<compile_context>
chip_gen: v7x
topology: tpu7x:2x2x1
jax: 0.10.0
libtpu: 0.0.40
codegen_flags: <defaults>
</compile_context>

<pallas_src>
import functools
import math

import jax
import jax.numpy as jnp
from jax.experimental import pallas as pl
from jax.experimental.pallas import tpu as pltpu

# ----------------------------- model config ---------------------------------
VOCAB_SRC = 16
VOCAB_TGT = 16
MAX_LEN = 32
EMB_DIM = 32           # embedding_dimension
FF_DIM = 128           # feedforward_dimension
N_HEADS = 2            # attention_heads
ENC_LAYERS = 2
DEC_LAYERS = 2
LN_EPS = 1e-5
NEG_INF = -1e30        # stand-in for -inf in the causal mask (softmax-safe)


# --------------------------- in-kernel helpers --------------------------------
def _dot(a, b):
    return jnp.dot(a, b, preferred_element_type=jnp.float32)


def _layernorm(x, g, b):
    mean = jnp.mean(x, axis=-1, keepdims=True)
    xc = x - mean
    var = jnp.mean(xc * xc, axis=-1, keepdims=True)
    return xc * jax.lax.rsqrt(var + LN_EPS) * g + b


def _softmax_rows(s):
    s = s - jnp.max(s, axis=-1, keepdims=True)
    p = jnp.exp(s)
    # reciprocal on the EUP slot (free next to the VPU work here)
    return p * pl.reciprocal(jnp.sum(p, axis=-1, keepdims=True), approx=True)


def _mha(x_q, x_kv, p, B, Lq, Lk, n_heads, causal, is_self_attn):
    """Multi-head attention on flattened (B*L, E) activations (all in VMEM)."""
    E = x_q.shape[-1]
    Dh = E // n_heads
    scale = 1.0 / math.sqrt(Dh)

    wqkv = p["wqkv"][...]          # (E, 3E) fused in-projection
    bqkv = p["bqkv"][...]          # (1, 3E)
    wo = p["wo"][...]              # (E, E)
    bo = p["bo"][...]              # (1, E)

    if is_self_attn:
        qkv = _dot(x_q, wqkv) + bqkv           # one MXU pass, N = 3E
        q = qkv[:, :E]
        k = qkv[:, E:2 * E]
        v = qkv[:, 2 * E:]
    else:
        q = _dot(x_q, wqkv[:, :E]) + bqkv[:, :E]
        kv = _dot(x_kv, wqkv[:, E:]) + bqkv[:, E:]
        k = kv[:, :E]
        v = kv[:, E:]

    if causal:
        row = jax.lax.broadcasted_iota(jnp.int32, (Lq, Lk), 0)
        col = jax.lax.broadcasted_iota(jnp.int32, (Lq, Lk), 1)

    batch_outs = []
    for b in range(B):                          # static Python unroll (B small)
        qb = q[b * Lq:(b + 1) * Lq, :]
        kb = k[b * Lk:(b + 1) * Lk, :]
        vb = v[b * Lk:(b + 1) * Lk, :]
        acc = bo                                # (1, E), broadcasts to (Lq, E)
        for h in range(n_heads):                # static head slices on the lane dim
            qh = qb[:, h * Dh:(h + 1) * Dh]
            kh = kb[:, h * Dh:(h + 1) * Dh]
            vh = vb[:, h * Dh:(h + 1) * Dh]
            # scores = qh @ kh^T  (contract on Dh; no explicit transpose)
            s = jax.lax.dot_general(qh, kh, (((1,), (1,)), ((), ())),
                                    preferred_element_type=jnp.float32) * scale
            if causal:
                s = jnp.where(col <= row, s, NEG_INF)
            attn = _softmax_rows(s)
            oh = _dot(attn, vh)                 # (Lq, Dh)
            # head merge == slice of the output projection (no concat/transpose)
            acc = acc + _dot(oh, wo[h * Dh:(h + 1) * Dh, :])
        batch_outs.append(acc)
    return jnp.concatenate(batch_outs, axis=0)  # (B*Lq, E)


def _ffn(x, p):
    h = jnp.maximum(_dot(x, p["ff_w1"][...]) + p["ff_b1"][...], 0.0)
    return _dot(h, p["ff_w2"][...]) + p["ff_b2"][...]


def _encoder_layer(x, p, B, L, n_heads):
    sa = _mha(x, x, p["self_attn"], B, L, L, n_heads,
              causal=False, is_self_attn=True)
    x = _layernorm(x + sa, p["ln1_g"][...], p["ln1_b"][...])
    ff = _ffn(x, p)
    x = _layernorm(x + ff, p["ln2_g"][...], p["ln2_b"][...])
    return x


def _decoder_layer(y, mem, p, B, Ly, Lx, n_heads):
    sa = _mha(y, y, p["self_attn"], B, Ly, Ly, n_heads,
              causal=True, is_self_attn=True)
    y = _layernorm(y + sa, p["ln1_g"][...], p["ln1_b"][...])
    ca = _mha(y, mem, p["cross_attn"], B, Ly, Lx, n_heads,
              causal=False, is_self_attn=False)
    y = _layernorm(y + ca, p["ln2_g"][...], p["ln2_b"][...])
    ff = _ffn(y, p)
    y = _layernorm(y + ff, p["ln3_g"][...], p["ln3_b"][...])
    return y


# ------------------------------ fused kernel ----------------------------------
def _transformer_kernel(treedef, B, Lx, Ly, n_heads, *refs):
    # refs = (param_leaf_refs..., src_ref, tgt_ref, out_ref)
    *param_refs, src_ref, tgt_ref, out_ref = refs
    p = jax.tree_util.tree_unflatten(treedef, list(param_refs))

    # ---------------- encoder ----------------
    mem = src_ref[...]                               # (B*Lx, E), stays in VMEM
    for lp in p["enc_layers"]:
        mem = _encoder_layer(mem, lp, B, Lx, n_heads)
    mem = _layernorm(mem, p["enc_norm_g"][...], p["enc_norm_b"][...])

    # ---------------- decoder ----------------
    out = tgt_ref[...]                               # (B*Ly, E)
    for lp in p["dec_layers"]:
        out = _decoder_layer(out, mem, lp, B, Ly, Lx, n_heads)
    out = _layernorm(out, p["dec_norm_g"][...], p["dec_norm_b"][...])

    # ------------- output projection ----------
    out_ref[...] = _dot(out, p["out_w"][...]) + p["out_b"][...]


def transformer_forward(params, X, Y):
    """X: (B, Lx) int32, Y: (B, Ly) int32 -> logits (B, Ly, VOCAB_TGT)."""
    B, Lx = X.shape
    Ly = Y.shape[1]
    E = params["src_emb"].shape[1]

    # TODO(synk): embedding-table gather + positional add stay in plain JAX glue.
    src = (jnp.take(params["src_emb"], X, axis=0)
           + params["pos_emb"][:Lx][None, :, :]).reshape(B * Lx, E)
    tgt = (jnp.take(params["tgt_emb"], Y, axis=0)
           + params["pos_emb"][:Ly][None, :, :]).reshape(B * Ly, E)

    kparams = {k: v for k, v in params.items()
               if k not in ("src_emb", "tgt_emb", "pos_emb")}
    leaves, treedef = jax.tree_util.tree_flatten(kparams)

    kernel = functools.partial(_transformer_kernel, treedef, B, Lx, Ly, N_HEADS)
    # Single invocation: every array fits VMEM with huge headroom, so no grid.
    # TODO(synk): at larger B, add a batch grid with "parallel" semantics (or
    # core_map) to use both TensorCores on v7x, and a bf16 matmul path.
    logits = pl.pallas_call(
        kernel,
        out_shape=jax.ShapeDtypeStruct((B * Ly, VOCAB_TGT), jnp.float32),
        compiler_params=pltpu.CompilerParams(vmem_limit_bytes=32 * 1024 * 1024),
    )(*leaves, src, tgt)
    return logits.reshape(B, Ly, VOCAB_TGT)


# ------------------------------ parameter init --------------------------------
def _init_linear(key, d_in, d_out):
    kw, kb = jax.random.split(key)
    w = jax.random.normal(kw, (d_in, d_out), jnp.float32) * (1.0 / math.sqrt(d_in))
    b = jax.random.normal(kb, (1, d_out), jnp.float32) * 0.01
    return w, b


def _init_attn(key, e):
    ks = jax.random.split(key, 2)
    wqkv, bqkv = _init_linear(ks[0], e, 3 * e)   # fused in-projection (E, 3E)
    wo, bo = _init_linear(ks[1], e, e)
    return dict(wqkv=wqkv, bqkv=bqkv, wo=wo, bo=bo)


def _init_enc_layer(key, e, f):
    ks = jax.random.split(key, 3)
    w1, b1 = _init_linear(ks[1], e, f)
    w2, b2 = _init_linear(ks[2], f, e)
    return dict(self_attn=_init_attn(ks[0], e),
                ff_w1=w1, ff_b1=b1, ff_w2=w2, ff_b2=b2,
                ln1_g=jnp.ones((1, e), jnp.float32), ln1_b=jnp.zeros((1, e), jnp.float32),
                ln2_g=jnp.ones((1, e), jnp.float32), ln2_b=jnp.zeros((1, e), jnp.float32))


def _init_dec_layer(key, e, f):
    ks = jax.random.split(key, 4)
    w1, b1 = _init_linear(ks[2], e, f)
    w2, b2 = _init_linear(ks[3], f, e)
    return dict(self_attn=_init_attn(ks[0], e),
                cross_attn=_init_attn(ks[1], e),
                ff_w1=w1, ff_b1=b1, ff_w2=w2, ff_b2=b2,
                ln1_g=jnp.ones((1, e), jnp.float32), ln1_b=jnp.zeros((1, e), jnp.float32),
                ln2_g=jnp.ones((1, e), jnp.float32), ln2_b=jnp.zeros((1, e), jnp.float32),
                ln3_g=jnp.ones((1, e), jnp.float32), ln3_b=jnp.zeros((1, e), jnp.float32))


def init_params(key):
    ks = jax.random.split(key, 6 + ENC_LAYERS + DEC_LAYERS)
    e = EMB_DIM
    out_w, out_b = _init_linear(ks[3], e, VOCAB_TGT)
    return dict(
        src_emb=jax.random.normal(ks[0], (VOCAB_SRC, e), jnp.float32) * 0.1,
        tgt_emb=jax.random.normal(ks[1], (VOCAB_TGT, e), jnp.float32) * 0.1,
        pos_emb=jax.random.normal(ks[2], (MAX_LEN, e), jnp.float32) * 0.1,
        out_w=out_w, out_b=out_b,
        enc_norm_g=jnp.ones((1, e), jnp.float32), enc_norm_b=jnp.zeros((1, e), jnp.float32),
        dec_norm_g=jnp.ones((1, e), jnp.float32), dec_norm_b=jnp.zeros((1, e), jnp.float32),
        enc_layers=[_init_enc_layer(ks[6 + i], e, FF_DIM) for i in range(ENC_LAYERS)],
        dec_layers=[_init_dec_layer(ks[6 + ENC_LAYERS + i], e, FF_DIM) for i in range(DEC_LAYERS)],
    )


# ------------------------------------ main ------------------------------------
if __name__ == "__main__":
    key = jax.random.PRNGKey(0)
    kp, kx, ky = jax.random.split(key, 3)
    params = init_params(kp)

    B, Lx, Ly = 2, 8, 8
    X = jax.random.randint(kx, (B, Lx), 0, VOCAB_SRC, dtype=jnp.int32)
    Y = jax.random.randint(ky, (B, Ly), 0, VOCAB_TGT, dtype=jnp.int32)

    fwd = jax.jit(transformer_forward)
    logits = fwd(params, X, Y)
    jax.block_until_ready(logits)

    assert logits.shape == (B, Ly, VOCAB_TGT)
    assert bool(jnp.all(jnp.isfinite(logits)))
    print("KERNEL_OK")
</pallas_src>

<mosaic_0001>
module attributes {stable_mosaic.version = 11 : i64} {
  func.func @_transformer_kernel(%arg0: memref<1x32xf32, #tpu.memory_space<vmem>>, %arg1: memref<1x96xf32, #tpu.memory_space<vmem>>, %arg2: memref<32x32xf32, #tpu.memory_space<vmem>>, %arg3: memref<32x96xf32, #tpu.memory_space<vmem>>, %arg4: memref<1x128xf32, #tpu.memory_space<vmem>>, %arg5: memref<1x32xf32, #tpu.memory_space<vmem>>, %arg6: memref<32x128xf32, #tpu.memory_space<vmem>>, %arg7: memref<128x32xf32, #tpu.memory_space<vmem>>, %arg8: memref<1x32xf32, #tpu.memory_space<vmem>>, %arg9: memref<1x32xf32, #tpu.memory_space<vmem>>, %arg10: memref<1x32xf32, #tpu.memory_space<vmem>>, %arg11: memref<1x32xf32, #tpu.memory_space<vmem>>, %arg12: memref<1x32xf32, #tpu.memory_space<vmem>>, %arg13: memref<1x32xf32, #tpu.memory_space<vmem>>, %arg14: memref<1x32xf32, #tpu.memory_space<vmem>>, %arg15: memref<1x96xf32, #tpu.memory_space<vmem>>, %arg16: memref<32x32xf32, #tpu.memory_space<vmem>>, %arg17: memref<32x96xf32, #tpu.memory_space<vmem>>, %arg18: memref<1x32xf32, #tpu.memory_space<vmem>>, %arg19: memref<1x96xf32, #tpu.memory_space<vmem>>, %arg20: memref<32x32xf32, #tpu.memory_space<vmem>>, %arg21: memref<32x96xf32, #tpu.memory_space<vmem>>, %arg22: memref<1x128xf32, #tpu.memory_space<vmem>>, %arg23: memref<1x32xf32, #tpu.memory_space<vmem>>, %arg24: memref<32x128xf32, #tpu.memory_space<vmem>>, %arg25: memref<128x32xf32, #tpu.memory_space<vmem>>, %arg26: memref<1x32xf32, #tpu.memory_space<vmem>>, %arg27: memref<1x32xf32, #tpu.memory_space<vmem>>, %arg28: memref<1x32xf32, #tpu.memory_space<vmem>>, %arg29: memref<1x32xf32, #tpu.memory_space<vmem>>, %arg30: memref<1x32xf32, #tpu.memory_space<vmem>>, %arg31: memref<1x32xf32, #tpu.memory_space<vmem>>, %arg32: memref<1x32xf32, #tpu.memory_space<vmem>>, %arg33: memref<1x96xf32, #tpu.memory_space<vmem>>, %arg34: memref<32x32xf32, #tpu.memory_space<vmem>>, %arg35: memref<32x96xf32, #tpu.memory_space<vmem>>, %arg36: memref<1x32xf32, #tpu.memory_space<vmem>>, %arg37: memref<1x32xf32, #tpu.memory_space<vmem>>, %arg38: memref<1x128xf32, #tpu.memory_space<vmem>>, %arg39: memref<1x32xf32, #tpu.memory_space<vmem>>, %arg40: memref<32x128xf32, #tpu.memory_space<vmem>>, %arg41: memref<128x32xf32, #tpu.memory_space<vmem>>, %arg42: memref<1x32xf32, #tpu.memory_space<vmem>>, %arg43: memref<1x32xf32, #tpu.memory_space<vmem>>, %arg44: memref<1x32xf32, #tpu.memory_space<vmem>>, %arg45: memref<1x32xf32, #tpu.memory_space<vmem>>, %arg46: memref<1x32xf32, #tpu.memory_space<vmem>>, %arg47: memref<1x96xf32, #tpu.memory_space<vmem>>, %arg48: memref<32x32xf32, #tpu.memory_space<vmem>>, %arg49: memref<32x96xf32, #tpu.memory_space<vmem>>, %arg50: memref<1x128xf32, #tpu.memory_space<vmem>>, %arg51: memref<1x32xf32, #tpu.memory_space<vmem>>, %arg52: memref<32x128xf32, #tpu.memory_space<vmem>>, %arg53: memref<128x32xf32, #tpu.memory_space<vmem>>, %arg54: memref<1x32xf32, #tpu.memory_space<vmem>>, %arg55: memref<1x32xf32, #tpu.memory_space<vmem>>, %arg56: memref<1x32xf32, #tpu.memory_space<vmem>>, %arg57: memref<1x32xf32, #tpu.memory_space<vmem>>, %arg58: memref<1x32xf32, #tpu.memory_space<vmem>>, %arg59: memref<1x96xf32, #tpu.memory_space<vmem>>, %arg60: memref<32x32xf32, #tpu.memory_space<vmem>>, %arg61: memref<32x96xf32, #tpu.memory_space<vmem>>, %arg62: memref<1x32xf32, #tpu.memory_space<vmem>>, %arg63: memref<1x32xf32, #tpu.memory_space<vmem>>, %arg64: memref<1x16xf32, #tpu.memory_space<vmem>>, %arg65: memref<32x16xf32, #tpu.memory_space<vmem>>, %arg66: memref<16x32xf32, #tpu.memory_space<vmem>>, %arg67: memref<16x32xf32, #tpu.memory_space<vmem>>, %arg68: memref<16x16xf32, #tpu.memory_space<vmem>>) attributes {dimension_semantics = [], scalar_prefetch = 0 : i64, scratch_operands = 0 : i64, tpu.core_type = #tpu.core_type<tc>} {
    %c0 = arith.constant 0 : index
    %c0_0 = arith.constant 0 : index
    %0 = vector.load %arg66[%c0, %c0_0] : memref<16x32xf32, #tpu.memory_space<vmem>>, vector<16x32xf32>
    %c0_1 = arith.constant 0 : index
    %c0_2 = arith.constant 0 : index
    %1 = vector.load %arg49[%c0_1, %c0_2] : memref<32x96xf32, #tpu.memory_space<vmem>>, vector<32x96xf32>
    %c0_3 = arith.constant 0 : index
    %c0_4 = arith.constant 0 : index
    %2 = vector.load %arg47[%c0_3, %c0_4] : memref<1x96xf32, #tpu.memory_space<vmem>>, vector<1x96xf32>
    %c0_5 = arith.constant 0 : index
    %c0_6 = arith.constant 0 : index
    %3 = vector.load %arg48[%c0_5, %c0_6] : memref<32x32xf32, #tpu.memory_space<vmem>>, vector<32x32xf32>
    %c0_7 = arith.constant 0 : index
    %c0_8 = arith.constant 0 : index
    %4 = vector.load %arg46[%c0_7, %c0_8] : memref<1x32xf32, #tpu.memory_space<vmem>>, vector<1x32xf32>
    %cst = arith.constant dense<0.000000e+00> : vector<16x96xf32>
    %5 = tpu.matmul %0, %1, %cst {dimension_numbers = #tpu.dot_dimension_numbers<[1], [0], [0], [1], [0, 0, 1, 1], [], []>} : vector<16x32xf32>, vector<32x96xf32>, vector<16x96xf32> -> vector<16x96xf32>
    %6 = vector.broadcast %2 : vector<1x96xf32> to vector<16x96xf32>
    %7 = arith.addf %5, %6 : vector<16x96xf32>
    %8 = vector.extract_strided_slice %7 {offsets = [0, 0], sizes = [16, 32], strides = [1, 1]} : vector<16x96xf32> to vector<16x32xf32>
    %9 = vector.extract_strided_slice %7 {offsets = [0, 32], sizes = [16, 32], strides = [1, 1]} : vector<16x96xf32> to vector<16x32xf32>
    %10 = vector.extract_strided_slice %7 {offsets = [0, 64], sizes = [16, 32], strides = [1, 1]} : vector<16x96xf32> to vector<16x32xf32>
    %11 = vector.extract_strided_slice %8 {offsets = [0, 0], sizes = [8, 32], strides = [1, 1]} : vector<16x32xf32> to vector<8x32xf32>
    %12 = vector.extract_strided_slice %9 {offsets = [0, 0], sizes = [8, 32], strides = [1, 1]} : vector<16x32xf32> to vector<8x32xf32>
    %13 = vector.extract_strided_slice %10 {offsets = [0, 0], sizes = [8, 32], strides = [1, 1]} : vector<16x32xf32> to vector<8x32xf32>
    %14 = vector.extract_strided_slice %11 {offsets = [0, 0], sizes = [8, 16], strides = [1, 1]} : vector<8x32xf32> to vector<8x16xf32>
    %15 = vector.extract_strided_slice %12 {offsets = [0, 0], sizes = [8, 16], strides = [1, 1]} : vector<8x32xf32> to vector<8x16xf32>
    %16 = vector.extract_strided_slice %13 {offsets = [0, 0], sizes = [8, 16], strides = [1, 1]} : vector<8x32xf32> to vector<8x16xf32>
    %cst_9 = arith.constant dense<0.000000e+00> : vector<8x8xf32>
    %17 = tpu.matmul %14, %15, %cst_9 {dimension_numbers = #tpu.dot_dimension_numbers<[1], [1], [0], [0], [0, 0, 1, 0], [], []>} : vector<8x16xf32>, vector<8x16xf32>, vector<8x8xf32> -> vector<8x8xf32>
    %cst_10 = arith.constant 2.500000e-01 : f32
    %18 = vector.broadcast %cst_10 : f32 to vector<8x8xf32>
    %19 = arith.mulf %17, %18 : vector<8x8xf32>
    %cst_11 = arith.constant dense<0xFF800000> : vector<8xf32>
    %20 = vector.multi_reduction <maximumf>, %19, %cst_11 [1] : vector<8x8xf32> to vector<8xf32>
    %21 = vector.shape_cast %20 : vector<8xf32> to vector<8x1xf32>
    %22 = vector.broadcast %21 : vector<8x1xf32> to vector<8x8xf32>
    %23 = arith.subf %19, %22 : vector<8x8xf32>
    %24 = math.exp %23 : vector<8x8xf32>
    %cst_12 = arith.constant dense<0.000000e+00> : vector<8xf32>
    %25 = vector.multi_reduction <add>, %24, %cst_12 [1] : vector<8x8xf32> to vector<8xf32>
    %26 = vector.shape_cast %25 : vector<8xf32> to vector<8x1xf32>
    %27 = tpu.reciprocal %26 {approx = true} : vector<8x1xf32> -> vector<8x1xf32>
    %28 = vector.broadcast %27 : vector<8x1xf32> to vector<8x8xf32>
    %29 = arith.mulf %24, %28 : vector<8x8xf32>
    %cst_13 = arith.constant dense<0.000000e+00> : vector<8x16xf32>
    %30 = tpu.matmul %29, %16, %cst_13 {dimension_numbers = #tpu.dot_dimension_numbers<[1], [0], [0], [1], [0, 0, 1, 1], [], []>} : vector<8x8xf32>, vector<8x16xf32>, vector<8x16xf32> -> vector<8x16xf32>
    %31 = vector.extract_strided_slice %3 {offsets = [0, 0], sizes = [16, 32], strides = [1, 1]} : vector<32x32xf32> to vector<16x32xf32>
    %cst_14 = arith.constant dense<0.000000e+00> : vector<8x32xf32>
    %32 = tpu.matmul %30, %31, %cst_14 {dimension_numbers = #tpu.dot_dimension_numbers<[1], [0], [0], [1], [0, 0, 1, 1], [], []>} : vector<8x16xf32>, vector<16x32xf32>, vector<8x32xf32> -> vector<8x32xf32>
    %33 = vector.broadcast %4 : vector<1x32xf32> to vector<8x32xf32>
    %34 = arith.addf %33, %32 : vector<8x32xf32>
    %35 = vector.extract_strided_slice %11 {offsets = [0, 16], sizes = [8, 16], strides = [1, 1]} : vector<8x32xf32> to vector<8x16xf32>
    %36 = vector.extract_strided_slice %12 {offsets = [0, 16], sizes = [8, 16], strides = [1, 1]} : vector<8x32xf32> to vector<8x16xf32>
    %37 = vector.extract_strided_slice %13 {offsets = [0, 16], sizes = [8, 16], strides = [1, 1]} : vector<8x32xf32> to vector<8x16xf32>
    %cst_15 = arith.constant dense<0.000000e+00> : vector<8x8xf32>
    %38 = tpu.matmul %35, %36, %cst_15 {dimension_numbers = #tpu.dot_dimension_numbers<[1], [1], [0], [0], [0, 0, 1, 0], [], []>} : vector<8x16xf32>, vector<8x16xf32>, vector<8x8xf32> -> vector<8x8xf32>
    %cst_16 = arith.constant 2.500000e-01 : f32
    %39 = vector.broadcast %cst_16 : f32 to vector<8x8xf32>
    %40 = arith.mulf %38, %39 : vector<8x8xf32>
    %cst_17 = arith.constant dense<0xFF800000> : vector<8xf32>
    %41 = vector.multi_reduction <maximumf>, %40, %cst_17 [1] : vector<8x8xf32> to vector<8xf32>
    %42 = vector.shape_cast %41 : vector<8xf32> to vector<8x1xf32>
    %43 = vector.broadcast %42 : vector<8x1xf32> to vector<8x8xf32>
    %44 = arith.subf %40, %43 : vector<8x8xf32>
    %45 = math.exp %44 : vector<8x8xf32>
    %cst_18 = arith.constant dense<0.000000e+00> : vector<8xf32>
    %46 = vector.multi_reduction <add>, %45, %cst_18 [1] : vector<8x8xf32> to vector<8xf32>
    %47 = vector.shape_cast %46 : vector<8xf32> to vector<8x1xf32>
    %48 = tpu.reciprocal %47 {approx = true} : vector<8x1xf32> -> vector<8x1xf32>
    %49 = vector.broadcast %48 : vector<8x1xf32> to vector<8x8xf32>
    %50 = arith.mulf %45, %49 : vector<8x8xf32>
    %cst_19 = arith.constant dense<0.000000e+00> : vector<8x16xf32>
    %51 = tpu.matmul %50, %37, %cst_19 {dimension_numbers = #tpu.dot_dimension_numbers<[1], [0], [0], [1], [0, 0, 1, 1], [], []>} : vector<8x8xf32>, vector<8x16xf32>, vector<8x16xf32> -> vector<8x16xf32>
    %52 = vector.extract_strided_slice %3 {offsets = [16, 0], sizes = [16, 32], strides = [1, 1]} : vector<32x32xf32> to vector<16x32xf32>
    %cst_20 = arith.constant dense<0.000000e+00> : vector<8x32xf32>
    %53 = tpu.matmul %51, %52, %cst_20 {dimension_numbers = #tpu.dot_dimension_numbers<[1], [0], [0], [1], [0, 0, 1, 1], [], []>} : vector<8x16xf32>, vector<16x32xf32>, vector<8x32xf32> -> vector<8x32xf32>
    %54 = arith.addf %34, %53 : vector<8x32xf32>
    %55 = vector.extract_strided_slice %8 {offsets = [8, 0], sizes = [8, 32], strides = [1, 1]} : vector<16x32xf32> to vector<8x32xf32>
    %56 = vector.extract_strided_slice %9 {offsets = [8, 0], sizes = [8, 32], strides = [1, 1]} : vector<16x32xf32> to vector<8x32xf32>
    %57 = vector.extract_strided_slice %10 {offsets = [8, 0], sizes = [8, 32], strides = [1, 1]} : vector<16x32xf32> to vector<8x32xf32>
    %58 = vector.extract_strided_slice %55 {offsets = [0, 0], sizes = [8, 16], strides = [1, 1]} : vector<8x32xf32> to vector<8x16xf32>
    %59 = vector.extract_strided_slice %56 {offsets = [0, 0], sizes = [8, 16], strides = [1, 1]} : vector<8x32xf32> to vector<8x16xf32>
    %60 = vector.extract_strided_slice %57 {offsets = [0, 0], sizes = [8, 16], strides = [1, 1]} : vector<8x32xf32> to vector<8x16xf32>
    %cst_21 = arith.constant dense<0.000000e+00> : vector<8x8xf32>
    %61 = tpu.matmul %58, %59, %cst_21 {dimension_numbers = #tpu.dot_dimension_numbers<[1], [1], [0], [0], [0, 0, 1, 0], [], []>} : vector<8x16xf32>, vector<8x16xf32>, vector<8x8xf32> -> vector<8x8xf32>
    %cst_22 = arith.constant 2.500000e-01 : f32
    %62 = vector.broadcast %cst_22 : f32 to vector<8x8xf32>
    %63 = arith.mulf %61, %62 : vector<8x8xf32>
    %cst_23 = arith.constant dense<0xFF800000> : vector<8xf32>
    %64 = vector.multi_reduction <maximumf>, %63, %cst_23 [1] : vector<8x8xf32> to vector<8xf32>
    %65 = vector.shape_cast %64 : vector<8xf32> to vector<8x1xf32>
    %66 = vector.broadcast %65 : vector<8x1xf32> to vector<8x8xf32>
    %67 = arith.subf %63, %66 : vector<8x8xf32>
    %68 = math.exp %67 : vector<8x8xf32>
    %cst_24 = arith.constant dense<0.000000e+00> : vector<8xf32>
    %69 = vector.multi_reduction <add>, %68, %cst_24 [1] : vector<8x8xf32> to vector<8xf32>
    %70 = vector.shape_cast %69 : vector<8xf32> to vector<8x1xf32>
    %71 = tpu.reciprocal %70 {approx = true} : vector<8x1xf32> -> vector<8x1xf32>
    %72 = vector.broadcast %71 : vector<8x1xf32> to vector<8x8xf32>
    %73 = arith.mulf %68, %72 : vector<8x8xf32>
    %cst_25 = arith.constant dense<0.000000e+00> : vector<8x16xf32>
    %74 = tpu.matmul %73, %60, %cst_25 {dimension_numbers = #tpu.dot_dimension_numbers<[1], [0], [0], [1], [0, 0, 1, 1], [], []>} : vector<8x8xf32>, vector<8x16xf32>, vector<8x16xf32> -> vector<8x16xf32>
    %75 = vector.extract_strided_slice %3 {offsets = [0, 0], sizes = [16, 32], strides = [1, 1]} : vector<32x32xf32> to vector<16x32xf32>
    %cst_26 = arith.constant dense<0.000000e+00> : vector<8x32xf32>
    %76 = tpu.matmul %74, %75, %cst_26 {dimension_numbers = #tpu.dot_dimension_numbers<[1], [0], [0], [1], [0, 0, 1, 1], [], []>} : vector<8x16xf32>, vector<16x32xf32>, vector<8x32xf32> -> vector<8x32xf32>
    %77 = vector.broadcast %4 : vector<1x32xf32> to vector<8x32xf32>
    %78 = arith.addf %77, %76 : vector<8x32xf32>
    %79 = vector.extract_strided_slice %55 {offsets = [0, 16], sizes = [8, 16], strides = [1, 1]} : vector<8x32xf32> to vector<8x16xf32>
    %80 = vector.extract_strided_slice %56 {offsets = [0, 16], sizes = [8, 16], strides = [1, 1]} : vector<8x32xf32> to vector<8x16xf32>
    %81 = vector.extract_strided_slice %57 {offsets = [0, 16], sizes = [8, 16], strides = [1, 1]} : vector<8x32xf32> to vector<8x16xf32>
    %cst_27 = arith.constant dense<0.000000e+00> : vector<8x8xf32>
    %82 = tpu.matmul %79, %80, %cst_27 {dimension_numbers = #tpu.dot_dimension_numbers<[1], [1], [0], [0], [0, 0, 1, 0], [], []>} : vector<8x16xf32>, vector<8x16xf32>, vector<8x8xf32> -> vector<8x8xf32>
    %cst_28 = arith.constant 2.500000e-01 : f32
    %83 = vector.broadcast %cst_28 : f32 to vector<8x8xf32>
    %84 = arith.mulf %82, %83 : vector<8x8xf32>
    %cst_29 = arith.constant dense<0xFF800000> : vector<8xf32>
    %85 = vector.multi_reduction <maximumf>, %84, %cst_29 [1] : vector<8x8xf32> to vector<8xf32>
    %86 = vector.shape_cast %85 : vector<8xf32> to vector<8x1xf32>
    %87 = vector.broadcast %86 : vector<8x1xf32> to vector<8x8xf32>
    %88 = arith.subf %84, %87 : vector<8x8xf32>
    %89 = math.exp %88 : vector<8x8xf32>
    %cst_30 = arith.constant dense<0.000000e+00> : vector<8xf32>
    %90 = vector.multi_reduction <add>, %89, %cst_30 [1] : vector<8x8xf32> to vector<8xf32>
    %91 = vector.shape_cast %90 : vector<8xf32> to vector<8x1xf32>
    %92 = tpu.reciprocal %91 {approx = true} : vector<8x1xf32> -> vector<8x1xf32>
    %93 = vector.broadcast %92 : vector<8x1xf32> to vector<8x8xf32>
    %94 = arith.mulf %89, %93 : vector<8x8xf32>
    %cst_31 = arith.constant dense<0.000000e+00> : vector<8x16xf32>
    %95 = tpu.matmul %94, %81, %cst_31 {dimension_numbers = #tpu.dot_dimension_numbers<[1], [0], [0], [1], [0, 0, 1, 1], [], []>} : vector<8x8xf32>, vector<8x16xf32>, vector<8x16xf32> -> vector<8x16xf32>
    %96 = vector.extract_strided_slice %3 {offsets = [16, 0], sizes = [16, 32], strides = [1, 1]} : vector<32x32xf32> to vector<16x32xf32>
    %cst_32 = arith.constant dense<0.000000e+00> : vector<8x32xf32>
    %97 = tpu.matmul %95, %96, %cst_32 {dimension_numbers = #tpu.dot_dimension_numbers<[1], [0], [0], [1], [0, 0, 1, 1], [], []>} : vector<8x16xf32>, vector<16x32xf32>, vector<8x32xf32> -> vector<8x32xf32>
    %98 = arith.addf %78, %97 : vector<8x32xf32>
    %99 = tpu.concatenate %54, %98 in 0 : vector<8x32xf32>, vector<8x32xf32> -> vector<16x32xf32>
    %100 = arith.addf %0, %99 : vector<16x32xf32>
    %c0_33 = arith.constant 0 : index
    %c0_34 = arith.constant 0 : index
    %101 = vector.load %arg43[%c0_33, %c0_34] : memref<1x32xf32, #tpu.memory_space<vmem>>, vector<1x32xf32>
    %c0_35 = arith.constant 0 : index
    %c0_36 = arith.constant 0 : index
    %102 = vector.load %arg42[%c0_35, %c0_36] : memref<1x32xf32, #tpu.memory_space<vmem>>, vector<1x32xf32>
    %cst_37 = arith.constant dense<0.000000e+00> : vector<16xf32>
    %103 = vector.multi_reduction <add>, %100, %cst_37 [1] : vector<16x32xf32> to vector<16xf32>
    %104 = vector.shape_cast %103 : vector<16xf32> to vector<16x1xf32>
    %cst_38 = arith.constant 3.200000e+01 : f32
    %105 = vector.broadcast %cst_38 : f32 to vector<16x1xf32>
    %106 = arith.divf %104, %105 : vector<16x1xf32>
    %107 = vector.broadcast %106 : vector<16x1xf32> to vector<16x32xf32>
    %108 = arith.subf %100, %107 : vector<16x32xf32>
    %109 = arith.mulf %108, %108 : vector<16x32xf32>
    %cst_39 = arith.constant dense<0.000000e+00> : vector<16xf32>
    %110 = vector.multi_reduction <add>, %109, %cst_39 [1] : vector<16x32xf32> to vector<16xf32>
    %111 = vector.shape_cast %110 : vector<16xf32> to vector<16x1xf32>
    %cst_40 = arith.constant 3.200000e+01 : f32
    %112 = vector.broadcast %cst_40 : f32 to vector<16x1xf32>
    %113 = arith.divf %111, %112 : vector<16x1xf32>
    %cst_41 = arith.constant 9.99999974E-6 : f32
    %114 = vector.broadcast %cst_41 : f32 to vector<16x1xf32>
    %115 = arith.addf %113, %114 : vector<16x1xf32>
    %116 = math.rsqrt %115 : vector<16x1xf32>
    %117 = vector.broadcast %116 : vector<16x1xf32> to vector<16x32xf32>
    %118 = arith.mulf %108, %117 : vector<16x32xf32>
    %119 = vector.broadcast %101 : vector<1x32xf32> to vector<16x32xf32>
    %120 = arith.mulf %118, %119 : vector<16x32xf32>
    %121 = vector.broadcast %102 : vector<1x32xf32> to vector<16x32xf32>
    %122 = arith.addf %120, %121 : vector<16x32xf32>
    %c0_42 = arith.constant 0 : index
    %c0_43 = arith.constant 0 : index
    %123 = vector.load %arg40[%c0_42, %c0_43] : memref<32x128xf32, #tpu.memory_space<vmem>>, vector<32x128xf32>
    %cst_44 = arith.constant dense<0.000000e+00> : vector<16x128xf32>
    %124 = tpu.matmul %122, %123, %cst_44 {dimension_numbers = #tpu.dot_dimension_numbers<[1], [0], [0], [1], [0, 0, 1, 1], [], []>} : vector<16x32xf32>, vector<32x128xf32>, vector<16x128xf32> -> vector<16x128xf32>
    %c0_45 = arith.constant 0 : index
    %c0_46 = arith.constant 0 : index
    %125 = vector.load %arg38[%c0_45, %c0_46] : memref<1x128xf32, #tpu.memory_space<vmem>>, vector<1x128xf32>
    %126 = vector.broadcast %125 : vector<1x128xf32> to vector<16x128xf32>
    %127 = arith.addf %124, %126 : vector<16x128xf32>
    %cst_47 = arith.constant 0.000000e+00 : f32
    %128 = vector.broadcast %cst_47 : f32 to vector<16x128xf32>
    %129 = arith.maximumf %127, %128 : vector<16x128xf32>
    %c0_48 = arith.constant 0 : index
    %c0_49 = arith.constant 0 : index
    %130 = vector.load %arg41[%c0_48, %c0_49] : memref<128x32xf32, #tpu.memory_space<vmem>>, vector<128x32xf32>
    %cst_50 = arith.constant dense<0.000000e+00> : vector<16x32xf32>
    %131 = tpu.matmul %129, %130, %cst_50 {dimension_numbers = #tpu.dot_dimension_numbers<[1], [0], [0], [1], [0, 0, 1, 1], [], []>} : vector<16x128xf32>, vector<128x32xf32>, vector<16x32xf32> -> vector<16x32xf32>
    %c0_51 = arith.constant 0 : index
    %c0_52 = arith.constant 0 : index
    %132 = vector.load %arg39[%c0_51, %c0_52] : memref<1x32xf32, #tpu.memory_space<vmem>>, vector<1x32xf32>
    %133 = vector.broadcast %132 : vector<1x32xf32> to vector<16x32xf32>
    %134 = arith.addf %131, %133 : vector<16x32xf32>
    %135 = arith.addf %122, %134 : vector<16x32xf32>
    %c0_53 = arith.constant 0 : index
    %c0_54 = arith.constant 0 : index
    %136 = vector.load %arg45[%c0_53, %c0_54] : memref<1x32xf32, #tpu.memory_space<vmem>>, vector<1x32xf32>
    %c0_55 = arith.constant 0 : index
    %c0_56 = arith.constant 0 : index
    %137 = vector.load %arg44[%c0_55, %c0_56] : memref<1x32xf32, #tpu.memory_space<vmem>>, vector<1x32xf32>
    %cst_57 = arith.constant dense<0.000000e+00> : vector<16xf32>
    %138 = vector.multi_reduction <add>, %135, %cst_57 [1] : vector<16x32xf32> to vector<16xf32>
    %139 = vector.shape_cast %138 : vector<16xf32> to vector<16x1xf32>
    %cst_58 = arith.constant 3.200000e+01 : f32
    %140 = vector.broadcast %cst_58 : f32 to vector<16x1xf32>
    %141 = arith.divf %139, %140 : vector<16x1xf32>
    %142 = vector.broadcast %141 : vector<16x1xf32> to vector<16x32xf32>
    %143 = arith.subf %135, %142 : vector<16x32xf32>
    %144 = arith.mulf %143, %143 : vector<16x32xf32>
    %cst_59 = arith.constant dense<0.000000e+00> : vector<16xf32>
    %145 = vector.multi_reduction <add>, %144, %cst_59 [1] : vector<16x32xf32> to vector<16xf32>
    %146 = vector.shape_cast %145 : vector<16xf32> to vector<16x1xf32>
    %cst_60 = arith.constant 3.200000e+01 : f32
    %147 = vector.broadcast %cst_60 : f32 to vector<16x1xf32>
    %148 = arith.divf %146, %147 : vector<16x1xf32>
    %cst_61 = arith.constant 9.99999974E-6 : f32
    %149 = vector.broadcast %cst_61 : f32 to vector<16x1xf32>
    %150 = arith.addf %148, %149 : vector<16x1xf32>
    %151 = math.rsqrt %150 : vector<16x1xf32>
    %152 = vector.broadcast %151 : vector<16x1xf32> to vector<16x32xf32>
    %153 = arith.mulf %143, %152 : vector<16x32xf32>
    %154 = vector.broadcast %136 : vector<1x32xf32> to vector<16x32xf32>
    %155 = arith.mulf %153, %154 : vector<16x32xf32>
    %156 = vector.broadcast %137 : vector<1x32xf32> to vector<16x32xf32>
    %157 = arith.addf %155, %156 : vector<16x32xf32>
    %c0_62 = arith.constant 0 : index
    %c0_63 = arith.constant 0 : index
    %158 = vector.load %arg61[%c0_62, %c0_63] : memref<32x96xf32, #tpu.memory_space<vmem>>, vector<32x96xf32>
    %c0_64 = arith.constant 0 : index
    %c0_65 = arith.constant 0 : index
    %159 = vector.load %arg59[%c0_64, %c0_65] : memref<1x96xf32, #tpu.memory_space<vmem>>, vector<1x96xf32>
    %c0_66 = arith.constant 0 : index
    %c0_67 = arith.constant 0 : index
    %160 = vector.load %arg60[%c0_66, %c0_67] : memref<32x32xf32, #tpu.memory_space<vmem>>, vector<32x32xf32>
    %c0_68 = arith.constant 0 : index
    %c0_69 = arith.constant 0 : index
    %161 = vector.load %arg58[%c0_68, %c0_69] : memref<1x32xf32, #tpu.memory_space<vmem>>, vector<1x32xf32>
    %cst_70 = arith.constant dense<0.000000e+00> : vector<16x96xf32>
    %162 = tpu.matmul %157, %158, %cst_70 {dimension_numbers = #tpu.dot_dimension_numbers<[1], [0], [0], [1], [0, 0, 1, 1], [], []>} : vector<16x32xf32>, vector<32x96xf32>, vector<16x96xf32> -> vector<16x96xf32>
    %163 = vector.broadcast %159 : vector<1x96xf32> to vector<16x96xf32>
    %164 = arith.addf %162, %163 : vector<16x96xf32>
    %165 = vector.extract_strided_slice %164 {offsets = [0, 0], sizes = [16, 32], strides = [1, 1]} : vector<16x96xf32> to vector<16x32xf32>
    %166 = vector.extract_strided_slice %164 {offsets = [0, 32], sizes = [16, 32], strides = [1, 1]} : vector<16x96xf32> to vector<16x32xf32>
    %167 = vector.extract_strided_slice %164 {offsets = [0, 64], sizes = [16, 32], strides = [1, 1]} : vector<16x96xf32> to vector<16x32xf32>
    %168 = vector.extract_strided_slice %165 {offsets = [0, 0], sizes = [8, 32], strides = [1, 1]} : vector<16x32xf32> to vector<8x32xf32>
    %169 = vector.extract_strided_slice %166 {offsets = [0, 0], sizes = [8, 32], strides = [1, 1]} : vector<16x32xf32> to vector<8x32xf32>
    %170 = vector.extract_strided_slice %167 {offsets = [0, 0], sizes = [8, 32], strides = [1, 1]} : vector<16x32xf32> to vector<8x32xf32>
    %171 = vector.extract_strided_slice %168 {offsets = [0, 0], sizes = [8, 16], strides = [1, 1]} : vector<8x32xf32> to vector<8x16xf32>
    %172 = vector.extract_strided_slice %169 {offsets = [0, 0], sizes = [8, 16], strides = [1, 1]} : vector<8x32xf32> to vector<8x16xf32>
    %173 = vector.extract_strided_slice %170 {offsets = [0, 0], sizes = [8, 16], strides = [1, 1]} : vector<8x32xf32> to vector<8x16xf32>
    %cst_71 = arith.constant dense<0.000000e+00> : vector<8x8xf32>
    %174 = tpu.matmul %171, %172, %cst_71 {dimension_numbers = #tpu.dot_dimension_numbers<[1], [1], [0], [0], [0, 0, 1, 0], [], []>} : vector<8x16xf32>, vector<8x16xf32>, vector<8x8xf32> -> vector<8x8xf32>
    %cst_72 = arith.constant 2.500000e-01 : f32
    %175 = vector.broadcast %cst_72 : f32 to vector<8x8xf32>
    %176 = arith.mulf %174, %175 : vector<8x8xf32>
    %cst_73 = arith.constant dense<0xFF800000> : vector<8xf32>
    %177 = vector.multi_reduction <maximumf>, %176, %cst_73 [1] : vector<8x8xf32> to vector<8xf32>
    %178 = vector.shape_cast %177 : vector<8xf32> to vector<8x1xf32>
    %179 = vector.broadcast %178 : vector<8x1xf32> to vector<8x8xf32>
    %180 = arith.subf %176, %179 : vector<8x8xf32>
    %181 = math.exp %180 : vector<8x8xf32>
    %cst_74 = arith.constant dense<0.000000e+00> : vector<8xf32>
    %182 = vector.multi_reduction <add>, %181, %cst_74 [1] : vector<8x8xf32> to vector<8xf32>
    %183 = vector.shape_cast %182 : vector<8xf32> to vector<8x1xf32>
    %184 = tpu.reciprocal %183 {approx = true} : vector<8x1xf32> -> vector<8x1xf32>
    %185 = vector.broadcast %184 : vector<8x1xf32> to vector<8x8xf32>
    %186 = arith.mulf %181, %185 : vector<8x8xf32>
    %cst_75 = arith.constant dense<0.000000e+00> : vector<8x16xf32>
    %187 = tpu.matmul %186, %173, %cst_75 {dimension_numbers = #tpu.dot_dimension_numbers<[1], [0], [0], [1], [0, 0, 1, 1], [], []>} : vector<8x8xf32>, vector<8x16xf32>, vector<8x16xf32> -> vector<8x16xf32>
    %188 = vector.extract_strided_slice %160 {offsets = [0, 0], sizes = [16, 32], strides = [1, 1]} : vector<32x32xf32> to vector<16x32xf32>
    %cst_76 = arith.constant dense<0.000000e+00> : vector<8x32xf32>
    %189 = tpu.matmul %187, %188, %cst_76 {dimension_numbers = #tpu.dot_dimension_numbers<[1], [0], [0], [1], [0, 0, 1, 1], [], []>} : vector<8x16xf32>, vector<16x32xf32>, vector<8x32xf32> -> vector<8x32xf32>
    %190 = vector.broadcast %161 : vector<1x32xf32> to vector<8x32xf32>
    %191 = arith.addf %190, %189 : vector<8x32xf32>
    %192 = vector.extract_strided_slice %168 {offsets = [0, 16], sizes = [8, 16], strides = [1, 1]} : vector<8x32xf32> to vector<8x16xf32>
    %193 = vector.extract_strided_slice %169 {offsets = [0, 16], sizes = [8, 16], strides = [1, 1]} : vector<8x32xf32> to vector<8x16xf32>
    %194 = vector.extract_strided_slice %170 {offsets = [0, 16], sizes = [8, 16], strides = [1, 1]} : vector<8x32xf32> to vector<8x16xf32>
    %cst_77 = arith.constant dense<0.000000e+00> : vector<8x8xf32>
    %195 = tpu.matmul %192, %193, %cst_77 {dimension_numbers = #tpu.dot_dimension_numbers<[1], [1], [0], [0], [0, 0, 1, 0], [], []>} : vector<8x16xf32>, vector<8x16xf32>, vector<8x8xf32> -> vector<8x8xf32>
    %cst_78 = arith.constant 2.500000e-01 : f32
    %196 = vector.broadcast %cst_78 : f32 to vector<8x8xf32>
    %197 = arith.mulf %195, %196 : vector<8x8xf32>
    %cst_79 = arith.constant dense<0xFF800000> : vector<8xf32>
    %198 = vector.multi_reduction <maximumf>, %197, %cst_79 [1] : vector<8x8xf32> to vector<8xf32>
    %199 = vector.shape_cast %198 : vector<8xf32> to vector<8x1xf32>
    %200 = vector.broadcast %199 : vector<8x1xf32> to vector<8x8xf32>
    %201 = arith.subf %197, %200 : vector<8x8xf32>
    %202 = math.exp %201 : vector<8x8xf32>
    %cst_80 = arith.constant dense<0.000000e+00> : vector<8xf32>
    %203 = vector.multi_reduction <add>, %202, %cst_80 [1] : vector<8x8xf32> to vector<8xf32>
    %204 = vector.shape_cast %203 : vector<8xf32> to vector<8x1xf32>
    %205 = tpu.reciprocal %204 {approx = true} : vector<8x1xf32> -> vector<8x1xf32>
    %206 = vector.broadcast %205 : vector<8x1xf32> to vector<8x8xf32>
    %207 = arith.mulf %202, %206 : vector<8x8xf32>
    %cst_81 = arith.constant dense<0.000000e+00> : vector<8x16xf32>
    %208 = tpu.matmul %207, %194, %cst_81 {dimension_numbers = #tpu.dot_dimension_numbers<[1], [0], [0], [1], [0, 0, 1, 1], [], []>} : vector<8x8xf32>, vector<8x16xf32>, vector<8x16xf32> -> vector<8x16xf32>
    %209 = vector.extract_strided_slice %160 {offsets = [16, 0], sizes = [16, 32], strides = [1, 1]} : vector<32x32xf32> to vector<16x32xf32>
    %cst_82 = arith.constant dense<0.000000e+00> : vector<8x32xf32>
    %210 = tpu.matmul %208, %209, %cst_82 {dimension_numbers = #tpu.dot_dimension_numbers<[1], [0], [0], [1], [0, 0, 1, 1], [], []>} : vector<8x16xf32>, vector<16x32xf32>, vector<8x32xf32> -> vector<8x32xf32>
    %211 = arith.addf %191, %210 : vector<8x32xf32>
    %212 = vector.extract_strided_slice %165 {offsets = [8, 0], sizes = [8, 32], strides = [1, 1]} : vector<16x32xf32> to vector<8x32xf32>
    %213 = vector.extract_strided_slice %166 {offsets = [8, 0], sizes = [8, 32], strides = [1, 1]} : vector<16x32xf32> to vector<8x32xf32>
    %214 = vector.extract_strided_slice %167 {offsets = [8, 0], sizes = [8, 32], strides = [1, 1]} : vector<16x32xf32> to vector<8x32xf32>
    %215 = vector.extract_strided_slice %212 {offsets = [0, 0], sizes = [8, 16], strides = [1, 1]} : vector<8x32xf32> to vector<8x16xf32>
    %216 = vector.extract_strided_slice %213 {offsets = [0, 0], sizes = [8, 16], strides = [1, 1]} : vector<8x32xf32> to vector<8x16xf32>
    %217 = vector.extract_strided_slice %214 {offsets = [0, 0], sizes = [8, 16], strides = [1, 1]} : vector<8x32xf32> to vector<8x16xf32>
    %cst_83 = arith.constant dense<0.000000e+00> : vector<8x8xf32>
    %218 = tpu.matmul %215, %216, %cst_83 {dimension_numbers = #tpu.dot_dimension_numbers<[1], [1], [0], [0], [0, 0, 1, 0], [], []>} : vector<8x16xf32>, vector<8x16xf32>, vector<8x8xf32> -> vector<8x8xf32>
    %cst_84 = arith.constant 2.500000e-01 : f32
    %219 = vector.broadcast %cst_84 : f32 to vector<8x8xf32>
    %220 = arith.mulf %218, %219 : vector<8x8xf32>
    %cst_85 = arith.constant dense<0xFF800000> : vector<8xf32>
    %221 = vector.multi_reduction <maximumf>, %220, %cst_85 [1] : vector<8x8xf32> to vector<8xf32>
    %222 = vector.shape_cast %221 : vector<8xf32> to vector<8x1xf32>
    %223 = vector.broadcast %222 : vector<8x1xf32> to vector<8x8xf32>
    %224 = arith.subf %220, %223 : vector<8x8xf32>
    %225 = math.exp %224 : vector<8x8xf32>
    %cst_86 = arith.constant dense<0.000000e+00> : vector<8xf32>
    %226 = vector.multi_reduction <add>, %225, %cst_86 [1] : vector<8x8xf32> to vector<8xf32>
    %227 = vector.shape_cast %226 : vector<8xf32> to vector<8x1xf32>
    %228 = tpu.reciprocal %227 {approx = true} : vector<8x1xf32> -> vector<8x1xf32>
    %229 = vector.broadcast %228 : vector<8x1xf32> to vector<8x8xf32>
    %230 = arith.mulf %225, %229 : vector<8x8xf32>
    %cst_87 = arith.constant dense<0.000000e+00> : vector<8x16xf32>
    %231 = tpu.matmul %230, %217, %cst_87 {dimension_numbers = #tpu.dot_dimension_numbers<[1], [0], [0], [1], [0, 0, 1, 1], [], []>} : vector<8x8xf32>, vector<8x16xf32>, vector<8x16xf32> -> vector<8x16xf32>
    %232 = vector.extract_strided_slice %160 {offsets = [0, 0], sizes = [16, 32], strides = [1, 1]} : vector<32x32xf32> to vector<16x32xf32>
    %cst_88 = arith.constant dense<0.000000e+00> : vector<8x32xf32>
    %233 = tpu.matmul %231, %232, %cst_88 {dimension_numbers = #tpu.dot_dimension_numbers<[1], [0], [0], [1], [0, 0, 1, 1], [], []>} : vector<8x16xf32>, vector<16x32xf32>, vector<8x32xf32> -> vector<8x32xf32>
    %234 = vector.broadcast %161 : vector<1x32xf32> to vector<8x32xf32>
    %235 = arith.addf %234, %233 : vector<8x32xf32>
    %236 = vector.extract_strided_slice %212 {offsets = [0, 16], sizes = [8, 16], strides = [1, 1]} : vector<8x32xf32> to vector<8x16xf32>
    %237 = vector.extract_strided_slice %213 {offsets = [0, 16], sizes = [8, 16], strides = [1, 1]} : vector<8x32xf32> to vector<8x16xf32>
    %238 = vector.extract_strided_slice %214 {offsets = [0, 16], sizes = [8, 16], strides = [1, 1]} : vector<8x32xf32> to vector<8x16xf32>
    %cst_89 = arith.constant dense<0.000000e+00> : vector<8x8xf32>
    %239 = tpu.matmul %236, %237, %cst_89 {dimension_numbers = #tpu.dot_dimension_numbers<[1], [1], [0], [0], [0, 0, 1, 0], [], []>} : vector<8x16xf32>, vector<8x16xf32>, vector<8x8xf32> -> vector<8x8xf32>
    %cst_90 = arith.constant 2.500000e-01 : f32
    %240 = vector.broadcast %cst_90 : f32 to vector<8x8xf32>
    %241 = arith.mulf %239, %240 : vector<8x8xf32>
    %cst_91 = arith.constant dense<0xFF800000> : vector<8xf32>
    %242 = vector.multi_reduction <maximumf>, %241, %cst_91 [1] : vector<8x8xf32> to vector<8xf32>
    %243 = vector.shape_cast %242 : vector<8xf32> to vector<8x1xf32>
    %244 = vector.broadcast %243 : vector<8x1xf32> to vector<8x8xf32>
    %245 = arith.subf %241, %244 : vector<8x8xf32>
    %246 = math.exp %245 : vector<8x8xf32>
    %cst_92 = arith.constant dense<0.000000e+00> : vector<8xf32>
    %247 = vector.multi_reduction <add>, %246, %cst_92 [1] : vector<8x8xf32> to vector<8xf32>
    %248 = vector.shape_cast %247 : vector<8xf32> to vector<8x1xf32>
    %249 = tpu.reciprocal %248 {approx = true} : vector<8x1xf32> -> vector<8x1xf32>
    %250 = vector.broadcast %249 : vector<8x1xf32> to vector<8x8xf32>
    %251 = arith.mulf %246, %250 : vector<8x8xf32>
    %cst_93 = arith.constant dense<0.000000e+00> : vector<8x16xf32>
    %252 = tpu.matmul %251, %238, %cst_93 {dimension_numbers = #tpu.dot_dimension_numbers<[1], [0], [0], [1], [0, 0, 1, 1], [], []>} : vector<8x8xf32>, vector<8x16xf32>, vector<8x16xf32> -> vector<8x16xf32>
    %253 = vector.extract_strided_slice %160 {offsets = [16, 0], sizes = [16, 32], strides = [1, 1]} : vector<32x32xf32> to vector<16x32xf32>
    %cst_94 = arith.constant dense<0.000000e+00> : vector<8x32xf32>
    %254 = tpu.matmul %252, %253, %cst_94 {dimension_numbers = #tpu.dot_dimension_numbers<[1], [0], [0], [1], [0, 0, 1, 1], [], []>} : vector<8x16xf32>, vector<16x32xf32>, vector<8x32xf32> -> vector<8x32xf32>
    %255 = arith.addf %235, %254 : vector<8x32xf32>
    %256 = tpu.concatenate %211, %255 in 0 : vector<8x32xf32>, vector<8x32xf32> -> vector<16x32xf32>
    %257 = arith.addf %157, %256 : vector<16x32xf32>
    %c0_95 = arith.constant 0 : index
    %c0_96 = arith.constant 0 : index
    %258 = vector.load %arg55[%c0_95, %c0_96] : memref<1x32xf32, #tpu.memory_space<vmem>>, vector<1x32xf32>
    %c0_97 = arith.constant 0 : index
    %c0_98 = arith.constant 0 : index
    %259 = vector.load %arg54[%c0_97, %c0_98] : memref<1x32xf32, #tpu.memory_space<vmem>>, vector<1x32xf32>
    %cst_99 = arith.constant dense<0.000000e+00> : vector<16xf32>
    %260 = vector.multi_reduction <add>, %257, %cst_99 [1] : vector<16x32xf32> to vector<16xf32>
    %261 = vector.shape_cast %260 : vector<16xf32> to vector<16x1xf32>
    %cst_100 = arith.constant 3.200000e+01 : f32
    %262 = vector.broadcast %cst_100 : f32 to vector<16x1xf32>
    %263 = arith.divf %261, %262 : vector<16x1xf32>
    %264 = vector.broadcast %263 : vector<16x1xf32> to vector<16x32xf32>
    %265 = arith.subf %257, %264 : vector<16x32xf32>
    %266 = arith.mulf %265, %265 : vector<16x32xf32>
    %cst_101 = arith.constant dense<0.000000e+00> : vector<16xf32>
    %267 = vector.multi_reduction <add>, %266, %cst_101 [1] : vector<16x32xf32> to vector<16xf32>
    %268 = vector.shape_cast %267 : vector<16xf32> to vector<16x1xf32>
    %cst_102 = arith.constant 3.200000e+01 : f32
    %269 = vector.broadcast %cst_102 : f32 to vector<16x1xf32>
    %270 = arith.divf %268, %269 : vector<16x1xf32>
    %cst_103 = arith.constant 9.99999974E-6 : f32
    %271 = vector.broadcast %cst_103 : f32 to vector<16x1xf32>
    %272 = arith.addf %270, %271 : vector<16x1xf32>
    %273 = math.rsqrt %272 : vector<16x1xf32>
    %274 = vector.broadcast %273 : vector<16x1xf32> to vector<16x32xf32>
    %275 = arith.mulf %265, %274 : vector<16x32xf32>
    %276 = vector.broadcast %258 : vector<1x32xf32> to vector<16x32xf32>
    %277 = arith.mulf %275, %276 : vector<16x32xf32>
    %278 = vector.broadcast %259 : vector<1x32xf32> to vector<16x32xf32>
    %279 = arith.addf %277, %278 : vector<16x32xf32>
    %c0_104 = arith.constant 0 : index
    %c0_105 = arith.constant 0 : index
    %280 = vector.load %arg52[%c0_104, %c0_105] : memref<32x128xf32, #tpu.memory_space<vmem>>, vector<32x128xf32>
    %cst_106 = arith.constant dense<0.000000e+00> : vector<16x128xf32>
    %281 = tpu.matmul %279, %280, %cst_106 {dimension_numbers = #tpu.dot_dimension_numbers<[1], [0], [0], [1], [0, 0, 1, 1], [], []>} : vector<16x32xf32>, vector<32x128xf32>, vector<16x128xf32> -> vector<16x128xf32>
    %c0_107 = arith.constant 0 : index
    %c0_108 = arith.constant 0 : index
    %282 = vector.load %arg50[%c0_107, %c0_108] : memref<1x128xf32, #tpu.memory_space<vmem>>, vector<1x128xf32>
    %283 = vector.broadcast %282 : vector<1x128xf32> to vector<16x128xf32>
    %284 = arith.addf %281, %283 : vector<16x128xf32>
    %cst_109 = arith.constant 0.000000e+00 : f32
    %285 = vector.broadcast %cst_109 : f32 to vector<16x128xf32>
    %286 = arith.maximumf %284, %285 : vector<16x128xf32>
    %c0_110 = arith.constant 0 : index
    %c0_111 = arith.constant 0 : index
    %287 = vector.load %arg53[%c0_110, %c0_111] : memref<128x32xf32, #tpu.memory_space<vmem>>, vector<128x32xf32>
    %cst_112 = arith.constant dense<0.000000e+00> : vector<16x32xf32>
    %288 = tpu.matmul %286, %287, %cst_112 {dimension_numbers = #tpu.dot_dimension_numbers<[1], [0], [0], [1], [0, 0, 1, 1], [], []>} : vector<16x128xf32>, vector<128x32xf32>, vector<16x32xf32> -> vector<16x32xf32>
    %c0_113 = arith.constant 0 : index
    %c0_114 = arith.constant 0 : index
    %289 = vector.load %arg51[%c0_113, %c0_114] : memref<1x32xf32, #tpu.memory_space<vmem>>, vector<1x32xf32>
    %290 = vector.broadcast %289 : vector<1x32xf32> to vector<16x32xf32>
    %291 = arith.addf %288, %290 : vector<16x32xf32>
    %292 = arith.addf %279, %291 : vector<16x32xf32>
    %c0_115 = arith.constant 0 : index
    %c0_116 = arith.constant 0 : index
    %293 = vector.load %arg57[%c0_115, %c0_116] : memref<1x32xf32, #tpu.memory_space<vmem>>, vector<1x32xf32>
    %c0_117 = arith.constant 0 : index
    %c0_118 = arith.constant 0 : index
    %294 = vector.load %arg56[%c0_117, %c0_118] : memref<1x32xf32, #tpu.memory_space<vmem>>, vector<1x32xf32>
    %cst_119 = arith.constant dense<0.000000e+00> : vector<16xf32>
    %295 = vector.multi_reduction <add>, %292, %cst_119 [1] : vector<16x32xf32> to vector<16xf32>
    %296 = vector.shape_cast %295 : vector<16xf32> to vector<16x1xf32>
    %cst_120 = arith.constant 3.200000e+01 : f32
    %297 = vector.broadcast %cst_120 : f32 to vector<16x1xf32>
    %298 = arith.divf %296, %297 : vector<16x1xf32>
    %299 = vector.broadcast %298 : vector<16x1xf32> to vector<16x32xf32>
    %300 = arith.subf %292, %299 : vector<16x32xf32>
    %301 = arith.mulf %300, %300 : vector<16x32xf32>
    %cst_121 = arith.constant dense<0.000000e+00> : vector<16xf32>
    %302 = vector.multi_reduction <add>, %301, %cst_121 [1] : vector<16x32xf32> to vector<16xf32>
    %303 = vector.shape_cast %302 : vector<16xf32> to vector<16x1xf32>
    %cst_122 = arith.constant 3.200000e+01 : f32
    %304 = vector.broadcast %cst_122 : f32 to vector<16x1xf32>
    %305 = arith.divf %303, %304 : vector<16x1xf32>
    %cst_123 = arith.constant 9.99999974E-6 : f32
    %306 = vector.broadcast %cst_123 : f32 to vector<16x1xf32>
    %307 = arith.addf %305, %306 : vector<16x1xf32>
    %308 = math.rsqrt %307 : vector<16x1xf32>
    %309 = vector.broadcast %308 : vector<16x1xf32> to vector<16x32xf32>
    %310 = arith.mulf %300, %309 : vector<16x32xf32>
    %311 = vector.broadcast %293 : vector<1x32xf32> to vector<16x32xf32>
    %312 = arith.mulf %310, %311 : vector<16x32xf32>
    %313 = vector.broadcast %294 : vector<1x32xf32> to vector<16x32xf32>
    %314 = arith.addf %312, %313 : vector<16x32xf32>
    %c0_124 = arith.constant 0 : index
    %c0_125 = arith.constant 0 : index
    %315 = vector.load %arg63[%c0_124, %c0_125] : memref<1x32xf32, #tpu.memory_space<vmem>>, vector<1x32xf32>
    %c0_126 = arith.constant 0 : index
    %c0_127 = arith.constant 0 : index
    %316 = vector.load %arg62[%c0_126, %c0_127] : memref<1x32xf32, #tpu.memory_space<vmem>>, vector<1x32xf32>
    %cst_128 = arith.constant dense<0.000000e+00> : vector<16xf32>
    %317 = vector.multi_reduction <add>, %314, %cst_128 [1] : vector<16x32xf32> to vector<16xf32>
    %318 = vector.shape_cast %317 : vector<16xf32> to vector<16x1xf32>
    %cst_129 = arith.constant 3.200000e+01 : f32
    %319 = vector.broadcast %cst_129 : f32 to vector<16x1xf32>
    %320 = arith.divf %318, %319 : vector<16x1xf32>
    %321 = vector.broadcast %320 : vector<16x1xf32> to vector<16x32xf32>
    %322 = arith.subf %314, %321 : vector<16x32xf32>
    %323 = arith.mulf %322, %322 : vector<16x32xf32>
    %cst_130 = arith.constant dense<0.000000e+00> : vector<16xf32>
    %324 = vector.multi_reduction <add>, %323, %cst_130 [1] : vector<16x32xf32> to vector<16xf32>
    %325 = vector.shape_cast %324 : vector<16xf32> to vector<16x1xf32>
    %cst_131 = arith.constant 3.200000e+01 : f32
    %326 = vector.broadcast %cst_131 : f32 to vector<16x1xf32>
    %327 = arith.divf %325, %326 : vector<16x1xf32>
    %cst_132 = arith.constant 9.99999974E-6 : f32
    %328 = vector.broadcast %cst_132 : f32 to vector<16x1xf32>
    %329 = arith.addf %327, %328 : vector<16x1xf32>
    %330 = math.rsqrt %329 : vector<16x1xf32>
    %331 = vector.broadcast %330 : vector<16x1xf32> to vector<16x32xf32>
    %332 = arith.mulf %322, %331 : vector<16x32xf32>
    %333 = vector.broadcast %315 : vector<1x32xf32> to vector<16x32xf32>
    %334 = arith.mulf %332, %333 : vector<16x32xf32>
    %335 = vector.broadcast %316 : vector<1x32xf32> to vector<16x32xf32>
    %336 = arith.addf %334, %335 : vector<16x32xf32>
    %c0_133 = arith.constant 0 : index
    %c0_134 = arith.constant 0 : index
    %337 = vector.load %arg67[%c0_133, %c0_134] : memref<16x32xf32, #tpu.memory_space<vmem>>, vector<16x32xf32>
    %c0_135 = arith.constant 0 : index
    %c0_136 = arith.constant 0 : index
    %338 = vector.load %arg17[%c0_135, %c0_136] : memref<32x96xf32, #tpu.memory_space<vmem>>, vector<32x96xf32>
    %c0_137 = arith.constant 0 : index
    %c0_138 = arith.constant 0 : index
    %339 = vector.load %arg15[%c0_137, %c0_138] : memref<1x96xf32, #tpu.memory_space<vmem>>, vector<1x96xf32>
    %c0_139 = arith.constant 0 : index
    %c0_140 = arith.constant 0 : index
    %340 = vector.load %arg16[%c0_139, %c0_140] : memref<32x32xf32, #tpu.memory_space<vmem>>, vector<32x32xf32>
    %c0_141 = arith.constant 0 : index
    %c0_142 = arith.constant 0 : index
    %341 = vector.load %arg14[%c0_141, %c0_142] : memref<1x32xf32, #tpu.memory_space<vmem>>, vector<1x32xf32>
    %cst_143 = arith.constant dense<0.000000e+00> : vector<16x96xf32>
    %342 = tpu.matmul %337, %338, %cst_143 {dimension_numbers = #tpu.dot_dimension_numbers<[1], [0], [0], [1], [0, 0, 1, 1], [], []>} : vector<16x32xf32>, vector<32x96xf32>, vector<16x96xf32> -> vector<16x96xf32>
    %343 = vector.broadcast %339 : vector<1x96xf32> to vector<16x96xf32>
    %344 = arith.addf %342, %343 : vector<16x96xf32>
    %345 = vector.extract_strided_slice %344 {offsets = [0, 0], sizes = [16, 32], strides = [1, 1]} : vector<16x96xf32> to vector<16x32xf32>
    %346 = vector.extract_strided_slice %344 {offsets = [0, 32], sizes = [16, 32], strides = [1, 1]} : vector<16x96xf32> to vector<16x32xf32>
    %347 = vector.extract_strided_slice %344 {offsets = [0, 64], sizes = [16, 32], strides = [1, 1]} : vector<16x96xf32> to vector<16x32xf32>
    %348 = tpu.iota {dimensions = array<i32: 0>} : vector<8x8xi32>
    %349 = tpu.iota {dimensions = array<i32: 1>} : vector<8x8xi32>
    %350 = vector.extract_strided_slice %345 {offsets = [0, 0], sizes = [8, 32], strides = [1, 1]} : vector<16x32xf32> to vector<8x32xf32>
    %351 = vector.extract_strided_slice %346 {offsets = [0, 0], sizes = [8, 32], strides = [1, 1]} : vector<16x32xf32> to vector<8x32xf32>
    %352 = vector.extract_strided_slice %347 {offsets = [0, 0], sizes = [8, 32], strides = [1, 1]} : vector<16x32xf32> to vector<8x32xf32>
    %353 = vector.extract_strided_slice %350 {offsets = [0, 0], sizes = [8, 16], strides = [1, 1]} : vector<8x32xf32> to vector<8x16xf32>
    %354 = vector.extract_strided_slice %351 {offsets = [0, 0], sizes = [8, 16], strides = [1, 1]} : vector<8x32xf32> to vector<8x16xf32>
    %355 = vector.extract_strided_slice %352 {offsets = [0, 0], sizes = [8, 16], strides = [1, 1]} : vector<8x32xf32> to vector<8x16xf32>
    %cst_144 = arith.constant dense<0.000000e+00> : vector<8x8xf32>
    %356 = tpu.matmul %353, %354, %cst_144 {dimension_numbers = #tpu.dot_dimension_numbers<[1], [1], [0], [0], [0, 0, 1, 0], [], []>} : vector<8x16xf32>, vector<8x16xf32>, vector<8x8xf32> -> vector<8x8xf32>
    %cst_145 = arith.constant 2.500000e-01 : f32
    %357 = vector.broadcast %cst_145 : f32 to vector<8x8xf32>
    %358 = arith.mulf %356, %357 : vector<8x8xf32>
    %359 = arith.cmpi sle, %349, %348 : vector<8x8xi32>
    %cst_146 = arith.constant -1.000000e+30 : f32
    %360 = vector.broadcast %cst_146 : f32 to vector<8x8xf32>
    %361 = arith.select %359, %358, %360 : vector<8x8xi1>, vector<8x8xf32>
    %cst_147 = arith.constant dense<0xFF800000> : vector<8xf32>
    %362 = vector.multi_reduction <maximumf>, %361, %cst_147 [1] : vector<8x8xf32> to vector<8xf32>
    %363 = vector.shape_cast %362 : vector<8xf32> to vector<8x1xf32>
    %364 = vector.broadcast %363 : vector<8x1xf32> to vector<8x8xf32>
    %365 = arith.subf %361, %364 : vector<8x8xf32>
    %366 = math.exp %365 : vector<8x8xf32>
    %cst_148 = arith.constant dense<0.000000e+00> : vector<8xf32>
    %367 = vector.multi_reduction <add>, %366, %cst_148 [1] : vector<8x8xf32> to vector<8xf32>
    %368 = vector.shape_cast %367 : vector<8xf32> to vector<8x1xf32>
    %369 = tpu.reciprocal %368 {approx = true} : vector<8x1xf32> -> vector<8x1xf32>
    %370 = vector.broadcast %369 : vector<8x1xf32> to vector<8x8xf32>
    %371 = arith.mulf %366, %370 : vector<8x8xf32>
    %cst_149 = arith.constant dense<0.000000e+00> : vector<8x16xf32>
    %372 = tpu.matmul %371, %355, %cst_149 {dimension_numbers = #tpu.dot_dimension_numbers<[1], [0], [0], [1], [0, 0, 1, 1], [], []>} : vector<8x8xf32>, vector<8x16xf32>, vector<8x16xf32> -> vector<8x16xf32>
    %373 = vector.extract_strided_slice %340 {offsets = [0, 0], sizes = [16, 32], strides = [1, 1]} : vector<32x32xf32> to vector<16x32xf32>
    %cst_150 = arith.constant dense<0.000000e+00> : vector<8x32xf32>
    %374 = tpu.matmul %372, %373, %cst_150 {dimension_numbers = #tpu.dot_dimension_numbers<[1], [0], [0], [1], [0, 0, 1, 1], [], []>} : vector<8x16xf32>, vector<16x32xf32>, vector<8x32xf32> -> vector<8x32xf32>
    %375 = vector.broadcast %341 : vector<1x32xf32> to vector<8x32xf32>
    %376 = arith.addf %375, %374 : vector<8x32xf32>
    %377 = vector.extract_strided_slice %350 {offsets = [0, 16], sizes = [8, 16], strides = [1, 1]} : vector<8x32xf32> to vector<8x16xf32>
    %378 = vector.extract_strided_slice %351 {offsets = [0, 16], sizes = [8, 16], strides = [1, 1]} : vector<8x32xf32> to vector<8x16xf32>
    %379 = vector.extract_strided_slice %352 {offsets = [0, 16], sizes = [8, 16], strides = [1, 1]} : vector<8x32xf32> to vector<8x16xf32>
    %cst_151 = arith.constant dense<0.000000e+00> : vector<8x8xf32>
    %380 = tpu.matmul %377, %378, %cst_151 {dimension_numbers = #tpu.dot_dimension_numbers<[1], [1], [0], [0], [0, 0, 1, 0], [], []>} : vector<8x16xf32>, vector<8x16xf32>, vector<8x8xf32> -> vector<8x8xf32>
    %cst_152 = arith.constant 2.500000e-01 : f32
    %381 = vector.broadcast %cst_152 : f32 to vector<8x8xf32>
    %382 = arith.mulf %380, %381 : vector<8x8xf32>
    %383 = arith.cmpi sle, %349, %348 : vector<8x8xi32>
    %cst_153 = arith.constant -1.000000e+30 : f32
    %384 = vector.broadcast %cst_153 : f32 to vector<8x8xf32>
    %385 = arith.select %383, %382, %384 : vector<8x8xi1>, vector<8x8xf32>
    %cst_154 = arith.constant dense<0xFF800000> : vector<8xf32>
    %386 = vector.multi_reduction <maximumf>, %385, %cst_154 [1] : vector<8x8xf32> to vector<8xf32>
    %387 = vector.shape_cast %386 : vector<8xf32> to vector<8x1xf32>
    %388 = vector.broadcast %387 : vector<8x1xf32> to vector<8x8xf32>
    %389 = arith.subf %385, %388 : vector<8x8xf32>
    %390 = math.exp %389 : vector<8x8xf32>
    %cst_155 = arith.constant dense<0.000000e+00> : vector<8xf32>
    %391 = vector.multi_reduction <add>, %390, %cst_155 [1] : vector<8x8xf32> to vector<8xf32>
    %392 = vector.shape_cast %391 : vector<8xf32> to vector<8x1xf32>
    %393 = tpu.reciprocal %392 {approx = true} : vector<8x1xf32> -> vector<8x1xf32>
    %394 = vector.broadcast %393 : vector<8x1xf32> to vector<8x8xf32>
    %395 = arith.mulf %390, %394 : vector<8x8xf32>
    %cst_156 = arith.constant dense<0.000000e+00> : vector<8x16xf32>
    %396 = tpu.matmul %395, %379, %cst_156 {dimension_numbers = #tpu.dot_dimension_numbers<[1], [0], [0], [1], [0, 0, 1, 1], [], []>} : vector<8x8xf32>, vector<8x16xf32>, vector<8x16xf32> -> vector<8x16xf32>
    %397 = vector.extract_strided_slice %340 {offsets = [16, 0], sizes = [16, 32], strides = [1, 1]} : vector<32x32xf32> to vector<16x32xf32>
    %cst_157 = arith.constant dense<0.000000e+00> : vector<8x32xf32>
    %398 = tpu.matmul %396, %397, %cst_157 {dimension_numbers = #tpu.dot_dimension_numbers<[1], [0], [0], [1], [0, 0, 1, 1], [], []>} : vector<8x16xf32>, vector<16x32xf32>, vector<8x32xf32> -> vector<8x32xf32>
    %399 = arith.addf %376, %398 : vector<8x32xf32>
    %400 = vector.extract_strided_slice %345 {offsets = [8, 0], sizes = [8, 32], strides = [1, 1]} : vector<16x32xf32> to vector<8x32xf32>
    %401 = vector.extract_strided_slice %346 {offsets = [8, 0], sizes = [8, 32], strides = [1, 1]} : vector<16x32xf32> to vector<8x32xf32>
    %402 = vector.extract_strided_slice %347 {offsets = [8, 0], sizes = [8, 32], strides = [1, 1]} : vector<16x32xf32> to vector<8x32xf32>
    %403 = vector.extract_strided_slice %400 {offsets = [0, 0], sizes = [8, 16], strides = [1, 1]} : vector<8x32xf32> to vector<8x16xf32>
    %404 = vector.extract_strided_slice %401 {offsets = [0, 0], sizes = [8, 16], strides = [1, 1]} : vector<8x32xf32> to vector<8x16xf32>
    %405 = vector.extract_strided_slice %402 {offsets = [0, 0], sizes = [8, 16], strides = [1, 1]} : vector<8x32xf32> to vector<8x16xf32>
    %cst_158 = arith.constant dense<0.000000e+00> : vector<8x8xf32>
    %406 = tpu.matmul %403, %404, %cst_158 {dimension_numbers = #tpu.dot_dimension_numbers<[1], [1], [0], [0], [0, 0, 1, 0], [], []>} : vector<8x16xf32>, vector<8x16xf32>, vector<8x8xf32> -> vector<8x8xf32>
    %cst_159 = arith.constant 2.500000e-01 : f32
    %407 = vector.broadcast %cst_159 : f32 to vector<8x8xf32>
    %408 = arith.mulf %406, %407 : vector<8x8xf32>
    %409 = arith.cmpi sle, %349, %348 : vector<8x8xi32>
    %cst_160 = arith.constant -1.000000e+30 : f32
    %410 = vector.broadcast %cst_160 : f32 to vector<8x8xf32>
    %411 = arith.select %409, %408, %410 : vector<8x8xi1>, vector<8x8xf32>
    %cst_161 = arith.constant dense<0xFF800000> : vector<8xf32>
    %412 = vector.multi_reduction <maximumf>, %411, %cst_161 [1] : vector<8x8xf32> to vector<8xf32>
    %413 = vector.shape_cast %412 : vector<8xf32> to vector<8x1xf32>
    %414 = vector.broadcast %413 : vector<8x1xf32> to vector<8x8xf32>
    %415 = arith.subf %411, %414 : vector<8x8xf32>
    %416 = math.exp %415 : vector<8x8xf32>
    %cst_162 = arith.constant dense<0.000000e+00> : vector<8xf32>
    %417 = vector.multi_reduction <add>, %416, %cst_162 [1] : vector<8x8xf32> to vector<8xf32>
    %418 = vector.shape_cast %417 : vector<8xf32> to vector<8x1xf32>
    %419 = tpu.reciprocal %418 {approx = true} : vector<8x1xf32> -> vector<8x1xf32>
    %420 = vector.broadcast %419 : vector<8x1xf32> to vector<8x8xf32>
    %421 = arith.mulf %416, %420 : vector<8x8xf32>
    %cst_163 = arith.constant dense<0.000000e+00> : vector<8x16xf32>
    %422 = tpu.matmul %421, %405, %cst_163 {dimension_numbers = #tpu.dot_dimension_numbers<[1], [0], [0], [1], [0, 0, 1, 1], [], []>} : vector<8x8xf32>, vector<8x16xf32>, vector<8x16xf32> -> vector<8x16xf32>
    %423 = vector.extract_strided_slice %340 {offsets = [0, 0], sizes = [16, 32], strides = [1, 1]} : vector<32x32xf32> to vector<16x32xf32>
    %cst_164 = arith.constant dense<0.000000e+00> : vector<8x32xf32>
    %424 = tpu.matmul %422, %423, %cst_164 {dimension_numbers = #tpu.dot_dimension_numbers<[1], [0], [0], [1], [0, 0, 1, 1], [], []>} : vector<8x16xf32>, vector<16x32xf32>, vector<8x32xf32> -> vector<8x32xf32>
    %425 = vector.broadcast %341 : vector<1x32xf32> to vector<8x32xf32>
    %426 = arith.addf %425, %424 : vector<8x32xf32>
    %427 = vector.extract_strided_slice %400 {offsets = [0, 16], sizes = [8, 16], strides = [1, 1]} : vector<8x32xf32> to vector<8x16xf32>
    %428 = vector.extract_strided_slice %401 {offsets = [0, 16], sizes = [8, 16], strides = [1, 1]} : vector<8x32xf32> to vector<8x16xf32>
    %429 = vector.extract_strided_slice %402 {offsets = [0, 16], sizes = [8, 16], strides = [1, 1]} : vector<8x32xf32> to vector<8x16xf32>
    %cst_165 = arith.constant dense<0.000000e+00> : vector<8x8xf32>
    %430 = tpu.matmul %427, %428, %cst_165 {dimension_numbers = #tpu.dot_dimension_numbers<[1], [1], [0], [0], [0, 0, 1, 0], [], []>} : vector<8x16xf32>, vector<8x16xf32>, vector<8x8xf32> -> vector<8x8xf32>
    %cst_166 = arith.constant 2.500000e-01 : f32
    %431 = vector.broadcast %cst_166 : f32 to vector<8x8xf32>
    %432 = arith.mulf %430, %431 : vector<8x8xf32>
    %433 = arith.cmpi sle, %349, %348 : vector<8x8xi32>
    %cst_167 = arith.constant -1.000000e+30 : f32
    %434 = vector.broadcast %cst_167 : f32 to vector<8x8xf32>
    %435 = arith.select %433, %432, %434 : vector<8x8xi1>, vector<8x8xf32>
    %cst_168 = arith.constant dense<0xFF800000> : vector<8xf32>
    %436 = vector.multi_reduction <maximumf>, %435, %cst_168 [1] : vector<8x8xf32> to vector<8xf32>
    %437 = vector.shape_cast %436 : vector<8xf32> to vector<8x1xf32>
    %438 = vector.broadcast %437 : vector<8x1xf32> to vector<8x8xf32>
    %439 = arith.subf %435, %438 : vector<8x8xf32>
    %440 = math.exp %439 : vector<8x8xf32>
    %cst_169 = arith.constant dense<0.000000e+00> : vector<8xf32>
    %441 = vector.multi_reduction <add>, %440, %cst_169 [1] : vector<8x8xf32> to vector<8xf32>
    %442 = vector.shape_cast %441 : vector<8xf32> to vector<8x1xf32>
    %443 = tpu.reciprocal %442 {approx = true} : vector<8x1xf32> -> vector<8x1xf32>
    %444 = vector.broadcast %443 : vector<8x1xf32> to vector<8x8xf32>
    %445 = arith.mulf %440, %444 : vector<8x8xf32>
    %cst_170 = arith.constant dense<0.000000e+00> : vector<8x16xf32>
    %446 = tpu.matmul %445, %429, %cst_170 {dimension_numbers = #tpu.dot_dimension_numbers<[1], [0], [0], [1], [0, 0, 1, 1], [], []>} : vector<8x8xf32>, vector<8x16xf32>, vector<8x16xf32> -> vector<8x16xf32>
    %447 = vector.extract_strided_slice %340 {offsets = [16, 0], sizes = [16, 32], strides = [1, 1]} : vector<32x32xf32> to vector<16x32xf32>
    %cst_171 = arith.constant dense<0.000000e+00> : vector<8x32xf32>
    %448 = tpu.matmul %446, %447, %cst_171 {dimension_numbers = #tpu.dot_dimension_numbers<[1], [0], [0], [1], [0, 0, 1, 1], [], []>} : vector<8x16xf32>, vector<16x32xf32>, vector<8x32xf32> -> vector<8x32xf32>
    %449 = arith.addf %426, %448 : vector<8x32xf32>
    %450 = tpu.concatenate %399, %449 in 0 : vector<8x32xf32>, vector<8x32xf32> -> vector<16x32xf32>
    %451 = arith.addf %337, %450 : vector<16x32xf32>
    %c0_172 = arith.constant 0 : index
    %c0_173 = arith.constant 0 : index
    %452 = vector.load %arg9[%c0_172, %c0_173] : memref<1x32xf32, #tpu.memory_space<vmem>>, vector<1x32xf32>
    %c0_174 = arith.constant 0 : index
    %c0_175 = arith.constant 0 : index
    %453 = vector.load %arg8[%c0_174, %c0_175] : memref<1x32xf32, #tpu.memory_space<vmem>>, vector<1x32xf32>
    %cst_176 = arith.constant dense<0.000000e+00> : vector<16xf32>
    %454 = vector.multi_reduction <add>, %451, %cst_176 [1] : vector<16x32xf32> to vector<16xf32>
    %455 = vector.shape_cast %454 : vector<16xf32> to vector<16x1xf32>
    %cst_177 = arith.constant 3.200000e+01 : f32
    %456 = vector.broadcast %cst_177 : f32 to vector<16x1xf32>
    %457 = arith.divf %455, %456 : vector<16x1xf32>
    %458 = vector.broadcast %457 : vector<16x1xf32> to vector<16x32xf32>
    %459 = arith.subf %451, %458 : vector<16x32xf32>
    %460 = arith.mulf %459, %459 : vector<16x32xf32>
    %cst_178 = arith.constant dense<0.000000e+00> : vector<16xf32>
    %461 = vector.multi_reduction <add>, %460, %cst_178 [1] : vector<16x32xf32> to vector<16xf32>
    %462 = vector.shape_cast %461 : vector<16xf32> to vector<16x1xf32>
    %cst_179 = arith.constant 3.200000e+01 : f32
    %463 = vector.broadcast %cst_179 : f32 to vector<16x1xf32>
    %464 = arith.divf %462, %463 : vector<16x1xf32>
    %cst_180 = arith.constant 9.99999974E-6 : f32
    %465 = vector.broadcast %cst_180 : f32 to vector<16x1xf32>
    %466 = arith.addf %464, %465 : vector<16x1xf32>
    %467 = math.rsqrt %466 : vector<16x1xf32>
    %468 = vector.broadcast %467 : vector<16x1xf32> to vector<16x32xf32>
    %469 = arith.mulf %459, %468 : vector<16x32xf32>
    %470 = vector.broadcast %452 : vector<1x32xf32> to vector<16x32xf32>
    %471 = arith.mulf %469, %470 : vector<16x32xf32>
    %472 = vector.broadcast %453 : vector<1x32xf32> to vector<16x32xf32>
    %473 = arith.addf %471, %472 : vector<16x32xf32>
    %c0_181 = arith.constant 0 : index
    %c0_182 = arith.constant 0 : index
    %474 = vector.load %arg3[%c0_181, %c0_182] : memref<32x96xf32, #tpu.memory_space<vmem>>, vector<32x96xf32>
    %c0_183 = arith.constant 0 : index
    %c0_184 = arith.constant 0 : index
    %475 = vector.load %arg1[%c0_183, %c0_184] : memref<1x96xf32, #tpu.memory_space<vmem>>, vector<1x96xf32>
    %c0_185 = arith.constant 0 : index
    %c0_186 = arith.constant 0 : index
    %476 = vector.load %arg2[%c0_185, %c0_186] : memref<32x32xf32, #tpu.memory_space<vmem>>, vector<32x32xf32>
    %c0_187 = arith.constant 0 : index
    %c0_188 = arith.constant 0 : index
    %477 = vector.load %arg0[%c0_187, %c0_188] : memref<1x32xf32, #tpu.memory_space<vmem>>, vector<1x32xf32>
    %478 = vector.extract_strided_slice %474 {offsets = [0, 0], sizes = [32, 32], strides = [1, 1]} : vector<32x96xf32> to vector<32x32xf32>
    %cst_189 = arith.constant dense<0.000000e+00> : vector<16x32xf32>
    %479 = tpu.matmul %473, %478, %cst_189 {dimension_numbers = #tpu.dot_dimension_numbers<[1], [0], [0], [1], [0, 0, 1, 1], [], []>} : vector<16x32xf32>, vector<32x32xf32>, vector<16x32xf32> -> vector<16x32xf32>
    %480 = vector.extract_strided_slice %475 {offsets = [0, 0], sizes = [1, 32], strides = [1, 1]} : vector<1x96xf32> to vector<1x32xf32>
    %481 = vector.broadcast %480 : vector<1x32xf32> to vector<16x32xf32>
    %482 = arith.addf %479, %481 : vector<16x32xf32>
    %483 = vector.extract_strided_slice %474 {offsets = [0, 32], sizes = [32, 64], strides = [1, 1]} : vector<32x96xf32> to vector<32x64xf32>
    %cst_190 = arith.constant dense<0.000000e+00> : vector<16x64xf32>
    %484 = tpu.matmul %336, %483, %cst_190 {dimension_numbers = #tpu.dot_dimension_numbers<[1], [0], [0], [1], [0, 0, 1, 1], [], []>} : vector<16x32xf32>, vector<32x64xf32>, vector<16x64xf32> -> vector<16x64xf32>
    %485 = vector.extract_strided_slice %475 {offsets = [0, 32], sizes = [1, 64], strides = [1, 1]} : vector<1x96xf32> to vector<1x64xf32>
    %486 = vector.broadcast %485 : vector<1x64xf32> to vector<16x64xf32>
    %487 = arith.addf %484, %486 : vector<16x64xf32>
    %488 = vector.extract_strided_slice %487 {offsets = [0, 0], sizes = [16, 32], strides = [1, 1]} : vector<16x64xf32> to vector<16x32xf32>
    %489 = vector.extract_strided_slice %487 {offsets = [0, 32], sizes = [16, 32], strides = [1, 1]} : vector<16x64xf32> to vector<16x32xf32>
    %490 = vector.extract_strided_slice %482 {offsets = [0, 0], sizes = [8, 32], strides = [1, 1]} : vector<16x32xf32> to vector<8x32xf32>
    %491 = vector.extract_strided_slice %488 {offsets = [0, 0], sizes = [8, 32], strides = [1, 1]} : vector<16x32xf32> to vector<8x32xf32>
    %492 = vector.extract_strided_slice %489 {offsets = [0, 0], sizes = [8, 32], strides = [1, 1]} : vector<16x32xf32> to vector<8x32xf32>
    %493 = vector.extract_strided_slice %490 {offsets = [0, 0], sizes = [8, 16], strides = [1, 1]} : vector<8x32xf32> to vector<8x16xf32>
    %494 = vector.extract_strided_slice %491 {offsets = [0, 0], sizes = [8, 16], strides = [1, 1]} : vector<8x32xf32> to vector<8x16xf32>
    %495 = vector.extract_strided_slice %492 {offsets = [0, 0], sizes = [8, 16], strides = [1, 1]} : vector<8x32xf32> to vector<8x16xf32>
    %cst_191 = arith.constant dense<0.000000e+00> : vector<8x8xf32>
    %496 = tpu.matmul %493, %494, %cst_191 {dimension_numbers = #tpu.dot_dimension_numbers<[1], [1], [0], [0], [0, 0, 1, 0], [], []>} : vector<8x16xf32>, vector<8x16xf32>, vector<8x8xf32> -> vector<8x8xf32>
    %cst_192 = arith.constant 2.500000e-01 : f32
    %497 = vector.broadcast %cst_192 : f32 to vector<8x8xf32>
    %498 = arith.mulf %496, %497 : vector<8x8xf32>
    %cst_193 = arith.constant dense<0xFF800000> : vector<8xf32>
    %499 = vector.multi_reduction <maximumf>, %498, %cst_193 [1] : vector<8x8xf32> to vector<8xf32>
    %500 = vector.shape_cast %499 : vector<8xf32> to vector<8x1xf32>
    %501 = vector.broadcast %500 : vector<8x1xf32> to vector<8x8xf32>
    %502 = arith.subf %498, %501 : vector<8x8xf32>
    %503 = math.exp %502 : vector<8x8xf32>
    %cst_194 = arith.constant dense<0.000000e+00> : vector<8xf32>
    %504 = vector.multi_reduction <add>, %503, %cst_194 [1] : vector<8x8xf32> to vector<8xf32>
    %505 = vector.shape_cast %504 : vector<8xf32> to vector<8x1xf32>
    %506 = tpu.reciprocal %505 {approx = true} : vector<8x1xf32> -> vector<8x1xf32>
    %507 = vector.broadcast %506 : vector<8x1xf32> to vector<8x8xf32>
    %508 = arith.mulf %503, %507 : vector<8x8xf32>
    %cst_195 = arith.constant dense<0.000000e+00> : vector<8x16xf32>
    %509 = tpu.matmul %508, %495, %cst_195 {dimension_numbers = #tpu.dot_dimension_numbers<[1], [0], [0], [1], [0, 0, 1, 1], [], []>} : vector<8x8xf32>, vector<8x16xf32>, vector<8x16xf32> -> vector<8x16xf32>
    %510 = vector.extract_strided_slice %476 {offsets = [0, 0], sizes = [16, 32], strides = [1, 1]} : vector<32x32xf32> to vector<16x32xf32>
    %cst_196 = arith.constant dense<0.000000e+00> : vector<8x32xf32>
    %511 = tpu.matmul %509, %510, %cst_196 {dimension_numbers = #tpu.dot_dimension_numbers<[1], [0], [0], [1], [0, 0, 1, 1], [], []>} : vector<8x16xf32>, vector<16x32xf32>, vector<8x32xf32> -> vector<8x32xf32>
    %512 = vector.broadcast %477 : vector<1x32xf32> to vector<8x32xf32>
    %513 = arith.addf %512, %511 : vector<8x32xf32>
    %514 = vector.extract_strided_slice %490 {offsets = [0, 16], sizes = [8, 16], strides = [1, 1]} : vector<8x32xf32> to vector<8x16xf32>
    %515 = vector.extract_strided_slice %491 {offsets = [0, 16], sizes = [8, 16], strides = [1, 1]} : vector<8x32xf32> to vector<8x16xf32>
    %516 = vector.extract_strided_slice %492 {offsets = [0, 16], sizes = [8, 16], strides = [1, 1]} : vector<8x32xf32> to vector<8x16xf32>
    %cst_197 = arith.constant dense<0.000000e+00> : vector<8x8xf32>
    %517 = tpu.matmul %514, %515, %cst_197 {dimension_numbers = #tpu.dot_dimension_numbers<[1], [1], [0], [0], [0, 0, 1, 0], [], []>} : vector<8x16xf32>, vector<8x16xf32>, vector<8x8xf32> -> vector<8x8xf32>
    %cst_198 = arith.constant 2.500000e-01 : f32
    %518 = vector.broadcast %cst_198 : f32 to vector<8x8xf32>
    %519 = arith.mulf %517, %518 : vector<8x8xf32>
    %cst_199 = arith.constant dense<0xFF800000> : vector<8xf32>
    %520 = vector.multi_reduction <maximumf>, %519, %cst_199 [1] : vector<8x8xf32> to vector<8xf32>
    %521 = vector.shape_cast %520 : vector<8xf32> to vector<8x1xf32>
    %522 = vector.broadcast %521 : vector<8x1xf32> to vector<8x8xf32>
    %523 = arith.subf %519, %522 : vector<8x8xf32>
    %524 = math.exp %523 : vector<8x8xf32>
    %cst_200 = arith.constant dense<0.000000e+00> : vector<8xf32>
    %525 = vector.multi_reduction <add>, %524, %cst_200 [1] : vector<8x8xf32> to vector<8xf32>
    %526 = vector.shape_cast %525 : vector<8xf32> to vector<8x1xf32>
    %527 = tpu.reciprocal %526 {approx = true} : vector<8x1xf32> -> vector<8x1xf32>
    %528 = vector.broadcast %527 : vector<8x1xf32> to vector<8x8xf32>
    %529 = arith.mulf %524, %528 : vector<8x8xf32>
    %cst_201 = arith.constant dense<0.000000e+00> : vector<8x16xf32>
    %530 = tpu.matmul %529, %516, %cst_201 {dimension_numbers = #tpu.dot_dimension_numbers<[1], [0], [0], [1], [0, 0, 1, 1], [], []>} : vector<8x8xf32>, vector<8x16xf32>, vector<8x16xf32> -> vector<8x16xf32>
    %531 = vector.extract_strided_slice %476 {offsets = [16, 0], sizes = [16, 32], strides = [1, 1]} : vector<32x32xf32> to vector<16x32xf32>
    %cst_202 = arith.constant dense<0.000000e+00> : vector<8x32xf32>
    %532 = tpu.matmul %530, %531, %cst_202 {dimension_numbers = #tpu.dot_dimension_numbers<[1], [0], [0], [1], [0, 0, 1, 1], [], []>} : vector<8x16xf32>, vector<16x32xf32>, vector<8x32xf32> -> vector<8x32xf32>
    %533 = arith.addf %513, %532 : vector<8x32xf32>
    %534 = vector.extract_strided_slice %482 {offsets = [8, 0], sizes = [8, 32], strides = [1, 1]} : vector<16x32xf32> to vector<8x32xf32>
    %535 = vector.extract_strided_slice %488 {offsets = [8, 0], sizes = [8, 32], strides = [1, 1]} : vector<16x32xf32> to vector<8x32xf32>
    %536 = vector.extract_strided_slice %489 {offsets = [8, 0], sizes = [8, 32], strides = [1, 1]} : vector<16x32xf32> to vector<8x32xf32>
    %537 = vector.extract_strided_slice %534 {offsets = [0, 0], sizes = [8, 16], strides = [1, 1]} : vector<8x32xf32> to vector<8x16xf32>
    %538 = vector.extract_strided_slice %535 {offsets = [0, 0], sizes = [8, 16], strides = [1, 1]} : vector<8x32xf32> to vector<8x16xf32>
    %539 = vector.extract_strided_slice %536 {offsets = [0, 0], sizes = [8, 16], strides = [1, 1]} : vector<8x32xf32> to vector<8x16xf32>
    %cst_203 = arith.constant dense<0.000000e+00> : vector<8x8xf32>
    %540 = tpu.matmul %537, %538, %cst_203 {dimension_numbers = #tpu.dot_dimension_numbers<[1], [1], [0], [0], [0, 0, 1, 0], [], []>} : vector<8x16xf32>, vector<8x16xf32>, vector<8x8xf32> -> vector<8x8xf32>
    %cst_204 = arith.constant 2.500000e-01 : f32
    %541 = vector.broadcast %cst_204 : f32 to vector<8x8xf32>
    %542 = arith.mulf %540, %541 : vector<8x8xf32>
    %cst_205 = arith.constant dense<0xFF800000> : vector<8xf32>
    %543 = vector.multi_reduction <maximumf>, %542, %cst_205 [1] : vector<8x8xf32> to vector<8xf32>
    %544 = vector.shape_cast %543 : vector<8xf32> to vector<8x1xf32>
    %545 = vector.broadcast %544 : vector<8x1xf32> to vector<8x8xf32>
    %546 = arith.subf %542, %545 : vector<8x8xf32>
    %547 = math.exp %546 : vector<8x8xf32>
    %cst_206 = arith.constant dense<0.000000e+00> : vector<8xf32>
    %548 = vector.multi_reduction <add>, %547, %cst_206 [1] : vector<8x8xf32> to vector<8xf32>
    %549 = vector.shape_cast %548 : vector<8xf32> to vector<8x1xf32>
    %550 = tpu.reciprocal %549 {approx = true} : vector<8x1xf32> -> vector<8x1xf32>
    %551 = vector.broadcast %550 : vector<8x1xf32> to vector<8x8xf32>
    %552 = arith.mulf %547, %551 : vector<8x8xf32>
    %cst_207 = arith.constant dense<0.000000e+00> : vector<8x16xf32>
    %553 = tpu.matmul %552, %539, %cst_207 {dimension_numbers = #tpu.dot_dimension_numbers<[1], [0], [0], [1], [0, 0, 1, 1], [], []>} : vector<8x8xf32>, vector<8x16xf32>, vector<8x16xf32> -> vector<8x16xf32>
    %554 = vector.extract_strided_slice %476 {offsets = [0, 0], sizes = [16, 32], strides = [1, 1]} : vector<32x32xf32> to vector<16x32xf32>
    %cst_208 = arith.constant dense<0.000000e+00> : vector<8x32xf32>
    %555 = tpu.matmul %553, %554, %cst_208 {dimension_numbers = #tpu.dot_dimension_numbers<[1], [0], [0], [1], [0, 0, 1, 1], [], []>} : vector<8x16xf32>, vector<16x32xf32>, vector<8x32xf32> -> vector<8x32xf32>
    %556 = vector.broadcast %477 : vector<1x32xf32> to vector<8x32xf32>
    %557 = arith.addf %556, %555 : vector<8x32xf32>
    %558 = vector.extract_strided_slice %534 {offsets = [0, 16], sizes = [8, 16], strides = [1, 1]} : vector<8x32xf32> to vector<8x16xf32>
    %559 = vector.extract_strided_slice %535 {offsets = [0, 16], sizes = [8, 16], strides = [1, 1]} : vector<8x32xf32> to vector<8x16xf32>
    %560 = vector.extract_strided_slice %536 {offsets = [0, 16], sizes = [8, 16], strides = [1, 1]} : vector<8x32xf32> to vector<8x16xf32>
    %cst_209 = arith.constant dense<0.000000e+00> : vector<8x8xf32>
    %561 = tpu.matmul %558, %559, %cst_209 {dimension_numbers = #tpu.dot_dimension_numbers<[1], [1], [0], [0], [0, 0, 1, 0], [], []>} : vector<8x16xf32>, vector<8x16xf32>, vector<8x8xf32> -> vector<8x8xf32>
    %cst_210 = arith.constant 2.500000e-01 : f32
    %562 = vector.broadcast %cst_210 : f32 to vector<8x8xf32>
    %563 = arith.mulf %561, %562 : vector<8x8xf32>
    %cst_211 = arith.constant dense<0xFF800000> : vector<8xf32>
    %564 = vector.multi_reduction <maximumf>, %563, %cst_211 [1] : vector<8x8xf32> to vector<8xf32>
    %565 = vector.shape_cast %564 : vector<8xf32> to vector<8x1xf32>
    %566 = vector.broadcast %565 : vector<8x1xf32> to vector<8x8xf32>
    %567 = arith.subf %563, %566 : vector<8x8xf32>
    %568 = math.exp %567 : vector<8x8xf32>
    %cst_212 = arith.constant dense<0.000000e+00> : vector<8xf32>
    %569 = vector.multi_reduction <add>, %568, %cst_212 [1] : vector<8x8xf32> to vector<8xf32>
    %570 = vector.shape_cast %569 : vector<8xf32> to vector<8x1xf32>
    %571 = tpu.reciprocal %570 {approx = true} : vector<8x1xf32> -> vector<8x1xf32>
    %572 = vector.broadcast %571 : vector<8x1xf32> to vector<8x8xf32>
    %573 = arith.mulf %568, %572 : vector<8x8xf32>
    %cst_213 = arith.constant dense<0.000000e+00> : vector<8x16xf32>
    %574 = tpu.matmul %573, %560, %cst_213 {dimension_numbers = #tpu.dot_dimension_numbers<[1], [0], [0], [1], [0, 0, 1, 1], [], []>} : vector<8x8xf32>, vector<8x16xf32>, vector<8x16xf32> -> vector<8x16xf32>
    %575 = vector.extract_strided_slice %476 {offsets = [16, 0], sizes = [16, 32], strides = [1, 1]} : vector<32x32xf32> to vector<16x32xf32>
    %cst_214 = arith.constant dense<0.000000e+00> : vector<8x32xf32>
    %576 = tpu.matmul %574, %575, %cst_214 {dimension_numbers = #tpu.dot_dimension_numbers<[1], [0], [0], [1], [0, 0, 1, 1], [], []>} : vector<8x16xf32>, vector<16x32xf32>, vector<8x32xf32> -> vector<8x32xf32>
    %577 = arith.addf %557, %576 : vector<8x32xf32>
    %578 = tpu.concatenate %533, %577 in 0 : vector<8x32xf32>, vector<8x32xf32> -> vector<16x32xf32>
    %579 = arith.addf %473, %578 : vector<16x32xf32>
    %c0_215 = arith.constant 0 : index
    %c0_216 = arith.constant 0 : index
    %580 = vector.load %arg11[%c0_215, %c0_216] : memref<1x32xf32, #tpu.memory_space<vmem>>, vector<1x32xf32>
    %c0_217 = arith.constant 0 : index
    %c0_218 = arith.constant 0 : index
    %581 = vector.load %arg10[%c0_217, %c0_218] : memref<1x32xf32, #tpu.memory_space<vmem>>, vector<1x32xf32>
    %cst_219 = arith.constant dense<0.000000e+00> : vector<16xf32>
    %582 = vector.multi_reduction <add>, %579, %cst_219 [1] : vector<16x32xf32> to vector<16xf32>
    %583 = vector.shape_cast %582 : vector<16xf32> to vector<16x1xf32>
    %cst_220 = arith.constant 3.200000e+01 : f32
    %584 = vector.broadcast %cst_220 : f32 to vector<16x1xf32>
    %585 = arith.divf %583, %584 : vector<16x1xf32>
    %586 = vector.broadcast %585 : vector<16x1xf32> to vector<16x32xf32>
    %587 = arith.subf %579, %586 : vector<16x32xf32>
    %588 = arith.mulf %587, %587 : vector<16x32xf32>
    %cst_221 = arith.constant dense<0.000000e+00> : vector<16xf32>
    %589 = vector.multi_reduction <add>, %588, %cst_221 [1] : vector<16x32xf32> to vector<16xf32>
    %590 = vector.shape_cast %589 : vector<16xf32> to vector<16x1xf32>
    %cst_222 = arith.constant 3.200000e+01 : f32
    %591 = vector.broadcast %cst_222 : f32 to vector<16x1xf32>
    %592 = arith.divf %590, %591 : vector<16x1xf32>
    %cst_223 = arith.constant 9.99999974E-6 : f32
    %593 = vector.broadcast %cst_223 : f32 to vector<16x1xf32>
    %594 = arith.addf %592, %593 : vector<16x1xf32>
    %595 = math.rsqrt %594 : vector<16x1xf32>
    %596 = vector.broadcast %595 : vector<16x1xf32> to vector<16x32xf32>
    %597 = arith.mulf %587, %596 : vector<16x32xf32>
    %598 = vector.broadcast %580 : vector<1x32xf32> to vector<16x32xf32>
    %599 = arith.mulf %597, %598 : vector<16x32xf32>
    %600 = vector.broadcast %581 : vector<1x32xf32> to vector<16x32xf32>
    %601 = arith.addf %599, %600 : vector<16x32xf32>
    %c0_224 = arith.constant 0 : index
    %c0_225 = arith.constant 0 : index
    %602 = vector.load %arg6[%c0_224, %c0_225] : memref<32x128xf32, #tpu.memory_space<vmem>>, vector<32x128xf32>
    %cst_226 = arith.constant dense<0.000000e+00> : vector<16x128xf32>
    %603 = tpu.matmul %601, %602, %cst_226 {dimension_numbers = #tpu.dot_dimension_numbers<[1], [0], [0], [1], [0, 0, 1, 1], [], []>} : vector<16x32xf32>, vector<32x128xf32>, vector<16x128xf32> -> vector<16x128xf32>
    %c0_227 = arith.constant 0 : index
    %c0_228 = arith.constant 0 : index
    %604 = vector.load %arg4[%c0_227, %c0_228] : memref<1x128xf32, #tpu.memory_space<vmem>>, vector<1x128xf32>
    %605 = vector.broadcast %604 : vector<1x128xf32> to vector<16x128xf32>
    %606 = arith.addf %603, %605 : vector<16x128xf32>
    %cst_229 = arith.constant 0.000000e+00 : f32
    %607 = vector.broadcast %cst_229 : f32 to vector<16x128xf32>
    %608 = arith.maximumf %606, %607 : vector<16x128xf32>
    %c0_230 = arith.constant 0 : index
    %c0_231 = arith.constant 0 : index
    %609 = vector.load %arg7[%c0_230, %c0_231] : memref<128x32xf32, #tpu.memory_space<vmem>>, vector<128x32xf32>
    %cst_232 = arith.constant dense<0.000000e+00> : vector<16x32xf32>
    %610 = tpu.matmul %608, %609, %cst_232 {dimension_numbers = #tpu.dot_dimension_numbers<[1], [0], [0], [1], [0, 0, 1, 1], [], []>} : vector<16x128xf32>, vector<128x32xf32>, vector<16x32xf32> -> vector<16x32xf32>
    %c0_233 = arith.constant 0 : index
    %c0_234 = arith.constant 0 : index
    %611 = vector.load %arg5[%c0_233, %c0_234] : memref<1x32xf32, #tpu.memory_space<vmem>>, vector<1x32xf32>
    %612 = vector.broadcast %611 : vector<1x32xf32> to vector<16x32xf32>
    %613 = arith.addf %610, %612 : vector<16x32xf32>
    %614 = arith.addf %601, %613 : vector<16x32xf32>
    %c0_235 = arith.constant 0 : index
    %c0_236 = arith.constant 0 : index
    %615 = vector.load %arg13[%c0_235, %c0_236] : memref<1x32xf32, #tpu.memory_space<vmem>>, vector<1x32xf32>
    %c0_237 = arith.constant 0 : index
    %c0_238 = arith.constant 0 : index
    %616 = vector.load %arg12[%c0_237, %c0_238] : memref<1x32xf32, #tpu.memory_space<vmem>>, vector<1x32xf32>
    %cst_239 = arith.constant dense<0.000000e+00> : vector<16xf32>
    %617 = vector.multi_reduction <add>, %614, %cst_239 [1] : vector<16x32xf32> to vector<16xf32>
    %618 = vector.shape_cast %617 : vector<16xf32> to vector<16x1xf32>
    %cst_240 = arith.constant 3.200000e+01 : f32
    %619 = vector.broadcast %cst_240 : f32 to vector<16x1xf32>
    %620 = arith.divf %618, %619 : vector<16x1xf32>
    %621 = vector.broadcast %620 : vector<16x1xf32> to vector<16x32xf32>
    %622 = arith.subf %614, %621 : vector<16x32xf32>
    %623 = arith.mulf %622, %622 : vector<16x32xf32>
    %cst_241 = arith.constant dense<0.000000e+00> : vector<16xf32>
    %624 = vector.multi_reduction <add>, %623, %cst_241 [1] : vector<16x32xf32> to vector<16xf32>
    %625 = vector.shape_cast %624 : vector<16xf32> to vector<16x1xf32>
    %cst_242 = arith.constant 3.200000e+01 : f32
    %626 = vector.broadcast %cst_242 : f32 to vector<16x1xf32>
    %627 = arith.divf %625, %626 : vector<16x1xf32>
    %cst_243 = arith.constant 9.99999974E-6 : f32
    %628 = vector.broadcast %cst_243 : f32 to vector<16x1xf32>
    %629 = arith.addf %627, %628 : vector<16x1xf32>
    %630 = math.rsqrt %629 : vector<16x1xf32>
    %631 = vector.broadcast %630 : vector<16x1xf32> to vector<16x32xf32>
    %632 = arith.mulf %622, %631 : vector<16x32xf32>
    %633 = vector.broadcast %615 : vector<1x32xf32> to vector<16x32xf32>
    %634 = arith.mulf %632, %633 : vector<16x32xf32>
    %635 = vector.broadcast %616 : vector<1x32xf32> to vector<16x32xf32>
    %636 = arith.addf %634, %635 : vector<16x32xf32>
    %c0_244 = arith.constant 0 : index
    %c0_245 = arith.constant 0 : index
    %637 = vector.load %arg35[%c0_244, %c0_245] : memref<32x96xf32, #tpu.memory_space<vmem>>, vector<32x96xf32>
    %c0_246 = arith.constant 0 : index
    %c0_247 = arith.constant 0 : index
    %638 = vector.load %arg33[%c0_246, %c0_247] : memref<1x96xf32, #tpu.memory_space<vmem>>, vector<1x96xf32>
    %c0_248 = arith.constant 0 : index
    %c0_249 = arith.constant 0 : index
    %639 = vector.load %arg34[%c0_248, %c0_249] : memref<32x32xf32, #tpu.memory_space<vmem>>, vector<32x32xf32>
    %c0_250 = arith.constant 0 : index
    %c0_251 = arith.constant 0 : index
    %640 = vector.load %arg32[%c0_250, %c0_251] : memref<1x32xf32, #tpu.memory_space<vmem>>, vector<1x32xf32>
    %cst_252 = arith.constant dense<0.000000e+00> : vector<16x96xf32>
    %641 = tpu.matmul %636, %637, %cst_252 {dimension_numbers = #tpu.dot_dimension_numbers<[1], [0], [0], [1], [0, 0, 1, 1], [], []>} : vector<16x32xf32>, vector<32x96xf32>, vector<16x96xf32> -> vector<16x96xf32>
    %642 = vector.broadcast %638 : vector<1x96xf32> to vector<16x96xf32>
    %643 = arith.addf %641, %642 : vector<16x96xf32>
    %644 = vector.extract_strided_slice %643 {offsets = [0, 0], sizes = [16, 32], strides = [1, 1]} : vector<16x96xf32> to vector<16x32xf32>
    %645 = vector.extract_strided_slice %643 {offsets = [0, 32], sizes = [16, 32], strides = [1, 1]} : vector<16x96xf32> to vector<16x32xf32>
    %646 = vector.extract_strided_slice %643 {offsets = [0, 64], sizes = [16, 32], strides = [1, 1]} : vector<16x96xf32> to vector<16x32xf32>
    %647 = tpu.iota {dimensions = array<i32: 0>} : vector<8x8xi32>
    %648 = tpu.iota {dimensions = array<i32: 1>} : vector<8x8xi32>
    %649 = vector.extract_strided_slice %644 {offsets = [0, 0], sizes = [8, 32], strides = [1, 1]} : vector<16x32xf32> to vector<8x32xf32>
    %650 = vector.extract_strided_slice %645 {offsets = [0, 0], sizes = [8, 32], strides = [1, 1]} : vector<16x32xf32> to vector<8x32xf32>
    %651 = vector.extract_strided_slice %646 {offsets = [0, 0], sizes = [8, 32], strides = [1, 1]} : vector<16x32xf32> to vector<8x32xf32>
    %652 = vector.extract_strided_slice %649 {offsets = [0, 0], sizes = [8, 16], strides = [1, 1]} : vector<8x32xf32> to vector<8x16xf32>
    %653 = vector.extract_strided_slice %650 {offsets = [0, 0], sizes = [8, 16], strides = [1, 1]} : vector<8x32xf32> to vector<8x16xf32>
    %654 = vector.extract_strided_slice %651 {offsets = [0, 0], sizes = [8, 16], strides = [1, 1]} : vector<8x32xf32> to vector<8x16xf32>
    %cst_253 = arith.constant dense<0.000000e+00> : vector<8x8xf32>
    %655 = tpu.matmul %652, %653, %cst_253 {dimension_numbers = #tpu.dot_dimension_numbers<[1], [1], [0], [0], [0, 0, 1, 0], [], []>} : vector<8x16xf32>, vector<8x16xf32>, vector<8x8xf32> -> vector<8x8xf32>
    %cst_254 = arith.constant 2.500000e-01 : f32
    %656 = vector.broadcast %cst_254 : f32 to vector<8x8xf32>
    %657 = arith.mulf %655, %656 : vector<8x8xf32>
    %658 = arith.cmpi sle, %648, %647 : vector<8x8xi32>
    %cst_255 = arith.constant -1.000000e+30 : f32
    %659 = vector.broadcast %cst_255 : f32 to vector<8x8xf32>
    %660 = arith.select %658, %657, %659 : vector<8x8xi1>, vector<8x8xf32>
    %cst_256 = arith.constant dense<0xFF800000> : vector<8xf32>
    %661 = vector.multi_reduction <maximumf>, %660, %cst_256 [1] : vector<8x8xf32> to vector<8xf32>
    %662 = vector.shape_cast %661 : vector<8xf32> to vector<8x1xf32>
    %663 = vector.broadcast %662 : vector<8x1xf32> to vector<8x8xf32>
    %664 = arith.subf %660, %663 : vector<8x8xf32>
    %665 = math.exp %664 : vector<8x8xf32>
    %cst_257 = arith.constant dense<0.000000e+00> : vector<8xf32>
    %666 = vector.multi_reduction <add>, %665, %cst_257 [1] : vector<8x8xf32> to vector<8xf32>
    %667 = vector.shape_cast %666 : vector<8xf32> to vector<8x1xf32>
    %668 = tpu.reciprocal %667 {approx = true} : vector<8x1xf32> -> vector<8x1xf32>
    %669 = vector.broadcast %668 : vector<8x1xf32> to vector<8x8xf32>
    %670 = arith.mulf %665, %669 : vector<8x8xf32>
    %cst_258 = arith.constant dense<0.000000e+00> : vector<8x16xf32>
    %671 = tpu.matmul %670, %654, %cst_258 {dimension_numbers = #tpu.dot_dimension_numbers<[1], [0], [0], [1], [0, 0, 1, 1], [], []>} : vector<8x8xf32>, vector<8x16xf32>, vector<8x16xf32> -> vector<8x16xf32>
    %672 = vector.extract_strided_slice %639 {offsets = [0, 0], sizes = [16, 32], strides = [1, 1]} : vector<32x32xf32> to vector<16x32xf32>
    %cst_259 = arith.constant dense<0.000000e+00> : vector<8x32xf32>
    %673 = tpu.matmul %671, %672, %cst_259 {dimension_numbers = #tpu.dot_dimension_numbers<[1], [0], [0], [1], [0, 0, 1, 1], [], []>} : vector<8x16xf32>, vector<16x32xf32>, vector<8x32xf32> -> vector<8x32xf32>
    %674 = vector.broadcast %640 : vector<1x32xf32> to vector<8x32xf32>
    %675 = arith.addf %674, %673 : vector<8x32xf32>
    %676 = vector.extract_strided_slice %649 {offsets = [0, 16], sizes = [8, 16], strides = [1, 1]} : vector<8x32xf32> to vector<8x16xf32>
    %677 = vector.extract_strided_slice %650 {offsets = [0, 16], sizes = [8, 16], strides = [1, 1]} : vector<8x32xf32> to vector<8x16xf32>
    %678 = vector.extract_strided_slice %651 {offsets = [0, 16], sizes = [8, 16], strides = [1, 1]} : vector<8x32xf32> to vector<8x16xf32>
    %cst_260 = arith.constant dense<0.000000e+00> : vector<8x8xf32>
    %679 = tpu.matmul %676, %677, %cst_260 {dimension_numbers = #tpu.dot_dimension_numbers<[1], [1], [0], [0], [0, 0, 1, 0], [], []>} : vector<8x16xf32>, vector<8x16xf32>, vector<8x8xf32> -> vector<8x8xf32>
    %cst_261 = arith.constant 2.500000e-01 : f32
    %680 = vector.broadcast %cst_261 : f32 to vector<8x8xf32>
    %681 = arith.mulf %679, %680 : vector<8x8xf32>
    %682 = arith.cmpi sle, %648, %647 : vector<8x8xi32>
    %cst_262 = arith.constant -1.000000e+30 : f32
    %683 = vector.broadcast %cst_262 : f32 to vector<8x8xf32>
    %684 = arith.select %682, %681, %683 : vector<8x8xi1>, vector<8x8xf32>
    %cst_263 = arith.constant dense<0xFF800000> : vector<8xf32>
    %685 = vector.multi_reduction <maximumf>, %684, %cst_263 [1] : vector<8x8xf32> to vector<8xf32>
    %686 = vector.shape_cast %685 : vector<8xf32> to vector<8x1xf32>
    %687 = vector.broadcast %686 : vector<8x1xf32> to vector<8x8xf32>
    %688 = arith.subf %684, %687 : vector<8x8xf32>
    %689 = math.exp %688 : vector<8x8xf32>
    %cst_264 = arith.constant dense<0.000000e+00> : vector<8xf32>
    %690 = vector.multi_reduction <add>, %689, %cst_264 [1] : vector<8x8xf32> to vector<8xf32>
    %691 = vector.shape_cast %690 : vector<8xf32> to vector<8x1xf32>
    %692 = tpu.reciprocal %691 {approx = true} : vector<8x1xf32> -> vector<8x1xf32>
    %693 = vector.broadcast %692 : vector<8x1xf32> to vector<8x8xf32>
    %694 = arith.mulf %689, %693 : vector<8x8xf32>
    %cst_265 = arith.constant dense<0.000000e+00> : vector<8x16xf32>
    %695 = tpu.matmul %694, %678, %cst_265 {dimension_numbers = #tpu.dot_dimension_numbers<[1], [0], [0], [1], [0, 0, 1, 1], [], []>} : vector<8x8xf32>, vector<8x16xf32>, vector<8x16xf32> -> vector<8x16xf32>
    %696 = vector.extract_strided_slice %639 {offsets = [16, 0], sizes = [16, 32], strides = [1, 1]} : vector<32x32xf32> to vector<16x32xf32>
    %cst_266 = arith.constant dense<0.000000e+00> : vector<8x32xf32>
    %697 = tpu.matmul %695, %696, %cst_266 {dimension_numbers = #tpu.dot_dimension_numbers<[1], [0], [0], [1], [0, 0, 1, 1], [], []>} : vector<8x16xf32>, vector<16x32xf32>, vector<8x32xf32> -> vector<8x32xf32>
    %698 = arith.addf %675, %697 : vector<8x32xf32>
    %699 = vector.extract_strided_slice %644 {offsets = [8, 0], sizes = [8, 32], strides = [1, 1]} : vector<16x32xf32> to vector<8x32xf32>
    %700 = vector.extract_strided_slice %645 {offsets = [8, 0], sizes = [8, 32], strides = [1, 1]} : vector<16x32xf32> to vector<8x32xf32>
    %701 = vector.extract_strided_slice %646 {offsets = [8, 0], sizes = [8, 32], strides = [1, 1]} : vector<16x32xf32> to vector<8x32xf32>
    %702 = vector.extract_strided_slice %699 {offsets = [0, 0], sizes = [8, 16], strides = [1, 1]} : vector<8x32xf32> to vector<8x16xf32>
    %703 = vector.extract_strided_slice %700 {offsets = [0, 0], sizes = [8, 16], strides = [1, 1]} : vector<8x32xf32> to vector<8x16xf32>
    %704 = vector.extract_strided_slice %701 {offsets = [0, 0], sizes = [8, 16], strides = [1, 1]} : vector<8x32xf32> to vector<8x16xf32>
    %cst_267 = arith.constant dense<0.000000e+00> : vector<8x8xf32>
    %705 = tpu.matmul %702, %703, %cst_267 {dimension_numbers = #tpu.dot_dimension_numbers<[1], [1], [0], [0], [0, 0, 1, 0], [], []>} : vector<8x16xf32>, vector<8x16xf32>, vector<8x8xf32> -> vector<8x8xf32>
    %cst_268 = arith.constant 2.500000e-01 : f32
    %706 = vector.broadcast %cst_268 : f32 to vector<8x8xf32>
    %707 = arith.mulf %705, %706 : vector<8x8xf32>
    %708 = arith.cmpi sle, %648, %647 : vector<8x8xi32>
    %cst_269 = arith.constant -1.000000e+30 : f32
    %709 = vector.broadcast %cst_269 : f32 to vector<8x8xf32>
    %710 = arith.select %708, %707, %709 : vector<8x8xi1>, vector<8x8xf32>
    %cst_270 = arith.constant dense<0xFF800000> : vector<8xf32>
    %711 = vector.multi_reduction <maximumf>, %710, %cst_270 [1] : vector<8x8xf32> to vector<8xf32>
    %712 = vector.shape_cast %711 : vector<8xf32> to vector<8x1xf32>
    %713 = vector.broadcast %712 : vector<8x1xf32> to vector<8x8xf32>
    %714 = arith.subf %710, %713 : vector<8x8xf32>
    %715 = math.exp %714 : vector<8x8xf32>
    %cst_271 = arith.constant dense<0.000000e+00> : vector<8xf32>
    %716 = vector.multi_reduction <add>, %715, %cst_271 [1] : vector<8x8xf32> to vector<8xf32>
    %717 = vector.shape_cast %716 : vector<8xf32> to vector<8x1xf32>
    %718 = tpu.reciprocal %717 {approx = true} : vector<8x1xf32> -> vector<8x1xf32>
    %719 = vector.broadcast %718 : vector<8x1xf32> to vector<8x8xf32>
    %720 = arith.mulf %715, %719 : vector<8x8xf32>
    %cst_272 = arith.constant dense<0.000000e+00> : vector<8x16xf32>
    %721 = tpu.matmul %720, %704, %cst_272 {dimension_numbers = #tpu.dot_dimension_numbers<[1], [0], [0], [1], [0, 0, 1, 1], [], []>} : vector<8x8xf32>, vector<8x16xf32>, vector<8x16xf32> -> vector<8x16xf32>
    %722 = vector.extract_strided_slice %639 {offsets = [0, 0], sizes = [16, 32], strides = [1, 1]} : vector<32x32xf32> to vector<16x32xf32>
    %cst_273 = arith.constant dense<0.000000e+00> : vector<8x32xf32>
    %723 = tpu.matmul %721, %722, %cst_273 {dimension_numbers = #tpu.dot_dimension_numbers<[1], [0], [0], [1], [0, 0, 1, 1], [], []>} : vector<8x16xf32>, vector<16x32xf32>, vector<8x32xf32> -> vector<8x32xf32>
    %724 = vector.broadcast %640 : vector<1x32xf32> to vector<8x32xf32>
    %725 = arith.addf %724, %723 : vector<8x32xf32>
    %726 = vector.extract_strided_slice %699 {offsets = [0, 16], sizes = [8, 16], strides = [1, 1]} : vector<8x32xf32> to vector<8x16xf32>
    %727 = vector.extract_strided_slice %700 {offsets = [0, 16], sizes = [8, 16], strides = [1, 1]} : vector<8x32xf32> to vector<8x16xf32>
    %728 = vector.extract_strided_slice %701 {offsets = [0, 16], sizes = [8, 16], strides = [1, 1]} : vector<8x32xf32> to vector<8x16xf32>
    %cst_274 = arith.constant dense<0.000000e+00> : vector<8x8xf32>
    %729 = tpu.matmul %726, %727, %cst_274 {dimension_numbers = #tpu.dot_dimension_numbers<[1], [1], [0], [0], [0, 0, 1, 0], [], []>} : vector<8x16xf32>, vector<8x16xf32>, vector<8x8xf32> -> vector<8x8xf32>
    %cst_275 = arith.constant 2.500000e-01 : f32
    %730 = vector.broadcast %cst_275 : f32 to vector<8x8xf32>
    %731 = arith.mulf %729, %730 : vector<8x8xf32>
    %732 = arith.cmpi sle, %648, %647 : vector<8x8xi32>
    %cst_276 = arith.constant -1.000000e+30 : f32
    %733 = vector.broadcast %cst_276 : f32 to vector<8x8xf32>
    %734 = arith.select %732, %731, %733 : vector<8x8xi1>, vector<8x8xf32>
    %cst_277 = arith.constant dense<0xFF800000> : vector<8xf32>
    %735 = vector.multi_reduction <maximumf>, %734, %cst_277 [1] : vector<8x8xf32> to vector<8xf32>
    %736 = vector.shape_cast %735 : vector<8xf32> to vector<8x1xf32>
    %737 = vector.broadcast %736 : vector<8x1xf32> to vector<8x8xf32>
    %738 = arith.subf %734, %737 : vector<8x8xf32>
    %739 = math.exp %738 : vector<8x8xf32>
    %cst_278 = arith.constant dense<0.000000e+00> : vector<8xf32>
    %740 = vector.multi_reduction <add>, %739, %cst_278 [1] : vector<8x8xf32> to vector<8xf32>
    %741 = vector.shape_cast %740 : vector<8xf32> to vector<8x1xf32>
    %742 = tpu.reciprocal %741 {approx = true} : vector<8x1xf32> -> vector<8x1xf32>
    %743 = vector.broadcast %742 : vector<8x1xf32> to vector<8x8xf32>
    %744 = arith.mulf %739, %743 : vector<8x8xf32>
    %cst_279 = arith.constant dense<0.000000e+00> : vector<8x16xf32>
    %745 = tpu.matmul %744, %728, %cst_279 {dimension_numbers = #tpu.dot_dimension_numbers<[1], [0], [0], [1], [0, 0, 1, 1], [], []>} : vector<8x8xf32>, vector<8x16xf32>, vector<8x16xf32> -> vector<8x16xf32>
    %746 = vector.extract_strided_slice %639 {offsets = [16, 0], sizes = [16, 32], strides = [1, 1]} : vector<32x32xf32> to vector<16x32xf32>
    %cst_280 = arith.constant dense<0.000000e+00> : vector<8x32xf32>
    %747 = tpu.matmul %745, %746, %cst_280 {dimension_numbers = #tpu.dot_dimension_numbers<[1], [0], [0], [1], [0, 0, 1, 1], [], []>} : vector<8x16xf32>, vector<16x32xf32>, vector<8x32xf32> -> vector<8x32xf32>
    %748 = arith.addf %725, %747 : vector<8x32xf32>
    %749 = tpu.concatenate %698, %748 in 0 : vector<8x32xf32>, vector<8x32xf32> -> vector<16x32xf32>
    %750 = arith.addf %636, %749 : vector<16x32xf32>
    %c0_281 = arith.constant 0 : index
    %c0_282 = arith.constant 0 : index
    %751 = vector.load %arg27[%c0_281, %c0_282] : memref<1x32xf32, #tpu.memory_space<vmem>>, vector<1x32xf32>
    %c0_283 = arith.constant 0 : index
    %c0_284 = arith.constant 0 : index
    %752 = vector.load %arg26[%c0_283, %c0_284] : memref<1x32xf32, #tpu.memory_space<vmem>>, vector<1x32xf32>
    %cst_285 = arith.constant dense<0.000000e+00> : vector<16xf32>
    %753 = vector.multi_reduction <add>, %750, %cst_285 [1] : vector<16x32xf32> to vector<16xf32>
    %754 = vector.shape_cast %753 : vector<16xf32> to vector<16x1xf32>
    %cst_286 = arith.constant 3.200000e+01 : f32
    %755 = vector.broadcast %cst_286 : f32 to vector<16x1xf32>
    %756 = arith.divf %754, %755 : vector<16x1xf32>
    %757 = vector.broadcast %756 : vector<16x1xf32> to vector<16x32xf32>
    %758 = arith.subf %750, %757 : vector<16x32xf32>
    %759 = arith.mulf %758, %758 : vector<16x32xf32>
    %cst_287 = arith.constant dense<0.000000e+00> : vector<16xf32>
    %760 = vector.multi_reduction <add>, %759, %cst_287 [1] : vector<16x32xf32> to vector<16xf32>
    %761 = vector.shape_cast %760 : vector<16xf32> to vector<16x1xf32>
    %cst_288 = arith.constant 3.200000e+01 : f32
    %762 = vector.broadcast %cst_288 : f32 to vector<16x1xf32>
    %763 = arith.divf %761, %762 : vector<16x1xf32>
    %cst_289 = arith.constant 9.99999974E-6 : f32
    %764 = vector.broadcast %cst_289 : f32 to vector<16x1xf32>
    %765 = arith.addf %763, %764 : vector<16x1xf32>
    %766 = math.rsqrt %765 : vector<16x1xf32>
    %767 = vector.broadcast %766 : vector<16x1xf32> to vector<16x32xf32>
    %768 = arith.mulf %758, %767 : vector<16x32xf32>
    %769 = vector.broadcast %751 : vector<1x32xf32> to vector<16x32xf32>
    %770 = arith.mulf %768, %769 : vector<16x32xf32>
    %771 = vector.broadcast %752 : vector<1x32xf32> to vector<16x32xf32>
    %772 = arith.addf %770, %771 : vector<16x32xf32>
    %c0_290 = arith.constant 0 : index
    %c0_291 = arith.constant 0 : index
    %773 = vector.load %arg21[%c0_290, %c0_291] : memref<32x96xf32, #tpu.memory_space<vmem>>, vector<32x96xf32>
    %c0_292 = arith.constant 0 : index
    %c0_293 = arith.constant 0 : index
    %774 = vector.load %arg19[%c0_292, %c0_293] : memref<1x96xf32, #tpu.memory_space<vmem>>, vector<1x96xf32>
    %c0_294 = arith.constant 0 : index
    %c0_295 = arith.constant 0 : index
    %775 = vector.load %arg20[%c0_294, %c0_295] : memref<32x32xf32, #tpu.memory_space<vmem>>, vector<32x32xf32>
    %c0_296 = arith.constant 0 : index
    %c0_297 = arith.constant 0 : index
    %776 = vector.load %arg18[%c0_296, %c0_297] : memref<1x32xf32, #tpu.memory_space<vmem>>, vector<1x32xf32>
    %777 = vector.extract_strided_slice %773 {offsets = [0, 0], sizes = [32, 32], strides = [1, 1]} : vector<32x96xf32> to vector<32x32xf32>
    %cst_298 = arith.constant dense<0.000000e+00> : vector<16x32xf32>
    %778 = tpu.matmul %772, %777, %cst_298 {dimension_numbers = #tpu.dot_dimension_numbers<[1], [0], [0], [1], [0, 0, 1, 1], [], []>} : vector<16x32xf32>, vector<32x32xf32>, vector<16x32xf32> -> vector<16x32xf32>
    %779 = vector.extract_strided_slice %774 {offsets = [0, 0], sizes = [1, 32], strides = [1, 1]} : vector<1x96xf32> to vector<1x32xf32>
    %780 = vector.broadcast %779 : vector<1x32xf32> to vector<16x32xf32>
    %781 = arith.addf %778, %780 : vector<16x32xf32>
    %782 = vector.extract_strided_slice %773 {offsets = [0, 32], sizes = [32, 64], strides = [1, 1]} : vector<32x96xf32> to vector<32x64xf32>
    %cst_299 = arith.constant dense<0.000000e+00> : vector<16x64xf32>
    %783 = tpu.matmul %336, %782, %cst_299 {dimension_numbers = #tpu.dot_dimension_numbers<[1], [0], [0], [1], [0, 0, 1, 1], [], []>} : vector<16x32xf32>, vector<32x64xf32>, vector<16x64xf32> -> vector<16x64xf32>
    %784 = vector.extract_strided_slice %774 {offsets = [0, 32], sizes = [1, 64], strides = [1, 1]} : vector<1x96xf32> to vector<1x64xf32>
    %785 = vector.broadcast %784 : vector<1x64xf32> to vector<16x64xf32>
    %786 = arith.addf %783, %785 : vector<16x64xf32>
    %787 = vector.extract_strided_slice %786 {offsets = [0, 0], sizes = [16, 32], strides = [1, 1]} : vector<16x64xf32> to vector<16x32xf32>
    %788 = vector.extract_strided_slice %786 {offsets = [0, 32], sizes = [16, 32], strides = [1, 1]} : vector<16x64xf32> to vector<16x32xf32>
    %789 = vector.extract_strided_slice %781 {offsets = [0, 0], sizes = [8, 32], strides = [1, 1]} : vector<16x32xf32> to vector<8x32xf32>
    %790 = vector.extract_strided_slice %787 {offsets = [0, 0], sizes = [8, 32], strides = [1, 1]} : vector<16x32xf32> to vector<8x32xf32>
    %791 = vector.extract_strided_slice %788 {offsets = [0, 0], sizes = [8, 32], strides = [1, 1]} : vector<16x32xf32> to vector<8x32xf32>
    %792 = vector.extract_strided_slice %789 {offsets = [0, 0], sizes = [8, 16], strides = [1, 1]} : vector<8x32xf32> to vector<8x16xf32>
    %793 = vector.extract_strided_slice %790 {offsets = [0, 0], sizes = [8, 16], strides = [1, 1]} : vector<8x32xf32> to vector<8x16xf32>
    %794 = vector.extract_strided_slice %791 {offsets = [0, 0], sizes = [8, 16], strides = [1, 1]} : vector<8x32xf32> to vector<8x16xf32>
    %cst_300 = arith.constant dense<0.000000e+00> : vector<8x8xf32>
    %795 = tpu.matmul %792, %793, %cst_300 {dimension_numbers = #tpu.dot_dimension_numbers<[1], [1], [0], [0], [0, 0, 1, 0], [], []>} : vector<8x16xf32>, vector<8x16xf32>, vector<8x8xf32> -> vector<8x8xf32>
    %cst_301 = arith.constant 2.500000e-01 : f32
    %796 = vector.broadcast %cst_301 : f32 to vector<8x8xf32>
    %797 = arith.mulf %795, %796 : vector<8x8xf32>
    %cst_302 = arith.constant dense<0xFF800000> : vector<8xf32>
    %798 = vector.multi_reduction <maximumf>, %797, %cst_302 [1] : vector<8x8xf32> to vector<8xf32>
    %799 = vector.shape_cast %798 : vector<8xf32> to vector<8x1xf32>
    %800 = vector.broadcast %799 : vector<8x1xf32> to vector<8x8xf32>
    %801 = arith.subf %797, %800 : vector<8x8xf32>
    %802 = math.exp %801 : vector<8x8xf32>
    %cst_303 = arith.constant dense<0.000000e+00> : vector<8xf32>
    %803 = vector.multi_reduction <add>, %802, %cst_303 [1] : vector<8x8xf32> to vector<8xf32>
    %804 = vector.shape_cast %803 : vector<8xf32> to vector<8x1xf32>
    %805 = tpu.reciprocal %804 {approx = true} : vector<8x1xf32> -> vector<8x1xf32>
    %806 = vector.broadcast %805 : vector<8x1xf32> to vector<8x8xf32>
    %807 = arith.mulf %802, %806 : vector<8x8xf32>
    %cst_304 = arith.constant dense<0.000000e+00> : vector<8x16xf32>
    %808 = tpu.matmul %807, %794, %cst_304 {dimension_numbers = #tpu.dot_dimension_numbers<[1], [0], [0], [1], [0, 0, 1, 1], [], []>} : vector<8x8xf32>, vector<8x16xf32>, vector<8x16xf32> -> vector<8x16xf32>
    %809 = vector.extract_strided_slice %775 {offsets = [0, 0], sizes = [16, 32], strides = [1, 1]} : vector<32x32xf32> to vector<16x32xf32>
    %cst_305 = arith.constant dense<0.000000e+00> : vector<8x32xf32>
    %810 = tpu.matmul %808, %809, %cst_305 {dimension_numbers = #tpu.dot_dimension_numbers<[1], [0], [0], [1], [0, 0, 1, 1], [], []>} : vector<8x16xf32>, vector<16x32xf32>, vector<8x32xf32> -> vector<8x32xf32>
    %811 = vector.broadcast %776 : vector<1x32xf32> to vector<8x32xf32>
    %812 = arith.addf %811, %810 : vector<8x32xf32>
    %813 = vector.extract_strided_slice %789 {offsets = [0, 16], sizes = [8, 16], strides = [1, 1]} : vector<8x32xf32> to vector<8x16xf32>
    %814 = vector.extract_strided_slice %790 {offsets = [0, 16], sizes = [8, 16], strides = [1, 1]} : vector<8x32xf32> to vector<8x16xf32>
    %815 = vector.extract_strided_slice %791 {offsets = [0, 16], sizes = [8, 16], strides = [1, 1]} : vector<8x32xf32> to vector<8x16xf32>
    %cst_306 = arith.constant dense<0.000000e+00> : vector<8x8xf32>
    %816 = tpu.matmul %813, %814, %cst_306 {dimension_numbers = #tpu.dot_dimension_numbers<[1], [1], [0], [0], [0, 0, 1, 0], [], []>} : vector<8x16xf32>, vector<8x16xf32>, vector<8x8xf32> -> vector<8x8xf32>
    %cst_307 = arith.constant 2.500000e-01 : f32
    %817 = vector.broadcast %cst_307 : f32 to vector<8x8xf32>
    %818 = arith.mulf %816, %817 : vector<8x8xf32>
    %cst_308 = arith.constant dense<0xFF800000> : vector<8xf32>
    %819 = vector.multi_reduction <maximumf>, %818, %cst_308 [1] : vector<8x8xf32> to vector<8xf32>
    %820 = vector.shape_cast %819 : vector<8xf32> to vector<8x1xf32>
    %821 = vector.broadcast %820 : vector<8x1xf32> to vector<8x8xf32>
    %822 = arith.subf %818, %821 : vector<8x8xf32>
    %823 = math.exp %822 : vector<8x8xf32>
    %cst_309 = arith.constant dense<0.000000e+00> : vector<8xf32>
    %824 = vector.multi_reduction <add>, %823, %cst_309 [1] : vector<8x8xf32> to vector<8xf32>
    %825 = vector.shape_cast %824 : vector<8xf32> to vector<8x1xf32>
    %826 = tpu.reciprocal %825 {approx = true} : vector<8x1xf32> -> vector<8x1xf32>
    %827 = vector.broadcast %826 : vector<8x1xf32> to vector<8x8xf32>
    %828 = arith.mulf %823, %827 : vector<8x8xf32>
    %cst_310 = arith.constant dense<0.000000e+00> : vector<8x16xf32>
    %829 = tpu.matmul %828, %815, %cst_310 {dimension_numbers = #tpu.dot_dimension_numbers<[1], [0], [0], [1], [0, 0, 1, 1], [], []>} : vector<8x8xf32>, vector<8x16xf32>, vector<8x16xf32> -> vector<8x16xf32>
    %830 = vector.extract_strided_slice %775 {offsets = [16, 0], sizes = [16, 32], strides = [1, 1]} : vector<32x32xf32> to vector<16x32xf32>
    %cst_311 = arith.constant dense<0.000000e+00> : vector<8x32xf32>
    %831 = tpu.matmul %829, %830, %cst_311 {dimension_numbers = #tpu.dot_dimension_numbers<[1], [0], [0], [1], [0, 0, 1, 1], [], []>} : vector<8x16xf32>, vector<16x32xf32>, vector<8x32xf32> -> vector<8x32xf32>
    %832 = arith.addf %812, %831 : vector<8x32xf32>
    %833 = vector.extract_strided_slice %781 {offsets = [8, 0], sizes = [8, 32], strides = [1, 1]} : vector<16x32xf32> to vector<8x32xf32>
    %834 = vector.extract_strided_slice %787 {offsets = [8, 0], sizes = [8, 32], strides = [1, 1]} : vector<16x32xf32> to vector<8x32xf32>
    %835 = vector.extract_strided_slice %788 {offsets = [8, 0], sizes = [8, 32], strides = [1, 1]} : vector<16x32xf32> to vector<8x32xf32>
    %836 = vector.extract_strided_slice %833 {offsets = [0, 0], sizes = [8, 16], strides = [1, 1]} : vector<8x32xf32> to vector<8x16xf32>
    %837 = vector.extract_strided_slice %834 {offsets = [0, 0], sizes = [8, 16], strides = [1, 1]} : vector<8x32xf32> to vector<8x16xf32>
    %838 = vector.extract_strided_slice %835 {offsets = [0, 0], sizes = [8, 16], strides = [1, 1]} : vector<8x32xf32> to vector<8x16xf32>
    %cst_312 = arith.constant dense<0.000000e+00> : vector<8x8xf32>
    %839 = tpu.matmul %836, %837, %cst_312 {dimension_numbers = #tpu.dot_dimension_numbers<[1], [1], [0], [0], [0, 0, 1, 0], [], []>} : vector<8x16xf32>, vector<8x16xf32>, vector<8x8xf32> -> vector<8x8xf32>
    %cst_313 = arith.constant 2.500000e-01 : f32
    %840 = vector.broadcast %cst_313 : f32 to vector<8x8xf32>
    %841 = arith.mulf %839, %840 : vector<8x8xf32>
    %cst_314 = arith.constant dense<0xFF800000> : vector<8xf32>
    %842 = vector.multi_reduction <maximumf>, %841, %cst_314 [1] : vector<8x8xf32> to vector<8xf32>
    %843 = vector.shape_cast %842 : vector<8xf32> to vector<8x1xf32>
    %844 = vector.broadcast %843 : vector<8x1xf32> to vector<8x8xf32>
    %845 = arith.subf %841, %844 : vector<8x8xf32>
    %846 = math.exp %845 : vector<8x8xf32>
    %cst_315 = arith.constant dense<0.000000e+00> : vector<8xf32>
    %847 = vector.multi_reduction <add>, %846, %cst_315 [1] : vector<8x8xf32> to vector<8xf32>
    %848 = vector.shape_cast %847 : vector<8xf32> to vector<8x1xf32>
    %849 = tpu.reciprocal %848 {approx = true} : vector<8x1xf32> -> vector<8x1xf32>
    %850 = vector.broadcast %849 : vector<8x1xf32> to vector<8x8xf32>
    %851 = arith.mulf %846, %850 : vector<8x8xf32>
    %cst_316 = arith.constant dense<0.000000e+00> : vector<8x16xf32>
    %852 = tpu.matmul %851, %838, %cst_316 {dimension_numbers = #tpu.dot_dimension_numbers<[1], [0], [0], [1], [0, 0, 1, 1], [], []>} : vector<8x8xf32>, vector<8x16xf32>, vector<8x16xf32> -> vector<8x16xf32>
    %853 = vector.extract_strided_slice %775 {offsets = [0, 0], sizes = [16, 32], strides = [1, 1]} : vector<32x32xf32> to vector<16x32xf32>
    %cst_317 = arith.constant dense<0.000000e+00> : vector<8x32xf32>
    %854 = tpu.matmul %852, %853, %cst_317 {dimension_numbers = #tpu.dot_dimension_numbers<[1], [0], [0], [1], [0, 0, 1, 1], [], []>} : vector<8x16xf32>, vector<16x32xf32>, vector<8x32xf32> -> vector<8x32xf32>
    %855 = vector.broadcast %776 : vector<1x32xf32> to vector<8x32xf32>
    %856 = arith.addf %855, %854 : vector<8x32xf32>
    %857 = vector.extract_strided_slice %833 {offsets = [0, 16], sizes = [8, 16], strides = [1, 1]} : vector<8x32xf32> to vector<8x16xf32>
    %858 = vector.extract_strided_slice %834 {offsets = [0, 16], sizes = [8, 16], strides = [1, 1]} : vector<8x32xf32> to vector<8x16xf32>
    %859 = vector.extract_strided_slice %835 {offsets = [0, 16], sizes = [8, 16], strides = [1, 1]} : vector<8x32xf32> to vector<8x16xf32>
    %cst_318 = arith.constant dense<0.000000e+00> : vector<8x8xf32>
    %860 = tpu.matmul %857, %858, %cst_318 {dimension_numbers = #tpu.dot_dimension_numbers<[1], [1], [0], [0], [0, 0, 1, 0], [], []>} : vector<8x16xf32>, vector<8x16xf32>, vector<8x8xf32> -> vector<8x8xf32>
    %cst_319 = arith.constant 2.500000e-01 : f32
    %861 = vector.broadcast %cst_319 : f32 to vector<8x8xf32>
    %862 = arith.mulf %860, %861 : vector<8x8xf32>
    %cst_320 = arith.constant dense<0xFF800000> : vector<8xf32>
    %863 = vector.multi_reduction <maximumf>, %862, %cst_320 [1] : vector<8x8xf32> to vector<8xf32>
    %864 = vector.shape_cast %863 : vector<8xf32> to vector<8x1xf32>
    %865 = vector.broadcast %864 : vector<8x1xf32> to vector<8x8xf32>
    %866 = arith.subf %862, %865 : vector<8x8xf32>
    %867 = math.exp %866 : vector<8x8xf32>
    %cst_321 = arith.constant dense<0.000000e+00> : vector<8xf32>
    %868 = vector.multi_reduction <add>, %867, %cst_321 [1] : vector<8x8xf32> to vector<8xf32>
    %869 = vector.shape_cast %868 : vector<8xf32> to vector<8x1xf32>
    %870 = tpu.reciprocal %869 {approx = true} : vector<8x1xf32> -> vector<8x1xf32>
    %871 = vector.broadcast %870 : vector<8x1xf32> to vector<8x8xf32>
    %872 = arith.mulf %867, %871 : vector<8x8xf32>
    %cst_322 = arith.constant dense<0.000000e+00> : vector<8x16xf32>
    %873 = tpu.matmul %872, %859, %cst_322 {dimension_numbers = #tpu.dot_dimension_numbers<[1], [0], [0], [1], [0, 0, 1, 1], [], []>} : vector<8x8xf32>, vector<8x16xf32>, vector<8x16xf32> -> vector<8x16xf32>
    %874 = vector.extract_strided_slice %775 {offsets = [16, 0], sizes = [16, 32], strides = [1, 1]} : vector<32x32xf32> to vector<16x32xf32>
    %cst_323 = arith.constant dense<0.000000e+00> : vector<8x32xf32>
    %875 = tpu.matmul %873, %874, %cst_323 {dimension_numbers = #tpu.dot_dimension_numbers<[1], [0], [0], [1], [0, 0, 1, 1], [], []>} : vector<8x16xf32>, vector<16x32xf32>, vector<8x32xf32> -> vector<8x32xf32>
    %876 = arith.addf %856, %875 : vector<8x32xf32>
    %877 = tpu.concatenate %832, %876 in 0 : vector<8x32xf32>, vector<8x32xf32> -> vector<16x32xf32>
    %878 = arith.addf %772, %877 : vector<16x32xf32>
    %c0_324 = arith.constant 0 : index
    %c0_325 = arith.constant 0 : index
    %879 = vector.load %arg29[%c0_324, %c0_325] : memref<1x32xf32, #tpu.memory_space<vmem>>, vector<1x32xf32>
    %c0_326 = arith.constant 0 : index
    %c0_327 = arith.constant 0 : index
    %880 = vector.load %arg28[%c0_326, %c0_327] : memref<1x32xf32, #tpu.memory_space<vmem>>, vector<1x32xf32>
    %cst_328 = arith.constant dense<0.000000e+00> : vector<16xf32>
    %881 = vector.multi_reduction <add>, %878, %cst_328 [1] : vector<16x32xf32> to vector<16xf32>
    %882 = vector.shape_cast %881 : vector<16xf32> to vector<16x1xf32>
    %cst_329 = arith.constant 3.200000e+01 : f32
    %883 = vector.broadcast %cst_329 : f32 to vector<16x1xf32>
    %884 = arith.divf %882, %883 : vector<16x1xf32>
    %885 = vector.broadcast %884 : vector<16x1xf32> to vector<16x32xf32>
    %886 = arith.subf %878, %885 : vector<16x32xf32>
    %887 = arith.mulf %886, %886 : vector<16x32xf32>
    %cst_330 = arith.constant dense<0.000000e+00> : vector<16xf32>
    %888 = vector.multi_reduction <add>, %887, %cst_330 [1] : vector<16x32xf32> to vector<16xf32>
    %889 = vector.shape_cast %888 : vector<16xf32> to vector<16x1xf32>
    %cst_331 = arith.constant 3.200000e+01 : f32
    %890 = vector.broadcast %cst_331 : f32 to vector<16x1xf32>
    %891 = arith.divf %889, %890 : vector<16x1xf32>
    %cst_332 = arith.constant 9.99999974E-6 : f32
    %892 = vector.broadcast %cst_332 : f32 to vector<16x1xf32>
    %893 = arith.addf %891, %892 : vector<16x1xf32>
    %894 = math.rsqrt %893 : vector<16x1xf32>
    %895 = vector.broadcast %894 : vector<16x1xf32> to vector<16x32xf32>
    %896 = arith.mulf %886, %895 : vector<16x32xf32>
    %897 = vector.broadcast %879 : vector<1x32xf32> to vector<16x32xf32>
    %898 = arith.mulf %896, %897 : vector<16x32xf32>
    %899 = vector.broadcast %880 : vector<1x32xf32> to vector<16x32xf32>
    %900 = arith.addf %898, %899 : vector<16x32xf32>
    %c0_333 = arith.constant 0 : index
    %c0_334 = arith.constant 0 : index
    %901 = vector.load %arg24[%c0_333, %c0_334] : memref<32x128xf32, #tpu.memory_space<vmem>>, vector<32x128xf32>
    %cst_335 = arith.constant dense<0.000000e+00> : vector<16x128xf32>
    %902 = tpu.matmul %900, %901, %cst_335 {dimension_numbers = #tpu.dot_dimension_numbers<[1], [0], [0], [1], [0, 0, 1, 1], [], []>} : vector<16x32xf32>, vector<32x128xf32>, vector<16x128xf32> -> vector<16x128xf32>
    %c0_336 = arith.constant 0 : index
    %c0_337 = arith.constant 0 : index
    %903 = vector.load %arg22[%c0_336, %c0_337] : memref<1x128xf32, #tpu.memory_space<vmem>>, vector<1x128xf32>
    %904 = vector.broadcast %903 : vector<1x128xf32> to vector<16x128xf32>
    %905 = arith.addf %902, %904 : vector<16x128xf32>
    %cst_338 = arith.constant 0.000000e+00 : f32
    %906 = vector.broadcast %cst_338 : f32 to vector<16x128xf32>
    %907 = arith.maximumf %905, %906 : vector<16x128xf32>
    %c0_339 = arith.constant 0 : index
    %c0_340 = arith.constant 0 : index
    %908 = vector.load %arg25[%c0_339, %c0_340] : memref<128x32xf32, #tpu.memory_space<vmem>>, vector<128x32xf32>
    %cst_341 = arith.constant dense<0.000000e+00> : vector<16x32xf32>
    %909 = tpu.matmul %907, %908, %cst_341 {dimension_numbers = #tpu.dot_dimension_numbers<[1], [0], [0], [1], [0, 0, 1, 1], [], []>} : vector<16x128xf32>, vector<128x32xf32>, vector<16x32xf32> -> vector<16x32xf32>
    %c0_342 = arith.constant 0 : index
    %c0_343 = arith.constant 0 : index
    %910 = vector.load %arg23[%c0_342, %c0_343] : memref<1x32xf32, #tpu.memory_space<vmem>>, vector<1x32xf32>
    %911 = vector.broadcast %910 : vector<1x32xf32> to vector<16x32xf32>
    %912 = arith.addf %909, %911 : vector<16x32xf32>
    %913 = arith.addf %900, %912 : vector<16x32xf32>
    %c0_344 = arith.constant 0 : index
    %c0_345 = arith.constant 0 : index
    %914 = vector.load %arg31[%c0_344, %c0_345] : memref<1x32xf32, #tpu.memory_space<vmem>>, vector<1x32xf32>
    %c0_346 = arith.constant 0 : index
    %c0_347 = arith.constant 0 : index
    %915 = vector.load %arg30[%c0_346, %c0_347] : memref<1x32xf32, #tpu.memory_space<vmem>>, vector<1x32xf32>
    %cst_348 = arith.constant dense<0.000000e+00> : vector<16xf32>
    %916 = vector.multi_reduction <add>, %913, %cst_348 [1] : vector<16x32xf32> to vector<16xf32>
    %917 = vector.shape_cast %916 : vector<16xf32> to vector<16x1xf32>
    %cst_349 = arith.constant 3.200000e+01 : f32
    %918 = vector.broadcast %cst_349 : f32 to vector<16x1xf32>
    %919 = arith.divf %917, %918 : vector<16x1xf32>
    %920 = vector.broadcast %919 : vector<16x1xf32> to vector<16x32xf32>
    %921 = arith.subf %913, %920 : vector<16x32xf32>
    %922 = arith.mulf %921, %921 : vector<16x32xf32>
    %cst_350 = arith.constant dense<0.000000e+00> : vector<16xf32>
    %923 = vector.multi_reduction <add>, %922, %cst_350 [1] : vector<16x32xf32> to vector<16xf32>
    %924 = vector.shape_cast %923 : vector<16xf32> to vector<16x1xf32>
    %cst_351 = arith.constant 3.200000e+01 : f32
    %925 = vector.broadcast %cst_351 : f32 to vector<16x1xf32>
    %926 = arith.divf %924, %925 : vector<16x1xf32>
    %cst_352 = arith.constant 9.99999974E-6 : f32
    %927 = vector.broadcast %cst_352 : f32 to vector<16x1xf32>
    %928 = arith.addf %926, %927 : vector<16x1xf32>
    %929 = math.rsqrt %928 : vector<16x1xf32>
    %930 = vector.broadcast %929 : vector<16x1xf32> to vector<16x32xf32>
    %931 = arith.mulf %921, %930 : vector<16x32xf32>
    %932 = vector.broadcast %914 : vector<1x32xf32> to vector<16x32xf32>
    %933 = arith.mulf %931, %932 : vector<16x32xf32>
    %934 = vector.broadcast %915 : vector<1x32xf32> to vector<16x32xf32>
    %935 = arith.addf %933, %934 : vector<16x32xf32>
    %c0_353 = arith.constant 0 : index
    %c0_354 = arith.constant 0 : index
    %936 = vector.load %arg37[%c0_353, %c0_354] : memref<1x32xf32, #tpu.memory_space<vmem>>, vector<1x32xf32>
    %c0_355 = arith.constant 0 : index
    %c0_356 = arith.constant 0 : index
    %937 = vector.load %arg36[%c0_355, %c0_356] : memref<1x32xf32, #tpu.memory_space<vmem>>, vector<1x32xf32>
    %cst_357 = arith.constant dense<0.000000e+00> : vector<16xf32>
    %938 = vector.multi_reduction <add>, %935, %cst_357 [1] : vector<16x32xf32> to vector<16xf32>
    %939 = vector.shape_cast %938 : vector<16xf32> to vector<16x1xf32>
    %cst_358 = arith.constant 3.200000e+01 : f32
    %940 = vector.broadcast %cst_358 : f32 to vector<16x1xf32>
    %941 = arith.divf %939, %940 : vector<16x1xf32>
    %942 = vector.broadcast %941 : vector<16x1xf32> to vector<16x32xf32>
    %943 = arith.subf %935, %942 : vector<16x32xf32>
    %944 = arith.mulf %943, %943 : vector<16x32xf32>
    %cst_359 = arith.constant dense<0.000000e+00> : vector<16xf32>
    %945 = vector.multi_reduction <add>, %944, %cst_359 [1] : vector<16x32xf32> to vector<16xf32>
    %946 = vector.shape_cast %945 : vector<16xf32> to vector<16x1xf32>
    %cst_360 = arith.constant 3.200000e+01 : f32
    %947 = vector.broadcast %cst_360 : f32 to vector<16x1xf32>
    %948 = arith.divf %946, %947 : vector<16x1xf32>
    %cst_361 = arith.constant 9.99999974E-6 : f32
    %949 = vector.broadcast %cst_361 : f32 to vector<16x1xf32>
    %950 = arith.addf %948, %949 : vector<16x1xf32>
    %951 = math.rsqrt %950 : vector<16x1xf32>
    %952 = vector.broadcast %951 : vector<16x1xf32> to vector<16x32xf32>
    %953 = arith.mulf %943, %952 : vector<16x32xf32>
    %954 = vector.broadcast %936 : vector<1x32xf32> to vector<16x32xf32>
    %955 = arith.mulf %953, %954 : vector<16x32xf32>
    %956 = vector.broadcast %937 : vector<1x32xf32> to vector<16x32xf32>
    %957 = arith.addf %955, %956 : vector<16x32xf32>
    %c0_362 = arith.constant 0 : index
    %c0_363 = arith.constant 0 : index
    %958 = vector.load %arg65[%c0_362, %c0_363] : memref<32x16xf32, #tpu.memory_space<vmem>>, vector<32x16xf32>
    %cst_364 = arith.constant dense<0.000000e+00> : vector<16x16xf32>
    %959 = tpu.matmul %957, %958, %cst_364 {dimension_numbers = #tpu.dot_dimension_numbers<[1], [0], [0], [1], [0, 0, 1, 1], [], []>} : vector<16x32xf32>, vector<32x16xf32>, vector<16x16xf32> -> vector<16x16xf32>
    %c0_365 = arith.constant 0 : index
    %c0_366 = arith.constant 0 : index
    %960 = vector.load %arg64[%c0_365, %c0_366] : memref<1x16xf32, #tpu.memory_space<vmem>>, vector<1x16xf32>
    %961 = vector.broadcast %960 : vector<1x16xf32> to vector<16x16xf32>
    %962 = arith.addf %959, %961 : vector<16x16xf32>
    %c0_367 = arith.constant 0 : index
    %c0_368 = arith.constant 0 : index
    %963 = vector.load %arg68[%c0_367, %c0_368] : memref<16x16xf32, #tpu.memory_space<vmem>>, vector<16x16xf32>
    tpu.vector_store %arg68[%c0_367, %c0_368], %962 {strides = array<i32>} : memref<16x16xf32, #tpu.memory_space<vmem>>, vector<16x16xf32>,
    return
  }
}

</mosaic_0001>

<bundles_post_ra>
// kernel: transformer_forward.1
= control target key start
LH: loop header
LB: loop body
LE: loop exit
PB: predicated region body
PF: predicated region fallthrough
CT: control target
= control target key end

     0   :  { %s11037_s6 = smov 1   ;;  %s11038_s10 = smov 2   ;;  %s12445_s0 = inlined_call_operand.smem [shape: u32[69], index: -1, kind: input, shape index: {}] }
   0x1   :  { %s11150_s5 = sld [smem:[%s12445_s0]]   ;;  %s11039_s14 = smov 3  }
   0x2   :  { %s11155_s9 = sld [smem:[%s12445_s0 + %s11037_s6]]   ;;  %s11040_s18 = smov 4  }
   0x3   :  { %s11160_s13 = sld [smem:[%s12445_s0 + %s11038_s10]]   ;;  %s11041_s22 = smov 5  }
   0x4   :  { %s11165_s17 = sld [smem:[%s12445_s0 + %s11039_s14]]   ;;  %s11042_s26 = smov 6  }
   0x5   :  { %s11170_s21 = sld [smem:[%s12445_s0 + %s11040_s18]]   ;;  %s11043_s30 = smov 7  }
   0x6   :  { %s11175_s25 = sld [smem:[%s12445_s0 + %s11041_s22]]   ;;  %s11044_s4 = smov 8  }
   0x7   :  { %12478 = sst [smem:[#allocation59_spill]] %s11150_s5  ;;  %s11045_s10 = smov 9  }
   0x8   :  { %12479 = sst [smem:[#allocation60_spill]] %s11155_s9  ;;  %s11046_s15 = smov 10  }
   0x9   :  { %12480 = sst [smem:[#allocation61_spill]] %s11160_s13  ;;  %s11047_s20 = smov 11  }
   0xa   :  { %12481 = sst [smem:[#allocation62_spill]] %s11165_s17  ;;  %s11049_s1 = smov 13  }
   0xb   :  { %12482 = sst [smem:[#allocation63_spill]] %s11170_s21  ;;  %s11050_s7 = smov 14  }
   0xc   :  { %12483 = sst [smem:[#allocation64_spill]] %s11175_s25  ;;  %s11052_s22 = smov 16  }
   0xd   :  { %s11180_s29 = sld [smem:[%s12445_s0 + %s11042_s26]]   ;;  %s11048_s26 = smov 12  }
   0xe   :  { %s11185_s3 = sld [smem:[%s12445_s0 + %s11043_s30]]   ;;  %s11053_s28 = smov 17  }
   0xf   :  { %s11190_s8 = sld [smem:[%s12445_s0 + %s11044_s4]]  }
  0x10   :  { %s11195_s14 = sld [smem:[%s12445_s0 + %s11045_s10]]  }
  0x11   :  { %s11200_s19 = sld [smem:[%s12445_s0 + %s11046_s15]]   ;;  %s11051_s15 = smov 15  }
  0x12   :  { %s11205_s24 = sld [smem:[%s12445_s0 + %s11047_s20]]  }
  0x13   :  { %12484 = sst [smem:[#allocation65_spill]] %s11180_s29 }
  0x14   :  { %12485 = sst [smem:[#allocation66_spill]] %s11185_s3 }
  0x15   :  { %12486 = sst [smem:[#allocation67_spill]] %s11190_s8 }
  0x16   :  { %12487 = sst [smem:[#allocation68_spill]] %s11195_s14 }
  0x17   :  { %12488 = sst [smem:[#allocation69_spill]] %s11200_s19 }
  0x18   :  { %12489 = sst [smem:[#allocation70_spill]] %s11205_s24 }
  0x19   :  { %s11210_s30 = sld [smem:[%s12445_s0 + %s11048_s26]]  }
  0x1a   :  { %s11215_s6 = sld [smem:[%s12445_s0 + %s11049_s1]]  }
  0x1b   :  { %s11220_s12 = sld [smem:[%s12445_s0 + %s11050_s7]]   ;;  %s11054_s7 = smov 18  }
  0x1c   :  { %s11225_s20 = sld [smem:[%s12445_s0 + %s11051_s15]]   ;;  %s11055_s15 = smov 19  }
  0x1d   :  { %s11230_s27 = sld [smem:[%s12445_s0 + %s11052_s22]]   ;;  %s11056_s22 = smov 20  }
  0x1e   :  { %s11235_s4 = sld [smem:[%s12445_s0 + %s11053_s28]]   ;;  %s11057_s28 = smov 21  }
  0x1f   :  { %12490 = sst [smem:[#allocation71_spill]] %s11210_s30 }
  0x20   :  { %12491 = sst [smem:[#allocation72_spill]] %s11215_s6 }
  0x21   :  { %12492 = sst [smem:[#allocation73_spill]] %s11220_s12 }
  0x22   :  { %12493 = sst [smem:[#allocation74_spill]] %s11225_s20 }
  0x23   :  { %12494 = sst [smem:[#allocation75_spill]] %s11230_s27 }
  0x24   :  { %12495 = sst [smem:[#allocation76_spill]] %s11235_s4 }
  0x25   :  { %s11240_s30 = sld [smem:[%s12445_s0 + %s11054_s7]]   ;;  %s11058_s7 = smov 22  }
  0x26   :  { %s11245_s6 = sld [smem:[%s12445_s0 + %s11055_s15]]   ;;  %s11059_s15 = smov 23  }
  0x27   :  { %s11250_s25 = sld [smem:[%s12445_s0 + %s11056_s22]]   ;;  %s11060_s22 = smov 24  }
  0x28   :  { %s11255_s21 = sld [smem:[%s12445_s0 + %s11057_s28]]   ;;  %s11061_s28 = smov 25  }
  0x2b   :  { %12496 = sst [smem:[#allocation77_spill]] %s11240_s30 }
  0x2c   :  { %12497 = sst [smem:[#allocation78_spill]] %s11245_s6 }
  0x2d   :  { %12498 = sst [smem:[#allocation79_spill]] %s11250_s25 }
  0x2e   :  { %12499 = sst [smem:[#allocation80_spill]] %s11255_s21 }
  0x2f   :  { %s11260_s30 = sld [smem:[%s12445_s0 + %s11058_s7]]   ;;  %s11062_s7 = smov 26  }
  0x30   :  { %s11265_s6 = sld [smem:[%s12445_s0 + %s11059_s15]]   ;;  %s11063_s15 = smov 27  }
  0x31   :  { %s11270_s25 = sld [smem:[%s12445_s0 + %s11060_s22]]   ;;  %s11064_s22 = smov 28  }
  0x32   :  { %s11275_s21 = sld [smem:[%s12445_s0 + %s11061_s28]]   ;;  %s11065_s28 = smov 29  }
  0x35   :  { %12500 = sst [smem:[#allocation81_spill]] %s11260_s30 }
  0x36   :  { %12501 = sst [smem:[#allocation82_spill]] %s11265_s6 }
  0x37   :  { %12502 = sst [smem:[#allocation83_spill]] %s11270_s25 }
  0x38   :  { %12503 = sst [smem:[#allocation84_spill]] %s11275_s21 }
  0x39   :  { %s11280_s30 = sld [smem:[%s12445_s0 + %s11062_s7]]   ;;  %s11066_s7 = smov 30  }
  0x3a   :  { %s11285_s6 = sld [smem:[%s12445_s0 + %s11063_s15]]   ;;  %s11067_s15 = smov 31  }
  0x3b   :  { %s11290_s25 = sld [smem:[%s12445_s0 + %s11064_s22]]   ;;  %s11068_s22 = smov 32  }
  0x3c   :  { %s11295_s21 = sld [smem:[%s12445_s0 + %s11065_s28]]   ;;  %s11069_s28 = smov 33  }
  0x3d   :  { %s11315_s3 = sld [smem:[%s12445_s0 + %s11069_s28]]   ;;  %s11073_s28 = smov 37  }
  0x3e   :  { %s11335_s5 = sld [smem:[%s12445_s0 + %s11073_s28]]   ;;  %s11077_s28 = smov 41  }
  0x3f   :  { %12504 = sst [smem:[#allocation85_spill]] %s11280_s30 }
  0x40   :  { %12505 = sst [smem:[#allocation86_spill]] %s11285_s6 }
  0x41   :  { %12506 = sst [smem:[#allocation87_spill]] %s11290_s25 }
  0x42   :  { %s11300_s30 = sld [smem:[%s12445_s0 + %s11066_s7]]   ;;  %s11070_s7 = smov 34  }
  0x43   :  { %s11305_s6 = sld [smem:[%s12445_s0 + %s11067_s15]]   ;;  %s11071_s15 = smov 35  }
  0x44   :  { %s11310_s25 = sld [smem:[%s12445_s0 + %s11068_s22]]   ;;  %s11072_s22 = smov 36  }
  0x45   :  { %12507 = sst [smem:[#allocation88_spill]] %s11315_s3 }
  0x46   :  { %s11320_s29 = sld [smem:[%s12445_s0 + %s11070_s7]]   ;;  %s11074_s7 = smov 38  }
  0x47   :  { %s11325_s19 = sld [smem:[%s12445_s0 + %s11071_s15]]   ;;  %s11075_s15 = smov 39  }
  0x48   :  { %s11330_s24 = sld [smem:[%s12445_s0 + %s11072_s22]]   ;;  %s11076_s22 = smov 40  }
  0x49   :  { %12510 = sst [smem:[#allocation91_spill]] %s11335_s5 }
  0x4a   :  { %s11350_s13 = sld [smem:[%s12445_s0 + %s11076_s22]]   ;;  %s11080_s22 = smov 44  }
  0x4b   :  { %s11355_s9 = sld [smem:[%s12445_s0 + %s11077_s28]]   ;;  %s11081_s28 = smov 45  }
  0x4c   :  { %12508 = sst [smem:[#allocation89_spill]] %s11320_s29 }
  0x4d   :  { %12509 = sst [smem:[#allocation90_spill]] %s11325_s19 }
  0x4e   :  { %s11340_s29 = sld [smem:[%s12445_s0 + %s11074_s7]]   ;;  %s11078_s7 = smov 42  }
  0x4f   :  { %s11345_s19 = sld [smem:[%s12445_s0 + %s11075_s15]]   ;;  %s11079_s15 = smov 43  }
  0x50   :  { %12512 = sst [smem:[#allocation93_spill]] %s11350_s13 }
  0x51   :  { %12513 = sst [smem:[#allocation94_spill]] %s11355_s9 }
  0x52   :  { %s11360_s8 = sld [smem:[%s12445_s0 + %s11078_s7]]   ;;  %s11082_s7 = smov 46  }
  0x53   :  { %s11365_s14 = sld [smem:[%s12445_s0 + %s11079_s15]]   ;;  %s11083_s15 = smov 47  }
  0x54   :  { %s11370_s17 = sld [smem:[%s12445_s0 + %s11080_s22]]   ;;  %s11084_s22 = smov 48  }
  0x55   :  { %12511 = sst [smem:[#allocation92_spill]] %s11345_s19 }
  0x56   :  { %s11375_s12 = sld [smem:[%s12445_s0 + %s11081_s28]]   ;;  %s11085_s28 = smov 49  }
  0x57   :  { %s11380_s27 = sld [smem:[%s12445_s0 + %s11082_s7]]   ;;  %s11086_s7 = smov 50  }
  0x58   :  { %s11385_s20 = sld [smem:[%s12445_s0 + %s11083_s15]]   ;;  %s11087_s15 = smov 51  }
  0x59   :  { %12514 = sst [smem:[#allocation95_spill]] %s11365_s14 }
  0x5a   :  { %s11390_s4 = sld [smem:[%s12445_s0 + %s11084_s22]]   ;;  %s11088_s22 = smov 52  }
  0x5b   :  { %s11395_s9 = sld [smem:[%s12445_s0 + %s11085_s28]]   ;;  %s11089_s28 = smov 53  }
  0x5c   :  { %12515 = sst [smem:[#allocation96_spill]] %s11375_s12 }
  0x5d   :  { %s11400_s13 = sld [smem:[%s12445_s0 + %s11086_s7]]   ;;  %s11090_s7 = smov 54  }
  0x5e   :  { %12516 = sst [smem:[#allocation97_spill]] %s11385_s20 }
  0x5f   :  { %s11405_s20 = sld [smem:[%s12445_s0 + %s11087_s15]]   ;;  %s11091_s15 = smov 55  }
  0x60   :  { %12517 = sst [smem:[#allocation98_spill]] %s11390_s4 }
  0x61   :  { %12518 = sst [smem:[#allocation99_spill]] %s11395_s9 }
  0x62   :  { %s11410_s4 = sld [smem:[%s12445_s0 + %s11088_s22]]   ;;  %s11092_s22 = smov 56  }
  0x63   :  { %s11415_s9 = sld [smem:[%s12445_s0 + %s11089_s28]]   ;;  %s11093_s28 = smov 57  }
  0x64   :  { %s11420_s12 = sld [smem:[%s12445_s0 + %s11090_s7]]   ;;  %s11094_s7 = smov 58  }
  0x65   :  { %12519 = sst [smem:[#allocation100_spill]] %s11405_s20 }
  0x66   :  { %s11425_s20 = sld [smem:[%s12445_s0 + %s11091_s15]]   ;;  %s11095_s15 = smov 59  }
  0x67   :  { %s11440_s14 = sld [smem:[%s12445_s0 + %s11094_s7]]   ;;  %s11098_s7 = smov 62  }
  0x68   :  { %12520 = sst [smem:[#allocation101_spill]] %s11410_s4 }
  0x69   :  { %12521 = sst [smem:[#allocation102_spill]] %s11415_s9 }
  0x6a   :  { %s11430_s4 = sld [smem:[%s12445_s0 + %s11092_s22]]   ;;  %s11096_s22 = smov 60  }
  0x6b   :  { %s11435_s9 = sld [smem:[%s12445_s0 + %s11093_s28]]   ;;  %s11097_s28 = smov 61  }
  0x6c   :  { %12522 = sst [smem:[#allocation103_spill]] %s11425_s20 }
  0x6d   :  { %s11445_s20 = sld [smem:[%s12445_s0 + %s11095_s15]]   ;;  %s11099_s15 = smov 63  }
  0x6e   :  { %s11450_s19 = sld [smem:[%s12445_s0 + %s11096_s22]]   ;;  %s11100_s22 = smov 64  }
  0x6f   :  { %s11460_s5 = sld [smem:[%s12445_s0 + %s11098_s7]]   ;;  %s11102_s7 = smov 66  }
  0x70   :  { %s11480_s3 = sld [smem:[%s12445_s0 + %s11102_s7]]  }
  0x71   :  { %12523 = sst [smem:[#allocation104_spill]] %s11435_s9 }
  0x72   :  { %s11455_s9 = sld [smem:[%s12445_s0 + %s11097_s28]]   ;;  %s11101_s28 = smov 65  }
  0x73   :  { %12524 = sst [smem:[#allocation105_spill]] %s11445_s20 }
  0x74   :  { %12525 = sst [smem:[#allocation106_spill]] %s11450_s19 }
  0x75   :  { %s11465_s20 = sld [smem:[%s12445_s0 + %s11099_s15]]   ;;  %s11103_s15 = smov 67  }
  0x76   :  { %s11470_s19 = sld [smem:[%s12445_s0 + %s11100_s22]]   ;;  %s11104_s22 = smov 68  }
  0x78   :  { %12526 = sst [smem:[#allocation107_spill]] %s11455_s9 }
  0x79   :  { %s11475_s9 = sld [smem:[%s12445_s0 + %s11101_s28]]  }
  0x7b   :  { %12527 = sst [smem:[#allocation108_spill]] %s11465_s20 }
  0x7c   :  { %12528 = sst [smem:[#allocation109_spill]] %s11470_s19 }
  0x7d   :  { %s11485_s20 = sld [smem:[%s12445_s0 + %s11103_s15]]  }
  0x7e   :  { %s11490_s19 = sld [smem:[%s12445_s0 + %s11104_s22]]  }
  0x7f   :  { %142 = vsyncpa [#allocation3], 0 }
  0x80   :  { %143 = vsyncpa [#allocation6], 0 }
  0x81   :  { %144 = vsyncpa [#allocation9], 0 }
  0x82   :  { %145 = vsyncpa [#allocation12], 0 }
  0x83   :  { %146 = vsyncpa [#allocation15], 0 }
  0x84   :  { %147 = vsyncpa [#allocation18], 0 }
  0x85   :  { %148 = vsyncpa [#allocation21], 0 }
  0x86   :  { %149 = vsyncpa [#allocation24], 0 }
  0x87   :  { %150 = vsyncpa [#allocation27], 0 }
  0x88   :  { %151 = vsyncpa [#allocation30], 0 }
  0x89   :  { %152 = vsyncpa [#allocation33], 0 }
  0x8a   :  { %153 = vsyncpa [#allocation36], 0 }
  0x8b   :  { %154 = vsyncpa [#allocation39], 0 }
  0x8c   :  { %155 = vsyncpa [#allocation42], 0 }
  0x8d   :  { %156 = vsyncpa [#allocation4], 0  ;;  %s11105_s0 = smov [#allocation5]   ;;  %s11106_s1 = smov [#allocation8]  }
  0x8e   :  { %s231_s28 = sshll.u32 %s11105_s0, 4  ;;  %s251_s2 = sshll.u32 %s11106_s1, 4  ;;  %s232_s28 = int_to_ptr.vmem [resolvable:$true] %s231_s28  ;;  %s252_s2 = int_to_ptr.vmem [resolvable:$true] %s251_s2 }
  0x8f   :  { %s10413_s7 = scalar_lea.hbm %s11300_s30, 16 }
  0x90   :  { %p10414_p0 = scmp.ne.s32.totalorder %s11300_s30, %s10413_s7  ;;  %p10417_p1 = scmp.lt.u32.totalorder %s10413_s7, %s11300_s30 }
  0x92   :  { %p10419_p2 = pnand %p10417_p1, %p10414_p0 }
  0x94   :  { %10422 = shalt.err (!%p10419_p2)
}
  0x95   :  { %s10423_s10 = scalar_lea.vmem %s232_s28, 16  ;;  %s10427_s11 = scalar_lea.vmem %s232_s28, 32 }
  0x96   :  { %p10424_p3 = scmp.ne.s32.totalorder %s232_s28, %s10423_s10  ;;  %p10428_p4 = scmp.lt.s32.totalorder %s232_s28, %s232_s28 }
  0x97   :  { %p10429_p5 = scmp.lt.s32.totalorder %s10427_s11, %s10423_s10 }
  0x99   :  { %p10430_p6 = por %p10429_p5, %p10428_p4 }
  0x9b   :  { %p10431_p7 = pnand %p10430_p6, %p10424_p3 }
  0x9d   :  { %10434 = shalt.err (!%p10431_p7)
}
  0x9e   :  { %234 = dma.hbm_to_vmem [thread:$0]  %s11300_s30, 16, %s232_s28, [#allocation6]  }
  0x9f   :  { %s10435_s15 = scalar_lea.hbm %s11310_s25, 16 }
  0xa0   :  { %p10436_p8 = scmp.ne.s32.totalorder %s11310_s25, %s10435_s15  ;;  %p10439_p9 = scmp.lt.u32.totalorder %s10435_s15, %s11310_s25 }
  0xa2   :  { %p10441_p10 = pnand %p10439_p9, %p10436_p8 }
  0xa4   :  { %10444 = shalt.err (!%p10441_p10)
}
  0xa5   :  { %s10445_s16 = scalar_lea.vmem %s252_s2, 16  ;;  %s10449_s18 = scalar_lea.vmem %s252_s2, 32 }
  0xa6   :  { %p10446_p11 = scmp.ne.s32.totalorder %s252_s2, %s10445_s16  ;;  %p10450_p12 = scmp.lt.s32.totalorder %s252_s2, %s252_s2 }
  0xa7   :  { %p10451_p13 = scmp.lt.s32.totalorder %s10449_s18, %s10445_s16 }
  0xa9   :  { %p10452_p0 = por %p10451_p13, %p10450_p12 }
  0xab   :  { %p10453_p1 = pnand %p10452_p0, %p10446_p11 }
  0xad   :  { %10456 = shalt.err (!%p10453_p1)
}
  0xae   :  { %254 = dma.hbm_to_vmem [thread:$0]  %s11310_s25, 16, %s252_s2, [#allocation9]  }
  0xaf   :  { %s11107_s22 = smov [#allocation11]   ;;  %s11108_s23 = smov [#allocation14]  }
  0xb0   :  { %s275_s30 = sshll.u32 %s11107_s22, 4  ;;  %s295_s26 = sshll.u32 %s11108_s23, 4  ;;  %s276_s30 = int_to_ptr.vmem [resolvable:$true] %s275_s30  ;;  %s296_s26 = int_to_ptr.vmem [resolvable:$true] %s295_s26 }
  0xb1   :  { %s10457_s0 = scalar_lea.hbm %s11330_s24, 16 }
  0xb2   :  { %p10458_p2 = scmp.ne.s32.totalorder %s11330_s24, %s10457_s0  ;;  %p10461_p3 = scmp.lt.u32.totalorder %s10457_s0, %s11330_s24 }
  0xb4   :  { %p10463_p4 = pnand %p10461_p3, %p10458_p2 }
  0xb6   :  { %10466 = shalt.err (!%p10463_p4)
}
  0xb7   :  { %s10467_s28 = scalar_lea.vmem %s276_s30, 16  ;;  %s10471_s1 = scalar_lea.vmem %s276_s30, 32 }
  0xb8   :  { %p10468_p5 = scmp.ne.s32.totalorder %s276_s30, %s10467_s28  ;;  %p10472_p6 = scmp.lt.s32.totalorder %s276_s30, %s276_s30 }
  0xb9   :  { %p10473_p7 = scmp.lt.s32.totalorder %s10471_s1, %s10467_s28 }
  0xbb   :  { %p10474_p8 = por %p10473_p7, %p10472_p6 }
  0xbd   :  { %p10475_p9 = pnand %p10474_p8, %p10468_p5 }
  0xbf   :  { %10478 = shalt.err (!%p10475_p9)
}
  0xc0   :  { %278 = dma.hbm_to_vmem [thread:$0]  %s11330_s24, 16, %s276_s30, [#allocation12]  }
  0xc1   :  { %s10479_s25 = scalar_lea.hbm %s11340_s29, 16 }
  0xc2   :  { %p10480_p10 = scmp.ne.s32.totalorder %s11340_s29, %s10479_s25  ;;  %p10483_p11 = scmp.lt.u32.totalorder %s10479_s25, %s11340_s29 }
  0xc4   :  { %p10485_p12 = pnand %p10483_p11, %p10480_p10 }
  0xc6   :  { %10488 = shalt.err (!%p10485_p12)
}
  0xc7   :  { %s10489_s2 = scalar_lea.vmem %s296_s26, 16  ;;  %s10493_s7 = scalar_lea.vmem %s296_s26, 32 }
  0xc8   :  { %p10490_p13 = scmp.ne.s32.totalorder %s296_s26, %s10489_s2  ;;  %p10494_p0 = scmp.lt.s32.totalorder %s296_s26, %s296_s26 }
  0xc9   :  { %p10495_p1 = scmp.lt.s32.totalorder %s10493_s7, %s10489_s2 }
  0xcb   :  { %p10496_p2 = por %p10495_p1, %p10494_p0 }
  0xcd   :  { %p10497_p3 = pnand %p10496_p2, %p10490_p13 }
  0xcf   :  { %10500 = shalt.err (!%p10497_p3)
}
  0xd0   :  { %298 = dma.hbm_to_vmem [thread:$0]  %s11340_s29, 16, %s296_s26, [#allocation15]  }
  0xd1   :  { %s11109_s10 = smov [#allocation17]   ;;  %s11110_s11 = smov [#allocation20]  }
  0xd2   :  { %s319_s24 = sshll.u32 %s11109_s10, 4  ;;  %s339_s15 = sshll.u32 %s11110_s11, 4  ;;  %s320_s24 = int_to_ptr.vmem [resolvable:$true] %s319_s24  ;;  %s340_s15 = int_to_ptr.vmem [resolvable:$true] %s339_s15 }
  0xd3   :  { %s10501_s16 = scalar_lea.hbm %s11360_s8, 16 }
  0xd4   :  { %p10502_p4 = scmp.ne.s32.totalorder %s11360_s8, %s10501_s16  ;;  %p10505_p5 = scmp.lt.u32.totalorder %s10501_s16, %s11360_s8 }
  0xd6   :  { %p10507_p6 = pnand %p10505_p5, %p10502_p4 }
  0xd8   :  { %10510 = shalt.err (!%p10507_p6)
}
  0xd9   :  { %s10511_s18 = scalar_lea.vmem %s320_s24, 16  ;;  %s10515_s22 = scalar_lea.vmem %s320_s24, 32 }
  0xda   :  { %p10512_p7 = scmp.ne.s32.totalorder %s320_s24, %s10511_s18  ;;  %p10516_p8 = scmp.lt.s32.totalorder %s320_s24, %s320_s24 }
  0xdb   :  { %p10517_p9 = scmp.lt.s32.totalorder %s10515_s22, %s10511_s18 }
  0xdd   :  { %p10518_p10 = por %p10517_p9, %p10516_p8 }
  0xdf   :  { %p10519_p11 = pnand %p10518_p10, %p10512_p7 }
  0xe1   :  { %10522 = shalt.err (!%p10519_p11)
}
  0xe2   :  { %322 = dma.hbm_to_vmem [thread:$0]  %s11360_s8, 16, %s320_s24, [#allocation18]  }
  0xe3   :  { %s10523_s29 = scalar_lea.hbm %s11370_s17, 16 }
  0xe4   :  { %p10524_p12 = scmp.ne.s32.totalorder %s11370_s17, %s10523_s29  ;;  %p10527_p13 = scmp.lt.u32.totalorder %s10523_s29, %s11370_s17 }
  0xe6   :  { %p10529_p0 = pnand %p10527_p13, %p10524_p12 }
  0xe8   :  { %10532 = shalt.err (!%p10529_p0)
}
  0xe9   :  { %s10533_s30 = scalar_lea.vmem %s340_s15, 16  ;;  %s10537_s23 = scalar_lea.vmem %s340_s15, 32 }
  0xea   :  { %p10534_p1 = scmp.ne.s32.totalorder %s340_s15, %s10533_s30  ;;  %p10538_p2 = scmp.lt.s32.totalorder %s340_s15, %s340_s15 }
  0xeb   :  { %p10539_p3 = scmp.lt.s32.totalorder %s10537_s23, %s10533_s30 }
  0xed   :  { %p10540_p4 = por %p10539_p3, %p10538_p2 }
  0xef   :  { %p10541_p5 = pnand %p10540_p4, %p10534_p1 }
  0xf1   :  { %10544 = shalt.err (!%p10541_p5)
}
  0xf2   :  { %342 = dma.hbm_to_vmem [thread:$0]  %s11370_s17, 16, %s340_s15, [#allocation21]  }
  0xf3   :  { %s11111_s26 = smov [#allocation23]   ;;  %s11112_s0 = smov [#allocation26]  }
  0xf4   :  { %s359_s8 = sshll.u32 %s11111_s26, 4  ;;  %s383_s28 = sshll.u32 %s11112_s0, 4  ;;  %s360_s8 = int_to_ptr.vmem [resolvable:$true] %s359_s8  ;;  %s384_s28 = int_to_ptr.vmem [resolvable:$true] %s383_s28 }
  0xf5   :  { %s10545_s1 = scalar_lea.hbm %s11380_s27, 16 }
  0xf6   :  { %p10546_p6 = scmp.ne.s32.totalorder %s11380_s27, %s10545_s1  ;;  %p10549_p7 = scmp.lt.u32.totalorder %s10545_s1, %s11380_s27 }
  0xf8   :  { %p10551_p8 = pnand %p10549_p7, %p10546_p6 }
  0xfa   :  { %10554 = shalt.err (!%p10551_p8)
}
  0xfb   :  { %s10555_s25 = scalar_lea.vmem %s360_s8, 16  ;;  %s10559_s2 = scalar_lea.vmem %s360_s8, 32 }
  0xfc   :  { %p10556_p9 = scmp.ne.s32.totalorder %s360_s8, %s10555_s25  ;;  %p10560_p10 = scmp.lt.s32.totalorder %s360_s8, %s360_s8 }
  0xfd   :  { %p10561_p11 = scmp.lt.s32.totalorder %s10559_s2, %s10555_s25 }
  0xff   :  { %p10562_p12 = por %p10561_p11, %p10560_p10 }
 0x101   :  { %p10563_p13 = pnand %p10562_p12, %p10556_p9 }
 0x103   :  { %10566 = shalt.err (!%p10563_p13)
}
 0x104   :  { %362 = dma.hbm_to_vmem [thread:$0]  %s11380_s27, 16, %s360_s8, [#allocation24]  }
 0x105   :  { %s10567_s17 = scalar_lea.hbm %s11400_s13, 16 }
 0x106   :  { %p10568_p0 = scmp.ne.s32.totalorder %s11400_s13, %s10567_s17  ;;  %p10571_p1 = scmp.lt.u32.totalorder %s10567_s17, %s11400_s13 }
 0x108   :  { %p10573_p2 = pnand %p10571_p1, %p10568_p0 }
 0x10a   :  { %10576 = shalt.err (!%p10573_p2)
}
 0x10b   :  { %s10577_s7 = scalar_lea.vmem %s384_s28, 16  ;;  %s10581_s10 = scalar_lea.vmem %s384_s28, 32 }
 0x10c   :  { %p10578_p3 = scmp.ne.s32.totalorder %s384_s28, %s10577_s7  ;;  %p10582_p4 = scmp.lt.s32.totalorder %s384_s28, %s384_s28 }
 0x10d   :  { %p10583_p5 = scmp.lt.s32.totalorder %s10581_s10, %s10577_s7 }
 0x10f   :  { %p10584_p6 = por %p10583_p5, %p10582_p4 }
 0x111   :  { %p10585_p7 = pnand %p10584_p6, %p10578_p3 }
 0x113   :  { %10588 = shalt.err (!%p10585_p7)
}
 0x114   :  { %386 = dma.hbm_to_vmem [thread:$0]  %s11400_s13, 16, %s384_s28, [#allocation27]  }
 0x115   :  { %s11113_s24 = smov [#allocation29]   ;;  %s11114_s11 = smov [#allocation32]  }
 0x116   :  { %s407_s27 = sshll.u32 %s11113_s24, 4  ;;  %s427_s15 = sshll.u32 %s11114_s11, 4  ;;  %s408_s27 = int_to_ptr.vmem [resolvable:$true] %s407_s27  ;;  %s428_s15 = int_to_ptr.vmem [resolvable:$true] %s427_s15 }
 0x117   :  { %s10589_s16 = scalar_lea.hbm %s11420_s12, 16 }
 0x118   :  { %p10590_p8 = scmp.ne.s32.totalorder %s11420_s12, %s10589_s16  ;;  %p10593_p9 = scmp.lt.u32.totalorder %s10589_s16, %s11420_s12 }
 0x11a   :  { %p10595_p10 = pnand %p10593_p9, %p10590_p8 }
 0x11c   :  { %10598 = shalt.err (!%p10595_p10)
}
 0x11d   :  { %s10599_s18 = scalar_lea.vmem %s408_s27, 16  ;;  %s10603_s22 = scalar_lea.vmem %s408_s27, 32 }
 0x11e   :  { %p10600_p11 = scmp.ne.s32.totalorder %s408_s27, %s10599_s18  ;;  %p10604_p12 = scmp.lt.s32.totalorder %s408_s27, %s408_s27 }
 0x11f   :  { %p10605_p13 = scmp.lt.s32.totalorder %s10603_s22, %s10599_s18 }
 0x121   :  { %p10606_p0 = por %p10605_p13, %p10604_p12 }
 0x123   :  { %p10607_p1 = pnand %p10606_p0, %p10600_p11 }
 0x125   :  { %10610 = shalt.err (!%p10607_p1)
}
 0x126   :  { %410 = dma.hbm_to_vmem [thread:$0]  %s11420_s12, 16, %s408_s27, [#allocation30]  }
 0x127   :  { %s10611_s13 = scalar_lea.hbm %s11430_s4, 16 }
 0x128   :  { %p10612_p2 = scmp.ne.s32.totalorder %s11430_s4, %s10611_s13  ;;  %p10615_p3 = scmp.lt.u32.totalorder %s10611_s13, %s11430_s4 }
 0x12a   :  { %p10617_p4 = pnand %p10615_p3, %p10612_p2 }
 0x12c   :  { %10620 = shalt.err (!%p10617_p4)
}
 0x12d   :  { %s10621_s29 = scalar_lea.vmem %s428_s15, 16  ;;  %s10625_s30 = scalar_lea.vmem %s428_s15, 32 }
 0x12e   :  { %p10622_p5 = scmp.ne.s32.totalorder %s428_s15, %s10621_s29  ;;  %p10626_p6 = scmp.lt.s32.totalorder %s428_s15, %s428_s15 }
 0x12f   :  { %p10627_p7 = scmp.lt.s32.totalorder %s10625_s30, %s10621_s29 }
 0x131   :  { %p10628_p8 = por %p10627_p7, %p10626_p6 }
 0x133   :  { %p10629_p9 = pnand %p10628_p8, %p10622_p5 }
 0x135   :  { %10632 = shalt.err (!%p10629_p9)
}
 0x136   :  { %430 = dma.hbm_to_vmem [thread:$0]  %s11430_s4, 16, %s428_s15, [#allocation33]  }
 0x137   :  { %s11115_s23 = smov [#allocation35]   ;;  %s11116_s26 = smov [#allocation38]  }
 0x138   :  { %s447_s12 = sshll.u32 %s11115_s23, 4  ;;  %s471_s8 = sshll.u32 %s11116_s26, 4  ;;  %s448_s12 = int_to_ptr.vmem [resolvable:$true] %s447_s12  ;;  %s472_s8 = int_to_ptr.vmem [resolvable:$true] %s471_s8 }
 0x139   :  { %s10633_s0 = scalar_lea.hbm %s11440_s14, 16 }
 0x13a   :  { %p10634_p10 = scmp.ne.s32.totalorder %s11440_s14, %s10633_s0  ;;  %p10637_p11 = scmp.lt.u32.totalorder %s10633_s0, %s11440_s14 }
 0x13c   :  { %p10639_p12 = pnand %p10637_p11, %p10634_p10 }
 0x13e   :  { %10642 = shalt.err (!%p10639_p12)
}
 0x13f   :  { %s10643_s28 = scalar_lea.vmem %s448_s12, 16  ;;  %s10647_s1 = scalar_lea.vmem %s448_s12, 32 }
 0x140   :  { %p10644_p13 = scmp.ne.s32.totalorder %s448_s12, %s10643_s28  ;;  %p10648_p0 = scmp.lt.s32.totalorder %s448_s12, %s448_s12 }
 0x141   :  { %p10649_p1 = scmp.lt.s32.totalorder %s10647_s1, %s10643_s28 }
 0x143   :  { %p10650_p2 = por %p10649_p1, %p10648_p0 }
 0x145   :  { %p10651_p3 = pnand %p10650_p2, %p10644_p13 }
 0x147   :  { %10654 = shalt.err (!%p10651_p3)
}
 0x148   :  { %450 = dma.hbm_to_vmem [thread:$0]  %s11440_s14, 16, %s448_s12, [#allocation36]  }
 0x149   :  { %s10655_s4 = scalar_lea.hbm %s11460_s5, 16 }
 0x14a   :  { %p10656_p4 = scmp.ne.s32.totalorder %s11460_s5, %s10655_s4  ;;  %p10659_p5 = scmp.lt.u32.totalorder %s10655_s4, %s11460_s5 }
 0x14c   :  { %p10661_p6 = pnand %p10659_p5, %p10656_p4 }
 0x14e   :  { %10664 = shalt.err (!%p10661_p6)
}
 0x14f   :  { %s10665_s25 = scalar_lea.vmem %s472_s8, 16  ;;  %s10669_s2 = scalar_lea.vmem %s472_s8, 32 }
 0x150   :  { %p10666_p7 = scmp.ne.s32.totalorder %s472_s8, %s10665_s25  ;;  %p10670_p8 = scmp.lt.s32.totalorder %s472_s8, %s472_s8 }
 0x151   :  { %p10671_p9 = scmp.lt.s32.totalorder %s10669_s2, %s10665_s25 }
 0x153   :  { %p10672_p10 = por %p10671_p9, %p10670_p8 }
 0x155   :  { %p10673_p11 = pnand %p10672_p10, %p10666_p7 }
 0x157   :  { %10676 = shalt.err (!%p10673_p11)
}
 0x158   :  { %474 = dma.hbm_to_vmem [thread:$0]  %s11460_s5, 16, %s472_s8, [#allocation39]  }
 0x159   :  { %s11117_s17 = smov [#allocation2]   ;;  %s11118_s7 = smov [#allocation7]  }
 0x15a   :  { %s221_s14 = sshll.u32 %s11117_s17, 4  ;;  %s241_s10 = sshll.u32 %s11118_s7, 4  ;;  %s222_s14 = int_to_ptr.vmem [resolvable:$true] %s221_s14  ;;  %s242_s10 = int_to_ptr.vmem [resolvable:$true] %s241_s10 }
 0x15b   :  { %s10677_s24 = scalar_lea.hbm %s11295_s21, 16 }
 0x15c   :  { %p10678_p12 = scmp.ne.s32.totalorder %s11295_s21, %s10677_s24  ;;  %p10681_p13 = scmp.lt.u32.totalorder %s10677_s24, %s11295_s21 }
 0x15e   :  { %p10683_p0 = pnand %p10681_p13, %p10678_p12 }
 0x160   :  { %10686 = shalt.err (!%p10683_p0)
}
 0x161   :  { %s10687_s27 = scalar_lea.vmem %s222_s14, 16  ;;  %s10691_s11 = scalar_lea.vmem %s222_s14, 32 }
 0x162   :  { %p10688_p1 = scmp.ne.s32.totalorder %s222_s14, %s10687_s27  ;;  %p10692_p2 = scmp.lt.s32.totalorder %s222_s14, %s222_s14 }
 0x163   :  { %p10693_p3 = scmp.lt.s32.totalorder %s10691_s11, %s10687_s27 }
 0x165   :  { %p10694_p4 = por %p10693_p3, %p10692_p2 }
 0x167   :  { %p10695_p5 = pnand %p10694_p4, %p10688_p1 }
 0x169   :  { %10698 = shalt.err (!%p10695_p5)
}
 0x16a   :  { %224 = dma.hbm_to_vmem [thread:$0]  %s11295_s21, 16, %s222_s14, [#allocation3]  }
 0x16b   :  { %s10699_s5 = scalar_lea.hbm %s11305_s6, 16 }
 0x16c   :  { %p10700_p6 = scmp.ne.s32.totalorder %s11305_s6, %s10699_s5  ;;  %p10703_p7 = scmp.lt.u32.totalorder %s10699_s5, %s11305_s6 }
 0x16e   :  { %p10705_p8 = pnand %p10703_p7, %p10700_p6 }
 0x170   :  { %10708 = shalt.err (!%p10705_p8)
}
 0x171   :  { %s10709_s15 = scalar_lea.vmem %s242_s10, 16  ;;  %s10713_s16 = scalar_lea.vmem %s242_s10, 32 }
 0x172   :  { %p10710_p9 = scmp.ne.s32.totalorder %s242_s10, %s10709_s15  ;;  %p10714_p10 = scmp.lt.s32.totalorder %s242_s10, %s242_s10 }
 0x173   :  { %p10715_p11 = scmp.lt.s32.totalorder %s10713_s16, %s10709_s15 }
 0x175   :  { %p10716_p12 = por %p10715_p11, %p10714_p10 }
 0x177   :  { %p10717_p13 = pnand %p10716_p12, %p10710_p9 }
 0x179   :  { %10720 = shalt.err (!%p10717_p13)
}
 0x17a   :  { %s12529_s18 = sld [smem:[#allocation88_spill]]  ;;  %s11119_s22 = smov [#allocation10]  }
 0x17b   :  { %244 = dma.hbm_to_vmem [thread:$0]  %s11305_s6, 16, %s242_s10, [#allocation6]  }
 0x17c   :  { %s261_s21 = sshll.u32 %s11119_s22, 4  ;;  %s11120_s13 = smov [#allocation13]   ;;  %s262_s21 = int_to_ptr.vmem [resolvable:$true] %s261_s21 }
 0x17d   :  { %s285_s29 = sshll.u32 %s11120_s13, 4  ;;  %s286_s29 = int_to_ptr.vmem [resolvable:$true] %s285_s29 }
 0x180   :  { %s10721_s30 = scalar_lea.hbm %s12529_s18, 16 }
 0x181   :  { %p10722_p0 = scmp.ne.s32.totalorder %s12529_s18, %s10721_s30  ;;  %p10725_p1 = scmp.lt.u32.totalorder %s10721_s30, %s12529_s18 }
 0x183   :  { %p10727_p2 = pnand %p10725_p1, %p10722_p0 }
 0x185   :  { %10730 = shalt.err (!%p10727_p2)
}
 0x186   :  { %s10731_s23 = scalar_lea.vmem %s262_s21, 16  ;;  %s10735_s12 = scalar_lea.vmem %s262_s21, 32 }
 0x187   :  { %p10732_p3 = scmp.ne.s32.totalorder %s262_s21, %s10731_s23  ;;  %p10736_p4 = scmp.lt.s32.totalorder %s262_s21, %s262_s21 }
 0x188   :  { %p10737_p5 = scmp.lt.s32.totalorder %s10735_s12, %s10731_s23 }
 0x18a   :  { %p10738_p6 = por %p10737_p5, %p10736_p4 }
 0x18c   :  { %p10739_p7 = pnand %p10738_p6, %p10732_p3 }
 0x18e   :  { %10742 = shalt.err (!%p10739_p7)
}
 0x18f   :  { %s12530_s6 = sld [smem:[#allocation91_spill]] }
 0x190   :  { %264 = dma.hbm_to_vmem [thread:$0]  %s12529_s18, 16, %s262_s21, [#allocation9]  }
 0x195   :  { %s10743_s26 = scalar_lea.hbm %s12530_s6, 16 }
 0x196   :  { %p10744_p8 = scmp.ne.s32.totalorder %s12530_s6, %s10743_s26  ;;  %p10747_p9 = scmp.lt.u32.totalorder %s10743_s26, %s12530_s6 }
 0x198   :  { %p10749_p10 = pnand %p10747_p9, %p10744_p8 }
 0x19a   :  { %10752 = shalt.err (!%p10749_p10)
}
 0x19b   :  { %s10753_s8 = scalar_lea.vmem %s286_s29, 16  ;;  %s10757_s0 = scalar_lea.vmem %s286_s29, 32 }
 0x19c   :  { %p10754_p11 = scmp.ne.s32.totalorder %s286_s29, %s10753_s8  ;;  %p10758_p12 = scmp.lt.s32.totalorder %s286_s29, %s286_s29 }
 0x19d   :  { %p10759_p13 = scmp.lt.s32.totalorder %s10757_s0, %s10753_s8 }
 0x19f   :  { %p10760_p0 = por %p10759_p13, %p10758_p12 }
 0x1a1   :  { %p10761_p1 = pnand %p10760_p0, %p10754_p11 }
 0x1a3   :  { %10764 = shalt.err (!%p10761_p1)
}
 0x1a4   :  { %s12531_s28 = sld [smem:[#allocation92_spill]]  ;;  %s11121_s1 = smov [#allocation16]  }
 0x1a5   :  { %288 = dma.hbm_to_vmem [thread:$0]  %s12530_s6, 16, %s286_s29, [#allocation12]  }
 0x1a6   :  { %s305_s4 = sshll.u32 %s11121_s1, 4  ;;  %s11122_s25 = smov [#allocation19]   ;;  %s306_s4 = int_to_ptr.vmem [resolvable:$true] %s305_s4 }
 0x1a7   :  { %s329_s2 = sshll.u32 %s11122_s25, 4  ;;  %s330_s2 = int_to_ptr.vmem [resolvable:$true] %s329_s2 }
 0x1aa   :  { %s10765_s17 = scalar_lea.hbm %s12531_s28, 16 }
 0x1ab   :  { %p10766_p2 = scmp.ne.s32.totalorder %s12531_s28, %s10765_s17  ;;  %p10769_p3 = scmp.lt.u32.totalorder %s10765_s17, %s12531_s28 }
 0x1ad   :  { %p10771_p4 = pnand %p10769_p3, %p10766_p2 }
 0x1af   :  { %10774 = shalt.err (!%p10771_p4)
}
 0x1b0   :  { %s10775_s14 = scalar_lea.vmem %s306_s4, 16  ;;  %s10779_s7 = scalar_lea.vmem %s306_s4, 32 }
 0x1b1   :  { %p10776_p5 = scmp.ne.s32.totalorder %s306_s4, %s10775_s14  ;;  %p10780_p6 = scmp.lt.s32.totalorder %s306_s4, %s306_s4 }
 0x1b2   :  { %p10781_p7 = scmp.lt.s32.totalorder %s10779_s7, %s10775_s14 }
 0x1b4   :  { %p10782_p8 = por %p10781_p7, %p10780_p6 }
 0x1b6   :  { %p10783_p9 = pnand %p10782_p8, %p10776_p5 }
 0x1b8   :  { %10786 = shalt.err (!%p10783_p9)
}
 0x1b9   :  { %s12532_s10 = sld [smem:[#allocation95_spill]] }
 0x1ba   :  { %308 = dma.hbm_to_vmem [thread:$0]  %s12531_s28, 16, %s306_s4, [#allocation15]  }
 0x1bf   :  { %s10787_s24 = scalar_lea.hbm %s12532_s10, 16 }
 0x1c0   :  { %p10788_p10 = scmp.ne.s32.totalorder %s12532_s10, %s10787_s24  ;;  %p10791_p11 = scmp.lt.u32.totalorder %s10787_s24, %s12532_s10 }
 0x1c2   :  { %p10793_p12 = pnand %p10791_p11, %p10788_p10 }
 0x1c4   :  { %10796 = shalt.err (!%p10793_p12)
}
 0x1c5   :  { %s10797_s27 = scalar_lea.vmem %s330_s2, 16  ;;  %s10801_s11 = scalar_lea.vmem %s330_s2, 32 }
 0x1c6   :  { %p10798_p13 = scmp.ne.s32.totalorder %s330_s2, %s10797_s27  ;;  %p10802_p0 = scmp.lt.s32.totalorder %s330_s2, %s330_s2 }
 0x1c7   :  { %p10803_p1 = scmp.lt.s32.totalorder %s10801_s11, %s10797_s27 }
 0x1c9   :  { %p10804_p2 = por %p10803_p1, %p10802_p0 }
 0x1cb   :  { %p10805_p3 = pnand %p10804_p2, %p10798_p13 }
 0x1cd   :  { %10808 = shalt.err (!%p10805_p3)
}
 0x1ce   :  { %s12533_s5 = sld [smem:[#allocation96_spill]]  ;;  %s11123_s15 = smov [#allocation22]  }
 0x1cf   :  { %332 = dma.hbm_to_vmem [thread:$0]  %s12532_s10, 16, %s330_s2, [#allocation18]  }
 0x1d0   :  { %s349_s16 = sshll.u32 %s11123_s15, 4  ;;  %s11124_s18 = smov [#allocation25]   ;;  %s350_s16 = int_to_ptr.vmem [resolvable:$true] %s349_s16 }
 0x1d1   :  { %s369_s22 = sshll.u32 %s11124_s18, 4  ;;  %s370_s22 = int_to_ptr.vmem [resolvable:$true] %s369_s22 }
 0x1d4   :  { %s10809_s21 = scalar_lea.hbm %s12533_s5, 16 }
 0x1d5   :  { %p10810_p4 = scmp.ne.s32.totalorder %s12533_s5, %s10809_s21  ;;  %p10813_p5 = scmp.lt.u32.totalorder %s10809_s21, %s12533_s5 }
 0x1d7   :  { %p10815_p6 = pnand %p10813_p5, %p10810_p4 }
 0x1d9   :  { %10818 = shalt.err (!%p10815_p6)
}
 0x1da   :  { %s10819_s13 = scalar_lea.vmem %s350_s16, 16  ;;  %s10823_s29 = scalar_lea.vmem %s350_s16, 32 }
 0x1db   :  { %p10820_p7 = scmp.ne.s32.totalorder %s350_s16, %s10819_s13  ;;  %p10824_p8 = scmp.lt.s32.totalorder %s350_s16, %s350_s16 }
 0x1dc   :  { %p10825_p9 = scmp.lt.s32.totalorder %s10823_s29, %s10819_s13 }
 0x1de   :  { %p10826_p10 = por %p10825_p9, %p10824_p8 }
 0x1e0   :  { %p10827_p11 = pnand %p10826_p10, %p10820_p7 }
 0x1e2   :  { %10830 = shalt.err (!%p10827_p11)
}
 0x1e3   :  { %s12534_s30 = sld [smem:[#allocation97_spill]] }
 0x1e4   :  { %352 = dma.hbm_to_vmem [thread:$0]  %s12533_s5, 16, %s350_s16, [#allocation21]  }
 0x1e9   :  { %s10831_s23 = scalar_lea.hbm %s12534_s30, 16 }
 0x1ea   :  { %p10832_p12 = scmp.ne.s32.totalorder %s12534_s30, %s10831_s23  ;;  %p10835_p13 = scmp.lt.u32.totalorder %s10831_s23, %s12534_s30 }
 0x1ec   :  { %p10837_p0 = pnand %p10835_p13, %p10832_p12 }
 0x1ee   :  { %10840 = shalt.err (!%p10837_p0)
}
 0x1ef   :  { %s10841_s12 = scalar_lea.vmem %s370_s22, 16  ;;  %s10845_s6 = scalar_lea.vmem %s370_s22, 32 }
 0x1f0   :  { %p10842_p1 = scmp.ne.s32.totalorder %s370_s22, %s10841_s12  ;;  %p10846_p2 = scmp.lt.s32.totalorder %s370_s22, %s370_s22 }
 0x1f1   :  { %p10847_p3 = scmp.lt.s32.totalorder %s10845_s6, %s10841_s12 }
 0x1f3   :  { %p10848_p4 = por %p10847_p3, %p10846_p2 }
 0x1f5   :  { %p10849_p5 = pnand %p10848_p4, %p10842_p1 }
 0x1f7   :  { %10852 = shalt.err (!%p10849_p5)
}
 0x1f8   :  { %s12535_s26 = sld [smem:[#allocation100_spill]]  ;;  %s11125_s8 = smov [#allocation28]  }
 0x1f9   :  { %372 = dma.hbm_to_vmem [thread:$0]  %s12534_s30, 16, %s370_s22, [#allocation24]  }
 0x1fa   :  { %s393_s0 = sshll.u32 %s11125_s8, 4  ;;  %s11126_s28 = smov [#allocation31]   ;;  %s394_s0 = int_to_ptr.vmem [resolvable:$true] %s393_s0 }
 0x1fb   :  { %s417_s1 = sshll.u32 %s11126_s28, 4  ;;  %s418_s1 = int_to_ptr.vmem [resolvable:$true] %s417_s1 }
 0x1fe   :  { %s10853_s4 = scalar_lea.hbm %s12535_s26, 16 }
 0x1ff   :  { %p10854_p6 = scmp.ne.s32.totalorder %s12535_s26, %s10853_s4  ;;  %p10857_p7 = scmp.lt.u32.totalorder %s10853_s4, %s12535_s26 }
 0x201   :  { %p10859_p8 = pnand %p10857_p7, %p10854_p6 }
 0x203   :  { %10862 = shalt.err (!%p10859_p8)
}
 0x204   :  { %s10863_s25 = scalar_lea.vmem %s394_s0, 16  ;;  %s10867_s2 = scalar_lea.vmem %s394_s0, 32 }
 0x205   :  { %p10864_p9 = scmp.ne.s32.totalorder %s394_s0, %s10863_s25  ;;  %p10868_p10 = scmp.lt.s32.totalorder %s394_s0, %s394_s0 }
 0x206   :  { %p10869_p11 = scmp.lt.s32.totalorder %s10867_s2, %s10863_s25 }
 0x208   :  { %p10870_p12 = por %p10869_p11, %p10868_p10 }
 0x20a   :  { %p10871_p13 = pnand %p10870_p12, %p10864_p9 }
 0x20c   :  { %10874 = shalt.err (!%p10871_p13)
}
 0x20d   :  { %s12536_s17 = sld [smem:[#allocation103_spill]] }
 0x20e   :  { %396 = dma.hbm_to_vmem [thread:$0]  %s12535_s26, 16, %s394_s0, [#allocation27]  }
 0x213   :  { %s10875_s14 = scalar_lea.hbm %s12536_s17, 16 }
 0x214   :  { %p10876_p0 = scmp.ne.s32.totalorder %s12536_s17, %s10875_s14  ;;  %p10879_p1 = scmp.lt.u32.totalorder %s10875_s14, %s12536_s17 }
 0x216   :  { %p10881_p2 = pnand %p10879_p1, %p10876_p0 }
 0x218   :  { %10884 = shalt.err (!%p10881_p2)
}
 0x219   :  { %s10885_s7 = scalar_lea.vmem %s418_s1, 16  ;;  %s10889_s10 = scalar_lea.vmem %s418_s1, 32 }
 0x21a   :  { %p10886_p3 = scmp.ne.s32.totalorder %s418_s1, %s10885_s7  ;;  %p10890_p4 = scmp.lt.s32.totalorder %s418_s1, %s418_s1 }
 0x21b   :  { %p10891_p5 = scmp.lt.s32.totalorder %s10889_s10, %s10885_s7 }
 0x21d   :  { %p10892_p6 = por %p10891_p5, %p10890_p4 }
 0x21f   :  { %p10893_p7 = pnand %p10892_p6, %p10886_p3 }
 0x221   :  { %10896 = shalt.err (!%p10893_p7)
}
 0x222   :  { %s12537_s24 = sld [smem:[#allocation104_spill]]  ;;  %s11127_s27 = smov [#allocation34]  }
 0x223   :  { %420 = dma.hbm_to_vmem [thread:$0]  %s12536_s17, 16, %s418_s1, [#allocation30]  }
 0x224   :  { %s437_s11 = sshll.u32 %s11127_s27, 4  ;;  %s11128_s5 = smov [#allocation37]   ;;  %s438_s11 = int_to_ptr.vmem [resolvable:$true] %s437_s11 }
 0x225   :  { %s457_s15 = sshll.u32 %s11128_s5, 4  ;;  %s458_s15 = int_to_ptr.vmem [resolvable:$true] %s457_s15 }
 0x228   :  { %s10897_s16 = scalar_lea.hbm %s12537_s24, 16 }
 0x229   :  { %p10898_p8 = scmp.ne.s32.totalorder %s12537_s24, %s10897_s16  ;;  %p10901_p9 = scmp.lt.u32.totalorder %s10897_s16, %s12537_s24 }
 0x22b   :  { %p10903_p10 = pnand %p10901_p9, %p10898_p8 }
 0x22d   :  { %10906 = shalt.err (!%p10903_p10)
}
 0x22e   :  { %s10907_s18 = scalar_lea.vmem %s438_s11, 16  ;;  %s10911_s22 = scalar_lea.vmem %s438_s11, 32 }
 0x22f   :  { %p10908_p11 = scmp.ne.s32.totalorder %s438_s11, %s10907_s18  ;;  %p10912_p12 = scmp.lt.s32.totalorder %s438_s11, %s438_s11 }
 0x230   :  { %p10913_p13 = scmp.lt.s32.totalorder %s10911_s22, %s10907_s18 }
 0x232   :  { %p10914_p0 = por %p10913_p13, %p10912_p12 }
 0x234   :  { %p10915_p1 = pnand %p10914_p0, %p10908_p11 }
 0x236   :  { %10918 = shalt.err (!%p10915_p1)
}
 0x237   :  { %s12538_s21 = sld [smem:[#allocation105_spill]] }
 0x238   :  { %440 = dma.hbm_to_vmem [thread:$0]  %s12537_s24, 16, %s438_s11, [#allocation33]  }
 0x23d   :  { %s10919_s13 = scalar_lea.hbm %s12538_s21, 16 }
 0x23e   :  { %p10920_p2 = scmp.ne.s32.totalorder %s12538_s21, %s10919_s13  ;;  %p10923_p3 = scmp.lt.u32.totalorder %s10919_s13, %s12538_s21 }
 0x240   :  { %p10925_p4 = pnand %p10923_p3, %p10920_p2 }
 0x242   :  { %10928 = shalt.err (!%p10925_p4)
}
 0x243   :  { %s10929_s29 = scalar_lea.vmem %s458_s15, 16  ;;  %s10933_s30 = scalar_lea.vmem %s458_s15, 32 }
 0x244   :  { %p10930_p5 = scmp.ne.s32.totalorder %s458_s15, %s10929_s29  ;;  %p10934_p6 = scmp.lt.s32.totalorder %s458_s15, %s458_s15 }
 0x245   :  { %p10935_p7 = scmp.lt.s32.totalorder %s10933_s30, %s10929_s29 }
 0x247   :  { %p10936_p8 = por %p10935_p7, %p10934_p6 }
 0x249   :  { %p10937_p9 = pnand %p10936_p8, %p10930_p5 }
 0x24b   :  { %10940 = shalt.err (!%p10937_p9)
}
 0x24c   :  { %s12539_s23 = sld [smem:[#allocation108_spill]]  ;;  %s11129_s12 = smov [#allocation40]  }
 0x24d   :  { %460 = dma.hbm_to_vmem [thread:$0]  %s12538_s21, 16, %s458_s15, [#allocation36]  }
 0x24e   :  { %s481_s6 = sshll.u32 %s11129_s12, 4  ;;  %s11130_s26 = smov [#allocation41]   ;;  %s482_s6 = int_to_ptr.vmem [resolvable:$true] %s481_s6 }
 0x24f   :  { %s491_s8 = sshll.u32 %s11130_s26, 4  ;;  %s492_s8 = int_to_ptr.vmem [resolvable:$true] %s491_s8 }
 0x252   :  { %s10941_s0 = scalar_lea.hbm %s12539_s23, 16 }
 0x253   :  { %p10942_p10 = scmp.ne.s32.totalorder %s12539_s23, %s10941_s0  ;;  %p10945_p11 = scmp.lt.u32.totalorder %s10941_s0, %s12539_s23 }
 0x255   :  { %p10947_p12 = pnand %p10945_p11, %p10942_p10 }
 0x257   :  { %10950 = shalt.err (!%p10947_p12)
}
 0x258   :  { %s10951_s28 = scalar_lea.vmem %s482_s6, 16  ;;  %s10955_s1 = scalar_lea.vmem %s482_s6, 32 }
 0x259   :  { %p10952_p13 = scmp.ne.s32.totalorder %s482_s6, %s10951_s28  ;;  %p10956_p0 = scmp.lt.s32.totalorder %s482_s6, %s482_s6 }
 0x25a   :  { %p10957_p1 = scmp.lt.s32.totalorder %s10955_s1, %s10951_s28 }
 0x25c   :  { %p10958_p2 = por %p10957_p1, %p10956_p0 }
 0x25e   :  { %p10959_p3 = pnand %p10958_p2, %p10952_p13 }
 0x260   :  { %10962 = shalt.err (!%p10959_p3)
}
 0x261   :  { %s12540_s4 = sld [smem:[#allocation109_spill]] }
 0x262   :  { %484 = dma.hbm_to_vmem [thread:$0]  %s12539_s23, 16, %s482_s6, [#allocation39]  }
 0x267   :  { %s10963_s25 = scalar_lea.hbm %s12540_s4, 16 }
 0x268   :  { %p10964_p4 = scmp.ne.s32.totalorder %s12540_s4, %s10963_s25  ;;  %p10967_p5 = scmp.lt.u32.totalorder %s10963_s25, %s12540_s4 }
 0x26a   :  { %p10969_p6 = pnand %p10967_p5, %p10964_p4 }
 0x26c   :  { %10972 = shalt.err (!%p10969_p6)
}
 0x26d   :  { %s10973_s2 = scalar_lea.vmem %s492_s8, 16  ;;  %s10977_s17 = scalar_lea.vmem %s492_s8, 32 }
 0x26e   :  { %p10974_p7 = scmp.ne.s32.totalorder %s492_s8, %s10973_s2  ;;  %p10978_p8 = scmp.lt.s32.totalorder %s492_s8, %s492_s8 }
 0x26f   :  { %p10979_p9 = scmp.lt.s32.totalorder %s10977_s17, %s10973_s2 }
 0x271   :  { %p10980_p10 = por %p10979_p9, %p10978_p8 }
 0x273   :  { %p10981_p11 = pnand %p10980_p10, %p10974_p7 }
 0x275   :  { %10984 = shalt.err (!%p10981_p11)
}
 0x276   :  { %494 = dma.hbm_to_vmem [thread:$0]  %s12540_s4, 16, %s492_s8, [#allocation42]  }
 0x277   :  { %11007 = dma.done.wait [#allocation3], 16  }
 0x278   :  { %11008 = vsyncadd [#allocation3], 4294967280 }
 0x279   :  { %11009 = dma.done.wait [#allocation6], 32  }
 0x27a   :  { %11010 = vsyncadd [#allocation6], 4294967264 }
 0x27b   :  { %11011 = dma.done.wait [#allocation9], 32  }
 0x27c   :  { %11012 = vsyncadd [#allocation9], 4294967264 }
 0x27d   :  { %11013 = dma.done.wait [#allocation12], 32  }
 0x27e   :  { %11014 = vsyncadd [#allocation12], 4294967264 }
 0x27f   :  { %11015 = dma.done.wait [#allocation15], 32  }
 0x280   :  { %11016 = vsyncadd [#allocation15], 4294967264 }
 0x281   :  { %11017 = dma.done.wait [#allocation18], 32  }
 0x282   :  { %11018 = vsyncadd [#allocation18], 4294967264 }
 0x283   :  { %11019 = dma.done.wait [#allocation21], 32  }
 0x284   :  { %11020 = vsyncadd [#allocation21], 4294967264 }
 0x285   :  { %11021 = dma.done.wait [#allocation24], 32  }
 0x286   :  { %11022 = vsyncadd [#allocation24], 4294967264 }
 0x287   :  { %11023 = dma.done.wait [#allocation27], 32  }
 0x288   :  { %11024 = vsyncadd [#allocation27], 4294967264 }
 0x289   :  { %11025 = dma.done.wait [#allocation30], 32  }
 0x28a   :  { %11026 = vsyncadd [#allocation30], 4294967264 }
 0x28b   :  { %11027 = dma.done.wait [#allocation33], 32  }
 0x28c   :  { %11028 = vsyncadd [#allocation33], 4294967264 }
 0x28d   :  { %11029 = dma.done.wait [#allocation36], 32  }
 0x28e   :  { %11030 = vsyncadd [#allocation36], 4294967264 }
 0x28f   :  { %11031 = dma.done.wait [#allocation39], 32  }
 0x290   :  { %11032 = vsyncadd [#allocation39], 4294967264 }
 0x291   :  { %11033 = dma.done.wait [#allocation42], 16  }
 0x292   :  { %11034 = vsyncadd [#allocation42], 4294967280  ;;  %s12541_s14 = sld [smem:[#allocation99_spill]]  ;;  %vm597_vm0 = vcmask 261120   ;;  %v11601_v5 = vld [vmem:[%s11480_s3] sm:$0xff]  ;;  %v11606_v7 = vld [vmem:[%s11480_s3 + $0x8] sm:$0xff] }
 0x293   :  { %9157 = vmatprep.mubr.msk.f32.mxu0 %vm597_vm0, %v11601_v5  ;;  %v11131_v8 = vmov 0.0   ;;  %vm11132_vm1 = vmmov 0   ;;  %v8664_v9 = vld [vmem:[#allocation25] ss:$0 sm:$0xff]  ;;  %s11133_s3 = smov 64   ;;  %s11134_s7 = smov 96  }
 0x294   :  { %9160 = vmatprep.subr.mxu1 %v11131_v8  ;;  %9162 = vmatprep.mubr.msk.f32.mxu1 %vm11132_vm1, %v11131_v8  ;;  %s11135_s10 = smov 80   ;;  %vm682_vm2 = vcmask 130048   ;;  %vm758_vm3 = vcmask 64512   ;;  %s12542_s24 = sld [smem:[#allocation98_spill]]  ;;  %v11138_v27 = vmov 0.0|0.0  }
 0x295   :  { %s11136_s27 = smov 48   ;;  %s11137_s11 = smov 112  }
 0x296   :  { %s12543_s5 = sld [smem:[#allocation93_spill]]  ;;  %s12544_s15 = sld [smem:[#allocation94_spill]] }
 0x297   :  { %s12545_s16 = sld [smem:[#allocation107_spill]]  ;;  %s12546_s18 = sld [smem:[#allocation106_spill]] }
 0x298   :  { %v581_v0 = vld [vmem:[%s12541_s14] sm:$0xff]  ;;  %v582_v1 = vld [vmem:[%s12541_s14 + $0x8] sm:$0xff]  ;;  %v583_v2 = vld [vmem:[%s12541_s14 + $0x10] sm:$0xff]  ;;  %s12547_s22 = sld [smem:[#allocation101_spill]]  ;;  %s12548_s21 = sld [smem:[#allocation76_spill]] }
 0x299   :  { %v9840_v3 = vpack.c.bf16 %v582_v1, %v581_v0  ;;  %v584_v4 = vld [vmem:[%s12541_s14 + $0x18] sm:$0xff]  ;;  %s12549_s13 = sld [smem:[#allocation102_spill]]  ;;  %s12550_s29 = sld [smem:[#allocation74_spill]] }
 0x29a   :  { %v9844_v6 = vpack.c.bf16 %v584_v4, %v583_v2  ;;  %v586_v25 = vld [vmem:[%s12542_s24] sm:$0xff]  ;;  %v587_v26 = vld [vmem:[%s12542_s24 + $0x8] sm:$0xff]  ;;  %v588_v46 = vld [vmem:[%s12542_s24 + $0x10] sm:$0xff]  ;;  %s12554_s30 = sld [smem:[#allocation73_spill]]  ;;  %s12555_s23 = sld [smem:[#allocation62_spill]] }
 0x29b   :  { %9841 = vmatprep.subr.bf16.mxu0 %v9840_v3  ;;  %v9849_v28 = vpack.c.bf16 %v587_v26, %v586_v25  ;;  %v589_v47 = vld [vmem:[%s12542_s24 + $0x18] sm:$0xff]  ;;  %s12556_s12 = sld [smem:[#allocation68_spill]]  ;;  %s12557_s6 = sld [smem:[#allocation67_spill]] }
 0x29c   :  { %9843 = vmatpush3.bf16.msra.mxu0 %v9840_v3  ;;  %v9852_v48 = vpack.c.bf16 %v589_v47, %v588_v46  ;;  %v8671_v3 = vld [vmem:[#allocation23] ss:$0 sm:$0xff]  ;;  %s12558_s26 = sld [smem:[#allocation60_spill]]  ;;  %s12559_s8 = sld [smem:[#allocation61_spill]] }
 0x29d   :  { %9845 = vmatprep.subr.bf16.mxu0 %v9844_v6  ;;  %s12560_s0 = sld [smem:[#allocation59_spill]]  ;;  %s12561_s28 = sld [smem:[#allocation70_spill]] }
 0x29e   :  { %s12562_s1 = sld [smem:[#allocation69_spill]]  ;;  %s12563_s4 = sld [smem:[#allocation65_spill]] }
 0x29f   :  { %s12564_s25 = sld [smem:[#allocation66_spill]]  ;;  %s12565_s2 = sld [smem:[#allocation63_spill]] }
 0x2a0   :  { %9847 = vmatpush3.bf16.msra.mxu0 %v9844_v6  ;;  %s12566_s17 = sld [smem:[#allocation64_spill]]  ;;  %s12567_s14 = sld [smem:[#allocation90_spill]] }
 0x2a1   :  { %9848 = vmatprep.subr.bf16.mxu0 %v11138_v27  ;;  %s12568_s24 = sld [smem:[#allocation72_spill]] }
 0x2a3   :  { %9158 = vmatmul.mubr.msk.f32.vlgmr.msra.gmra.mrb[0].mxu0 %vm597_vm0, %v11606_v7 }
 0x2a4   :  { %9174 = vmatprep.mubr.msk.f32.mxu0 %vm11132_vm1, %v11131_v8  ;;  %9850 = vmatpush3.bf16.msra.mxu0 %v9849_v28 }
 0x2a5   :  { %9182 = vmatprep.subr.mxu0 %v11131_v8 }
 0x376   :  { %v9159_v10 = vpop.f32.mrb[0].mxu0 }
 0x377   :  { %v11615_v11 = vadd.f32 %v9159_v10, %v8664_v9  ;;  %v670_v12 = vpop.f32.mrb[1].mxu0 }
 0x378   :  { %v671_v13 = vadd.f32 %v8664_v9, %v670_v12 }
 0x37a   :  { %770 = vrot.lane.b32.xlu1 %v671_v13, %s11133_s3  ;;  %680 = vrot.lane.b32.xlu0 %v671_v13, %s11134_s7 }
 0x37e   :  { %928 = vrot.lane.b32.xlu1 %v671_v13, %s11135_s10 }
 0x3ec   :  { %v681_v14 = vpop.permute.xlu0 %680  ;;  %v771_v15 = vpop.permute.xlu1 %770 }
 0x3ed   :  { %9161 = vmatpush3.xpose.msk.msra.mxu1 %vm682_vm2, %v681_v14 }
 0x3ee   :  { %9165 = vmatprep.subr.mxu1 %v11131_v8 }
 0x3f0   :  { %9163 = vmatmul.mubr.msk.f32.vlgmr.msra.gmra.mrb[0].mxu1 %vm682_vm2, %v671_v13  ;;  %v929_v29 = vpop.permute.xlu1 %928 }
 0x3f1   :  { %9166 = vmatpush3.msra.mxu1 %v771_v15  ;;  %9167 = vmatprep.mubr.msk.f32.mxu1 %vm11132_vm1, %v11131_v8 }
 0x3f2   :  { %9177 = vmatprep.subr.mxu1 %v11131_v8 }
 0x4c3   :  { %v753_v16 = vpop.f32.mrb[0].mxu1 }
 0x4c4   :  { %v757_v17 = vmul.f32 0.25, %v753_v16  ;;  %v9164_v18 = vpop.f32.mrb[1].mxu1 }
 0x4c6   :  { %v759_v19 = vsel %vm758_vm3, %v757_v17, -inf }
 0x4c7   :  { %760 = vmax.xlane.f32.xlu0 %v759_v19 }
 0x4dd   :  { %1016 = vrot.lane.b32.xlu0 %v671_v13, %s11136_s27 }
 0x554   :  { %v761_v20 = vpop.xlane.xlu0 %760 }
 0x555   :  { %v762_v21 = vsub.f32 %v757_v17, %v761_v20 }
 0x557   :  { %v763_v22 = vmul.f32 1.442695, %v762_v21 }
 0x558   :  { %v1017_v35 = vpop.permute.xlu0 %1016 }
 0x559   :  { %10269 = vpow2.f32 %v763_v22 }
 0x563   :  { %v10270_v23 = vpop.eup %10269 }
 0x564   :  { %v765_v24 = vsel %vm758_vm3, %v10270_v23, 0.0 }
 0x565   :  { %766 = vadd.xlane.f32.xlu1 %v765_v24 }
 0x576   :  { %926 = vrot.lane.b32.xlu1 %v671_v13, %s11137_s11 }
 0x5f2   :  { %v767_v30 = vpop.xlane.xlu1 %766 }
 0x5f3   :  { %10271 = vrcp.f32 %v767_v30 }
 0x5f6   :  { %v927_v33 = vpop.permute.xlu1 %926 }
 0x5fd   :  { %v10272_v31 = vpop.eup %10271 }
 0x5fe   :  { %v769_v32 = vmul.f32 %v10272_v31, %v10270_v23 }
 0x600   :  { %9168 = vmatmul.mubr.msk.f32.vlgmr.msra.gmra.mrb[2].mxu1 %vm758_vm3, %v769_v32 }
 0x601   :  { %9178 = vmatpush3.xpose.msk.msra.mxu1 %vm682_vm2, %v929_v29  ;;  %9179 = vmatprep.mubr.msk.f32.mxu1 %vm11132_vm1, %v11131_v8 }
 0x602   :  { %9851 = vmatprep.subr.bf16.mxu1 %v11138_v27 }
 0x604   :  { %9180 = vmatmul.mubr.msk.f32.vlgmr.msra.gmra.mrb[4].mxu1 %vm682_vm2, %v927_v33 }
 0x605   :  { %9191 = vmatprep.mubr.msk.f32.mxu1 %vm11132_vm1, %v11131_v8  ;;  %9853 = vmatpush3.bf16.msra.mxu1 %v9852_v48 }
 0x606   :  { %9199 = vmatprep.subr.mxu1 %v11131_v8 }
 0x6d3   :  { %v842_v34 = vpop.f32.mrb[2].mxu1 }
 0x6d4   :  { %v9169_v36 = vpop.f32.mrb[3].mxu1  ;;  %9175 = vmatmul.mubr.msk.f32.vlgmr.msra.gmra.mrb[2].mxu0 %vm682_vm2, %v842_v34 }
 0x6d5   :  { %9183 = vmatpush3.msra.mxu0 %v1017_v35  ;;  %9184 = vmatprep.mubr.msk.f32.mxu0 %vm11132_vm1, %v11131_v8 }
 0x6d6   :  { %9194 = vmatprep.subr.mxu0 %v11131_v8 }
 0x6d7   :  { %v1000_v37 = vpop.f32.mrb[4].mxu1 }
 0x6d8   :  { %v1004_v38 = vmul.f32 0.25, %v1000_v37  ;;  %v9181_v39 = vpop.f32.mrb[5].mxu1 }
 0x6da   :  { %v1005_v40 = vsel %vm758_vm3, %v1004_v38, -inf }
 0x6db   :  { %1006 = vmax.xlane.f32.xlu1 %v1005_v40 }
 0x6ec   :  { %1255 = vrot.lane.b32.xlu1 %v11615_v11, %s11133_s3 }
 0x6f0   :  { %1407 = vrot.lane.b32.xlu1 %v11615_v11, %s11135_s10 }
 0x768   :  { %v1007_v41 = vpop.xlane.xlu1 %1006 }
 0x769   :  { %v1008_v42 = vsub.f32 %v1004_v38, %v1007_v41 }
 0x76b   :  { %v1009_v43 = vmul.f32 1.442695, %v1008_v42 }
 0x76c   :  { %v1256_v56 = vpop.permute.xlu1 %1255 }
 0x76d   :  { %10273 = vpow2.f32 %v1009_v43 }
 0x770   :  { %v1408_v12 = vpop.permute.xlu1 %1407 }
 0x777   :  { %v10274_v44 = vpop.eup %10273 }
 0x778   :  { %v1011_v45 = vsel %vm758_vm3, %v10274_v44, 0.0 }
 0x779   :  { %1012 = vadd.xlane.f32.xlu0 %v1011_v45 }
 0x78f   :  { %1167 = vrot.lane.b32.xlu0 %v11615_v11, %s11134_s7 }
 0x7a7   :  { %v915_v49 = vpop.f32.mrb[2].mxu0 }
 0x7a8   :  { %v9176_v50 = vpop.f32.mrb[3].mxu0  ;;  %v925_v4 = vadd.f32 %v8671_v3, %v915_v49 }
 0x806   :  { %v1013_v51 = vpop.xlane.xlu0 %1012 }
 0x807   :  { %10275 = vrcp.f32 %v1013_v51 }
 0x80a   :  { %v1168_v54 = vpop.permute.xlu0 %1167 }
 0x811   :  { %v10276_v52 = vpop.eup %10275 }
 0x812   :  { %v1015_v53 = vmul.f32 %v10276_v52, %v10274_v44 }
 0x814   :  { %9185 = vmatmul.mubr.msk.f32.vlgmr.msra.gmra.mrb[4].mxu0 %vm758_vm3, %v1015_v53 }
 0x815   :  { %9195 = vmatpush3.xpose.msk.msra.mxu0 %vm682_vm2, %v1168_v54  ;;  %9196 = vmatprep.mubr.msk.f32.mxu0 %vm11132_vm1, %v11131_v8 }
 0x816   :  { %9854 = vmatprep.subr.bf16.mxu0 %v11138_v27 }
 0x818   :  { %9197 = vmatmul.mubr.msk.f32.vlgmr.msra.gmra.mrb[6].mxu0 %vm682_vm2, %v11615_v11 }
 0x819   :  { %9856 = vmatpush3.bf16.msra.mxu0 %v9849_v28  ;;  %9208 = vmatprep.mubr.msk.f32.mxu0 %vm11132_vm1, %v11131_v8 }
 0x81a   :  { %9216 = vmatprep.subr.mxu0 %v11131_v8 }
 0x8e7   :  { %v1088_v55 = vpop.f32.mrb[4].mxu0 }
 0x8e8   :  { %v9186_v57 = vpop.f32.mrb[5].mxu0  ;;  %9192 = vmatmul.mubr.msk.f32.vlgmr.msra.gmra.mrb[6].mxu1 %vm682_vm2, %v1088_v55 }
 0x8e9   :  { %9200 = vmatpush3.msra.mxu1 %v1256_v56  ;;  %9201 = vmatprep.mubr.msk.f32.mxu1 %vm11132_vm1, %v11131_v8  ;;  %v8684_v56 = vld [vmem:[#allocation19] ss:$0 sm:$0xff] }
 0x8ea   :  { %9211 = vmatprep.subr.mxu1 %v11131_v8 }
 0x8eb   :  { %v1239_v58 = vpop.f32.mrb[6].mxu0 }
 0x8ec   :  { %v1243_v59 = vmul.f32 0.25, %v1239_v58  ;;  %v9198_v60 = vpop.f32.mrb[7].mxu0  ;;  %v8685_v58 = vld [vmem:[#allocation17] ss:$0 sm:$0xff] }
 0x8ee   :  { %v1244_v61 = vsel %vm758_vm3, %v1243_v59, -inf }
 0x8ef   :  { %1245 = vmax.xlane.f32.xlu0 %v1244_v61  ;;  %v1692_v61 = vld [vmem:[%s12543_s5] sm:$0xff] }
 0x97c   :  { %v1246_v62 = vpop.xlane.xlu0 %1245 }
 0x97d   :  { %v1247_v63 = vsub.f32 %v1243_v59, %v1246_v62  ;;  %v1693_v62 = vld [vmem:[%s12543_s5 + $0x8] sm:$0xff] }
 0x97f   :  { %v1248_v0 = vmul.f32 1.442695, %v1247_v63  ;;  %v9860_v63 = vpack.c.bf16 %v1693_v62, %v1692_v61  ;;  %v1930_v62 = vld [vmem:[%s12545_s16] sm:$0xff] }
 0x981   :  { %10277 = vpow2.f32 %v1248_v0  ;;  %v1694_v0 = vld [vmem:[%s12543_s5 + $0x10] sm:$0xff] }
 0x98b   :  { %v10278_v1 = vpop.eup %10277 }
 0x98c   :  { %v1250_v2 = vsel %vm758_vm3, %v10278_v1, 0.0 }
 0x98d   :  { %1251 = vadd.xlane.f32.xlu1 %v1250_v2 }
 0x99e   :  { %1405 = vrot.lane.b32.xlu1 %v11615_v11, %s11137_s11 }
 0x9bb   :  { %v1161_v6 = vpop.f32.mrb[6].mxu1 }
 0x9bc   :  { %v1165_v9 = vadd.f32 %v1161_v6, %v925_v4  ;;  %v9193_v10 = vpop.f32.mrb[7].mxu1  ;;  %v1787_v4 = vld [vmem:[%s12544_s15 + $0x8] sm:$0xff]  ;;  %v1788_v6 = vld [vmem:[%s12544_s15 + $0x10] sm:$0xff] }
 0x9bd   :  { %v1789_v10 = vld [vmem:[%s12544_s15 + $0x18] sm:$0xff] }
 0x9be   :  { %v1645_v31 = vadd.f32 %v1165_v9, %v11601_v5 }
 0x9c0   :  { %v1649_v32 = vsel %vm597_vm0, %v1645_v31, 0.0 }
 0xa1a   :  { %v1252_v13 = vpop.xlane.xlu1 %1251 }
 0xa1b   :  { %10279 = vrcp.f32 %v1252_v13  ;;  %v1790_v13 = vld [vmem:[%s12544_s15 + $0x20] sm:$0xff] }
 0xa1e   :  { %v1406_v16 = vpop.permute.xlu1 %1405 }
 0xa25   :  { %v10280_v14 = vpop.eup %10279 }
 0xa26   :  { %v1254_v15 = vmul.f32 %v10280_v14, %v10278_v1  ;;  %v1695_v1 = vld [vmem:[%s12543_s5 + $0x18] sm:$0xff]  ;;  %v1791_v14 = vld [vmem:[%s12544_s15 + $0x28] sm:$0xff]  ;;  %s12569_s5 = sld [smem:[#allocation71_spill]] }
 0xa27   :  { %v9864_v2 = vpack.c.bf16 %v1695_v1, %v1694_v0  ;;  %v1932_v0 = vld [vmem:[%s12545_s16 + $0x10] sm:$0xff] }
 0xa28   :  { %9202 = vmatmul.mubr.msk.f32.vlgmr.msra.gmra.mrb[8].mxu1 %vm758_vm3, %v1254_v15  ;;  %v9876_v15 = vpack.c.bf16 %v1791_v14, %v1790_v13 }
 0xa29   :  { %9212 = vmatpush3.xpose.msk.msra.mxu1 %vm682_vm2, %v1408_v12  ;;  %9213 = vmatprep.mubr.msk.f32.mxu1 %vm11132_vm1, %v11131_v8  ;;  %v9872_v12 = vpack.c.bf16 %v1789_v10, %v1788_v6 }
 0xa2a   :  { %9857 = vmatprep.subr.bf16.mxu1 %v11138_v27 }
 0xa2c   :  { %9214 = vmatmul.mubr.msk.f32.vlgmr.msra.gmra.mrb[10].mxu1 %vm682_vm2, %v1406_v16  ;;  %v1792_v16 = vld [vmem:[%s12544_s15 + $0x30] sm:$0xff] }
 0xa2d   :  { %9859 = vmatpush3.bf16.msra.mxu1 %v9852_v48  ;;  %9225 = vmatprep.mubr.msk.f32.mxu1 %vm11132_vm1, %v11131_v8 }
 0xafb   :  { %v1327_v17 = vpop.f32.mrb[8].mxu1 }
 0xafc   :  { %v9203_v18 = vpop.f32.mrb[9].mxu1  ;;  %9209 = vmatmul.mubr.msk.f32.vlgmr.msra.gmra.mrb[8].mxu0 %vm682_vm2, %v1327_v17  ;;  %v1793_v17 = vld [vmem:[%s12544_s15 + $0x38] sm:$0xff] }
 0xafd   :  { %9218 = vmatprep.mubr.msk.f32.mxu0 %vm11132_vm1, %v11131_v8  ;;  %v9880_v18 = vpack.c.bf16 %v1793_v17, %v1792_v16  ;;  %v8691_v17 = vld [vmem:[#allocation20] ss:$0 sm:$0xff] }
 0xaff   :  { %v1479_v19 = vpop.f32.mrb[10].mxu1 }
 0xb00   :  { %v1483_v20 = vmul.f32 0.25, %v1479_v19  ;;  %v9215_v21 = vpop.f32.mrb[11].mxu1  ;;  %v1794_v19 = vld [vmem:[%s12544_s15 + $0x40] sm:$0xff] }
 0xb02   :  { %v1484_v22 = vsel %vm758_vm3, %v1483_v20, -inf }
 0xb03   :  { %1485 = vmax.xlane.f32.xlu1 %v1484_v22  ;;  %v1796_v22 = vld [vmem:[%s12544_s15 + $0x50] sm:$0xff] }
 0xb90   :  { %v1486_v23 = vpop.xlane.xlu1 %1485 }
 0xb91   :  { %v1487_v24 = vsub.f32 %v1483_v20, %v1486_v23  ;;  %v1795_v20 = vld [vmem:[%s12544_s15 + $0x48] sm:$0xff]  ;;  %v1797_v23 = vld [vmem:[%s12544_s15 + $0x58] sm:$0xff] }
 0xb92   :  { %v9884_v21 = vpack.c.bf16 %v1795_v20, %v1794_v19 }
 0xb93   :  { %v1488_v25 = vmul.f32 1.442695, %v1487_v24  ;;  %v9888_v24 = vpack.c.bf16 %v1797_v23, %v1796_v22 }
 0xb95   :  { %10281 = vpow2.f32 %v1488_v25  ;;  %v1798_v25 = vld [vmem:[%s12544_s15 + $0x60] sm:$0xff] }
 0xb9f   :  { %v10282_v26 = vpop.eup %10281 }
 0xba0   :  { %v1490_v28 = vsel %vm758_vm3, %v10282_v26, 0.0 }
 0xba1   :  { %1491 = vadd.xlane.f32.xlu0 %v1490_v28 }
 0xbb7   :  { %1495 = vrot.lane.b32.xlu0 %v11615_v11, %s11136_s27 }
 0xbcf   :  { %v1400_v29 = vpop.f32.mrb[8].mxu0 }
 0xbd0   :  { %v9210_v30 = vpop.f32.mrb[9].mxu0  ;;  %v1404_v40 = vadd.f32 %v8671_v3, %v1400_v29  ;;  %v1786_v3 = vld [vmem:[%s12544_s15] sm:$0xff] }
 0xbd1   :  { %v9868_v9 = vpack.c.bf16 %v1787_v4, %v1786_v3 }
 0xbd3   :  { %9869 = vmatprep.subr.bf16.mxu1 %v9868_v9 }
 0xbd6   :  { %1650 = vadd.xlane.f32.xlu0 %v1649_v32 }
 0xc2e   :  { %v1492_v33 = vpop.xlane.xlu0 %1491 }
 0xc2f   :  { %10283 = vrcp.f32 %v1492_v33 }
 0xc32   :  { %v1496_v34 = vpop.permute.xlu0 %1495 }
 0xc33   :  { %9217 = vmatpush3.msra.mxu0 %v1496_v34 }
 0xc34   :  { %9861 = vmatprep.subr.bf16.mxu0 %v9860_v63 }
 0xc39   :  { %v10284_v35 = vpop.eup %10283 }
 0xc3a   :  { %v1494_v36 = vmul.f32 %v10284_v35, %v10282_v26  ;;  %v1799_v26 = vld [vmem:[%s12544_s15 + $0x68] sm:$0xff] }
 0xc3b   :  { %v9892_v28 = vpack.c.bf16 %v1799_v26, %v1798_v25 }
 0xc3c   :  { %9219 = vmatmul.mubr.msk.f32.vlgmr.msra.gmra.mrb[10].mxu0 %vm758_vm3, %v1494_v36  ;;  %v1800_v36 = vld [vmem:[%s12544_s15 + $0x70] sm:$0xff] }
 0xc3d   :  { %9863 = vmatpush3.bf16.msra.mxu0 %v9860_v63  ;;  %v1931_v63 = vld [vmem:[%s12545_s16 + $0x8] sm:$0xff] }
 0xc3e   :  { %9865 = vmatprep.subr.bf16.mxu0 %v9864_v2  ;;  %v9900_v1 = vpack.c.bf16 %v1931_v63, %v1930_v62 }
 0xc41   :  { %9867 = vmatpush3.bf16.msra.mxu0 %v9864_v2  ;;  %v1933_v2 = vld [vmem:[%s12545_s16 + $0x18] sm:$0xff]  ;;  %s12573_s16 = sld [smem:[#allocation85_spill]] }
 0xc42   :  { %v9904_v3 = vpack.c.bf16 %v1933_v2, %v1932_v0  ;;  %9901 = vmatprep.subr.bf16.mxu0 %v9900_v1 }
 0xc63   :  { %v1651_v11 = vpop.xlane.xlu0 %1650 }
 0xc64   :  { %v1656_v39 = vmul.f32 0.03125, %v1651_v11  ;;  %v8686_v11 = vld [vmem:[#allocation14] ss:$0 sm:$0xff] }
 0xc66   :  { %v1658_v5 = vsub.f32 %v1645_v31, %v1656_v39 }
 0xc68   :  { %v1660_v46 = vmul.f32 %v1658_v5, %v1658_v5 }
 0xc6a   :  { %v1662_v47 = vsel %vm597_vm0, %v1660_v46, 0.0 }
 0xd0f   :  { %v1567_v37 = vpop.f32.mrb[10].mxu0 }
 0xd10   :  { %v9220_v38 = vpop.f32.mrb[11].mxu0  ;;  %9226 = vmatmul.mubr.msk.f32.vlgmr.msra.gmra.mrb[12].mxu1 %vm682_vm2, %v1567_v37  ;;  %v1801_v37 = vld [vmem:[%s12544_s15 + $0x78] sm:$0xff]  ;;  %s12570_s15 = sld [smem:[#allocation89_spill]] }
 0xd11   :  { %9871 = vmatpush3.bf16.msra.mxu1 %v9868_v9  ;;  %v9896_v38 = vpack.c.bf16 %v1801_v37, %v1800_v36 }
 0xd12   :  { %9873 = vmatprep.subr.bf16.mxu1 %v9872_v12 }
 0xd15   :  { %9875 = vmatpush3.bf16.msra.mxu1 %v9872_v12 }
 0xd16   :  { %9877 = vmatprep.subr.bf16.mxu1 %v9876_v15 }
 0xd19   :  { %9879 = vmatpush3.bf16.msra.mxu1 %v9876_v15  ;;  %v8690_v15 = vld [vmem:[#allocation22] ss:$0 sm:$0xff] }
 0xd1a   :  { %9881 = vmatprep.subr.bf16.mxu1 %v9880_v18 }
 0xd1d   :  { %9883 = vmatpush3.bf16.msra.mxu1 %v9880_v18 }
 0xd1e   :  { %9885 = vmatprep.subr.bf16.mxu1 %v9884_v21 }
 0xd21   :  { %9887 = vmatpush3.bf16.msra.mxu1 %v9884_v21 }
 0xd22   :  { %9889 = vmatprep.subr.bf16.mxu1 %v9888_v24 }
 0xd25   :  { %9891 = vmatpush3.bf16.msra.mxu1 %v9888_v24  ;;  %v8692_v24 = vld [vmem:[#allocation37] ss:$0 sm:$0xff] }
 0xd26   :  { %9893 = vmatprep.subr.bf16.mxu1 %v9892_v28 }
 0xd29   :  { %9895 = vmatpush3.bf16.msra.mxu1 %v9892_v28 }
 0xd2a   :  { %9897 = vmatprep.subr.bf16.mxu1 %v9896_v38 }
 0xd2d   :  { %9899 = vmatpush3.bf16.msra.mxu1 %v9896_v38 }
 0xd2e   :  { %9911 = vmatprep.subr.bf16.mxu1 %v11138_v27 }
 0xde3   :  { %v1640_v41 = vpop.f32.mrb[12].mxu1 }
 0xde4   :  { %v1644_v42 = vadd.f32 %v1640_v41, %v1404_v40  ;;  %v9227_v43 = vpop.f32.mrb[13].mxu1 }
 0xde6   :  { %v1646_v44 = vadd.f32 %v1644_v42, %v11606_v7 }
 0xde8   :  { %v1652_v45 = vsel %vm597_vm0, %v1646_v44, 0.0 }
 0xde9   :  { %1653 = vadd.xlane.f32.xlu1 %v1652_v45 }
 0xded   :  { %1663 = vadd.xlane.f32.xlu1 %v1662_v47 }
 0xe76   :  { %v1654_v48 = vpop.xlane.xlu1 %1653 }
 0xe77   :  { %v1657_v49 = vmul.f32 0.03125, %v1654_v48 }
 0xe79   :  { %v11697_v50 = vsub.f32 %v1646_v44, %v1657_v49  ;;  %v8689_v44 = vld [vmem:[#allocation16] ss:$0 sm:$0xff] }
 0xe7a   :  { %v1664_v51 = vpop.xlane.xlu1 %1663 }
 0xe7b   :  { %v1668_v52 = vmul.f32 0.03125, %v1664_v51  ;;  %v1661_v53 = vmul.f32 %v11697_v50, %v11697_v50 }
 0xe7d   :  { %v1670_v54 = vadd.f32 1e-05, %v1668_v52  ;;  %v1665_v7 = vsel %vm597_vm0, %v1661_v53, 0.0 }
 0xe7e   :  { %1666 = vadd.xlane.f32.xlu1 %v1665_v7 }
 0xe7f   :  { %10285 = vrsqrt.f32 %v1670_v54 }
 0xe89   :  { %v10286_v55 = vpop.eup %10285 }
 0xe8a   :  { %v1674_v57 = vmul.f32 %v10286_v55, %v1658_v5 }
 0xe8c   :  { %v1682_v59 = vmul.f32 %v8684_v56, %v1674_v57 }
 0xe8e   :  { %v11702_v60 = vadd.f32 %v8685_v58, %v1682_v59 }
 0xe90   :  { %9236 = vmatprep.mubr.msk.f32.mxu0 %vm597_vm0, %v11702_v60 }
 0xf0b   :  { %v1667_v29 = vpop.xlane.xlu1 %1666 }
 0xf0c   :  { %v1669_v30 = vmul.f32 0.03125, %v1667_v29 }
 0xf0e   :  { %v1671_v31 = vadd.f32 1e-05, %v1669_v30 }
 0xf10   :  { %10287 = vrsqrt.f32 %v1671_v31 }
 0xf1a   :  { %v10288_v32 = vpop.eup %10287 }
 0xf1b   :  { %v1675_v33 = vmul.f32 %v10288_v32, %v11697_v50 }
 0xf1d   :  { %v1683_v34 = vmul.f32 %v8684_v56, %v1675_v33 }
 0xf1f   :  { %v1691_v35 = vadd.f32 %v8685_v58, %v1683_v34 }
 0xf21   :  { %9237 = vmatmul.mubr.msk.f32.vlgmr.msra.gmra.mrb[12].mxu0 %vm597_vm0, %v1691_v35 }
 0xf22   :  { %9903 = vmatpush3.bf16.msra.mxu0 %v9900_v1 }
 0xf23   :  { %9905 = vmatprep.subr.bf16.mxu0 %v9904_v3 }
 0xf26   :  { %9907 = vmatpush3.bf16.msra.mxu0 %v9904_v3 }
 0xf27   :  { %9285 = vmatprep.subr.mxu0 %v11131_v8 }
 0xff4   :  { %v9238_v39 = vpop.f32.mrb[12].mxu0 }
 0xff5   :  { %v1781_v40 = vadd.f32 %v9238_v39, %v8686_v11  ;;  %v1775_v41 = vpop.f32.mrb[13].mxu0 }
 0xff6   :  { %v1776_v5 = vadd.f32 %v8686_v11, %v1775_v41  ;;  %v1935_v41 = vld [vmem:[%s12546_s18] sm:$0xff] }
 0xff7   :  { %v1785_v43 = vmax.f32 %v1781_v40, 0.0 }
 0xff8   :  { %v1784_v42 = vmax.f32 %v1776_v5, 0.0  ;;  %v1936_v5 = vld [vmem:[%s12546_s18 + $0x8] sm:$0xff] }
 0xffa   :  { %9271 = vmatprep.mubr.f32.mxu1 %v1784_v42 }
 0xffb   :  { %9272 = vmatmul.mubr.f32.vlgmr.msra.gmra.mrb[14].mxu1 %v1785_v43  ;;  %v9909_v43 = vpack.c.bf16 %v1936_v5, %v1935_v41 }
 0xffc   :  { %9316 = vmatprep.mubr.msk.f32.mxu1 %vm11132_vm1, %v11131_v8 }
0x10ce   :  { %v9273_v45 = vpop.f32.mrb[14].mxu1 }
0x10cf   :  { %v1875_v46 = vpop.f32.mrb[15].mxu1  ;;  %v1881_v47 = vadd.f32 %v9273_v45, %v8689_v44 }
0x10d0   :  { %v1876_v48 = vadd.f32 %v8689_v44, %v1875_v46 }
0x10d1   :  { %v1885_v51 = vadd.f32 %v1881_v47, %v1691_v35 }
0x10d2   :  { %v1884_v49 = vadd.f32 %v1876_v48, %v11702_v60 }
0x10d3   :  { %v1891_v52 = vsel %vm597_vm0, %v1885_v51, 0.0 }
0x10d4   :  { %v1888_v50 = vsel %vm597_vm0, %v1884_v49, 0.0 }
0x10d5   :  { %1889 = vadd.xlane.f32.xlu1 %v1888_v50 }
0x10d9   :  { %1892 = vadd.xlane.f32.xlu1 %v1891_v52 }
0x1162   :  { %v1890_v53 = vpop.xlane.xlu1 %1889 }
0x1163   :  { %v1894_v54 = vmul.f32 0.03125, %v1890_v53 }
0x1165   :  { %v1896_v7 = vsub.f32 %v1884_v49, %v1894_v54 }
0x1166   :  { %v1893_v55 = vpop.xlane.xlu1 %1892 }
0x1167   :  { %v1895_v56 = vmul.f32 0.03125, %v1893_v55  ;;  %v1898_v57 = vmul.f32 %v1896_v7, %v1896_v7 }
0x1169   :  { %v1897_v58 = vsub.f32 %v1885_v51, %v1895_v56  ;;  %v1900_v59 = vsel %vm597_vm0, %v1898_v57, 0.0 }
0x116a   :  { %1901 = vadd.xlane.f32.xlu1 %v1900_v59 }
0x116b   :  { %v1899_v60 = vmul.f32 %v1897_v58, %v1897_v58 }
0x116d   :  { %v1903_v61 = vsel %vm597_vm0, %v1899_v60, 0.0  ;;  %v1937_v60 = vld [vmem:[%s12546_s18 + $0x10] sm:$0xff] }
0x116e   :  { %1904 = vadd.xlane.f32.xlu0 %v1903_v61  ;;  %v1938_v61 = vld [vmem:[%s12546_s18 + $0x18] sm:$0xff]  ;;  %s12574_s18 = sld [smem:[#allocation78_spill]] }
0x116f   :  { %v9912_v62 = vpack.c.bf16 %v1938_v61, %v1937_v60 }
0x1171   :  { %9913 = vmatpush3.bf16.msra.mxu1 %v9912_v62 }
0x1172   :  { %9324 = vmatprep.subr.mxu1 %v11131_v8 }
0x11f7   :  { %v1902_v4 = vpop.xlane.xlu1 %1901 }
0x11f8   :  { %v1906_v6 = vmul.f32 0.03125, %v1902_v4 }
0x11fa   :  { %v1908_v9 = vadd.f32 1e-05, %v1906_v6 }
0x11fb   :  { %v1905_v10 = vpop.xlane.xlu0 %1904 }
0x11fc   :  { %10289 = vrsqrt.f32 %v1908_v9  ;;  %v1907_v12 = vmul.f32 0.03125, %v1905_v10 }
0x11fe   :  { %v1909_v13 = vadd.f32 1e-05, %v1907_v12 }
0x1200   :  { %10291 = vrsqrt.f32 %v1909_v13 }
0x1206   :  { %v10290_v14 = vpop.eup %10289 }
0x1207   :  { %v1912_v16 = vmul.f32 %v10290_v14, %v1896_v7 }
0x1209   :  { %v1920_v18 = vmul.f32 %v8690_v15, %v1912_v16 }
0x120a   :  { %v10292_v19 = vpop.eup %10291 }
0x120b   :  { %v1913_v20 = vmul.f32 %v10292_v19, %v1897_v58  ;;  %v11741_v21 = vadd.f32 %v8691_v17, %v1920_v18  ;;  %v8699_v19 = vld [vmem:[#allocation35] ss:$0 sm:$0xff] }
0x120d   :  { %v1921_v22 = vmul.f32 %v8690_v15, %v1913_v20  ;;  %9282 = vmatprep.mubr.msk.f32.mxu0 %vm597_vm0, %v11741_v21 }
0x120f   :  { %v11745_v23 = vadd.f32 %v8691_v17, %v1921_v22 }
0x1211   :  { %9283 = vmatmul.mubr.msk.f32.vlgmr.msra.gmra.mrb[14].mxu0 %vm597_vm0, %v11745_v23 }
0x1212   :  { %9287 = vmatprep.mubr.msk.f32.mxu0 %vm11132_vm1, %v11131_v8 }
0x12e4   :  { %v9284_v25 = vpop.f32.mrb[14].mxu0 }
0x12e5   :  { %v11751_v26 = vadd.f32 %v9284_v25, %v8692_v24  ;;  %v2018_v28 = vpop.f32.mrb[15].mxu0 }
0x12e6   :  { %v2019_v29 = vadd.f32 %v8692_v24, %v2018_v28 }
0x12e8   :  { %2028 = vrot.lane.b32.xlu1 %v2019_v29, %s11134_s7 }
0x12ec   :  { %2274 = vrot.lane.b32.xlu1 %v2019_v29, %s11135_s10 }
0x12f0   :  { %2272 = vrot.lane.b32.xlu1 %v2019_v29, %s11137_s11 }
0x135a   :  { %v2029_v30 = vpop.permute.xlu1 %2028 }
0x135b   :  { %9286 = vmatpush3.xpose.msk.msra.mxu0 %vm682_vm2, %v2029_v30 }
0x135c   :  { %9290 = vmatprep.subr.mxu0 %v11131_v8 }
0x135e   :  { %9288 = vmatmul.mubr.msk.f32.vlgmr.msra.gmra.mrb[16].mxu0 %vm682_vm2, %v2019_v29  ;;  %v2275_v45 = vpop.permute.xlu1 %2274 }
0x135f   :  { %9292 = vmatprep.mubr.msk.f32.mxu0 %vm11132_vm1, %v11131_v8 }
0x1362   :  { %v2273_v48 = vpop.permute.xlu1 %2272 }
0x1431   :  { %v2100_v31 = vpop.f32.mrb[16].mxu0 }
0x1432   :  { %v2104_v32 = vmul.f32 0.25, %v2100_v31  ;;  %v9289_v33 = vpop.f32.mrb[17].mxu0 }
0x1434   :  { %v2105_v34 = vsel %vm758_vm3, %v2104_v32, -inf }
0x1435   :  { %2106 = vmax.xlane.f32.xlu0 %v2105_v34 }
0x14c2   :  { %v2107_v35 = vpop.xlane.xlu0 %2106 }
0x14c3   :  { %v2108_v36 = vsub.f32 %v2104_v32, %v2107_v35 }
0x14c5   :  { %v2109_v37 = vmul.f32 1.442695, %v2108_v36 }
0x14c7   :  { %10293 = vpow2.f32 %v2109_v37 }
0x14d1   :  { %v10294_v38 = vpop.eup %10293 }
0x14d2   :  { %v2111_v11 = vsel %vm758_vm3, %v10294_v38, 0.0 }
0x14d3   :  { %2112 = vadd.xlane.f32.xlu0 %v2111_v11 }
0x14e9   :  { %2116 = vrot.lane.b32.xlu0 %v2019_v29, %s11133_s3 }
0x1560   :  { %v2113_v39 = vpop.xlane.xlu0 %2112 }
0x1561   :  { %10295 = vrcp.f32 %v2113_v39 }
0x1564   :  { %v2117_v40 = vpop.permute.xlu0 %2116 }
0x1565   :  { %9291 = vmatpush3.msra.mxu0 %v2117_v40 }
0x1566   :  { %9908 = vmatprep.subr.bf16.mxu0 %v11138_v27 }
0x156b   :  { %v10296_v42 = vpop.eup %10295 }
0x156c   :  { %v2115_v44 = vmul.f32 %v10296_v42, %v10294_v38 }
0x156e   :  { %9293 = vmatmul.mubr.msk.f32.vlgmr.msra.gmra.mrb[18].mxu0 %vm758_vm3, %v2115_v44 }
0x156f   :  { %9910 = vmatpush3.bf16.msra.mxu0 %v9909_v43  ;;  %9299 = vmatprep.mubr.msk.f32.mxu0 %vm11132_vm1, %v11131_v8 }
0x1570   :  { %9302 = vmatprep.subr.mxu0 %v11131_v8 }
0x1641   :  { %v2188_v46 = vpop.f32.mrb[18].mxu0 }
0x1642   :  { %v9294_v47 = vpop.f32.mrb[19].mxu0  ;;  %9300 = vmatmul.mubr.msk.f32.vlgmr.msra.gmra.mrb[20].mxu0 %vm682_vm2, %v2188_v46 }
0x1643   :  { %9303 = vmatpush3.xpose.msk.msra.mxu0 %vm682_vm2, %v2275_v45  ;;  %9304 = vmatprep.mubr.msk.f32.mxu0 %vm11132_vm1, %v11131_v8 }
0x1644   :  { %9307 = vmatprep.subr.mxu0 %v11131_v8 }
0x1646   :  { %9305 = vmatmul.mubr.msk.f32.vlgmr.msra.gmra.mrb[22].mxu0 %vm682_vm2, %v2273_v48 }
0x1647   :  { %9309 = vmatprep.mubr.msk.f32.mxu0 %vm11132_vm1, %v11131_v8 }
0x1715   :  { %v2261_v49 = vpop.f32.mrb[20].mxu0 }
0x1716   :  { %v9301_v50 = vpop.f32.mrb[21].mxu0  ;;  %v2271_v20 = vadd.f32 %v8699_v19, %v2261_v49 }
0x1719   :  { %v2346_v51 = vpop.f32.mrb[22].mxu0 }
0x171a   :  { %v2350_v52 = vmul.f32 0.25, %v2346_v51  ;;  %v9306_v53 = vpop.f32.mrb[23].mxu0 }
0x171c   :  { %v2351_v54 = vsel %vm758_vm3, %v2350_v52, -inf }
0x171d   :  { %2352 = vmax.xlane.f32.xlu1 %v2351_v54 }
0x172e   :  { %2362 = vrot.lane.b32.xlu1 %v2019_v29, %s11136_s27 }
0x17aa   :  { %v2353_v7 = vpop.xlane.xlu1 %2352 }
0x17ab   :  { %v2354_v55 = vsub.f32 %v2350_v52, %v2353_v7 }
0x17ad   :  { %v2355_v56 = vmul.f32 1.442695, %v2354_v55 }
0x17ae   :  { %v2363_v57 = vpop.permute.xlu1 %2362 }
0x17af   :  { %10297 = vpow2.f32 %v2355_v56  ;;  %9308 = vmatpush3.msra.mxu0 %v2363_v57 }
0x17b0   :  { %9319 = vmatprep.subr.mxu0 %v11131_v8 }
0x17b9   :  { %v10298_v58 = vpop.eup %10297 }
0x17ba   :  { %v2357_v59 = vsel %vm758_vm3, %v10298_v58, 0.0 }
0x17bb   :  { %2358 = vadd.xlane.f32.xlu0 %v2357_v59 }
0x17d1   :  { %2513 = vrot.lane.b32.xlu0 %v11751_v26, %s11134_s7 }
0x1848   :  { %v2359_v63 = vpop.xlane.xlu0 %2358 }
0x1849   :  { %10299 = vrcp.f32 %v2359_v63 }
0x184c   :  { %v2514_v2 = vpop.permute.xlu0 %2513 }
0x1853   :  { %v10300_v0 = vpop.eup %10299 }
0x1854   :  { %v2361_v1 = vmul.f32 %v10300_v0, %v10298_v58 }
0x1856   :  { %9310 = vmatmul.mubr.msk.f32.vlgmr.msra.gmra.mrb[24].mxu0 %vm758_vm3, %v2361_v1 }
0x1857   :  { %9320 = vmatpush3.xpose.msk.msra.mxu0 %vm682_vm2, %v2514_v2  ;;  %9321 = vmatprep.mubr.msk.f32.mxu0 %vm11132_vm1, %v11131_v8 }
0x1858   :  { %9914 = vmatprep.subr.bf16.mxu0 %v11138_v27 }
0x185a   :  { %9322 = vmatmul.mubr.msk.f32.vlgmr.msra.gmra.mrb[26].mxu0 %vm682_vm2, %v11751_v26 }
0x185b   :  { %9916 = vmatpush3.bf16.msra.mxu0 %v9909_v43  ;;  %9333 = vmatprep.mubr.msk.f32.mxu0 %vm11132_vm1, %v11131_v8 }
0x185c   :  { %9341 = vmatprep.subr.mxu0 %v11131_v8 }
0x1929   :  { %v2434_v3 = vpop.f32.mrb[24].mxu0 }
0x192a   :  { %v9311_v4 = vpop.f32.mrb[25].mxu0  ;;  %9317 = vmatmul.mubr.msk.f32.vlgmr.msra.gmra.mrb[16].mxu1 %vm682_vm2, %v2434_v3 }
0x192b   :  { %9326 = vmatprep.mubr.msk.f32.mxu1 %vm11132_vm1, %v11131_v8  ;;  %v11837_v4 = vld [vmem:[#allocation31] ss:$0 sm:$0xff] }
0x192d   :  { %v2585_v6 = vpop.f32.mrb[26].mxu0 }
0x192e   :  { %v2589_v9 = vmul.f32 0.25, %v2585_v6  ;;  %v9323_v10 = vpop.f32.mrb[27].mxu0 }
0x1930   :  { %v2590_v12 = vsel %vm758_vm3, %v2589_v9, -inf }
0x1931   :  { %2591 = vmax.xlane.f32.xlu1 %v2590_v12 }
0x1942   :  { %2601 = vrot.lane.b32.xlu1 %v11751_v26, %s11133_s3 }
0x1946   :  { %2751 = vrot.lane.b32.xlu1 %v11751_v26, %s11137_s11 }
0x19be   :  { %v2592_v13 = vpop.xlane.xlu1 %2591 }
0x19bf   :  { %v2593_v14 = vsub.f32 %v2589_v9, %v2592_v13  ;;  %v8713_v9 = vld [vmem:[#allocation29] ss:$0 sm:$0xff] }
0x19c0   :  { %v3037_v13 = vld [vmem:[%s12547_s22] sm:$0xff] }
0x19c1   :  { %v2594_v15 = vmul.f32 1.442695, %v2593_v14  ;;  %v3038_v14 = vld [vmem:[%s12547_s22 + $0x8] sm:$0xff] }
0x19c2   :  { %v2602_v16 = vpop.permute.xlu1 %2601 }
0x19c3   :  { %10301 = vpow2.f32 %v2594_v15  ;;  %9325 = vmatpush3.msra.mxu1 %v2602_v16  ;;  %v9920_v15 = vpack.c.bf16 %v3038_v14, %v3037_v13  ;;  %v3039_v16 = vld [vmem:[%s12547_s22 + $0x10] sm:$0xff] }
0x19c4   :  { %9336 = vmatprep.subr.mxu1 %v11131_v8 }
0x19c6   :  { %v2752_v32 = vpop.permute.xlu1 %2751 }
0x19cd   :  { %v10302_v17 = vpop.eup %10301 }
0x19ce   :  { %v2596_v18 = vsel %vm758_vm3, %v10302_v17, 0.0 }
0x19cf   :  { %2597 = vadd.xlane.f32.xlu0 %v2596_v18 }
0x19e5   :  { %2753 = vrot.lane.b32.xlu0 %v11751_v26, %s11135_s10 }
0x19fd   :  { %v2507_v22 = vpop.f32.mrb[16].mxu1 }
0x19fe   :  { %v2511_v24 = vadd.f32 %v2507_v22, %v2271_v20  ;;  %v9318_v25 = vpop.f32.mrb[17].mxu1  ;;  %v3322_v20 = vld [vmem:[%s12548_s21 + $0x8] sm:$0xff] }
0x19ff   :  { %v3132_v25 = vld [vmem:[%s12549_s13 + $0x8] sm:$0xff] }
0x1a00   :  { %v2991_v11 = vadd.f32 %v2511_v24, %v11741_v21  ;;  %v3131_v24 = vld [vmem:[%s12549_s13] sm:$0xff] }
0x1a02   :  { %v2995_v39 = vsel %vm597_vm0, %v2991_v11, 0.0 }
0x1a5c   :  { %v2598_v28 = vpop.xlane.xlu0 %2597 }
0x1a5d   :  { %10303 = vrcp.f32 %v2598_v28  ;;  %v3133_v28 = vld [vmem:[%s12549_s13 + $0x10] sm:$0xff] }
0x1a60   :  { %v2754_v31 = vpop.permute.xlu0 %2753 }
0x1a67   :  { %v10304_v29 = vpop.eup %10303 }
0x1a68   :  { %v2600_v30 = vmul.f32 %v10304_v29, %v10302_v17  ;;  %v3040_v17 = vld [vmem:[%s12547_s22 + $0x18] sm:$0xff]  ;;  %v9928_v29 = vpack.c.bf16 %v3132_v25, %v3131_v24  ;;  %s12575_s22 = sld [smem:[#allocation79_spill]] }
0x1a69   :  { %v9924_v18 = vpack.c.bf16 %v3040_v17, %v3039_v16 }
0x1a6a   :  { %9327 = vmatmul.mubr.msk.f32.vlgmr.msra.gmra.mrb[18].mxu1 %vm758_vm3, %v2600_v30  ;;  %v3134_v30 = vld [vmem:[%s12549_s13 + $0x18] sm:$0xff] }
0x1a6b   :  { %9337 = vmatpush3.xpose.msk.msra.mxu1 %vm682_vm2, %v2754_v31  ;;  %9338 = vmatprep.mubr.msk.f32.mxu1 %vm11132_vm1, %v11131_v8  ;;  %v9932_v31 = vpack.c.bf16 %v3134_v30, %v3133_v28 }
0x1a6c   :  { %9917 = vmatprep.subr.bf16.mxu1 %v11138_v27 }
0x1a6e   :  { %9339 = vmatmul.mubr.msk.f32.vlgmr.msra.gmra.mrb[20].mxu1 %vm682_vm2, %v2752_v32  ;;  %v3135_v32 = vld [vmem:[%s12549_s13 + $0x20] sm:$0xff] }
0x1a6f   :  { %9919 = vmatpush3.bf16.msra.mxu1 %v9912_v62  ;;  %9350 = vmatprep.mubr.msk.f32.mxu1 %vm11132_vm1, %v11131_v8 }
0x1a70   :  { %9929 = vmatprep.subr.bf16.mxu1 %v9928_v29 }
0x1b3d   :  { %v2673_v33 = vpop.f32.mrb[18].mxu1 }
0x1b3e   :  { %v9328_v34 = vpop.f32.mrb[19].mxu1  ;;  %9334 = vmatmul.mubr.msk.f32.vlgmr.msra.gmra.mrb[28].mxu0 %vm682_vm2, %v2673_v33  ;;  %v3136_v33 = vld [vmem:[%s12549_s13 + $0x28] sm:$0xff] }
0x1b3f   :  { %9343 = vmatprep.mubr.msk.f32.mxu0 %vm11132_vm1, %v11131_v8  ;;  %v9936_v34 = vpack.c.bf16 %v3136_v33, %v3135_v32 }
0x1b41   :  { %v2825_v35 = vpop.f32.mrb[20].mxu1 }
0x1b42   :  { %v2829_v36 = vmul.f32 0.25, %v2825_v35  ;;  %v9340_v37 = vpop.f32.mrb[21].mxu1  ;;  %v3137_v35 = vld [vmem:[%s12549_s13 + $0x30] sm:$0xff] }
0x1b44   :  { %v2830_v38 = vsel %vm758_vm3, %v2829_v36, -inf }
0x1b45   :  { %2831 = vmax.xlane.f32.xlu1 %v2830_v38  ;;  %v3139_v38 = vld [vmem:[%s12549_s13 + $0x40] sm:$0xff] }
0x1b49   :  { %2996 = vadd.xlane.f32.xlu1 %v2995_v39 }
0x1bd2   :  { %v2832_v40 = vpop.xlane.xlu1 %2831 }
0x1bd3   :  { %v2833_v41 = vsub.f32 %v2829_v36, %v2832_v40  ;;  %v3138_v36 = vld [vmem:[%s12549_s13 + $0x38] sm:$0xff]  ;;  %v3141_v40 = vld [vmem:[%s12549_s13 + $0x50] sm:$0xff] }
0x1bd4   :  { %v9940_v37 = vpack.c.bf16 %v3138_v36, %v3137_v35 }
0x1bd5   :  { %v2834_v5 = vmul.f32 1.442695, %v2833_v41  ;;  %v3142_v41 = vld [vmem:[%s12549_s13 + $0x58] sm:$0xff] }
0x1bd6   :  { %v2997_v51 = vpop.xlane.xlu1 %2996 }
0x1bd7   :  { %10305 = vpow2.f32 %v2834_v5  ;;  %v3001_v52 = vmul.f32 0.03125, %v2997_v51  ;;  %v9948_v5 = vpack.c.bf16 %v3142_v41, %v3141_v40 }
0x1bd9   :  { %v3003_v7 = vsub.f32 %v2991_v11, %v3001_v52  ;;  %v3140_v11 = vld [vmem:[%s12549_s13 + $0x48] sm:$0xff] }
0x1bda   :  { %v9944_v39 = vpack.c.bf16 %v3140_v11, %v3139_v38 }
0x1bdb   :  { %v3005_v58 = vmul.f32 %v3003_v7, %v3003_v7 }
0x1bdd   :  { %v3007_v59 = vsel %vm597_vm0, %v3005_v58, 0.0 }
0x1be1   :  { %v10306_v42 = vpop.eup %10305 }
0x1be2   :  { %v2836_v43 = vsel %vm758_vm3, %v10306_v42, 0.0 }
0x1be3   :  { %2837 = vadd.xlane.f32.xlu0 %v2836_v43  ;;  %v3144_v43 = vld [vmem:[%s12549_s13 + $0x68] sm:$0xff] }
0x1bf9   :  { %2841 = vrot.lane.b32.xlu0 %v11751_v26, %s11136_s27 }
0x1c11   :  { %v2746_v44 = vpop.f32.mrb[28].mxu0 }
0x1c12   :  { %v9335_v45 = vpop.f32.mrb[29].mxu0  ;;  %v2750_v53 = vadd.f32 %v8699_v19, %v2746_v44  ;;  %v3321_v19 = vld [vmem:[%s12548_s21] sm:$0xff] }
0x1c13   :  { %v9960_v22 = vpack.c.bf16 %v3322_v20, %v3321_v19 }
0x1c70   :  { %v2838_v46 = vpop.xlane.xlu0 %2837 }
0x1c71   :  { %10307 = vrcp.f32 %v2838_v46 }
0x1c74   :  { %v2842_v21 = vpop.permute.xlu0 %2841 }
0x1c75   :  { %9342 = vmatpush3.msra.mxu0 %v2842_v21 }
0x1c76   :  { %9921 = vmatprep.subr.bf16.mxu0 %v9920_v15 }
0x1c7b   :  { %v10308_v47 = vpop.eup %10307 }
0x1c7c   :  { %v2840_v48 = vmul.f32 %v10308_v47, %v10306_v42  ;;  %v3143_v42 = vld [vmem:[%s12549_s13 + $0x60] sm:$0xff] }
0x1c7d   :  { %v9952_v44 = vpack.c.bf16 %v3144_v43, %v3143_v42 }
0x1c7e   :  { %9344 = vmatmul.mubr.msk.f32.vlgmr.msra.gmra.mrb[30].mxu0 %vm758_vm3, %v2840_v48 }
0x1c7f   :  { %9923 = vmatpush3.bf16.msra.mxu0 %v9920_v15 }
0x1c80   :  { %9925 = vmatprep.subr.bf16.mxu0 %v9924_v18 }
0x1c83   :  { %9927 = vmatpush3.bf16.msra.mxu0 %v9924_v18 }
0x1c84   :  { %9961 = vmatprep.subr.bf16.mxu0 %v9960_v22 }
0x1d51   :  { %v2913_v49 = vpop.f32.mrb[30].mxu0 }
0x1d52   :  { %v9345_v50 = vpop.f32.mrb[31].mxu0  ;;  %9351 = vmatmul.mubr.msk.f32.vlgmr.msra.gmra.mrb[22].mxu1 %vm682_vm2, %v2913_v49  ;;  %v3323_v49 = vld [vmem:[%s12548_s21 + $0x10] sm:$0xff] }
0x1d53   :  { %9931 = vmatpush3.bf16.msra.mxu1 %v9928_v29  ;;  %v3324_v50 = vld [vmem:[%s12548_s21 + $0x18] sm:$0xff]  ;;  %s12579_s21 = sld [smem:[#allocation84_spill]] }
0x1d54   :  { %9933 = vmatprep.subr.bf16.mxu1 %v9932_v31 }
0x1d57   :  { %9935 = vmatpush3.bf16.msra.mxu1 %v9932_v31 }
0x1d58   :  { %9937 = vmatprep.subr.bf16.mxu1 %v9936_v34 }
0x1d5b   :  { %9939 = vmatpush3.bf16.msra.mxu1 %v9936_v34 }
0x1d5c   :  { %9941 = vmatprep.subr.bf16.mxu1 %v9940_v37 }
0x1d5f   :  { %9943 = vmatpush3.bf16.msra.mxu1 %v9940_v37 }
0x1d60   :  { %9945 = vmatprep.subr.bf16.mxu1 %v9944_v39 }
0x1d63   :  { %9947 = vmatpush3.bf16.msra.mxu1 %v9944_v39 }
0x1d64   :  { %9949 = vmatprep.subr.bf16.mxu1 %v9948_v5 }
0x1d67   :  { %9951 = vmatpush3.bf16.msra.mxu1 %v9948_v5 }
0x1d68   :  { %9953 = vmatprep.subr.bf16.mxu1 %v9952_v44 }
0x1d6b   :  { %9955 = vmatpush3.bf16.msra.mxu1 %v9952_v44 }
0x1e25   :  { %v2986_v54 = vpop.f32.mrb[22].mxu1 }
0x1e26   :  { %v2990_v26 = vadd.f32 %v2986_v54, %v2750_v53  ;;  %v9352_v55 = vpop.f32.mrb[23].mxu1  ;;  %v9964_v53 = vpack.c.bf16 %v3324_v50, %v3323_v49  ;;  %v11871_v54 = vld [vmem:[%s11485_s20] sm:$0xff] }
0x1e27   :  { %v3146_v55 = vld [vmem:[%s12549_s13 + $0x78] sm:$0xff] }
0x1e28   :  { %v2992_v56 = vadd.f32 %v2990_v26, %v11745_v23  ;;  %v3145_v26 = vld [vmem:[%s12549_s13 + $0x70] sm:$0xff]  ;;  %s12580_s13 = sld [smem:[#allocation81_spill]] }
0x1e2a   :  { %v2998_v57 = vsel %vm597_vm0, %v2992_v56, 0.0 }
0x1e2b   :  { %2999 = vadd.xlane.f32.xlu1 %v2998_v57  ;;  %v8714_v57 = vld [vmem:[#allocation26] ss:$0 sm:$0xff] }
0x1e2f   :  { %3008 = vadd.xlane.f32.xlu1 %v3007_v59 }
0x1eb8   :  { %v3000_v60 = vpop.xlane.xlu1 %2999 }
0x1eb9   :  { %v3002_v61 = vmul.f32 0.03125, %v3000_v60 }
0x1ebb   :  { %v11832_v62 = vsub.f32 %v2992_v56, %v3002_v61  ;;  %v9956_v56 = vpack.c.bf16 %v3146_v55, %v3145_v26 }
0x1ebc   :  { %v3009_v63 = vpop.xlane.xlu1 %3008 }
0x1ebd   :  { %v3013_v0 = vmul.f32 0.03125, %v3009_v63  ;;  %v3006_v1 = vmul.f32 %v11832_v62, %v11832_v62  ;;  %9957 = vmatprep.subr.bf16.mxu1 %v9956_v56 }
0x1ebe   :  { %9959 = vmatpush3.bf16.msra.mxu1 %v9956_v56 }
0x1ebf   :  { %v3015_v2 = vadd.f32 1e-05, %v3013_v0  ;;  %v3010_v23 = vsel %vm597_vm0, %v3006_v1, 0.0  ;;  %9971 = vmatprep.subr.bf16.mxu1 %v11138_v27  ;;  %v8722_v0 = vld [vmem:[%s12550_s29] ss:$0 sm:$0xff]  ;;  %s12581_s29 = sld [smem:[#allocation82_spill]] }
0x1ec0   :  { %3011 = vadd.xlane.f32.xlu1 %v3010_v23 }
0x1ec1   :  { %10309 = vrsqrt.f32 %v3015_v2 }
0x1ecb   :  { %v10310_v3 = vpop.eup %10309 }
0x1ecc   :  { %v3019_v6 = vmul.f32 %v10310_v3, %v3003_v7  ;;  %v11878_v7 = vld [vmem:[%s11485_s20 + $0x8] sm:$0xff]  ;;  %s12553_s20 = sld [smem:[#allocation75_spill]] }
0x1ece   :  { %v3027_v10 = vmul.f32 %v11837_v4, %v3019_v6 }
0x1ed0   :  { %v11840_v12 = vadd.f32 %v8713_v9, %v3027_v10  ;;  %v3418_v10 = vlaneseq }
0x1ed2   :  { %9361 = vmatprep.mubr.msk.f32.mxu0 %vm597_vm0, %v11840_v12  ;;  %v3419_v13 = vshrl.u32 %v3418_v10, 7  ;;  %v3421_v14 = vand.u32 127, %v3418_v10  ;;  %v3326_v32 = vld [vmem:[%s12553_s20] sm:$0xff]  ;;  %v3327_v33 = vld [vmem:[%s12553_s20 + $0x8] sm:$0xff] }
0x1ed3   :  { %v9969_v35 = vpack.c.bf16 %v3327_v33, %v3326_v32 }
0x1ed4   :  { %vm11903_vm4 = vcmp.le.s32.totalorder %v3421_v14, %v3419_v13 }
0x1f4d   :  { %v3012_v45 = vpop.xlane.xlu1 %3011 }
0x1f4e   :  { %v3014_v46 = vmul.f32 0.03125, %v3012_v45 }
0x1f50   :  { %v3016_v21 = vadd.f32 1e-05, %v3014_v46 }
0x1f52   :  { %10311 = vrsqrt.f32 %v3016_v21 }
0x1f5c   :  { %v10312_v47 = vpop.eup %10311 }
0x1f5d   :  { %v3020_v48 = vmul.f32 %v10312_v47, %v11832_v62 }
0x1f5f   :  { %v3028_v51 = vmul.f32 %v11837_v4, %v3020_v48 }
0x1f61   :  { %v11868_v52 = vadd.f32 %v8713_v9, %v3028_v51  ;;  %v3328_v51 = vld [vmem:[%s12553_s20 + $0x10] sm:$0xff] }
0x1f63   :  { %9362 = vmatmul.mubr.msk.f32.vlgmr.msra.gmra.mrb[32].mxu0 %vm597_vm0, %v11868_v52 }
0x1f64   :  { %9963 = vmatpush3.bf16.msra.mxu0 %v9960_v22  ;;  %9407 = vmatprep.mubr.msk.f32.mxu0 %vm597_vm0, %v11871_v54 }
0x1f65   :  { %9965 = vmatprep.subr.bf16.mxu0 %v9964_v53 }
0x1f68   :  { %9967 = vmatpush3.bf16.msra.mxu0 %v9964_v53  ;;  %v3329_v53 = vld [vmem:[%s12553_s20 + $0x18] sm:$0xff] }
0x1f69   :  { %9410 = vmatprep.subr.mxu0 %v11131_v8  ;;  %v9972_v26 = vpack.c.bf16 %v3329_v53, %v3328_v51 }
0x1f6b   :  { %9408 = vmatmul.mubr.msk.f32.vlgmr.msra.gmra.mrb[34].mxu0 %vm597_vm0, %v11878_v7 }
0x1f6c   :  { %9412 = vmatprep.mubr.msk.f32.mxu0 %vm11132_vm1, %v11131_v8 }
0x2036   :  { %v9363_v58 = vpop.f32.mrb[32].mxu0 }
0x2037   :  { %v3126_v59 = vadd.f32 %v9363_v58, %v8714_v57  ;;  %v3120_v60 = vpop.f32.mrb[33].mxu0 }
0x2038   :  { %v3121_v61 = vadd.f32 %v8714_v57, %v3120_v60 }
0x2039   :  { %v3130_v63 = vmax.f32 %v3126_v59, 0.0 }
0x203a   :  { %v3129_v62 = vmax.f32 %v3121_v61, 0.0 }
0x203c   :  { %9396 = vmatprep.mubr.f32.mxu1 %v3129_v62 }
0x203d   :  { %9397 = vmatmul.mubr.f32.vlgmr.msra.gmra.mrb[24].mxu1 %v3130_v63 }
0x203e   :  { %v9409_v1 = vpop.f32.mrb[34].mxu0  ;;  %9441 = vmatprep.mubr.msk.f32.mxu1 %vm11132_vm1, %v11131_v8  ;;  %9973 = vmatpush3.bf16.msra.mxu1 %v9972_v26 }
0x203f   :  { %v11891_v2 = vadd.f32 %v9409_v1, %v8722_v0  ;;  %v3409_v23 = vpop.f32.mrb[35].mxu0  ;;  %9449 = vmatprep.subr.mxu1 %v11131_v8 }
0x2040   :  { %v3410_v3 = vadd.f32 %v8722_v0, %v3409_v23 }
0x2042   :  { %3423 = vrot.lane.b32.xlu1 %v3410_v3, %s11134_s7 }
0x20b4   :  { %v3424_v4 = vpop.permute.xlu1 %3423 }
0x20b5   :  { %9411 = vmatpush3.xpose.msk.msra.mxu0 %vm682_vm2, %v3424_v4 }
0x20b6   :  { %9415 = vmatprep.subr.mxu0 %v11131_v8 }
0x20b8   :  { %9413 = vmatmul.mubr.msk.f32.vlgmr.msra.gmra.mrb[36].mxu0 %vm682_vm2, %v3410_v3 }
0x20b9   :  { %9417 = vmatprep.mubr.msk.f32.mxu0 %vm11132_vm1, %v11131_v8 }
0x2110   :  { %v11899_v6 = vpop.f32.mrb[24].mxu1 }
0x2111   :  { %v11901_v9 = vpop.f32.mrb[25].mxu1 }
0x218b   :  { %v3495_v15 = vpop.f32.mrb[36].mxu0 }
0x218c   :  { %v3499_v17 = vmul.f32 0.25, %v3495_v15  ;;  %v9414_v18 = vpop.f32.mrb[37].mxu0  ;;  %v11965_v15 = vld [vmem:[%s12554_s30] ss:$0 sm:$0xff] }
0x218e   :  { %v3501_v19 = vsel %vm11903_vm4, %v3499_v17, -1e+30 }
0x218f   :  { %v3502_v20 = vsel %vm758_vm3, %v3501_v19, -inf }
0x2190   :  { %3503 = vmax.xlane.f32.xlu0 %v3502_v20 }
0x21a6   :  { %3513 = vrot.lane.b32.xlu0 %v3410_v3, %s11133_s3 }
0x21aa   :  { %3669 = vrot.lane.b32.xlu0 %v3410_v3, %s11137_s11 }
0x221d   :  { %v3504_v22 = vpop.xlane.xlu0 %3503 }
0x221e   :  { %v3505_v24 = vsub.f32 %v3501_v19, %v3504_v22 }
0x2220   :  { %v3506_v25 = vmul.f32 1.442695, %v3505_v24 }
0x2221   :  { %v3514_v28 = vpop.permute.xlu0 %3513 }
0x2222   :  { %10313 = vpow2.f32 %v3506_v25  ;;  %9416 = vmatpush3.msra.mxu0 %v3514_v28 }
0x2223   :  { %9968 = vmatprep.subr.bf16.mxu0 %v11138_v27 }
0x2225   :  { %v3670_v39 = vpop.permute.xlu0 %3669 }
0x222c   :  { %v10314_v29 = vpop.eup %10313 }
0x222d   :  { %v3508_v30 = vsel %vm758_vm3, %v10314_v29, 0.0 }
0x222e   :  { %3509 = vadd.xlane.f32.xlu1 %v3508_v30 }
0x223f   :  { %3671 = vrot.lane.b32.xlu1 %v3410_v3, %s11135_s10 }
0x22bb   :  { %v3510_v31 = vpop.xlane.xlu1 %3509 }
0x22bc   :  { %10315 = vrcp.f32 %v3510_v31 }
0x22bf   :  { %v3672_v38 = vpop.permute.xlu1 %3671 }
0x22c6   :  { %v10316_v34 = vpop.eup %10315 }
0x22c7   :  { %v3512_v36 = vmul.f32 %v10316_v34, %v10314_v29 }
0x22c9   :  { %9418 = vmatmul.mubr.msk.f32.vlgmr.msra.gmra.mrb[38].mxu0 %vm758_vm3, %v3512_v36 }
0x22ca   :  { %9970 = vmatpush3.bf16.msra.mxu0 %v9969_v35  ;;  %9424 = vmatprep.mubr.msk.f32.mxu0 %vm11132_vm1, %v11131_v8 }
0x22cb   :  { %9427 = vmatprep.subr.mxu0 %v11131_v8 }
0x239c   :  { %v3585_v37 = vpop.f32.mrb[38].mxu0 }
0x239d   :  { %v9419_v11 = vpop.f32.mrb[39].mxu0  ;;  %9425 = vmatmul.mubr.msk.f32.vlgmr.msra.gmra.mrb[40].mxu0 %vm682_vm2, %v3585_v37 }
0x239e   :  { %9428 = vmatpush3.xpose.msk.msra.mxu0 %vm682_vm2, %v3672_v38  ;;  %9429 = vmatprep.mubr.msk.f32.mxu0 %vm11132_vm1, %v11131_v8 }
0x239f   :  { %9432 = vmatprep.subr.mxu0 %v11131_v8 }
0x23a1   :  { %9430 = vmatmul.mubr.msk.f32.vlgmr.msra.gmra.mrb[42].mxu0 %vm682_vm2, %v3670_v39 }
0x23a2   :  { %9434 = vmatprep.mubr.msk.f32.mxu0 %vm11132_vm1, %v11131_v8 }
0x2470   :  { %v3658_v40 = vpop.f32.mrb[40].mxu0 }
0x2471   :  { %v9426_v41 = vpop.f32.mrb[41].mxu0  ;;  %v3668_v17 = vadd.f32 %v11965_v15, %v3658_v40 }
0x2474   :  { %v3743_v5 = vpop.f32.mrb[42].mxu0 }
0x2475   :  { %v3747_v42 = vmul.f32 0.25, %v3743_v5  ;;  %v9431_v43 = vpop.f32.mrb[43].mxu0  ;;  %v8717_v5 = vld [vmem:[#allocation28] ss:$0 sm:$0xff] }
0x2477   :  { %v3748_v44 = vsel %vm11903_vm4, %v3747_v42, -1e+30  ;;  %v3221_v42 = vadd.f32 %v8717_v5, %v11901_v9 }
0x2478   :  { %v3749_v45 = vsel %vm758_vm3, %v3748_v44, -inf }
0x2479   :  { %3750 = vmax.xlane.f32.xlu0 %v3749_v45 }
0x248f   :  { %3760 = vrot.lane.b32.xlu0 %v3410_v3, %s11136_s27 }
0x2506   :  { %v3751_v46 = vpop.xlane.xlu0 %3750 }
0x2507   :  { %v3752_v21 = vsub.f32 %v3748_v44, %v3751_v46  ;;  %v3226_v44 = vadd.f32 %v11899_v6, %v8717_v5 }
0x2509   :  { %v3753_v47 = vmul.f32 1.442695, %v3752_v21  ;;  %v3230_v46 = vadd.f32 %v3226_v44, %v11868_v52 }
0x250a   :  { %v3761_v48 = vpop.permute.xlu0 %3760 }
0x250b   :  { %10317 = vpow2.f32 %v3753_v47  ;;  %9433 = vmatpush3.msra.mxu0 %v3761_v48  ;;  %v3236_v21 = vsel %vm597_vm0, %v3230_v46, 0.0 }
0x250c   :  { %9444 = vmatprep.subr.mxu0 %v11131_v8 }
0x2515   :  { %v10318_v49 = vpop.eup %10317 }
0x2516   :  { %v3755_v50 = vsel %vm758_vm3, %v10318_v49, 0.0 }
0x2517   :  { %3756 = vadd.xlane.f32.xlu1 %v3755_v50 }
0x2528   :  { %3911 = vrot.lane.b32.xlu1 %v11891_v2, %s11134_s7 }
0x25a4   :  { %v3757_v55 = vpop.xlane.xlu1 %3756 }
0x25a5   :  { %10319 = vrcp.f32 %v3757_v55 }
0x25a8   :  { %v3912_v58 = vpop.permute.xlu1 %3911 }
0x25af   :  { %v10320_v56 = vpop.eup %10319 }
0x25b0   :  { %v3759_v57 = vmul.f32 %v10320_v56, %v10318_v49 }
0x25b2   :  { %9435 = vmatmul.mubr.msk.f32.vlgmr.msra.gmra.mrb[44].mxu0 %vm758_vm3, %v3759_v57 }
0x25b3   :  { %9445 = vmatpush3.xpose.msk.msra.mxu0 %vm682_vm2, %v3912_v58  ;;  %9446 = vmatprep.mubr.msk.f32.mxu0 %vm11132_vm1, %v11131_v8 }
0x25b4   :  { %9974 = vmatprep.subr.bf16.mxu0 %v11138_v27 }
0x25b6   :  { %9447 = vmatmul.mubr.msk.f32.vlgmr.msra.gmra.mrb[46].mxu0 %vm682_vm2, %v11891_v2 }
0x25b7   :  { %9976 = vmatpush3.bf16.msra.mxu0 %v9969_v35  ;;  %9458 = vmatprep.mubr.msk.f32.mxu0 %vm11132_vm1, %v11131_v8 }
0x25b8   :  { %9466 = vmatprep.subr.mxu0 %v11131_v8 }
0x2685   :  { %v3832_v59 = vpop.f32.mrb[44].mxu0 }
0x2686   :  { %v9436_v60 = vpop.f32.mrb[45].mxu0  ;;  %9442 = vmatmul.mubr.msk.f32.vlgmr.msra.gmra.mrb[26].mxu1 %vm682_vm2, %v3832_v59 }
0x2687   :  { %9451 = vmatprep.mubr.msk.f32.mxu1 %vm11132_vm1, %v11131_v8 }
0x2689   :  { %v3983_v61 = vpop.f32.mrb[46].mxu0 }
0x268a   :  { %v3987_v62 = vmul.f32 0.25, %v3983_v61  ;;  %v9448_v63 = vpop.f32.mrb[47].mxu0 }
0x268c   :  { %v3988_v0 = vsel %vm11903_vm4, %v3987_v62, -1e+30 }
0x268d   :  { %v3989_v1 = vsel %vm758_vm3, %v3988_v0, -inf }
0x268e   :  { %3990 = vmax.xlane.f32.xlu0 %v3989_v1 }
0x26a4   :  { %4000 = vrot.lane.b32.xlu0 %v11891_v2, %s11133_s3 }
0x26a8   :  { %4150 = vrot.lane.b32.xlu0 %v11891_v2, %s11137_s11 }
0x271b   :  { %v3991_v23 = vpop.xlane.xlu0 %3990 }
0x271c   :  { %v3992_v3 = vsub.f32 %v3988_v0, %v3991_v23 }
0x271e   :  { %v3993_v4 = vmul.f32 1.442695, %v3992_v3 }
0x271f   :  { %v4001_v10 = vpop.permute.xlu0 %4000 }
0x2720   :  { %10321 = vpow2.f32 %v3993_v4  ;;  %9450 = vmatpush3.msra.mxu1 %v4001_v10 }
0x2721   :  { %9461 = vmatprep.subr.mxu1 %v11131_v8 }
0x2723   :  { %v4151_v29 = vpop.permute.xlu0 %4150 }
0x272a   :  { %v10322_v13 = vpop.eup %10321 }
0x272b   :  { %v3995_v14 = vsel %vm758_vm3, %v10322_v13, 0.0 }
0x272c   :  { %3996 = vadd.xlane.f32.xlu1 %v3995_v14 }
0x273d   :  { %4152 = vrot.lane.b32.xlu1 %v11891_v2, %s11135_s10 }
0x2759   :  { %v3905_v18 = vpop.f32.mrb[26].mxu1 }
0x275a   :  { %v3909_v19 = vadd.f32 %v3905_v18, %v3668_v17  ;;  %v9443_v20 = vpop.f32.mrb[27].mxu1 }
0x275c   :  { %v11986_v37 = vadd.f32 %v3909_v19, %v11871_v54  ;;  %v3229_v54 = vadd.f32 %v3221_v42, %v11840_v12 }
0x275e   :  { %v4395_v38 = vsel %vm597_vm0, %v11986_v37, 0.0  ;;  %v3233_v45 = vsel %vm597_vm0, %v3229_v54, 0.0 }
0x27b9   :  { %v3997_v22 = vpop.xlane.xlu1 %3996 }
0x27ba   :  { %10323 = vrcp.f32 %v3997_v22 }
0x27bd   :  { %v4153_v28 = vpop.permute.xlu1 %4152 }
0x27c4   :  { %v10324_v24 = vpop.eup %10323 }
0x27c5   :  { %v3999_v25 = vmul.f32 %v10324_v24, %v10322_v13  ;;  %v8718_v13 = vld [vmem:[#allocation34] ss:$0 sm:$0xff] }
0x27c7   :  { %9452 = vmatmul.mubr.msk.f32.vlgmr.msra.gmra.mrb[28].mxu1 %vm758_vm3, %v3999_v25  ;;  %v8719_v25 = vld [vmem:[#allocation32] ss:$0 sm:$0xff] }
0x27c8   :  { %9462 = vmatpush3.xpose.msk.msra.mxu1 %vm682_vm2, %v4153_v28  ;;  %9463 = vmatprep.mubr.msk.f32.mxu1 %vm11132_vm1, %v11131_v8 }
0x27c9   :  { %9977 = vmatprep.subr.bf16.mxu1 %v11138_v27 }
0x27cb   :  { %9464 = vmatmul.mubr.msk.f32.vlgmr.msra.gmra.mrb[30].mxu1 %vm682_vm2, %v4151_v29 }
0x27cc   :  { %9979 = vmatpush3.bf16.msra.mxu1 %v9972_v26  ;;  %9475 = vmatprep.mubr.msk.f32.mxu1 %vm11132_vm1, %v11131_v8 }
0x27cd   :  { %9505 = vmatprep.subr.mxu1 %v11131_v8 }
0x289a   :  { %v4072_v30 = vpop.f32.mrb[28].mxu1 }
0x289b   :  { %v9453_v31 = vpop.f32.mrb[29].mxu1  ;;  %9459 = vmatmul.mubr.msk.f32.vlgmr.msra.gmra.mrb[48].mxu0 %vm682_vm2, %v4072_v30 }
0x289c   :  { %9468 = vmatprep.mubr.msk.f32.mxu0 %vm11132_vm1, %v11131_v8 }
0x289e   :  { %v4224_v32 = vpop.f32.mrb[30].mxu1 }
0x289f   :  { %v4228_v33 = vmul.f32 0.25, %v4224_v32  ;;  %v9465_v34 = vpop.f32.mrb[31].mxu1 }
0x28a1   :  { %v4229_v35 = vsel %vm11903_vm4, %v4228_v33, -1e+30 }
0x28a2   :  { %v4230_v36 = vsel %vm758_vm3, %v4229_v35, -inf }
0x28a3   :  { %4231 = vmax.xlane.f32.xlu0 %v4230_v36 }
0x28b9   :  { %4241 = vrot.lane.b32.xlu0 %v11891_v2, %s11136_s27 }
0x28d8   :  { %4396 = vadd.xlane.f32.xlu0 %v4395_v38 }
0x2930   :  { %v4232_v11 = vpop.xlane.xlu0 %4231 }
0x2931   :  { %v4233_v39 = vsub.f32 %v4229_v35, %v4232_v11  ;;  %v4438_v11 = vld [vmem:[%s12555_s23 + $0x8] sm:$0xff] }
0x2933   :  { %v4234_v40 = vmul.f32 1.442695, %v4233_v39 }
0x2934   :  { %v4242_v41 = vpop.permute.xlu0 %4241 }
0x2935   :  { %10325 = vpow2.f32 %v4234_v40  ;;  %9467 = vmatpush3.msra.mxu0 %v4242_v41 }
0x293f   :  { %v10326_v43 = vpop.eup %10325 }
0x2940   :  { %v4236_v2 = vsel %vm758_vm3, %v10326_v43, 0.0 }
0x2941   :  { %4237 = vadd.xlane.f32.xlu1 %v4236_v2 }
0x2945   :  { %3234 = vadd.xlane.f32.xlu1 %v3233_v45 }
0x2949   :  { %3237 = vadd.xlane.f32.xlu1 %v3236_v21 }
0x2965   :  { %v4397_v24 = vpop.xlane.xlu0 %4396 }
0x2966   :  { %v4401_v29 = vmul.f32 0.03125, %v4397_v24 }
0x2968   :  { %v4403_v33 = vsub.f32 %v11986_v37, %v4401_v29 }
0x296a   :  { %v4405_v36 = vmul.f32 %v4403_v33, %v4403_v33 }
0x296c   :  { %v4407_v38 = vsel %vm597_vm0, %v4405_v36, 0.0 }
0x296e   :  { %v4145_v47 = vpop.f32.mrb[48].mxu0 }
0x296f   :  { %v9460_v48 = vpop.f32.mrb[49].mxu0  ;;  %v4149_v14 = vadd.f32 %v11965_v15, %v4145_v47 }
0x29ce   :  { %v4238_v49 = vpop.xlane.xlu1 %4237 }
0x29cf   :  { %10327 = vrcp.f32 %v4238_v49 }
0x29d2   :  { %v3235_v9 = vpop.xlane.xlu1 %3234 }
0x29d3   :  { %v3239_v50 = vmul.f32 0.03125, %v3235_v9 }
0x29d5   :  { %v3241_v6 = vsub.f32 %v3229_v54, %v3239_v50 }
0x29d6   :  { %v3238_v51 = vpop.xlane.xlu1 %3237 }
0x29d7   :  { %v3240_v53 = vmul.f32 0.03125, %v3238_v51  ;;  %v3243_v26 = vmul.f32 %v3241_v6, %v3241_v6 }
0x29d9   :  { %v10328_v12 = vpop.eup %10327  ;;  %v3242_v55 = vsub.f32 %v3230_v46, %v3240_v53  ;;  %v3245_v56 = vsel %vm597_vm0, %v3243_v26, 0.0  ;;  %v8742_v53 = vld [vmem:[%s12556_s12] ss:$0 sm:$0xff] }
0x29da   :  { %3246 = vadd.xlane.f32.xlu1 %v3245_v56  ;;  %v4240_v52 = vmul.f32 %v10328_v12, %v10326_v43  ;;  %v8743_v12 = vld [vmem:[%s12557_s6] ss:$0 sm:$0xff]  ;;  %v4439_v56 = vld [vmem:[%s12555_s23 + $0x10] sm:$0xff] }
0x29db   :  { %v3244_v57 = vmul.f32 %v3242_v55, %v3242_v55 }
0x29dc   :  { %9469 = vmatmul.mubr.msk.f32.vlgmr.msra.gmra.mrb[50].mxu0 %vm758_vm3, %v4240_v52  ;;  %v4440_v52 = vld [vmem:[%s12555_s23 + $0x18] sm:$0xff] }
0x29dd   :  { %v3248_v58 = vsel %vm597_vm0, %v3244_v57, 0.0 }
0x29de   :  { %3249 = vadd.xlane.f32.xlu1 %v3248_v58  ;;  %v10254_v58 = vpack.i.bf16 %v4440_v52, %v4439_v56 }
0x2a67   :  { %v3247_v61 = vpop.xlane.xlu1 %3246 }
0x2a68   :  { %v3251_v62 = vmul.f32 0.03125, %v3247_v61  ;;  %v9984_v61 = vpack.c.bf16 %v4440_v52, %v4439_v56 }
0x2a6a   :  { %v3253_v0 = vadd.f32 1e-05, %v3251_v62 }
0x2a6b   :  { %v3250_v63 = vpop.xlane.xlu1 %3249 }
0x2a6c   :  { %v3252_v1 = vmul.f32 0.03125, %v3250_v63  ;;  %10329 = vrsqrt.f32 %v3253_v0 }
0x2a6e   :  { %v3254_v23 = vadd.f32 1e-05, %v3252_v1  ;;  %v12026_v1 = vld [vmem:[%s12558_s26] ss:$0 sm:$0xff] }
0x2a70   :  { %10331 = vrsqrt.f32 %v3254_v23 }
0x2a76   :  { %v10330_v3 = vpop.eup %10329 }
0x2a77   :  { %v3257_v4 = vmul.f32 %v10330_v3, %v3241_v6 }
0x2a79   :  { %v3265_v20 = vmul.f32 %v8718_v13, %v3257_v4 }
0x2a7a   :  { %v10332_v10 = vpop.eup %10331 }
0x2a7b   :  { %v3258_v22 = vmul.f32 %v10332_v10, %v3242_v55  ;;  %v3273_v31 = vadd.f32 %v8719_v25, %v3265_v20 }
0x2a7d   :  { %v3266_v32 = vmul.f32 %v8718_v13, %v3258_v22  ;;  %v3277_v15 = vsel %vm597_vm0, %v3273_v31, 0.0 }
0x2a7f   :  { %v3274_v34 = vadd.f32 %v8719_v25, %v3266_v32  ;;  %v8720_v25 = vld [vmem:[#allocation40] ss:$0 sm:$0xff] }
0x2a81   :  { %v3280_v35 = vsel %vm597_vm0, %v3274_v34, 0.0 }
0x2aaf   :  { %v4313_v59 = vpop.f32.mrb[50].mxu0 }
0x2ab0   :  { %v9470_v60 = vpop.f32.mrb[51].mxu0  ;;  %9476 = vmatmul.mubr.msk.f32.vlgmr.msra.gmra.mrb[32].mxu1 %vm682_vm2, %v4313_v59 }
0x2ab1   :  { %9507 = vmatprep.mubr.msk.f32.mxu1 %vm11132_vm1, %v11131_v8 }
0x2b83   :  { %v4386_v17 = vpop.f32.mrb[32].mxu1 }
0x2b84   :  { %v4390_v18 = vadd.f32 %v4386_v17, %v4149_v14  ;;  %v9477_v19 = vpop.f32.mrb[33].mxu1 }
0x2b86   :  { %v4392_v28 = vadd.f32 %v4390_v18, %v11878_v7  ;;  %v4437_v7 = vld [vmem:[%s12555_s23] sm:$0xff] }
0x2b87   :  { %v10249_v39 = vpack.i.bf16 %v4438_v11, %v4437_v7  ;;  %v9980_v59 = vpack.c.bf16 %v4438_v11, %v4437_v7 }
0x2b88   :  { %v4398_v30 = vsel %vm597_vm0, %v4392_v28, 0.0 }
0x2b89   :  { %4399 = vadd.xlane.f32.xlu1 %v4398_v30  ;;  %10250 = vrot.lane.b32.xlu0 %v10249_v39, %s11134_s7 }
0x2b8a   :  { %9981 = vmatprep.subr.bf16.mxu0 %v9980_v59 }
0x2b8b   :  { %9983 = vmatpush3.bf16.msra.mxu0 %v9980_v59 }
0x2b8c   :  { %9985 = vmatprep.subr.bf16.mxu0 %v9984_v61 }
0x2b8d   :  { %3278 = vadd.xlane.f32.xlu1 %v3277_v15 }
0x2b8f   :  { %9987 = vmatpush3.bf16.msra.mxu0 %v9984_v61 }
0x2b91   :  { %3281 = vadd.xlane.f32.xlu1 %v3280_v35 }
0x2b95   :  { %4408 = vadd.xlane.f32.xlu1 %v4407_v38 }
0x2bfb   :  { %v10251_v60 = vpop.permute.xlu0 %10250 }
0x2bfc   :  { %v10253_v62 = vunpack.i.h.bf16 %v10251_v60  ;;  %v10252_v63 = vunpack.i.l.bf16 %v10251_v60 }
0x2bfe   :  { %v9988_v0 = vpack.c.bf16 %v10253_v62, %v10252_v63 }
0x2c00   :  { %9989 = vmatprep.subr.bf16.mxu0 %v9988_v0 }
0x2c16   :  { %v4400_v40 = vpop.xlane.xlu1 %4399 }
0x2c17   :  { %v4402_v37 = vmul.f32 0.03125, %v4400_v40 }
0x2c19   :  { %v4404_v54 = vsub.f32 %v4392_v28, %v4402_v37 }
0x2c1a   :  { %v3279_v41 = vpop.xlane.xlu1 %3278 }
0x2c1b   :  { %v3283_v5 = vmul.f32 0.03125, %v3279_v41  ;;  %v4406_v50 = vmul.f32 %v4404_v54, %v4404_v54 }
0x2c1d   :  { %v3285_v42 = vsub.f32 %v3273_v31, %v3283_v5  ;;  %v4410_v6 = vsel %vm597_vm0, %v4406_v50, 0.0  ;;  %v4442_v50 = vld [vmem:[%s12559_s8] sm:$0xff] }
0x2c1e   :  { %v3282_v43 = vpop.xlane.xlu1 %3281 }
0x2c1f   :  { %v3284_v44 = vmul.f32 0.03125, %v3282_v43  ;;  %v3287_v2 = vmul.f32 %v3285_v42, %v3285_v42 }
0x2c21   :  { %v3286_v45 = vsub.f32 %v3274_v34, %v3284_v44  ;;  %v3289_v46 = vsel %vm597_vm0, %v3287_v2, 0.0  ;;  %v8721_v34 = vld [vmem:[#allocation38] ss:$0 sm:$0xff] }
0x2c22   :  { %3290 = vadd.xlane.f32.xlu1 %v3289_v46  ;;  %v4409_v21 = vpop.xlane.xlu1 %4408 }
0x2c23   :  { %v4413_v47 = vmul.f32 0.03125, %v4409_v21  ;;  %v3288_v48 = vmul.f32 %v3286_v45, %v3286_v45 }
0x2c25   :  { %v4415_v49 = vadd.f32 1e-05, %v4413_v47  ;;  %v3292_v9 = vsel %vm597_vm0, %v3288_v48, 0.0 }
0x2c26   :  { %3293 = vadd.xlane.f32.xlu1 %v3292_v9 }
0x2c27   :  { %10333 = vrsqrt.f32 %v4415_v49 }
0x2c2a   :  { %4411 = vadd.xlane.f32.xlu1 %v4410_v6  ;;  %v4443_v6 = vld [vmem:[%s12559_s8 + $0x8] sm:$0xff] }
0x2c31   :  { %v10334_v51 = vpop.eup %10333 }
0x2c32   :  { %v4419_v26 = vmul.f32 %v10334_v51, %v4403_v33  ;;  %v9997_v51 = vpack.c.bf16 %v4443_v6, %v4442_v50 }
0x2c34   :  { %v4427_v55 = vmul.f32 %v8742_v53, %v4419_v26 }
0x2c36   :  { %v12020_v57 = vadd.f32 %v8743_v12, %v4427_v55 }
0x2c38   :  { %9486 = vmatprep.mubr.msk.f32.mxu0 %vm597_vm0, %v12020_v57 }
0x2c3b   :  { %10255 = vrot.lane.b32.xlu1 %v10254_v58, %s11134_s7 }
0x2c3f   :  { %4550 = vrot.lane.b32.xlu1 %v12026_v1, %s11134_s7 }
0x2caf   :  { %v3291_v23 = vpop.xlane.xlu1 %3290 }
0x2cb0   :  { %v3295_v3 = vmul.f32 0.03125, %v3291_v23 }
0x2cb2   :  { %v3297_v4 = vadd.f32 1e-05, %v3295_v3 }
0x2cb3   :  { %v3294_v10 = vpop.xlane.xlu1 %3293 }
0x2cb4   :  { %v3296_v13 = vmul.f32 0.03125, %v3294_v10  ;;  %10335 = vrsqrt.f32 %v3297_v4 }
0x2cb6   :  { %v3298_v18 = vadd.f32 1e-05, %v3296_v13 }
0x2cb7   :  { %v4412_v14 = vpop.xlane.xlu1 %4411 }
0x2cb8   :  { %v4414_v17 = vmul.f32 0.03125, %v4412_v14 }
0x2cba   :  { %v4416_v19 = vadd.f32 1e-05, %v4414_v17 }
0x2cbb   :  { %v10256_v22 = vpop.permute.xlu1 %10255 }
0x2cbc   :  { %10337 = vrsqrt.f32 %v4416_v19  ;;  %v10258_v30 = vunpack.i.h.bf16 %v10256_v22  ;;  %v10257_v31 = vunpack.i.l.bf16 %v10256_v22  ;;  %v4445_v19 = vld [vmem:[%s12559_s8 + $0x18] sm:$0xff] }
0x2cbd   :  { %10339 = vrsqrt.f32 %v3298_v18  ;;  %v4444_v18 = vld [vmem:[%s12559_s8 + $0x10] sm:$0xff] }
0x2cbe   :  { %v10336_v20 = vpop.eup %10335  ;;  %v9992_v36 = vpack.c.bf16 %v10258_v30, %v10257_v31 }
0x2cbf   :  { %v3301_v24 = vmul.f32 %v10336_v20, %v3285_v42  ;;  %v4551_v5 = vpop.permute.xlu1 %4550  ;;  %v10000_v20 = vpack.c.bf16 %v4445_v19, %v4444_v18 }
0x2cc1   :  { %v3309_v33 = vmul.f32 %v8720_v25, %v3301_v24 }
0x2cc3   :  { %v12032_v7 = vadd.f32 %v8721_v34, %v3309_v33 }
0x2cc6   :  { %v10338_v28 = vpop.eup %10337 }
0x2cc7   :  { %v4420_v29 = vmul.f32 %v10338_v28, %v4404_v54  ;;  %v10340_v32 = vpop.eup %10339 }
0x2cc8   :  { %v3302_v35 = vmul.f32 %v10340_v32, %v3286_v45 }
0x2cc9   :  { %v4428_v15 = vmul.f32 %v8742_v53, %v4420_v29 }
0x2cca   :  { %v3310_v11 = vmul.f32 %v8720_v25, %v3302_v35 }
0x2ccb   :  { %v12030_v38 = vadd.f32 %v8743_v12, %v4428_v15 }
0x2ccc   :  { %v12038_v39 = vadd.f32 %v8721_v34, %v3310_v11 }
0x2ccd   :  { %9487 = vmatmul.mubr.msk.f32.vlgmr.msra.gmra.mrb[52].mxu0 %vm597_vm0, %v12030_v38 }
0x2cce   :  { %9991 = vmatpush3.bf16.msra.mxu0 %v9988_v0  ;;  %9497 = vmatprep.mubr.msk.f32.mxu0 %vm597_vm0, %v12032_v7 }
0x2ccf   :  { %9993 = vmatprep.subr.bf16.mxu0 %v9992_v36 }
0x2cd2   :  { %9995 = vmatpush3.bf16.msra.mxu0 %v9992_v36 }
0x2cd3   :  { %9500 = vmatprep.subr.mxu0 %v11131_v8 }
0x2cd5   :  { %9498 = vmatmul.mubr.msk.f32.vlgmr.msra.gmra.mrb[54].mxu0 %vm597_vm0, %v12038_v39 }
0x2cd6   :  { %9502 = vmatprep.mubr.msk.f32.mxu0 %vm11132_vm1, %v11131_v8 }
0x2da0   :  { %v9488_v40 = vpop.f32.mrb[52].mxu0 }
0x2da1   :  { %v4525_v41 = vpop.f32.mrb[53].mxu0  ;;  %v4531_v23 = vadd.f32 %v9488_v40, %v12026_v1 }
0x2da2   :  { %v4526_v44 = vadd.f32 %v12026_v1, %v4525_v41  ;;  %v8753_v41 = vld [vmem:[%s12560_s0] ss:$0 sm:$0xff] }
0x2da8   :  { %v9499_v37 = vpop.f32.mrb[54].mxu0 }
0x2da9   :  { %v4625_v42 = vpop.f32.mrb[55].mxu0  ;;  %v12073_v0 = vadd.f32 %v9499_v37, %v4551_v5 }
0x2daa   :  { %v4626_v43 = vadd.f32 %v4625_v42, %v4551_v5 }
0x2dac   :  { %9501 = vmatpush3.xpose.msk.msra.mxu0 %vm682_vm2, %v4626_v43 }
0x2dad   :  { %9996 = vmatprep.subr.bf16.mxu0 %v11138_v27 }
0x2daf   :  { %9503 = vmatmul.mubr.msk.f32.vlgmr.msra.gmra.mrb[56].mxu0 %vm682_vm2, %v4526_v44 }
0x2db0   :  { %9514 = vmatprep.mubr.msk.f32.mxu0 %vm11132_vm1, %v11131_v8  ;;  %9998 = vmatpush3.bf16.msra.mxu0 %v9997_v51 }
0x2db1   :  { %9522 = vmatprep.subr.mxu0 %v11131_v8 }
0x2e82   :  { %v4706_v2 = vpop.f32.mrb[56].mxu0 }
0x2e83   :  { %v4710_v54 = vmul.f32 0.25, %v4706_v2  ;;  %v9504_v45 = vpop.f32.mrb[57].mxu0 }
0x2e85   :  { %v4711_v46 = vsel %vm758_vm3, %v4710_v54, -inf }
0x2e86   :  { %4712 = vmax.xlane.f32.xlu1 %v4711_v46 }
0x2e97   :  { %4880 = vrot.lane.b32.xlu1 %v4626_v43, %s11137_s11 }
0x2e9b   :  { %4878 = vrot.lane.b32.xlu1 %v4526_v44, %s11137_s11 }
0x2f13   :  { %v4713_v21 = vpop.xlane.xlu1 %4712 }
0x2f14   :  { %v4714_v47 = vsub.f32 %v4710_v54, %v4713_v21 }
0x2f16   :  { %v4715_v48 = vmul.f32 1.442695, %v4714_v47 }
0x2f17   :  { %v4881_v55 = vpop.permute.xlu1 %4880 }
0x2f18   :  { %10341 = vpow2.f32 %v4715_v48 }
0x2f1b   :  { %v4879_v52 = vpop.permute.xlu1 %4878 }
0x2f22   :  { %v10342_v49 = vpop.eup %10341 }
0x2f23   :  { %v4717_v9 = vsel %vm758_vm3, %v10342_v49, 0.0 }
0x2f24   :  { %4718 = vadd.xlane.f32.xlu0 %v4717_v9 }
0x2f3a   :  { %4722 = vrot.lane.b32.xlu0 %v4626_v43, %s11134_s7 }
0x2fb1   :  { %v4719_v53 = vpop.xlane.xlu0 %4718 }
0x2fb2   :  { %10343 = vrcp.f32 %v4719_v53 }
0x2fb5   :  { %v4723_v26 = vpop.permute.xlu0 %4722 }
0x2fb6   :  { %9506 = vmatpush3.msra.mxu1 %v4723_v26 }
0x2fb7   :  { %9517 = vmatprep.subr.mxu1 %v11131_v8 }
0x2fbc   :  { %v10344_v12 = vpop.eup %10343 }
0x2fbd   :  { %v4721_v56 = vmul.f32 %v10344_v12, %v10342_v49 }
0x2fbf   :  { %9508 = vmatmul.mubr.msk.f32.vlgmr.msra.gmra.mrb[34].mxu1 %vm758_vm3, %v4721_v56 }
0x2fc0   :  { %9518 = vmatpush3.xpose.msk.msra.mxu1 %vm682_vm2, %v4881_v55  ;;  %9519 = vmatprep.mubr.msk.f32.mxu1 %vm11132_vm1, %v11131_v8 }
0x2fc1   :  { %9999 = vmatprep.subr.bf16.mxu1 %v11138_v27 }
0x2fc3   :  { %9520 = vmatmul.mubr.msk.f32.vlgmr.msra.gmra.mrb[36].mxu1 %vm682_vm2, %v4879_v52 }
0x2fc4   :  { %9531 = vmatprep.mubr.msk.f32.mxu1 %vm11132_vm1, %v11131_v8  ;;  %10001 = vmatpush3.bf16.msra.mxu1 %v10000_v20 }
0x2fc5   :  { %9539 = vmatprep.subr.mxu1 %v11131_v8 }
0x3092   :  { %v4794_v58 = vpop.f32.mrb[34].mxu1 }
0x3093   :  { %v9509_v59 = vpop.f32.mrb[35].mxu1  ;;  %9515 = vmatmul.mubr.msk.f32.vlgmr.msra.gmra.mrb[58].mxu0 %vm682_vm2, %v4794_v58 }
0x3094   :  { %9524 = vmatprep.mubr.msk.f32.mxu0 %vm11132_vm1, %v11131_v8 }
0x3096   :  { %v4952_v60 = vpop.f32.mrb[36].mxu1 }
0x3097   :  { %v4956_v61 = vmul.f32 0.25, %v4952_v60  ;;  %v9521_v62 = vpop.f32.mrb[37].mxu1 }
0x3099   :  { %v4957_v63 = vsel %vm758_vm3, %v4956_v61, -inf }
0x309a   :  { %4958 = vmax.xlane.f32.xlu0 %v4957_v63 }
0x30b0   :  { %4968 = vrot.lane.b32.xlu0 %v4626_v43, %s11135_s10 }
0x30b4   :  { %5358 = vrot.lane.b32.xlu0 %v12073_v0, %s11137_s11 }
0x30b8   :  { %5356 = vrot.lane.b32.xlu0 %v4531_v23, %s11137_s11 }
0x3127   :  { %v4959_v3 = vpop.xlane.xlu0 %4958 }
0x3128   :  { %v4960_v4 = vsub.f32 %v4956_v61, %v4959_v3 }
0x312a   :  { %v4961_v10 = vmul.f32 1.442695, %v4960_v4 }
0x312b   :  { %v4969_v13 = vpop.permute.xlu0 %4968 }
0x312c   :  { %10345 = vpow2.f32 %v4961_v10  ;;  %9523 = vmatpush3.msra.mxu0 %v4969_v13 }
0x312d   :  { %9534 = vmatprep.subr.mxu0 %v11131_v8 }
0x312f   :  { %v5359_v45 = vpop.permute.xlu0 %5358 }
0x3133   :  { %v5357_v21 = vpop.permute.xlu0 %5356 }
0x3136   :  { %v10346_v14 = vpop.eup %10345 }
0x3137   :  { %v4963_v17 = vsel %vm758_vm3, %v10346_v14, 0.0 }
0x3138   :  { %4964 = vadd.xlane.f32.xlu1 %v4963_v17 }
0x3166   :  { %v4867_v1 = vpop.f32.mrb[58].mxu0 }
0x3167   :  { %v9516_v22 = vpop.f32.mrb[59].mxu0  ;;  %v4877_v5 = vadd.f32 %v8753_v41, %v4867_v1 }
0x31c5   :  { %v4965_v24 = vpop.xlane.xlu1 %4964 }
0x31c6   :  { %10347 = vrcp.f32 %v4965_v24 }
0x31d0   :  { %v10348_v25 = vpop.eup %10347 }
0x31d1   :  { %v4967_v28 = vmul.f32 %v10348_v25, %v10346_v14 }
0x31d3   :  { %9525 = vmatmul.mubr.msk.f32.vlgmr.msra.gmra.mrb[60].mxu0 %vm758_vm3, %v4967_v28 }
0x31d4   :  { %9535 = vmatpush3.xpose.msk.msra.mxu0 %vm682_vm2, %v12073_v0  ;;  %9536 = vmatprep.mubr.msk.f32.mxu0 %vm11132_vm1, %v11131_v8 }
0x31d5   :  { %10002 = vmatprep.subr.bf16.mxu0 %v11138_v27 }
0x31d7   :  { %9537 = vmatmul.mubr.msk.f32.vlgmr.msra.gmra.mrb[62].mxu0 %vm682_vm2, %v4531_v23 }
0x31d8   :  { %10004 = vmatpush3.bf16.msra.mxu0 %v9997_v51  ;;  %9548 = vmatprep.mubr.msk.f32.mxu0 %vm11132_vm1, %v11131_v8 }
0x31d9   :  { %9556 = vmatprep.subr.mxu0 %v11131_v8 }
0x32a6   :  { %v5040_v29 = vpop.f32.mrb[60].mxu0 }
0x32a7   :  { %v9526_v30 = vpop.f32.mrb[61].mxu0  ;;  %9532 = vmatmul.mubr.msk.f32.vlgmr.msra.gmra.mrb[38].mxu1 %vm682_vm2, %v5040_v29 }
0x32a8   :  { %9541 = vmatprep.mubr.msk.f32.mxu1 %vm11132_vm1, %v11131_v8 }
0x32aa   :  { %v5190_v31 = vpop.f32.mrb[62].mxu0 }
0x32ab   :  { %v5194_v32 = vmul.f32 0.25, %v5190_v31  ;;  %v9538_v33 = vpop.f32.mrb[63].mxu0 }
0x32ac   :  { %v8766_v33 = vld [vmem:[%s12561_s28] ss:$0 sm:$0xff] }
0x32ad   :  { %v5195_v15 = vsel %vm758_vm3, %v5194_v32, -inf }
0x32ae   :  { %5196 = vmax.xlane.f32.xlu1 %v5195_v15 }
0x333b   :  { %v5197_v34 = vpop.xlane.xlu1 %5196 }
0x333c   :  { %v5198_v35 = vsub.f32 %v5194_v32, %v5197_v34  ;;  %v8767_v34 = vld [vmem:[%s12562_s1] ss:$0 sm:$0xff] }
0x333e   :  { %v5199_v36 = vmul.f32 1.442695, %v5198_v35 }
0x3340   :  { %10349 = vpow2.f32 %v5199_v36 }
0x334a   :  { %v10350_v11 = vpop.eup %10349 }
0x334b   :  { %v5201_v40 = vsel %vm758_vm3, %v10350_v11, 0.0 }
0x334c   :  { %5202 = vadd.xlane.f32.xlu1 %v5201_v40  ;;  %v5643_v40 = vld [vmem:[%s12563_s4 + $0x8] sm:$0xff] }
0x335d   :  { %5206 = vrot.lane.b32.xlu1 %v12073_v0, %s11134_s7 }
0x337a   :  { %v5113_v37 = vpop.f32.mrb[38].mxu1 }
0x337b   :  { %v5117_v42 = vadd.f32 %v5113_v37, %v4877_v5  ;;  %v9533_v43 = vpop.f32.mrb[39].mxu1  ;;  %v5644_v5 = vld [vmem:[%s12563_s4 + $0x10] sm:$0xff]  ;;  %v5645_v37 = vld [vmem:[%s12563_s4 + $0x18] sm:$0xff] }
0x337c   :  { %v5736_v43 = vld [vmem:[%s12564_s25] sm:$0xff] }
0x337d   :  { %v5596_v56 = vadd.f32 %v5117_v42, %v12020_v57  ;;  %v10012_v42 = vpack.c.bf16 %v5645_v37, %v5644_v5  ;;  %v5880_v37 = vld [vmem:[%s12567_s14] sm:$0xff] }
0x337f   :  { %v5600_v58 = vsel %vm597_vm0, %v5596_v56, 0.0 }
0x33d9   :  { %v5203_v44 = vpop.xlane.xlu1 %5202 }
0x33da   :  { %10351 = vrcp.f32 %v5203_v44  ;;  %v5737_v44 = vld [vmem:[%s12564_s25 + $0x8] sm:$0xff] }
0x33dd   :  { %v5207_v2 = vpop.permute.xlu1 %5206 }
0x33de   :  { %9540 = vmatpush3.msra.mxu1 %v5207_v2  ;;  %v5738_v2 = vld [vmem:[%s12564_s25 + $0x10] sm:$0xff] }
0x33df   :  { %9551 = vmatprep.subr.mxu1 %v11131_v8 }
0x33e4   :  { %v10352_v54 = vpop.eup %10351 }
0x33e5   :  { %v5205_v46 = vmul.f32 %v10352_v54, %v10350_v11  ;;  %v5642_v11 = vld [vmem:[%s12563_s4] sm:$0xff]  ;;  %v10016_v54 = vpack.c.bf16 %v5737_v44, %v5736_v43  ;;  %v5882_v44 = vld [vmem:[%s12567_s14 + $0x10] sm:$0xff] }
0x33e7   :  { %9542 = vmatmul.mubr.msk.f32.vlgmr.msra.gmra.mrb[40].mxu1 %vm758_vm3, %v5205_v46 }
0x33e8   :  { %9552 = vmatpush3.xpose.msk.msra.mxu1 %vm682_vm2, %v5359_v45  ;;  %9553 = vmatprep.mubr.msk.f32.mxu1 %vm11132_vm1, %v11131_v8  ;;  %v5739_v45 = vld [vmem:[%s12564_s25 + $0x18] sm:$0xff] }
0x33e9   :  { %10005 = vmatprep.subr.bf16.mxu1 %v11138_v27  ;;  %v10020_v46 = vpack.c.bf16 %v5739_v45, %v5738_v2  ;;  %v5883_v2 = vld [vmem:[%s12567_s14 + $0x18] sm:$0xff] }
0x33eb   :  { %9554 = vmatmul.mubr.msk.f32.vlgmr.msra.gmra.mrb[42].mxu1 %vm682_vm2, %v5357_v21  ;;  %v5740_v21 = vld [vmem:[%s12564_s25 + $0x20] sm:$0xff] }
0x33ec   :  { %10007 = vmatpush3.bf16.msra.mxu1 %v10000_v20  ;;  %9565 = vmatprep.mubr.msk.f32.mxu1 %vm11132_vm1, %v11131_v8 }
0x33ed   :  { %10017 = vmatprep.subr.bf16.mxu1 %v10016_v54 }
0x34ba   :  { %v5278_v47 = vpop.f32.mrb[40].mxu1 }
0x34bb   :  { %v9543_v48 = vpop.f32.mrb[41].mxu1  ;;  %9549 = vmatmul.mubr.msk.f32.vlgmr.msra.gmra.mrb[64].mxu0 %vm682_vm2, %v5278_v47  ;;  %v5741_v47 = vld [vmem:[%s12564_s25 + $0x28] sm:$0xff] }
0x34bc   :  { %9558 = vmatprep.mubr.msk.f32.mxu0 %vm11132_vm1, %v11131_v8  ;;  %v10024_v48 = vpack.c.bf16 %v5741_v47, %v5740_v21 }
0x34be   :  { %v5430_v49 = vpop.f32.mrb[42].mxu1 }
0x34bf   :  { %v5434_v9 = vmul.f32 0.25, %v5430_v49  ;;  %v9555_v50 = vpop.f32.mrb[43].mxu1  ;;  %v5742_v49 = vld [vmem:[%s12564_s25 + $0x30] sm:$0xff] }
0x34c1   :  { %v5435_v6 = vsel %vm758_vm3, %v5434_v9, -inf }
0x34c2   :  { %5436 = vmax.xlane.f32.xlu0 %v5435_v6  ;;  %v5744_v6 = vld [vmem:[%s12564_s25 + $0x40] sm:$0xff] }
0x34d8   :  { %5446 = vrot.lane.b32.xlu0 %v12073_v0, %s11135_s10 }
0x354f   :  { %v5437_v51 = vpop.xlane.xlu0 %5436 }
0x3550   :  { %v5438_v53 = vsub.f32 %v5434_v9, %v5437_v51  ;;  %v5743_v9 = vld [vmem:[%s12564_s25 + $0x38] sm:$0xff]  ;;  %v5745_v51 = vld [vmem:[%s12564_s25 + $0x48] sm:$0xff] }
0x3551   :  { %v10028_v50 = vpack.c.bf16 %v5743_v9, %v5742_v49 }
0x3552   :  { %v5439_v26 = vmul.f32 1.442695, %v5438_v53  ;;  %v10032_v53 = vpack.c.bf16 %v5745_v51, %v5744_v6  ;;  %v8773_v51 = vld [vmem:[%s12569_s5] ss:$0 sm:$0xff] }
0x3553   :  { %v5447_v12 = vpop.permute.xlu0 %5446 }
0x3554   :  { %10353 = vpow2.f32 %v5439_v26  ;;  %9557 = vmatpush3.msra.mxu0 %v5447_v12  ;;  %v5746_v26 = vld [vmem:[%s12564_s25 + $0x50] sm:$0xff]  ;;  %v5747_v12 = vld [vmem:[%s12564_s25 + $0x58] sm:$0xff] }
0x355e   :  { %v10354_v55 = vpop.eup %10353 }
0x355f   :  { %v5441_v52 = vsel %vm758_vm3, %v10354_v55, 0.0 }
0x3560   :  { %5442 = vadd.xlane.f32.xlu1 %v5441_v52  ;;  %v5749_v52 = vld [vmem:[%s12564_s25 + $0x68] sm:$0xff] }
0x3564   :  { %5601 = vadd.xlane.f32.xlu1 %v5600_v58 }
0x358e   :  { %v5351_v59 = vpop.f32.mrb[64].mxu0 }
0x358f   :  { %v9550_v60 = vpop.f32.mrb[65].mxu0  ;;  %v5355_v4 = vadd.f32 %v8753_v41, %v5351_v59  ;;  %v10008_v41 = vpack.c.bf16 %v5643_v40, %v5642_v11 }
0x3591   :  { %10009 = vmatprep.subr.bf16.mxu0 %v10008_v41 }
0x35ed   :  { %v5443_v61 = vpop.xlane.xlu1 %5442 }
0x35ee   :  { %10355 = vrcp.f32 %v5443_v61 }
0x35f1   :  { %v5602_v3 = vpop.xlane.xlu1 %5601 }
0x35f2   :  { %v5606_v57 = vmul.f32 0.03125, %v5602_v3  ;;  %v5750_v3 = vld [vmem:[%s12564_s25 + $0x70] sm:$0xff] }
0x35f4   :  { %v5608_v13 = vsub.f32 %v5596_v56, %v5606_v57  ;;  %v5748_v56 = vld [vmem:[%s12564_s25 + $0x60] sm:$0xff]  ;;  %v5751_v57 = vld [vmem:[%s12564_s25 + $0x78] sm:$0xff] }
0x35f5   :  { %v10040_v58 = vpack.c.bf16 %v5749_v52, %v5748_v56 }
0x35f6   :  { %v5610_v20 = vmul.f32 %v5608_v13, %v5608_v13 }
0x35f8   :  { %v10356_v62 = vpop.eup %10355  ;;  %v5612_v1 = vsel %vm597_vm0, %v5610_v20, 0.0 }
0x35f9   :  { %v5445_v63 = vmul.f32 %v10356_v62, %v10354_v55  ;;  %v10036_v55 = vpack.c.bf16 %v5747_v12, %v5746_v26 }
0x35fb   :  { %9559 = vmatmul.mubr.msk.f32.vlgmr.msra.gmra.mrb[66].mxu0 %vm758_vm3, %v5445_v63 }
0x35fc   :  { %10011 = vmatpush3.bf16.msra.mxu0 %v10008_v41 }
0x35fd   :  { %10013 = vmatprep.subr.bf16.mxu0 %v10012_v42 }
0x3600   :  { %10015 = vmatpush3.bf16.msra.mxu0 %v10012_v42  ;;  %v5881_v42 = vld [vmem:[%s12567_s14 + $0x8] sm:$0xff] }
0x3601   :  { %v10048_v43 = vpack.c.bf16 %v5881_v42, %v5880_v37 }
0x3603   :  { %10049 = vmatprep.subr.bf16.mxu0 %v10048_v43 }
0x36ce   :  { %v5518_v0 = vpop.f32.mrb[66].mxu0 }
0x36cf   :  { %v9560_v23 = vpop.f32.mrb[67].mxu0  ;;  %9566 = vmatmul.mubr.msk.f32.vlgmr.msra.gmra.mrb[44].mxu1 %vm682_vm2, %v5518_v0 }
0x36d0   :  { %10019 = vmatpush3.bf16.msra.mxu1 %v10016_v54  ;;  %v10052_v54 = vpack.c.bf16 %v5883_v2, %v5882_v44  ;;  %v5887_v44 = vld [vmem:[%s12570_s15 + $0x10] sm:$0xff]  ;;  %v5888_v2 = vld [vmem:[%s12570_s15 + $0x18] sm:$0xff] }
0x36d1   :  { %10021 = vmatprep.subr.bf16.mxu1 %v10020_v46 }
0x36d4   :  { %10023 = vmatpush3.bf16.msra.mxu1 %v10020_v46 }
0x36d5   :  { %10025 = vmatprep.subr.bf16.mxu1 %v10024_v48 }
0x36d8   :  { %10027 = vmatpush3.bf16.msra.mxu1 %v10024_v48 }
0x36d9   :  { %10029 = vmatprep.subr.bf16.mxu1 %v10028_v50 }
0x36dc   :  { %10031 = vmatpush3.bf16.msra.mxu1 %v10028_v50  ;;  %v8772_v50 = vld [vmem:[%s12568_s24] ss:$0 sm:$0xff] }
0x36dd   :  { %10033 = vmatprep.subr.bf16.mxu1 %v10032_v53 }
0x36e0   :  { %10035 = vmatpush3.bf16.msra.mxu1 %v10032_v53 }
0x36e1   :  { %10037 = vmatprep.subr.bf16.mxu1 %v10036_v55 }
0x36e4   :  { %10039 = vmatpush3.bf16.msra.mxu1 %v10036_v55 }
0x36e5   :  { %10041 = vmatprep.subr.bf16.mxu1 %v10040_v58 }
0x36e8   :  { %10043 = vmatpush3.bf16.msra.mxu1 %v10040_v58  ;;  %v8774_v58 = vld [vmem:[#allocation10] ss:$0 sm:$0xff] }
0x37a2   :  { %v5591_v10 = vpop.f32.mrb[44].mxu1 }
0x37a3   :  { %v5595_v14 = vadd.f32 %v5591_v10, %v5355_v4  ;;  %v9567_v17 = vpop.f32.mrb[45].mxu1  ;;  %v10044_v4 = vpack.c.bf16 %v5751_v57, %v5750_v3  ;;  %v8768_v10 = vld [vmem:[%s12565_s2] ss:$0 sm:$0xff] }
0x37a5   :  { %v5597_v18 = vadd.f32 %v5595_v14, %v12030_v38  ;;  %10045 = vmatprep.subr.bf16.mxu1 %v10044_v4 }
0x37a6   :  { %10047 = vmatpush3.bf16.msra.mxu1 %v10044_v4 }
0x37a7   :  { %v5603_v19 = vsel %vm597_vm0, %v5597_v18, 0.0  ;;  %10059 = vmatprep.subr.bf16.mxu1 %v11138_v27 }
0x37a8   :  { %5604 = vadd.xlane.f32.xlu1 %v5603_v19 }
0x37ac   :  { %5613 = vadd.xlane.f32.xlu1 %v5612_v1  ;;  %v8771_v1 = vld [vmem:[%s12566_s17] ss:$0 sm:$0xff] }
0x3835   :  { %v5605_v22 = vpop.xlane.xlu1 %5604 }
0x3836   :  { %v5607_v24 = vmul.f32 0.03125, %v5605_v22 }
0x3838   :  { %v12125_v25 = vsub.f32 %v5597_v18, %v5607_v24 }
0x3839   :  { %v5614_v28 = vpop.xlane.xlu1 %5613 }
0x383a   :  { %v5618_v29 = vmul.f32 0.03125, %v5614_v28  ;;  %v5611_v38 = vmul.f32 %v12125_v25, %v12125_v25 }
0x383c   :  { %v5620_v30 = vadd.f32 1e-05, %v5618_v29  ;;  %v5615_v31 = vsel %vm597_vm0, %v5611_v38, 0.0 }
0x383d   :  { %5616 = vadd.xlane.f32.xlu1 %v5615_v31 }
0x383e   :  { %10357 = vrsqrt.f32 %v5620_v30 }
0x3848   :  { %v10358_v32 = vpop.eup %10357 }
0x3849   :  { %v5624_v15 = vmul.f32 %v10358_v32, %v5608_v13 }
0x384b   :  { %v5632_v35 = vmul.f32 %v8766_v33, %v5624_v15 }
0x384d   :  { %v12132_v36 = vadd.f32 %v8767_v34, %v5632_v35 }
0x384f   :  { %9576 = vmatprep.mubr.msk.f32.mxu0 %vm597_vm0, %v12132_v36 }
0x38ca   :  { %v5617_v59 = vpop.xlane.xlu1 %5616 }
0x38cb   :  { %v5619_v60 = vmul.f32 0.03125, %v5617_v59 }
0x38cd   :  { %v5621_v61 = vadd.f32 1e-05, %v5619_v60 }
0x38cf   :  { %10359 = vrsqrt.f32 %v5621_v61 }
0x38d9   :  { %v10360_v62 = vpop.eup %10359 }
0x38da   :  { %v5625_v63 = vmul.f32 %v10360_v62, %v12125_v25 }
0x38dc   :  { %v5633_v0 = vmul.f32 %v8766_v33, %v5625_v63 }
0x38de   :  { %v5641_v23 = vadd.f32 %v8767_v34, %v5633_v0 }
0x38e0   :  { %9577 = vmatmul.mubr.msk.f32.vlgmr.msra.gmra.mrb[68].mxu0 %vm597_vm0, %v5641_v23 }
0x38e1   :  { %10051 = vmatpush3.bf16.msra.mxu0 %v10048_v43 }
0x38e2   :  { %10053 = vmatprep.subr.bf16.mxu0 %v10052_v54 }
0x38e5   :  { %10055 = vmatpush3.bf16.msra.mxu0 %v10052_v54  ;;  %v10060_v54 = vpack.c.bf16 %v5888_v2, %v5887_v44 }
0x38e6   :  { %9625 = vmatprep.subr.mxu0 %v11131_v8 }
0x39b3   :  { %v9578_v13 = vpop.f32.mrb[68].mxu0 }
0x39b4   :  { %v5731_v14 = vadd.f32 %v9578_v13, %v8768_v10  ;;  %v5725_v17 = vpop.f32.mrb[69].mxu0 }
0x39b5   :  { %v5726_v18 = vadd.f32 %v8768_v10, %v5725_v17 }
0x39b6   :  { %v5735_v20 = vmax.f32 %v5731_v14, 0.0 }
0x39b7   :  { %v5734_v19 = vmax.f32 %v5726_v18, 0.0 }
0x39b9   :  { %9611 = vmatprep.mubr.f32.mxu1 %v5734_v19 }
0x39ba   :  { %9612 = vmatmul.mubr.f32.vlgmr.msra.gmra.mrb[46].mxu1 %v5735_v20 }
0x39bb   :  { %9656 = vmatprep.mubr.msk.f32.mxu1 %vm11132_vm1, %v11131_v8  ;;  %10061 = vmatpush3.bf16.msra.mxu1 %v10060_v54 }
0x39bc   :  { %9664 = vmatprep.subr.mxu1 %v11131_v8 }
0x3a8d   :  { %v9613_v22 = vpop.f32.mrb[46].mxu1 }
0x3a8e   :  { %v5831_v24 = vadd.f32 %v9613_v22, %v8771_v1  ;;  %v5825_v25 = vpop.f32.mrb[47].mxu1  ;;  %v5886_v22 = vld [vmem:[%s12570_s15 + $0x8] sm:$0xff] }
0x3a8f   :  { %v5826_v28 = vadd.f32 %v8771_v1, %v5825_v25  ;;  %v5885_v1 = vld [vmem:[%s12570_s15] sm:$0xff] }
0x3a90   :  { %v5835_v29 = vadd.f32 %v5831_v24, %v5641_v23  ;;  %v10057_v25 = vpack.c.bf16 %v5886_v22, %v5885_v1 }
0x3a91   :  { %v5834_v38 = vadd.f32 %v5826_v28, %v12132_v36 }
0x3a92   :  { %v5841_v30 = vsel %vm597_vm0, %v5835_v29, 0.0 }
0x3a93   :  { %5842 = vadd.xlane.f32.xlu1 %v5841_v30  ;;  %v5838_v31 = vsel %vm597_vm0, %v5834_v38, 0.0 }
0x3a94   :  { %5839 = vadd.xlane.f32.xlu0 %v5838_v31 }
0x3b20   :  { %v5843_v32 = vpop.xlane.xlu1 %5842 }
0x3b21   :  { %v5845_v33 = vmul.f32 0.03125, %v5843_v32  ;;  %v5840_v15 = vpop.xlane.xlu0 %5839 }
0x3b22   :  { %v5844_v34 = vmul.f32 0.03125, %v5840_v15 }
0x3b23   :  { %v5847_v35 = vsub.f32 %v5835_v29, %v5845_v33 }
0x3b24   :  { %v5846_v11 = vsub.f32 %v5834_v38, %v5844_v34 }
0x3b25   :  { %v5849_v36 = vmul.f32 %v5847_v35, %v5847_v35 }
0x3b26   :  { %v5848_v40 = vmul.f32 %v5846_v11, %v5846_v11 }
0x3b27   :  { %v5853_v5 = vsel %vm597_vm0, %v5849_v36, 0.0 }
0x3b28   :  { %v5850_v41 = vsel %vm597_vm0, %v5848_v40, 0.0 }
0x3b29   :  { %5851 = vadd.xlane.f32.xlu1 %v5850_v41 }
0x3b2d   :  { %5854 = vadd.xlane.f32.xlu1 %v5853_v5 }
0x3bb6   :  { %v5852_v45 = vpop.xlane.xlu1 %5851 }
0x3bb7   :  { %v5856_v46 = vmul.f32 0.03125, %v5852_v45 }
0x3bb9   :  { %v5858_v21 = vadd.f32 1e-05, %v5856_v46 }
0x3bba   :  { %v5855_v47 = vpop.xlane.xlu1 %5854 }
0x3bbb   :  { %10361 = vrsqrt.f32 %v5858_v21  ;;  %v5857_v48 = vmul.f32 0.03125, %v5855_v47 }
0x3bbd   :  { %v5859_v49 = vadd.f32 1e-05, %v5857_v48 }
0x3bbf   :  { %10363 = vrsqrt.f32 %v5859_v49 }
0x3bc5   :  { %v10362_v9 = vpop.eup %10361 }
0x3bc6   :  { %v5862_v6 = vmul.f32 %v10362_v9, %v5846_v11 }
0x3bc8   :  { %v5870_v53 = vmul.f32 %v8772_v50, %v5862_v6 }
0x3bc9   :  { %v10364_v26 = vpop.eup %10363 }
0x3bca   :  { %v5863_v12 = vmul.f32 %v10364_v26, %v5847_v35  ;;  %v12175_v55 = vadd.f32 %v8773_v51, %v5870_v53 }
0x3bcc   :  { %v5871_v56 = vmul.f32 %v8772_v50, %v5863_v12  ;;  %9622 = vmatprep.mubr.msk.f32.mxu0 %vm597_vm0, %v12175_v55 }
0x3bce   :  { %v12179_v52 = vadd.f32 %v8773_v51, %v5871_v56 }
0x3bd0   :  { %9623 = vmatmul.mubr.msk.f32.vlgmr.msra.gmra.mrb[70].mxu0 %vm597_vm0, %v12179_v52 }
0x3bd1   :  { %9627 = vmatprep.mubr.msk.f32.mxu0 %vm11132_vm1, %v11131_v8 }
0x3ca3   :  { %v9624_v59 = vpop.f32.mrb[70].mxu0 }
0x3ca4   :  { %v12185_v60 = vadd.f32 %v9624_v59, %v8774_v58  ;;  %v5968_v61 = vpop.f32.mrb[71].mxu0 }
0x3ca5   :  { %v5969_v62 = vadd.f32 %v8774_v58, %v5968_v61 }
0x3ca7   :  { %5978 = vrot.lane.b32.xlu1 %v5969_v62, %s11134_s7 }
0x3d19   :  { %v5979_v63 = vpop.permute.xlu1 %5978 }
0x3d1a   :  { %9626 = vmatpush3.xpose.msk.msra.mxu0 %vm682_vm2, %v5979_v63 }
0x3d1b   :  { %9630 = vmatprep.subr.mxu0 %v11131_v8 }
0x3d1d   :  { %9628 = vmatmul.mubr.msk.f32.vlgmr.msra.gmra.mrb[72].mxu0 %vm682_vm2, %v5969_v62 }
0x3d1e   :  { %9632 = vmatprep.mubr.msk.f32.mxu0 %vm11132_vm1, %v11131_v8 }
0x3df0   :  { %v6050_v0 = vpop.f32.mrb[72].mxu0 }
0x3df1   :  { %v6054_v23 = vmul.f32 0.25, %v6050_v0  ;;  %v9629_v3 = vpop.f32.mrb[73].mxu0 }
0x3df3   :  { %v6055_v57 = vsel %vm11903_vm4, %v6054_v23, -1e+30 }
0x3df4   :  { %v6056_v4 = vsel %vm758_vm3, %v6055_v57, -inf }
0x3df5   :  { %6057 = vmax.xlane.f32.xlu0 %v6056_v4 }
0x3e0b   :  { %6067 = vrot.lane.b32.xlu0 %v5969_v62, %s11133_s3 }
0x3e0f   :  { %6225 = vrot.lane.b32.xlu0 %v5969_v62, %s11135_s10 }
0x3e13   :  { %6223 = vrot.lane.b32.xlu0 %v5969_v62, %s11137_s11 }
0x3e82   :  { %v6058_v10 = vpop.xlane.xlu0 %6057 }
0x3e83   :  { %v6059_v13 = vsub.f32 %v6055_v57, %v6058_v10 }
0x3e85   :  { %v6060_v14 = vmul.f32 1.442695, %v6059_v13 }
0x3e86   :  { %v6068_v17 = vpop.permute.xlu0 %6067 }
0x3e87   :  { %10365 = vpow2.f32 %v6060_v14  ;;  %9631 = vmatpush3.msra.mxu0 %v6068_v17 }
0x3e88   :  { %10056 = vmatprep.subr.bf16.mxu0 %v11138_v27 }
0x3e8a   :  { %v6226_v29 = vpop.permute.xlu0 %6225 }
0x3e8e   :  { %v6224_v31 = vpop.permute.xlu0 %6223 }
0x3e91   :  { %v10366_v18 = vpop.eup %10365 }
0x3e92   :  { %v6062_v19 = vsel %vm758_vm3, %v10366_v18, 0.0 }
0x3e93   :  { %6063 = vadd.xlane.f32.xlu1 %v6062_v19 }
0x3ea4   :  { %6314 = vrot.lane.b32.xlu1 %v5969_v62, %s11136_s27  ;;  %v8781_v62 = vld [vmem:[#allocation8] ss:$0 sm:$0xff] }
0x3f20   :  { %v6064_v20 = vpop.xlane.xlu1 %6063 }
0x3f21   :  { %10367 = vrcp.f32 %v6064_v20 }
0x3f24   :  { %v6315_v32 = vpop.permute.xlu1 %6314 }
0x3f2b   :  { %v10368_v24 = vpop.eup %10367 }
0x3f2c   :  { %v6066_v28 = vmul.f32 %v10368_v24, %v10366_v18 }
0x3f2e   :  { %9633 = vmatmul.mubr.msk.f32.vlgmr.msra.gmra.mrb[74].mxu0 %vm758_vm3, %v6066_v28 }
0x3f2f   :  { %10058 = vmatpush3.bf16.msra.mxu0 %v10057_v25  ;;  %9639 = vmatprep.mubr.msk.f32.mxu0 %vm11132_vm1, %v11131_v8 }
0x3f30   :  { %9642 = vmatprep.subr.mxu0 %v11131_v8 }
0x4001   :  { %v6139_v38 = vpop.f32.mrb[74].mxu0 }
0x4002   :  { %v9634_v30 = vpop.f32.mrb[75].mxu0  ;;  %9640 = vmatmul.mubr.msk.f32.vlgmr.msra.gmra.mrb[76].mxu0 %vm682_vm2, %v6139_v38 }
0x4003   :  { %9643 = vmatpush3.xpose.msk.msra.mxu0 %vm682_vm2, %v6226_v29  ;;  %9644 = vmatprep.mubr.msk.f32.mxu0 %vm11132_vm1, %v11131_v8 }
0x4004   :  { %9647 = vmatprep.subr.mxu0 %v11131_v8 }
0x4006   :  { %9645 = vmatmul.mubr.msk.f32.vlgmr.msra.gmra.mrb[78].mxu0 %vm682_vm2, %v6224_v31 }
0x4007   :  { %9648 = vmatpush3.msra.mxu0 %v6315_v32  ;;  %9649 = vmatprep.mubr.msk.f32.mxu0 %vm11132_vm1, %v11131_v8 }
0x4008   :  { %9659 = vmatprep.subr.mxu0 %v11131_v8 }
0x40d5   :  { %v6212_v33 = vpop.f32.mrb[76].mxu0 }
0x40d6   :  { %v9641_v15 = vpop.f32.mrb[77].mxu0  ;;  %v6222_v63 = vadd.f32 %v8781_v62, %v6212_v33 }
0x40d9   :  { %v6297_v34 = vpop.f32.mrb[78].mxu0 }
0x40da   :  { %v6301_v35 = vmul.f32 0.25, %v6297_v34  ;;  %v9646_v11 = vpop.f32.mrb[79].mxu0 }
0x40dc   :  { %v6302_v40 = vsel %vm11903_vm4, %v6301_v35, -1e+30 }
0x40dd   :  { %v6303_v41 = vsel %vm758_vm3, %v6302_v40, -inf }
0x40de   :  { %6304 = vmax.xlane.f32.xlu0 %v6303_v41 }
0x40f4   :  { %6554 = vrot.lane.b32.xlu0 %v12185_v60, %s11133_s3  ;;  %s12571_s3 = sld [smem:[#allocation80_spill]] }
0x40f8   :  { %6706 = vrot.lane.b32.xlu0 %v12185_v60, %s11135_s10 }
0x416b   :  { %v6305_v36 = vpop.xlane.xlu0 %6304 }
0x416c   :  { %v6306_v5 = vsub.f32 %v6302_v40, %v6305_v36 }
0x416e   :  { %v6307_v37 = vmul.f32 1.442695, %v6306_v5 }
0x416f   :  { %v6555_v49 = vpop.permute.xlu0 %6554 }
0x4170   :  { %10369 = vpow2.f32 %v6307_v37 }
0x4173   :  { %v6707_v57 = vpop.permute.xlu0 %6706 }
0x417a   :  { %v10370_v42 = vpop.eup %10369 }
0x417b   :  { %v6309_v43 = vsel %vm758_vm3, %v10370_v42, 0.0 }
0x417c   :  { %6310 = vadd.xlane.f32.xlu1 %v6309_v43 }
0x418d   :  { %6465 = vrot.lane.b32.xlu1 %v12185_v60, %s11134_s7 }
0x4209   :  { %v6311_v45 = vpop.xlane.xlu1 %6310 }
0x420a   :  { %10371 = vrcp.f32 %v6311_v45 }
0x420d   :  { %v6466_v47 = vpop.permute.xlu1 %6465 }
0x4214   :  { %v10372_v46 = vpop.eup %10371 }
0x4215   :  { %v6313_v21 = vmul.f32 %v10372_v46, %v10370_v42  ;;  %v6993_v46 = vld [vmem:[%s12571_s3 + $0x10] sm:$0xff] }
0x4217   :  { %9650 = vmatmul.mubr.msk.f32.vlgmr.msra.gmra.mrb[80].mxu0 %vm758_vm3, %v6313_v21  ;;  %v6994_v21 = vld [vmem:[%s12571_s3 + $0x18] sm:$0xff] }
0x4218   :  { %9660 = vmatpush3.xpose.msk.msra.mxu0 %vm682_vm2, %v6466_v47  ;;  %9661 = vmatprep.mubr.msk.f32.mxu0 %vm11132_vm1, %v11131_v8 }
0x4219   :  { %10062 = vmatprep.subr.bf16.mxu0 %v11138_v27 }
0x421b   :  { %9662 = vmatmul.mubr.msk.f32.vlgmr.msra.gmra.mrb[82].mxu0 %vm682_vm2, %v12185_v60 }
0x421c   :  { %10064 = vmatpush3.bf16.msra.mxu0 %v10057_v25  ;;  %9673 = vmatprep.mubr.msk.f32.mxu0 %vm11132_vm1, %v11131_v8 }
0x421d   :  { %9681 = vmatprep.subr.mxu0 %v11131_v8 }
0x42ea   :  { %v6386_v48 = vpop.f32.mrb[80].mxu0 }
0x42eb   :  { %v9651_v9 = vpop.f32.mrb[81].mxu0  ;;  %9657 = vmatmul.mubr.msk.f32.vlgmr.msra.gmra.mrb[48].mxu1 %vm682_vm2, %v6386_v48 }
0x42ec   :  { %9665 = vmatpush3.msra.mxu1 %v6555_v49  ;;  %9666 = vmatprep.mubr.msk.f32.mxu1 %vm11132_vm1, %v11131_v8 }
0x42ed   :  { %9676 = vmatprep.subr.mxu1 %v11131_v8 }
0x42ee   :  { %v6537_v50 = vpop.f32.mrb[82].mxu0 }
0x42ef   :  { %v6541_v6 = vmul.f32 0.25, %v6537_v50  ;;  %v9663_v51 = vpop.f32.mrb[83].mxu0 }
0x42f1   :  { %v6542_v53 = vsel %vm11903_vm4, %v6541_v6, -1e+30 }
0x42f2   :  { %v6543_v26 = vsel %vm758_vm3, %v6542_v53, -inf }
0x42f3   :  { %6544 = vmax.xlane.f32.xlu1 %v6543_v26 }
0x4380   :  { %v6545_v12 = vpop.xlane.xlu1 %6544 }
0x4381   :  { %v6546_v56 = vsub.f32 %v6542_v53, %v6545_v12 }
0x4383   :  { %v6547_v58 = vmul.f32 1.442695, %v6546_v56  ;;  %v8795_v56 = vld [vmem:[%s12573_s16] ss:$0 sm:$0xff] }
0x4385   :  { %10373 = vpow2.f32 %v6547_v58 }
0x438f   :  { %v10374_v59 = vpop.eup %10373 }
0x4390   :  { %v6549_v61 = vsel %vm758_vm3, %v10374_v59, 0.0 }
0x4391   :  { %6550 = vadd.xlane.f32.xlu0 %v6549_v61  ;;  %v6992_v61 = vld [vmem:[%s12571_s3 + $0x8] sm:$0xff] }
0x43a7   :  { %6704 = vrot.lane.b32.xlu0 %v12185_v60, %s11137_s11 }
0x43be   :  { %v6459_v0 = vpop.f32.mrb[48].mxu1 }
0x43bf   :  { %v6463_v23 = vadd.f32 %v6459_v0, %v6222_v63  ;;  %v9658_v3 = vpop.f32.mrb[49].mxu1 }
0x43c0   :  { %v12291_v3 = vld [vmem:[%s12574_s18] ss:$0 sm:$0xff] }
0x43c1   :  { %v6945_v25 = vadd.f32 %v6463_v23, %v12175_v55  ;;  %v10072_v23 = vpack.c.bf16 %v6994_v21, %v6993_v46 }
0x43c3   :  { %v6949_v28 = vsel %vm597_vm0, %v6945_v25, 0.0 }
0x441e   :  { %v6551_v4 = vpop.xlane.xlu0 %6550 }
0x441f   :  { %10375 = vrcp.f32 %v6551_v4 }
0x4422   :  { %v6705_v14 = vpop.permute.xlu0 %6704 }
0x4429   :  { %v10376_v10 = vpop.eup %10375 }
0x442a   :  { %v6553_v13 = vmul.f32 %v10376_v10, %v10374_v59  ;;  %v6991_v59 = vld [vmem:[%s12571_s3] sm:$0xff] }
0x442b   :  { %v10259_v63 = vpack.i.bf16 %v6992_v61, %v6991_v59  ;;  %v10068_v0 = vpack.c.bf16 %v6992_v61, %v6991_v59 }
0x442c   :  { %9667 = vmatmul.mubr.msk.f32.vlgmr.msra.gmra.mrb[50].mxu1 %vm758_vm3, %v6553_v13 }
0x442d   :  { %9677 = vmatpush3.xpose.msk.msra.mxu1 %vm682_vm2, %v6707_v57  ;;  %9678 = vmatprep.mubr.msk.f32.mxu1 %vm11132_vm1, %v11131_v8 }
0x442e   :  { %10065 = vmatprep.subr.bf16.mxu1 %v11138_v27 }
0x4430   :  { %9679 = vmatmul.mubr.msk.f32.vlgmr.msra.gmra.mrb[52].mxu1 %vm682_vm2, %v6705_v14 }
0x4431   :  { %10067 = vmatpush3.bf16.msra.mxu1 %v10060_v54  ;;  %9690 = vmatprep.mubr.msk.f32.mxu1 %vm11132_vm1, %v11131_v8 }
0x44ff   :  { %v6626_v17 = vpop.f32.mrb[50].mxu1 }
0x4500   :  { %v9668_v18 = vpop.f32.mrb[51].mxu1  ;;  %9674 = vmatmul.mubr.msk.f32.vlgmr.msra.gmra.mrb[84].mxu0 %vm682_vm2, %v6626_v17 }
0x4501   :  { %9683 = vmatprep.mubr.msk.f32.mxu0 %vm11132_vm1, %v11131_v8 }
0x4503   :  { %v6778_v19 = vpop.f32.mrb[52].mxu1 }
0x4504   :  { %v6782_v20 = vmul.f32 0.25, %v6778_v19  ;;  %v9680_v1 = vpop.f32.mrb[53].mxu1 }
0x4506   :  { %v6783_v22 = vsel %vm11903_vm4, %v6782_v20, -1e+30 }
0x4507   :  { %v6784_v24 = vsel %vm758_vm3, %v6783_v22, -inf }
0x4508   :  { %6785 = vmax.xlane.f32.xlu1 %v6784_v24 }
0x4519   :  { %6795 = vrot.lane.b32.xlu1 %v12185_v60, %s11136_s27  ;;  %s12572_s27 = sld [smem:[#allocation86_spill]] }
0x451f   :  { %v8794_v26 = vld [vmem:[%s12572_s27] ss:$0 sm:$0xff] }
0x453d   :  { %6950 = vadd.xlane.f32.xlu1 %v6949_v28 }
0x4595   :  { %v6786_v29 = vpop.xlane.xlu1 %6785 }
0x4596   :  { %v6787_v38 = vsub.f32 %v6783_v22, %v6786_v29 }
0x4598   :  { %v6788_v30 = vmul.f32 1.442695, %v6787_v38 }
0x4599   :  { %v6796_v31 = vpop.permute.xlu1 %6795 }
0x459a   :  { %10377 = vpow2.f32 %v6788_v30  ;;  %9682 = vmatpush3.msra.mxu0 %v6796_v31 }
0x459b   :  { %10069 = vmatprep.subr.bf16.mxu0 %v10068_v0 }
0x45a4   :  { %v10378_v32 = vpop.eup %10377 }
0x45a5   :  { %v6790_v16 = vsel %vm758_vm3, %v10378_v32, 0.0 }
0x45a6   :  { %6791 = vadd.xlane.f32.xlu0 %v6790_v16 }
0x45ca   :  { %v6951_v40 = vpop.xlane.xlu1 %6950 }
0x45cb   :  { %v6955_v41 = vmul.f32 0.03125, %v6951_v40 }
0x45cd   :  { %v6957_v37 = vsub.f32 %v6945_v25, %v6955_v41 }
0x45cf   :  { %v6959_v54 = vmul.f32 %v6957_v37, %v6957_v37 }
0x45d1   :  { %v6961_v45 = vsel %vm597_vm0, %v6959_v54, 0.0 }
0x45d3   :  { %v6699_v33 = vpop.f32.mrb[84].mxu0 }
0x45d4   :  { %v9675_v15 = vpop.f32.mrb[85].mxu0  ;;  %v6703_v36 = vadd.f32 %v8781_v62, %v6699_v33 }
0x4633   :  { %v6792_v34 = vpop.xlane.xlu0 %6791 }
0x4634   :  { %10379 = vrcp.f32 %v6792_v34 }
0x463e   :  { %v10380_v60 = vpop.eup %10379 }
0x463f   :  { %v6794_v35 = vmul.f32 %v10380_v60, %v10378_v32 }
0x4641   :  { %9684 = vmatmul.mubr.msk.f32.vlgmr.msra.gmra.mrb[86].mxu0 %vm758_vm3, %v6794_v35 }
0x4642   :  { %10071 = vmatpush3.bf16.msra.mxu0 %v10068_v0 }
0x4643   :  { %10073 = vmatprep.subr.bf16.mxu0 %v10072_v23 }
0x4646   :  { %10075 = vmatpush3.bf16.msra.mxu0 %v10072_v23 }
0x4647   :  { %9715 = vmatprep.subr.mxu0 %v11131_v8 }
0x4714   :  { %v6867_v55 = vpop.f32.mrb[86].mxu0 }
0x4715   :  { %v9685_v11 = vpop.f32.mrb[87].mxu0  ;;  %9691 = vmatmul.mubr.msk.f32.vlgmr.msra.gmra.mrb[54].mxu1 %vm682_vm2, %v6867_v55 }
0x4716   :  { %9712 = vmatprep.mubr.msk.f32.mxu1 %vm597_vm0, %v12032_v7  ;;  %v10264_v7 = vpack.i.bf16 %v6994_v21, %v6993_v46 }
0x4718   :  { %10265 = vrot.lane.b32.xlu1 %v10264_v7, %s11134_s7 }
0x478a   :  { %v10266_v4 = vpop.permute.xlu1 %10265 }
0x478b   :  { %v10268_v14 = vunpack.i.h.bf16 %v10266_v4  ;;  %v10267_v17 = vunpack.i.l.bf16 %v10266_v4 }
0x478d   :  { %v10080_v22 = vpack.c.bf16 %v10268_v14, %v10267_v17 }
0x47e8   :  { %v6940_v5 = vpop.f32.mrb[54].mxu1 }
0x47e9   :  { %v6944_v42 = vadd.f32 %v6940_v5, %v6703_v36  ;;  %v9692_v43 = vpop.f32.mrb[55].mxu1 }
0x47eb   :  { %v6946_v44 = vadd.f32 %v6944_v42, %v12179_v52  ;;  %v6997_v42 = vld [vmem:[%s12575_s22 + $0x8] sm:$0xff] }
0x47ed   :  { %v6952_v2 = vsel %vm597_vm0, %v6946_v44, 0.0 }
0x47ee   :  { %6953 = vadd.xlane.f32.xlu0 %v6952_v2 }
0x47f2   :  { %6962 = vadd.xlane.f32.xlu0 %v6961_v45 }
0x487b   :  { %v6954_v47 = vpop.xlane.xlu0 %6953 }
0x487c   :  { %v6956_v48 = vmul.f32 0.03125, %v6954_v47 }
0x487e   :  { %v6958_v49 = vsub.f32 %v6946_v44, %v6956_v48 }
0x487f   :  { %v6963_v52 = vpop.xlane.xlu0 %6962 }
0x4880   :  { %v6967_v9 = vmul.f32 0.03125, %v6963_v52  ;;  %v6960_v50 = vmul.f32 %v6958_v49, %v6958_v49 }
0x4882   :  { %v6969_v6 = vadd.f32 1e-05, %v6967_v9  ;;  %v6964_v51 = vsel %vm597_vm0, %v6960_v50, 0.0 }
0x4883   :  { %6965 = vadd.xlane.f32.xlu0 %v6964_v51 }
0x4884   :  { %10381 = vrsqrt.f32 %v6969_v6 }
0x488e   :  { %v10382_v53 = vpop.eup %10381 }
0x488f   :  { %v6973_v12 = vmul.f32 %v10382_v53, %v6957_v37  ;;  %v6996_v37 = vld [vmem:[%s12575_s22] sm:$0xff] }
0x4890   :  { %v10085_v43 = vpack.c.bf16 %v6997_v42, %v6996_v37 }
0x4891   :  { %v6981_v58 = vmul.f32 %v8794_v26, %v6973_v12 }
0x4893   :  { %v12284_v62 = vadd.f32 %v8795_v56, %v6981_v58  ;;  %v6999_v58 = vld [vmem:[%s12575_s22 + $0x18] sm:$0xff] }
0x4895   :  { %9701 = vmatprep.mubr.msk.f32.mxu0 %vm597_vm0, %v12284_v62 }
0x4899   :  { %10260 = vrot.lane.b32.xlu0 %v10259_v63, %s11134_s7 }
0x489d   :  { %7104 = vrot.lane.b32.xlu0 %v12291_v3, %s11134_s7 }
0x4910   :  { %v6966_v57 = vpop.xlane.xlu0 %6965 }
0x4911   :  { %v6968_v10 = vmul.f32 0.03125, %v6966_v57 }
0x4913   :  { %v6970_v13 = vadd.f32 1e-05, %v6968_v10 }
0x4914   :  { %v10261_v18 = vpop.permute.xlu0 %10260 }
0x4915   :  { %10383 = vrsqrt.f32 %v6970_v13  ;;  %v10263_v19 = vunpack.i.h.bf16 %v10261_v18  ;;  %v10262_v20 = vunpack.i.l.bf16 %v10261_v18 }
0x4917   :  { %v10076_v1 = vpack.c.bf16 %v10263_v19, %v10262_v20 }
0x4918   :  { %v12306_v38 = vpop.permute.xlu0 %7104 }
0x4919   :  { %10077 = vmatprep.subr.bf16.mxu1 %v10076_v1 }
0x491a   :  { %10079 = vmatpush3.bf16.msra.mxu1 %v10076_v1 }
0x491b   :  { %10081 = vmatprep.subr.bf16.mxu1 %v10080_v22 }
0x491e   :  { %10083 = vmatpush3.bf16.msra.mxu1 %v10080_v22 }
0x491f   :  { %v10384_v24 = vpop.eup %10383  ;;  %9720 = vmatprep.subr.mxu1 %v11131_v8 }
0x4920   :  { %v6974_v25 = vmul.f32 %v10384_v24, %v6958_v49 }
0x4921   :  { %9713 = vmatmul.mubr.msk.f32.vlgmr.msra.gmra.mrb[56].mxu1 %vm597_vm0, %v12038_v39 }
0x4922   :  { %v6982_v28 = vmul.f32 %v8794_v26, %v6974_v25  ;;  %9722 = vmatprep.mubr.msk.f32.mxu1 %vm11132_vm1, %v11131_v8 }
0x4924   :  { %v12300_v29 = vadd.f32 %v8795_v56, %v6982_v28  ;;  %v6998_v56 = vld [vmem:[%s12575_s22 + $0x10] sm:$0xff] }
0x4925   :  { %v10088_v59 = vpack.c.bf16 %v6999_v58, %v6998_v56 }
0x4926   :  { %9702 = vmatmul.mubr.msk.f32.vlgmr.msra.gmra.mrb[88].mxu0 %vm597_vm0, %v12300_v29 }
0x4927   :  { %9717 = vmatprep.mubr.msk.f32.mxu0 %vm11132_vm1, %v11131_v8 }
0x49f4   :  { %v9714_v30 = vpop.f32.mrb[56].mxu1 }
0x49f5   :  { %v7173_v31 = vpop.f32.mrb[57].mxu1  ;;  %v12339_v26 = vadd.f32 %v9714_v30, %v12306_v38 }
0x49f6   :  { %v7174_v32 = vadd.f32 %v7173_v31, %v12306_v38 }
0x49f8   :  { %9716 = vmatpush3.xpose.msk.msra.mxu0 %vm682_vm2, %v7174_v32 }
0x49f9   :  { %v9703_v39 = vpop.f32.mrb[88].mxu0  ;;  %10084 = vmatprep.subr.bf16.mxu0 %v11138_v27 }
0x49fa   :  { %v7079_v16 = vpop.f32.mrb[89].mxu0  ;;  %v7085_v12 = vadd.f32 %v9703_v39, %v12291_v3 }
0x49fb   :  { %v7080_v33 = vadd.f32 %v12291_v3, %v7079_v16 }
0x49fd   :  { %9718 = vmatmul.mubr.msk.f32.vlgmr.msra.gmra.mrb[90].mxu0 %vm682_vm2, %v7080_v33 }
0x49fe   :  { %9729 = vmatprep.mubr.msk.f32.mxu0 %vm11132_vm1, %v11131_v8  ;;  %10086 = vmatpush3.bf16.msra.mxu0 %v10085_v43 }
0x49ff   :  { %9737 = vmatprep.subr.mxu0 %v11131_v8 }
0x4ad0   :  { %v7254_v15 = vpop.f32.mrb[90].mxu0 }
0x4ad1   :  { %v7258_v34 = vmul.f32 0.25, %v7254_v15  ;;  %v9719_v60 = vpop.f32.mrb[91].mxu0 }
0x4ad3   :  { %v7259_v35 = vsel %vm758_vm3, %v7258_v34, -inf }
0x4ad4   :  { %7260 = vmax.xlane.f32.xlu0 %v7259_v35 }
0x4aea   :  { %7270 = vrot.lane.b32.xlu0 %v7174_v32, %s11134_s7 }
0x4aee   :  { %7426 = vrot.lane.b32.xlu0 %v7080_v33, %s11137_s11 }
0x4b61   :  { %v7261_v55 = vpop.xlane.xlu0 %7260 }
0x4b62   :  { %v7262_v11 = vsub.f32 %v7258_v34, %v7261_v55 }
0x4b64   :  { %v7263_v40 = vmul.f32 1.442695, %v7262_v11 }
0x4b65   :  { %v7271_v41 = vpop.permute.xlu0 %7270 }
0x4b66   :  { %10385 = vpow2.f32 %v7263_v40  ;;  %9721 = vmatpush3.msra.mxu1 %v7271_v41 }
0x4b67   :  { %9732 = vmatprep.subr.mxu1 %v11131_v8 }
0x4b69   :  { %v7427_v46 = vpop.permute.xlu0 %7426 }
0x4b70   :  { %v10386_v36 = vpop.eup %10385 }
0x4b71   :  { %v7265_v5 = vsel %vm758_vm3, %v10386_v36, 0.0 }
0x4b72   :  { %7266 = vadd.xlane.f32.xlu1 %v7265_v5 }
0x4b83   :  { %7428 = vrot.lane.b32.xlu1 %v7174_v32, %s11137_s11 }
0x4bff   :  { %v7267_v44 = vpop.xlane.xlu1 %7266 }
0x4c00   :  { %10387 = vrcp.f32 %v7267_v44 }
0x4c03   :  { %v7429_v45 = vpop.permute.xlu1 %7428 }
0x4c0a   :  { %v10388_v2 = vpop.eup %10387 }
0x4c0b   :  { %v7269_v54 = vmul.f32 %v10388_v2, %v10386_v36 }
0x4c0d   :  { %9723 = vmatmul.mubr.msk.f32.vlgmr.msra.gmra.mrb[58].mxu1 %vm758_vm3, %v7269_v54 }
0x4c0e   :  { %9733 = vmatpush3.xpose.msk.msra.mxu1 %vm682_vm2, %v7429_v45  ;;  %9734 = vmatprep.mubr.msk.f32.mxu1 %vm11132_vm1, %v11131_v8 }
0x4c0f   :  { %10087 = vmatprep.subr.bf16.mxu1 %v11138_v27 }
0x4c11   :  { %9735 = vmatmul.mubr.msk.f32.vlgmr.msra.gmra.mrb[60].mxu1 %vm682_vm2, %v7427_v46 }
0x4c12   :  { %9746 = vmatprep.mubr.msk.f32.mxu1 %vm11132_vm1, %v11131_v8  ;;  %10089 = vmatpush3.bf16.msra.mxu1 %v10088_v59 }
0x4c13   :  { %9754 = vmatprep.subr.mxu1 %v11131_v8 }
0x4ce0   :  { %v7342_v21 = vpop.f32.mrb[58].mxu1 }
0x4ce1   :  { %v9724_v7 = vpop.f32.mrb[59].mxu1  ;;  %9730 = vmatmul.mubr.msk.f32.vlgmr.msra.gmra.mrb[92].mxu0 %vm682_vm2, %v7342_v21 }
0x4ce2   :  { %9739 = vmatprep.mubr.msk.f32.mxu0 %vm11132_vm1, %v11131_v8 }
0x4ce4   :  { %v7500_v47 = vpop.f32.mrb[60].mxu1 }
0x4ce5   :  { %v7504_v48 = vmul.f32 0.25, %v7500_v47  ;;  %v9736_v49 = vpop.f32.mrb[61].mxu1 }
0x4ce7   :  { %v7505_v52 = vsel %vm758_vm3, %v7504_v48, -inf }
0x4ce8   :  { %7506 = vmax.xlane.f32.xlu1 %v7505_v52 }
0x4d75   :  { %v7507_v9 = vpop.xlane.xlu1 %7506 }
0x4d76   :  { %v7508_v50 = vsub.f32 %v7504_v48, %v7507_v9 }
0x4d78   :  { %v7509_v6 = vmul.f32 1.442695, %v7508_v50 }
0x4d7a   :  { %10389 = vpow2.f32 %v7509_v6 }
0x4d84   :  { %v10390_v51 = vpop.eup %10389 }
0x4d85   :  { %v7511_v53 = vsel %vm758_vm3, %v10390_v51, 0.0 }
0x4d86   :  { %7512 = vadd.xlane.f32.xlu0 %v7511_v53 }
0x4d9c   :  { %7516 = vrot.lane.b32.xlu0 %v7174_v32, %s11135_s10 }
0x4da0   :  { %7906 = vrot.lane.b32.xlu0 %v12339_v26, %s11137_s11 }
0x4da4   :  { %7904 = vrot.lane.b32.xlu0 %v7085_v12, %s11137_s11  ;;  %s12576_s11 = sld [smem:[#allocation77_spill]] }
0x4daa   :  { %v8805_v25 = vld [vmem:[%s12576_s11] ss:$0 sm:$0xff] }
0x4db4   :  { %v7415_v61 = vpop.f32.mrb[92].mxu0 }
0x4db5   :  { %v9731_v63 = vpop.f32.mrb[93].mxu0  ;;  %v7425_v28 = vadd.f32 %v8805_v25, %v7415_v61 }
0x4e13   :  { %v7513_v0 = vpop.xlane.xlu0 %7512 }
0x4e14   :  { %10391 = vrcp.f32 %v7513_v0 }
0x4e17   :  { %v7517_v23 = vpop.permute.xlu0 %7516 }
0x4e18   :  { %9738 = vmatpush3.msra.mxu0 %v7517_v23 }
0x4e19   :  { %9749 = vmatprep.subr.mxu0 %v11131_v8 }
0x4e1b   :  { %v7907_v33 = vpop.permute.xlu0 %7906 }
0x4e1e   :  { %v10392_v57 = vpop.eup %10391 }
0x4e1f   :  { %v7515_v4 = vmul.f32 %v10392_v57, %v10390_v51  ;;  %v7905_v34 = vpop.permute.xlu0 %7904 }
0x4e21   :  { %9740 = vmatmul.mubr.msk.f32.vlgmr.msra.gmra.mrb[94].mxu0 %vm758_vm3, %v7515_v4  ;;  %v8818_v4 = vld [vmem:[#allocation2] ss:$0 sm:$0xff] }
0x4e22   :  { %9750 = vmatpush3.xpose.msk.msra.mxu0 %vm682_vm2, %v12339_v26  ;;  %9751 = vmatprep.mubr.msk.f32.mxu0 %vm11132_vm1, %v11131_v8 }
0x4e23   :  { %10090 = vmatprep.subr.bf16.mxu0 %v11138_v27 }
0x4e25   :  { %9752 = vmatmul.mubr.msk.f32.vlgmr.msra.gmra.mrb[96].mxu0 %vm682_vm2, %v7085_v12 }
0x4e26   :  { %10092 = vmatpush3.bf16.msra.mxu0 %v10085_v43  ;;  %9763 = vmatprep.mubr.msk.f32.mxu0 %vm11132_vm1, %v11131_v8 }
0x4e27   :  { %9771 = vmatprep.subr.mxu0 %v11131_v8 }
0x4ef4   :  { %v7588_v3 = vpop.f32.mrb[94].mxu0 }
0x4ef5   :  { %v9741_v10 = vpop.f32.mrb[95].mxu0  ;;  %9747 = vmatmul.mubr.msk.f32.vlgmr.msra.gmra.mrb[62].mxu1 %vm682_vm2, %v7588_v3 }
0x4ef6   :  { %9756 = vmatprep.mubr.msk.f32.mxu1 %vm11132_vm1, %v11131_v8 }
0x4ef8   :  { %v7738_v13 = vpop.f32.mrb[96].mxu0 }
0x4ef9   :  { %v7742_v14 = vmul.f32 0.25, %v7738_v13  ;;  %v9753_v17 = vpop.f32.mrb[97].mxu0 }
0x4efb   :  { %v7743_v18 = vsel %vm758_vm3, %v7742_v14, -inf }
0x4efc   :  { %7744 = vmax.xlane.f32.xlu1 %v7743_v18 }
0x4f89   :  { %v7745_v19 = vpop.xlane.xlu1 %7744 }
0x4f8a   :  { %v7746_v20 = vsub.f32 %v7742_v14, %v7745_v19 }
0x4f8c   :  { %v7747_v1 = vmul.f32 1.442695, %v7746_v20 }
0x4f8e   :  { %10393 = vpow2.f32 %v7747_v1 }
0x4f98   :  { %v10394_v22 = vpop.eup %10393 }
0x4f99   :  { %v7749_v24 = vsel %vm758_vm3, %v10394_v22, 0.0 }
0x4f9a   :  { %7750 = vadd.xlane.f32.xlu1 %v7749_v24  ;;  %v8284_v24 = vld [vmem:[%s12579_s21] sm:$0xff] }
0x4fab   :  { %7754 = vrot.lane.b32.xlu1 %v12339_v26, %s11134_s7  ;;  %s12577_s7 = sld [smem:[#allocation87_spill]] }
0x4fb1   :  { %v8819_v10 = vld [vmem:[%s12577_s7] ss:$0 sm:$0xff] }
0x4fc8   :  { %v7661_v38 = vpop.f32.mrb[62].mxu1 }
0x4fc9   :  { %v7665_v30 = vadd.f32 %v7661_v38, %v7425_v28  ;;  %v9748_v31 = vpop.f32.mrb[63].mxu1  ;;  %v8286_v28 = vld [vmem:[%s12579_s21 + $0x10] sm:$0xff] }
0x4fcb   :  { %v8144_v41 = vadd.f32 %v7665_v30, %v12284_v62  ;;  %v8287_v30 = vld [vmem:[%s12579_s21 + $0x18] sm:$0xff] }
0x4fcc   :  { %v10108_v31 = vpack.c.bf16 %v8287_v30, %v8286_v28  ;;  %v8825_v28 = vld [vmem:[#allocation5] ss:$0 sm:$0xff] }
0x4fcd   :  { %v8148_v36 = vsel %vm597_vm0, %v8144_v41, 0.0 }
0x5027   :  { %v7751_v32 = vpop.xlane.xlu1 %7750 }
0x5028   :  { %10395 = vrcp.f32 %v7751_v32  ;;  %v8288_v32 = vld [vmem:[%s12579_s21 + $0x20] sm:$0xff] }
0x502b   :  { %v7755_v39 = vpop.permute.xlu1 %7754 }
0x502c   :  { %9755 = vmatpush3.msra.mxu1 %v7755_v39  ;;  %v8289_v39 = vld [vmem:[%s12579_s21 + $0x28] sm:$0xff] }
0x502d   :  { %9766 = vmatprep.subr.mxu1 %v11131_v8 }
0x5032   :  { %v10396_v16 = vpop.eup %10395 }
0x5033   :  { %v7753_v15 = vmul.f32 %v10396_v16, %v10394_v22  ;;  %v10112_v16 = vpack.c.bf16 %v8289_v39, %v8288_v32 }
0x5035   :  { %9757 = vmatmul.mubr.msk.f32.vlgmr.msra.gmra.mrb[64].mxu1 %vm758_vm3, %v7753_v15  ;;  %v8291_v15 = vld [vmem:[%s12579_s21 + $0x38] sm:$0xff] }
0x5036   :  { %9767 = vmatpush3.xpose.msk.msra.mxu1 %vm682_vm2, %v7907_v33  ;;  %9768 = vmatprep.mubr.msk.f32.mxu1 %vm11132_vm1, %v11131_v8  ;;  %v8290_v33 = vld [vmem:[%s12579_s21 + $0x30] sm:$0xff] }
0x5037   :  { %10093 = vmatprep.subr.bf16.mxu1 %v11138_v27 }
0x5039   :  { %9769 = vmatmul.mubr.msk.f32.vlgmr.msra.gmra.mrb[66].mxu1 %vm682_vm2, %v7905_v34  ;;  %v10116_v34 = vpack.c.bf16 %v8291_v15, %v8290_v33 }
0x503a   :  { %10095 = vmatpush3.bf16.msra.mxu1 %v10088_v59  ;;  %9780 = vmatprep.mubr.msk.f32.mxu1 %vm11132_vm1, %v11131_v8 }
0x5108   :  { %v7826_v60 = vpop.f32.mrb[64].mxu1 }
0x5109   :  { %v9758_v35 = vpop.f32.mrb[65].mxu1  ;;  %9764 = vmatmul.mubr.msk.f32.vlgmr.msra.gmra.mrb[98].mxu0 %vm682_vm2, %v7826_v60  ;;  %v8292_v60 = vld [vmem:[%s12579_s21 + $0x40] sm:$0xff] }
0x510a   :  { %9773 = vmatprep.mubr.msk.f32.mxu0 %vm11132_vm1, %v11131_v8  ;;  %v8293_v35 = vld [vmem:[%s12579_s21 + $0x48] sm:$0xff] }
0x510c   :  { %v7978_v55 = vpop.f32.mrb[66].mxu1 }
0x510d   :  { %v7982_v11 = vmul.f32 0.25, %v7978_v55  ;;  %v9770_v40 = vpop.f32.mrb[67].mxu1  ;;  %v10120_v55 = vpack.c.bf16 %v8293_v35, %v8292_v60 }
0x510e   :  { %v8295_v40 = vld [vmem:[%s12579_s21 + $0x58] sm:$0xff] }
0x510f   :  { %v7983_v27 = vsel %vm758_vm3, %v7982_v11, -inf }
0x5110   :  { %7984 = vmax.xlane.f32.xlu1 %v7983_v27  ;;  %v8296_v27 = vld [vmem:[%s12579_s21 + $0x60] sm:$0xff] }
0x5114   :  { %8149 = vadd.xlane.f32.xlu1 %v8148_v36  ;;  %v8297_v36 = vld [vmem:[%s12579_s21 + $0x68] sm:$0xff] }
0x519d   :  { %v7985_v5 = vpop.xlane.xlu1 %7984 }
0x519e   :  { %v7986_v37 = vsub.f32 %v7982_v11, %v7985_v5  ;;  %v8294_v11 = vld [vmem:[%s12579_s21 + $0x50] sm:$0xff]  ;;  %v10128_v5 = vpack.c.bf16 %v8297_v36, %v8296_v27 }
0x51a0   :  { %v7987_v42 = vmul.f32 1.442695, %v7986_v37 }
0x51a1   :  { %v8150_v47 = vpop.xlane.xlu1 %8149 }
0x51a2   :  { %10397 = vpow2.f32 %v7987_v42  ;;  %v8154_v48 = vmul.f32 0.03125, %v8150_v47 }
0x51a4   :  { %v8156_v9 = vsub.f32 %v8144_v41, %v8154_v48  ;;  %v10124_v41 = vpack.c.bf16 %v8295_v40, %v8294_v11 }
0x51ac   :  { %v10398_v43 = vpop.eup %10397 }
0x51ad   :  { %v7989_v44 = vsel %vm758_vm3, %v10398_v43, 0.0 }
0x51ae   :  { %7990 = vadd.xlane.f32.xlu0 %v7989_v44 }
0x51c4   :  { %7994 = vrot.lane.b32.xlu0 %v12339_v26, %s11135_s10  ;;  %v8158_v26 = vmul.f32 %v8156_v9, %v8156_v9  ;;  %s12578_s10 = sld [smem:[#allocation83_spill]] }
0x51c6   :  { %v8160_v12 = vsel %vm597_vm0, %v8158_v26, 0.0 }
0x51ca   :  { %v8190_v17 = vld [vmem:[%s12578_s10] sm:$0xff]  ;;  %v8191_v18 = vld [vmem:[%s12578_s10 + $0x8] sm:$0xff]  ;;  %v8192_v20 = vld [vmem:[%s12578_s10 + $0x10] sm:$0xff] }
0x51cb   :  { %v10096_v19 = vpack.c.bf16 %v8191_v18, %v8190_v17  ;;  %v8193_v1 = vld [vmem:[%s12578_s10 + $0x18] sm:$0xff] }
0x51cc   :  { %v10100_v22 = vpack.c.bf16 %v8193_v1, %v8192_v20 }
0x51dc   :  { %v7899_v8 = vpop.f32.mrb[98].mxu0 }
0x51dd   :  { %v9765_v2 = vpop.f32.mrb[99].mxu0  ;;  %v7903_v49 = vadd.f32 %v8805_v25, %v7899_v8  ;;  %v8285_v25 = vld [vmem:[%s12579_s21 + $0x8] sm:$0xff] }
0x51de   :  { %v10104_v38 = vpack.c.bf16 %v8285_v25, %v8284_v24  ;;  %v8824_v24 = vld [vmem:[#allocation7] ss:$0 sm:$0xff] }
0x51e0   :  { %10105 = vmatprep.subr.bf16.mxu1 %v10104_v38 }
0x523b   :  { %v7991_v62 = vpop.xlane.xlu0 %7990 }
0x523c   :  { %10399 = vrcp.f32 %v7991_v62 }
0x523f   :  { %v7995_v54 = vpop.permute.xlu0 %7994 }
0x5240   :  { %9772 = vmatpush3.msra.mxu0 %v7995_v54  ;;  %v8298_v54 = vld [vmem:[%s12579_s21 + $0x70] sm:$0xff] }
0x5241   :  { %10097 = vmatprep.subr.bf16.mxu0 %v10096_v19 }
0x5246   :  { %v10400_v45 = vpop.eup %10399 }
0x5247   :  { %v7993_v46 = vmul.f32 %v10400_v45, %v10398_v43  ;;  %v8299_v45 = vld [vmem:[%s12579_s21 + $0x78] sm:$0xff] }
0x5249   :  { %9774 = vmatmul.mubr.msk.f32.vlgmr.msra.gmra.mrb[100].mxu0 %vm758_vm3, %v7993_v46  ;;  %v10132_v46 = vpack.c.bf16 %v8299_v45, %v8298_v54 }
0x524a   :  { %10099 = vmatpush3.bf16.msra.mxu0 %v10096_v19 }
0x524b   :  { %10101 = vmatprep.subr.bf16.mxu0 %v10100_v22 }
0x524e   :  { %10103 = vmatpush3.bf16.msra.mxu0 %v10100_v22 }
0x531c   :  { %v8066_v21 = vpop.f32.mrb[100].mxu0 }
0x531d   :  { %v9775_v7 = vpop.f32.mrb[101].mxu0  ;;  %9781 = vmatmul.mubr.msk.f32.vlgmr.msra.gmra.mrb[68].mxu1 %vm682_vm2, %v8066_v21  ;;  %v8820_v21 = vld [vmem:[%s12580_s13] ss:$0 sm:$0xff] }
0x531e   :  { %10107 = vmatpush3.bf16.msra.mxu1 %v10104_v38 }
0x531f   :  { %10109 = vmatprep.subr.bf16.mxu1 %v10108_v31 }
0x5322   :  { %10111 = vmatpush3.bf16.msra.mxu1 %v10108_v31 }
0x5323   :  { %10113 = vmatprep.subr.bf16.mxu1 %v10112_v16 }
0x5326   :  { %10115 = vmatpush3.bf16.msra.mxu1 %v10112_v16 }
0x5327   :  { %10117 = vmatprep.subr.bf16.mxu1 %v10116_v34 }
0x532a   :  { %10119 = vmatpush3.bf16.msra.mxu1 %v10116_v34 }
0x532b   :  { %10121 = vmatprep.subr.bf16.mxu1 %v10120_v55 }
0x532e   :  { %10123 = vmatpush3.bf16.msra.mxu1 %v10120_v55 }
0x532f   :  { %10125 = vmatprep.subr.bf16.mxu1 %v10124_v41 }
0x5332   :  { %10127 = vmatpush3.bf16.msra.mxu1 %v10124_v41 }
0x5333   :  { %10129 = vmatprep.subr.bf16.mxu1 %v10128_v5 }
0x5336   :  { %10131 = vmatpush3.bf16.msra.mxu1 %v10128_v5 }
0x5337   :  { %10133 = vmatprep.subr.bf16.mxu1 %v10132_v46 }
0x533a   :  { %10135 = vmatpush3.bf16.msra.mxu1 %v10132_v46 }
0x53f0   :  { %v8139_v52 = vpop.f32.mrb[68].mxu1 }
0x53f1   :  { %v8143_v50 = vadd.f32 %v8139_v52, %v7903_v49  ;;  %v9782_v6 = vpop.f32.mrb[69].mxu1 }
0x53f3   :  { %v8145_v51 = vadd.f32 %v8143_v50, %v12300_v29  ;;  %v8823_v50 = vld [vmem:[%s12581_s29] ss:$0 sm:$0xff] }
0x53f5   :  { %v8151_v53 = vsel %vm597_vm0, %v8145_v51, 0.0 }
0x53f6   :  { %8152 = vadd.xlane.f32.xlu1 %v8151_v53 }
0x53fa   :  { %8161 = vadd.xlane.f32.xlu1 %v8160_v12 }
0x5483   :  { %v8153_v56 = vpop.xlane.xlu1 %8152 }
0x5484   :  { %v8155_v58 = vmul.f32 0.03125, %v8153_v56 }
0x5486   :  { %v12390_v59 = vsub.f32 %v8145_v51, %v8155_v58 }
0x5487   :  { %v8162_v61 = vpop.xlane.xlu1 %8161 }
0x5488   :  { %v8166_v63 = vmul.f32 0.03125, %v8162_v61  ;;  %v8159_v0 = vmul.f32 %v12390_v59, %v12390_v59 }
0x548a   :  { %v8168_v29 = vadd.f32 1e-05, %v8166_v63  ;;  %v8163_v23 = vsel %vm597_vm0, %v8159_v0, 0.0 }
0x548b   :  { %8164 = vadd.xlane.f32.xlu1 %v8163_v23 }
0x548c   :  { %10401 = vrsqrt.f32 %v8168_v29 }
0x5496   :  { %v10402_v57 = vpop.eup %10401 }
0x5497   :  { %v8172_v3 = vmul.f32 %v10402_v57, %v8156_v9 }
0x5499   :  { %v8180_v13 = vmul.f32 %v8818_v4, %v8172_v3 }
0x549b   :  { %v12396_v14 = vadd.f32 %v8819_v10, %v8180_v13 }
0x549d   :  { %9791 = vmatprep.mubr.msk.f32.mxu0 %vm597_vm0, %v12396_v14 }
0x5518   :  { %v8165_v37 = vpop.xlane.xlu1 %8164 }
0x5519   :  { %v8167_v42 = vmul.f32 0.03125, %v8165_v37  ;;  %v8472_v37 = vld [vmem:[%s11475_s9] sm:$0xff] }
0x551b   :  { %v8169_v43 = vadd.f32 1e-05, %v8167_v42  ;;  %v8473_v42 = vld [vmem:[%s11475_s9 + $0x8] sm:$0xff] }
0x551d   :  { %10403 = vrsqrt.f32 %v8169_v43  ;;  %v10136_v43 = vpack.c.bf16 %v8473_v42, %v8472_v37 }
0x551f   :  { %10137 = vmatprep.subr.bf16.mxu0 %v10136_v43 }
0x5527   :  { %v10404_v44 = vpop.eup %10403 }
0x5528   :  { %v8173_v8 = vmul.f32 %v10404_v44, %v12390_v59  ;;  %v8474_v44 = vld [vmem:[%s11475_s9 + $0x10] sm:$0xff] }
0x552a   :  { %v8181_v2 = vmul.f32 %v8818_v4, %v8173_v8  ;;  %v8475_v8 = vld [vmem:[%s11475_s9 + $0x18] sm:$0xff]  ;;  %s11139_s9 = smov [#allocation43]  }
0x552b   :  { %s8571_s20 = sshll.u32 %s11139_s9, 4  ;;  %s8572_s20 = int_to_ptr.vmem [resolvable:$true] %s8571_s20 }
0x552c   :  { %v8189_v62 = vadd.f32 %v8819_v10, %v8181_v2  ;;  %v10140_v2 = vpack.c.bf16 %v8475_v8, %v8474_v44  ;;  %s10985_s30 = scalar_lea.vmem %s8572_s20, 256  ;;  %p10990_p13 = scmp.lt.s32.totalorder %s8572_s20, %s8572_s20 }
0x552d   :  { %p10986_p12 = scmp.ne.s32.totalorder %s8572_s20, %s10985_s30  ;;  %p10991_p0 = scmp.lt.s32.totalorder %s10985_s30, %s10985_s30 }
0x552e   :  { %9792 = vmatmul.mubr.msk.f32.vlgmr.msra.gmra.mrb[102].mxu0 %vm597_vm0, %v8189_v62 }
0x552f   :  { %10139 = vmatpush3.bf16.msra.mxu0 %v10136_v43  ;;  %p10992_p1 = por %p10991_p0, %p10990_p13 }
0x5530   :  { %10141 = vmatprep.subr.bf16.mxu0 %v10140_v2 }
0x5531   :  { %p10993_p2 = pnand %p10992_p1, %p10986_p12 }
0x5533   :  { %10143 = vmatpush3.bf16.msra.mxu0 %v10140_v2 }
0x5601   :  { %v9793_v7 = vpop.f32.mrb[102].mxu0 }
0x5602   :  { %v8279_v47 = vadd.f32 %v9793_v7, %v8820_v21  ;;  %v8273_v48 = vpop.f32.mrb[103].mxu0 }
0x5603   :  { %v8274_v49 = vadd.f32 %v8820_v21, %v8273_v48  ;;  %v8826_v48 = vld [vmem:[#allocation13] ss:$0 sm:$0xff] }
0x5604   :  { %v8283_v9 = vmax.f32 %v8279_v47, 0.0 }
0x5605   :  { %v8282_v52 = vmax.f32 %v8274_v49, 0.0 }
0x5607   :  { %9826 = vmatprep.mubr.f32.mxu1 %v8282_v52  ;;  %v8827_v52 = vld [vmem:[#allocation11] ss:$0 sm:$0xff] }
0x5608   :  { %9827 = vmatmul.mubr.f32.vlgmr.msra.gmra.mrb[70].mxu1 %v8283_v9 }
0x56db   :  { %v9828_v6 = vpop.f32.mrb[70].mxu1 }
0x56dc   :  { %v8379_v51 = vadd.f32 %v9828_v6, %v8823_v50  ;;  %v8373_v53 = vpop.f32.mrb[71].mxu1 }
0x56dd   :  { %v8374_v26 = vadd.f32 %v8823_v50, %v8373_v53 }
0x56de   :  { %v8383_v12 = vadd.f32 %v8379_v51, %v8189_v62 }
0x56df   :  { %v8382_v56 = vadd.f32 %v8374_v26, %v12396_v14 }
0x56e0   :  { %v8389_v58 = vsel %vm597_vm0, %v8383_v12, 0.0 }
0x56e1   :  { %8390 = vadd.xlane.f32.xlu0 %v8389_v58  ;;  %v8386_v59 = vsel %vm597_vm0, %v8382_v56, 0.0 }
0x56e2   :  { %8387 = vadd.xlane.f32.xlu1 %v8386_v59 }
0x576e   :  { %v8391_v61 = vpop.xlane.xlu0 %8390 }
0x576f   :  { %v8393_v63 = vmul.f32 0.03125, %v8391_v61  ;;  %v8388_v0 = vpop.xlane.xlu1 %8387 }
0x5770   :  { %v8392_v29 = vmul.f32 0.03125, %v8388_v0 }
0x5771   :  { %v8395_v23 = vsub.f32 %v8383_v12, %v8393_v63  ;;  %v8828_v12 = vld [vmem:[#allocation41] ss:$0 sm:$0xff] }
0x5772   :  { %v8394_v57 = vsub.f32 %v8382_v56, %v8392_v29 }
0x5773   :  { %v8397_v10 = vmul.f32 %v8395_v23, %v8395_v23 }
0x5774   :  { %v8396_v4 = vmul.f32 %v8394_v57, %v8394_v57 }
0x5775   :  { %v8401_v13 = vsel %vm597_vm0, %v8397_v10, 0.0 }
0x5776   :  { %v8398_v3 = vsel %vm597_vm0, %v8396_v4, 0.0 }
0x5777   :  { %8399 = vadd.xlane.f32.xlu1 %v8398_v3 }
0x577b   :  { %8402 = vadd.xlane.f32.xlu1 %v8401_v13 }
0x5804   :  { %v8400_v14 = vpop.xlane.xlu1 %8399 }
0x5805   :  { %v8404_v17 = vmul.f32 0.03125, %v8400_v14 }
0x5807   :  { %v8406_v18 = vadd.f32 1e-05, %v8404_v17 }
0x5808   :  { %v8403_v19 = vpop.xlane.xlu1 %8402 }
0x5809   :  { %10405 = vrsqrt.f32 %v8406_v18  ;;  %v8405_v20 = vmul.f32 0.03125, %v8403_v19 }
0x580b   :  { %v8407_v1 = vadd.f32 1e-05, %v8405_v20 }
0x580d   :  { %10407 = vrsqrt.f32 %v8407_v1 }
0x5813   :  { %v10406_v22 = vpop.eup %10405 }
0x5814   :  { %v8410_v25 = vmul.f32 %v10406_v22, %v8394_v57 }
0x5816   :  { %v8418_v38 = vmul.f32 %v8824_v24, %v8410_v25 }
0x5817   :  { %v10408_v30 = vpop.eup %10407 }
0x5818   :  { %v8426_v31 = vadd.f32 %v8825_v28, %v8418_v38  ;;  %v8411_v32 = vmul.f32 %v10408_v30, %v8395_v23 }
0x581a   :  { %v8430_v39 = vsel %vm597_vm0, %v8426_v31, 0.0  ;;  %v8419_v16 = vmul.f32 %v8824_v24, %v8411_v32 }
0x581b   :  { %8431 = vadd.xlane.f32.xlu1 %v8430_v39 }
0x581c   :  { %v8427_v33 = vadd.f32 %v8825_v28, %v8419_v16 }
0x581e   :  { %v8433_v15 = vsel %vm597_vm0, %v8427_v33, 0.0 }
0x581f   :  { %8434 = vadd.xlane.f32.xlu1 %v8433_v15 }
0x58a8   :  { %v8432_v34 = vpop.xlane.xlu1 %8431 }
0x58a9   :  { %v8436_v60 = vmul.f32 0.03125, %v8432_v34 }
0x58ab   :  { %v8438_v35 = vsub.f32 %v8426_v31, %v8436_v60 }
0x58ac   :  { %v8435_v55 = vpop.xlane.xlu1 %8434 }
0x58ad   :  { %v8437_v11 = vmul.f32 0.03125, %v8435_v55  ;;  %v8440_v40 = vmul.f32 %v8438_v35, %v8438_v35 }
0x58af   :  { %v8439_v41 = vsub.f32 %v8427_v33, %v8437_v11  ;;  %v8442_v27 = vsel %vm597_vm0, %v8440_v40, 0.0 }
0x58b0   :  { %8443 = vadd.xlane.f32.xlu1 %v8442_v27 }
0x58b1   :  { %v8441_v36 = vmul.f32 %v8439_v41, %v8439_v41 }
0x58b3   :  { %v8445_v5 = vsel %vm597_vm0, %v8441_v36, 0.0 }
0x58b4   :  { %8446 = vadd.xlane.f32.xlu1 %v8445_v5 }
0x593d   :  { %v8444_v62 = vpop.xlane.xlu1 %8443 }
0x593e   :  { %v8448_v54 = vmul.f32 0.03125, %v8444_v62 }
0x5940   :  { %v8450_v45 = vadd.f32 1e-05, %v8448_v54 }
0x5941   :  { %v8447_v46 = vpop.xlane.xlu1 %8446 }
0x5942   :  { %10409 = vrsqrt.f32 %v8450_v45  ;;  %v8449_v21 = vmul.f32 0.03125, %v8447_v46 }
0x5944   :  { %v8451_v7 = vadd.f32 1e-05, %v8449_v21 }
0x5946   :  { %10411 = vrsqrt.f32 %v8451_v7 }
0x594c   :  { %v10410_v47 = vpop.eup %10409 }
0x594d   :  { %v8454_v49 = vmul.f32 %v10410_v47, %v8438_v35 }
0x594f   :  { %v8462_v9 = vmul.f32 %v8826_v48, %v8454_v49 }
0x5950   :  { %v10412_v50 = vpop.eup %10411 }
0x5951   :  { %v8455_v6 = vmul.f32 %v10412_v50, %v8439_v41  ;;  %v8470_v51 = vadd.f32 %v8827_v52, %v8462_v9 }
0x5953   :  { %v8463_v53 = vmul.f32 %v8826_v48, %v8455_v6  ;;  %9837 = vmatprep.mubr.msk.f32.mxu0 %vm597_vm0, %v8470_v51 }
0x5955   :  { %v8471_v26 = vadd.f32 %v8827_v52, %v8463_v53 }
0x5957   :  { %9838 = vmatmul.mubr.msk.f32.vlgmr.msra.gmra.mrb[104].mxu0 %vm597_vm0, %v8471_v26 }
0x5a2a   :  { %v9839_v56 = vpop.f32.mrb[104].mxu0 }
0x5a2b   :  { %v8561_v58 = vadd.f32 %v9839_v56, %v8828_v12  ;;  %v8555_v59 = vpop.f32.mrb[105].mxu0 }
0x5a2c   :  { %v8556_v61 = vadd.f32 %v8828_v12, %v8555_v59 }
0x5a2d   :  { %8565 = vst.msk [vmem:[#allocation43 + $0x8] sm:$0xff] %vm682_vm2, %v8561_v58 }
0x5a2e   :  { %8564 = vst.msk [vmem:[#allocation43] sm:$0xff] %vm682_vm2, %v8556_v61 }
0x5a2f   :  { %10996 = shalt.err (!%p10993_p2)
}
0x5a30   :  { %s10997_s23 = scalar_lea.hbm %s11490_s19, 256 }
0x5a31   :  { %p10998_p3 = scmp.ne.s32.totalorder %s11490_s19, %s10997_s23  ;;  %p11001_p4 = scmp.lt.u32.totalorder %s10997_s23, %s11490_s19 }
0x5a33   :  { %p11003_p5 = pnand %p11001_p4, %p10998_p3 }
0x5a35   :  { %11006 = shalt.err (!%p11003_p5)
}
0x5a36   :  { %s11140_s12 = smov 128   ;;  %s11141_s6 = smov 8  }
0x5a37   :  { %8577 = dma.vmem_to_hbm [thread:$0]  %s8572_s20, 256, %s11490_s19, [#allocation4], %s11140_s12, %s11140_s12, %s11141_s6  }
0x5a38   :  { %11035 = dma.done.wait [#allocation4], 256  }
0x5a39   :  { %11036 = vsyncadd [#allocation4], 4294967040 }
0x5a3a   :  { %8581 = vsyncpa [#allocation3], 1 }
0x5a3b   :  { %8582 = vsyncpa [#allocation6], 1 }
0x5a3c   :  { %8583 = vsyncpa [#allocation9], 1 }
0x5a3d   :  { %8584 = vsyncpa [#allocation12], 1 }
0x5a3e   :  { %8585 = vsyncpa [#allocation15], 1 }
0x5a3f   :  { %8586 = vsyncpa [#allocation18], 1 }
0x5a40   :  { %8587 = vsyncpa [#allocation21], 1 }
0x5a41   :  { %8588 = vsyncpa [#allocation24], 1 }
0x5a42   :  { %8589 = vsyncpa [#allocation27], 1 }
0x5a43   :  { %8590 = vsyncpa [#allocation30], 1 }
0x5a44   :  { %8591 = vsyncpa [#allocation33], 1 }
0x5a45   :  { %8592 = vsyncpa [#allocation36], 1 }
0x5a46   :  { %8593 = vsyncpa [#allocation39], 1 }
0x5a47   :  { %8594 = vsyncpa [#allocation42], 1 }
0x5a48   :  { %8595 = vsyncpa [#allocation4], 1 }

</bundles_post_ra>
